<compile_context>
chip_gen: v6e
topology: v6e:2x2x1
jax: 0.10.0
libtpu: 0.0.40
codegen_flags: <defaults>
</compile_context>

<pallas_src>
import functools

import jax
import jax.numpy as jnp
from jax import lax
from jax.experimental import pallas as pl
from jax.experimental.pallas import tpu as pltpu

_K = 10  # conv kernel width


def _shapes(n_classes):
    L1 = n_classes - (_K - 1)      # conv1 output length
    P1 = L1 // 2                   # after MaxPool1d(2)
    L2 = P1 - (_K - 1)
    P2 = L2 // 2
    L3 = P2 - (_K - 1)
    P3 = L3 // 2
    # fc1 expects (n_classes - 64) * 4 = 32 * P3 features
    assert 32 * P3 == (n_classes - 64) * 4, "n_classes incompatible with fc1 shape algebra"
    assert n_classes % 8 == 0, "stacked-stride layout needs n_classes % 8 == 0"
    return L1, P1, L2, P2, L3, P3


def _im2col(v, rows, k):
    """v: (rows_in, C) value.  Returns (rows, C*k), column order tap-major (k*C + c)."""
    return jnp.concatenate([v[i:i + rows, :] for i in range(k)], axis=1)


def extremnet_kernel(dx_ref, w1_ref, b1_ref, w2_ref, b2_ref, w3_ref, b3_ref,
                     fc1w_ref, fc1b_ref, gamma_ref, beta_ref, fc2w_ref, fc2b_ref,
                     out_ref, s1, s2, s3, *, B, N):
    L1, P1, L2, P2, L3, P3 = _shapes(N)
    S0, S1p, S2p = N, N // 2, N // 4          # per-sample row strides per stage

    dx = dx_ref[...]                          # (B*N, 1) stacked differenced input

    # ---- conv1 + relu + pool (all samples at once, taps fused into one matmul) ----
    rows1 = (B - 1) * S0 + L1
    c1 = jnp.dot(_im2col(dx, rows1, _K), w1_ref[...],
                 preferred_element_type=jnp.float32) + b1_ref[...]
    c1 = jnp.maximum(c1, 0.0)
    # neighbour max in registers, one store, then one stride-2 load
    s1[...] = jnp.maximum(c1[0:rows1 - 1, :], c1[1:rows1, :])
    p1 = s1[pl.ds(0, (B - 1) * S1p + P1, 2), :]        # (., 4) pooled, stride S1p/sample

    # ---- conv2 ----
    rows2 = (B - 1) * S1p + L2
    c2 = jnp.dot(_im2col(p1, rows2, _K), w2_ref[...],
                 preferred_element_type=jnp.float32) + b2_ref[...]
    c2 = jnp.maximum(c2, 0.0)
    s2[...] = jnp.maximum(c2[0:rows2 - 1, :], c2[1:rows2, :])
    p2 = s2[pl.ds(0, (B - 1) * S2p + P2, 2), :]        # (., 16) pooled, stride S2p/sample

    # ---- conv3 ----
    rows3 = (B - 1) * S2p + L3
    c3 = jnp.dot(_im2col(p2, rows3, _K), w3_ref[...],
                 preferred_element_type=jnp.float32) + b3_ref[...]
    c3 = jnp.maximum(c3, 0.0)
    s3[...] = jnp.maximum(c3[0:rows3 - 1, :], c3[1:rows3, :])

    # ---- gather pooled conv3 into (B, 32*P3) and run fc1 as one matmul ----
    # s3 row b*S2p + 2*t is sample b's pooled position t; a stride-S2p read picks
    # one pooled position across the whole batch.  Column order t*32 + c matches
    # the pre-permuted fc1 weight.
    hin = jnp.concatenate(
        [s3[pl.ds(2 * t, B, S2p), :] for t in range(P3)], axis=1)     # (B, 32*P3)
    h = jnp.dot(hin, fc1w_ref[...],
                preferred_element_type=jnp.float32) + fc1b_ref[...]   # (B, 128) lane-dense
    h = jnp.maximum(h, 0.0)

    # BatchNorm1d, train mode: batch statistics, biased variance, eps = 1e-5.
    # TODO(synk): running-mean/var state updates are training bookkeeping and are
    # omitted (they do not affect the returned tensor).
    mean = jnp.mean(h, axis=0, keepdims=True)
    var = jnp.mean((h - mean) * (h - mean), axis=0, keepdims=True)
    hn = (h - mean) * lax.rsqrt(var + 1e-5)
    hn = hn * gamma_ref[...] + beta_ref[...]

    out_ref[...] = jnp.dot(hn, fc2w_ref[...],
                           preferred_element_type=jnp.float32) + fc2b_ref[...]


def prepare_params(params, n_classes):
    """One-time preprocessing of torch-layout params into kernel layout (call at init)."""
    N = n_classes
    _, _, _, _, _, P3 = _shapes(N)
    NP = ((N + 127) // 128) * 128               # lane-dense padded feature width
    f32 = jnp.float32

    def pad_cols(a):
        return jnp.pad(a, ((0, 0), (0, NP - a.shape[1])))

    w1 = params["conv1_w"].astype(f32)          # (4, 1, 10)   (Cout, Cin, K)
    w2 = params["conv2_w"].astype(f32)          # (16, 4, 10)
    w3 = params["conv3_w"].astype(f32)          # (32, 16, 10)
    fc1w = params["fc1_w"].astype(f32)          # (N, 32*P3)   (out, in)
    fc2w = params["fc2_w"].astype(f32)          # (N, N)

    return {
        "w1": jnp.transpose(w1[:, 0, :], (1, 0)),                          # (10, 4)
        "b1": params["conv1_b"].astype(f32).reshape(1, -1),
        "w2": jnp.transpose(w2, (2, 1, 0)).reshape(_K * 4, 16),            # (40, 16)
        "b2": params["conv2_b"].astype(f32).reshape(1, -1),
        "w3": jnp.transpose(w3, (2, 1, 0)).reshape(_K * 16, 32),           # (160, 32)
        "b3": params["conv3_b"].astype(f32).reshape(1, -1),
        # fold torch's channel-major flatten (c*P3 + t) into row order (t*32 + c),
        # zero-pad output columns to NP lanes
        "fc1w": pad_cols(jnp.transpose(fc1w.reshape(N, 32, P3), (2, 1, 0))
                         .reshape(32 * P3, N)),                            # (32*P3, NP)
        "fc1b": pad_cols(params["fc1_b"].astype(f32).reshape(1, -1)),
        "gamma": pad_cols(params["bn_gamma"].astype(f32).reshape(1, -1)),
        "beta": pad_cols(params["bn_beta"].astype(f32).reshape(1, -1)),
        "fc2w": jnp.pad(fc2w.T, ((0, NP - N), (0, NP - N))),               # (NP, NP)
        "fc2b": pad_cols(params["fc2_b"].astype(f32).reshape(1, -1)),
    }


@jax.jit
def extremnet_forward(x, prepped):
    """x: (B, n_classes) float32 -> (B, n_classes) float32."""
    B, N = x.shape
    L1, P1, L2, P2, L3, P3 = _shapes(N)
    NP = prepped["fc2w"].shape[0]

    # discrete difference (first sample kept), hoisted to XLA; stacked (B*N, 1) layout
    xf = x.astype(jnp.float32)
    dx = (xf - jnp.pad(xf, ((0, 0), (1, 0)))[:, :-1]).reshape(B * N, 1)

    rows1 = (B - 1) * N + L1
    rows2 = (B - 1) * (N // 2) + L2
    rows3 = (B - 1) * (N // 4) + L3

    args = (dx, prepped["w1"], prepped["b1"], prepped["w2"], prepped["b2"],
            prepped["w3"], prepped["b3"], prepped["fc1w"], prepped["fc1b"],
            prepped["gamma"], prepped["beta"], prepped["fc2w"], prepped["fc2b"])

    vmem = pltpu.MemorySpace.VMEM
    out = pl.pallas_call(
        functools.partial(extremnet_kernel, B=B, N=N),
        out_shape=jax.ShapeDtypeStruct((B, NP), jnp.float32),
        in_specs=[pl.BlockSpec(memory_space=vmem) for _ in args],
        out_specs=pl.BlockSpec(memory_space=vmem),
        scratch_shapes=[
            pltpu.VMEM((rows1 - 1, 4), jnp.float32),    # conv1 relu + neighbour-max
            pltpu.VMEM((rows2 - 1, 16), jnp.float32),   # conv2
            pltpu.VMEM((rows3 - 1, 32), jnp.float32),   # conv3
        ],
    )(*args)
    return out[:, :N]


def init_params(key, n_classes):
    ks = jax.random.split(key, 10)

    def u(k, shape, scale):
        return jax.random.uniform(k, shape, jnp.float32, -scale, scale)

    F = (n_classes - 64) * 4
    return {
        "conv1_w": u(ks[0], (4, 1, 10), 0.30),
        "conv1_b": u(ks[1], (4,), 0.30),
        "conv2_w": u(ks[2], (16, 4, 10), 0.15),
        "conv2_b": u(ks[3], (16,), 0.15),
        "conv3_w": u(ks[4], (32, 16, 10), 0.08),
        "conv3_b": u(ks[5], (32,), 0.08),
        "fc1_w": u(ks[6], (n_classes, F), 0.08),
        "fc1_b": u(ks[7], (n_classes,), 0.08),
        "fc2_w": u(ks[8], (n_classes, n_classes), 0.10),
        "fc2_b": u(ks[9], (n_classes,), 0.10),
        "bn_gamma": jnp.ones((n_classes,), jnp.float32),   # PyTorch BN default init
        "bn_beta": jnp.zeros((n_classes,), jnp.float32),
    }


def extremnet_ref(x, p):
    """Pure-JAX reference with torch-layout params (for correctness checking)."""
    B, N = x.shape
    dx = x - jnp.pad(x, ((0, 0), (1, 0)))[:, :-1]
    h = dx[:, None, :]                                     # (B, 1, N)

    def conv1d(h, w, b):                                   # w: (Cout, Cin, K)
        K = w.shape[-1]
        L = h.shape[-1] - K + 1
        out = jnp.zeros((h.shape[0], w.shape[0], L), jnp.float32)
        for k in range(K):
            out = out + jnp.einsum("bcl,oc->bol", h[:, :, k:k + L], w[:, :, k])
        return out + b[None, :, None]

    def pool(h):
        P = h.shape[-1] // 2
        return jnp.maximum(h[:, :, 0:2 * P:2], h[:, :, 1:2 * P:2])

    h = pool(jax.nn.relu(conv1d(h, p["conv1_w"], p["conv1_b"])))
    h = pool(jax.nn.relu(conv1d(h, p["conv2_w"], p["conv2_b"])))
    h = pool(jax.nn.relu(conv1d(h, p["conv3_w"], p["conv3_b"])))
    h = h.reshape(B, (N - 64) * 4)
    h = jax.nn.relu(h @ p["fc1_w"].T + p["fc1_b"])
    mean = h.mean(0, keepdims=True)
    var = ((h - mean) ** 2).mean(0, keepdims=True)
    h = (h - mean) / jnp.sqrt(var + 1e-5) * p["bn_gamma"] + p["bn_beta"]
    return h @ p["fc2_w"].T + p["fc2_b"]


if __name__ == "__main__":
    # smallest n_classes where the module's own shape algebra closes: 96
    n_classes = 96
    batch = 4

    key = jax.random.PRNGKey(0)
    kx, kp = jax.random.split(key)
    x = jax.random.normal(kx, (batch, n_classes), jnp.float32)
    params = init_params(kp, n_classes)
    prepped = prepare_params(params, n_classes)   # one-time prep, not in per-call path

    out = jax.block_until_ready(extremnet_forward(x, prepped))
    assert out.shape == (batch, n_classes)
    assert bool(jnp.all(jnp.isfinite(out)))

    ref = extremnet_ref(x, params)
    max_err = float(jnp.max(jnp.abs(out - ref)))
    assert max_err < 5e-2, f"max abs error vs reference: {max_err}"

    print("KERNEL_OK")
</pallas_src>

<mosaic_0001>
module attributes {stable_mosaic.version = 11 : i64} {
  func.func @extremnet_kernel(%arg0: memref<384x1xf32, #tpu.memory_space<vmem>>, %arg1: memref<10x4xf32, #tpu.memory_space<vmem>>, %arg2: memref<1x4xf32, #tpu.memory_space<vmem>>, %arg3: memref<40x16xf32, #tpu.memory_space<vmem>>, %arg4: memref<1x16xf32, #tpu.memory_space<vmem>>, %arg5: memref<160x32xf32, #tpu.memory_space<vmem>>, %arg6: memref<1x32xf32, #tpu.memory_space<vmem>>, %arg7: memref<128x128xf32, #tpu.memory_space<vmem>>, %arg8: memref<1x128xf32, #tpu.memory_space<vmem>>, %arg9: memref<1x128xf32, #tpu.memory_space<vmem>>, %arg10: memref<1x128xf32, #tpu.memory_space<vmem>>, %arg11: memref<128x128xf32, #tpu.memory_space<vmem>>, %arg12: memref<1x128xf32, #tpu.memory_space<vmem>>, %arg13: memref<4x128xf32, #tpu.memory_space<vmem>>, %arg14: memref<374x4xf32, #tpu.memory_space<vmem>>, %arg15: memref<177x16xf32, #tpu.memory_space<vmem>>, %arg16: memref<79x32xf32, #tpu.memory_space<vmem>>) attributes {dimension_semantics = [], scalar_prefetch = 0 : i64, scratch_operands = 3 : i64, tpu.core_type = #tpu.core_type<tc>} {
    %c0 = arith.constant 0 : index
    %c0_0 = arith.constant 0 : index
    %0 = vector.load %arg0[%c0, %c0_0] : memref<384x1xf32, #tpu.memory_space<vmem>>, vector<384x1xf32>
    %1 = vector.extract_strided_slice %0 {offsets = [0, 0], sizes = [375, 1], strides = [1, 1]} : vector<384x1xf32> to vector<375x1xf32>
    %2 = vector.extract_strided_slice %0 {offsets = [1, 0], sizes = [375, 1], strides = [1, 1]} : vector<384x1xf32> to vector<375x1xf32>
    %3 = vector.extract_strided_slice %0 {offsets = [2, 0], sizes = [375, 1], strides = [1, 1]} : vector<384x1xf32> to vector<375x1xf32>
    %4 = vector.extract_strided_slice %0 {offsets = [3, 0], sizes = [375, 1], strides = [1, 1]} : vector<384x1xf32> to vector<375x1xf32>
    %5 = vector.extract_strided_slice %0 {offsets = [4, 0], sizes = [375, 1], strides = [1, 1]} : vector<384x1xf32> to vector<375x1xf32>
    %6 = vector.extract_strided_slice %0 {offsets = [5, 0], sizes = [375, 1], strides = [1, 1]} : vector<384x1xf32> to vector<375x1xf32>
    %7 = vector.extract_strided_slice %0 {offsets = [6, 0], sizes = [375, 1], strides = [1, 1]} : vector<384x1xf32> to vector<375x1xf32>
    %8 = vector.extract_strided_slice %0 {offsets = [7, 0], sizes = [375, 1], strides = [1, 1]} : vector<384x1xf32> to vector<375x1xf32>
    %9 = vector.extract_strided_slice %0 {offsets = [8, 0], sizes = [375, 1], strides = [1, 1]} : vector<384x1xf32> to vector<375x1xf32>
    %10 = vector.extract_strided_slice %0 {offsets = [9, 0], sizes = [375, 1], strides = [1, 1]} : vector<384x1xf32> to vector<375x1xf32>
    %11 = tpu.concatenate %1, %2, %3, %4, %5, %6, %7, %8, %9, %10 in 1 : vector<375x1xf32>, vector<375x1xf32>, vector<375x1xf32>, vector<375x1xf32>, vector<375x1xf32>, vector<375x1xf32>, vector<375x1xf32>, vector<375x1xf32>, vector<375x1xf32>, vector<375x1xf32> -> vector<375x10xf32>
    %c0_1 = arith.constant 0 : index
    %c0_2 = arith.constant 0 : index
    %12 = vector.load %arg1[%c0_1, %c0_2] : memref<10x4xf32, #tpu.memory_space<vmem>>, vector<10x4xf32>
    %cst = arith.constant dense<0.000000e+00> : vector<375x4xf32>
    %13 = tpu.matmul %11, %12, %cst {dimension_numbers = #tpu.dot_dimension_numbers<[1], [0], [0], [1], [0, 0, 1, 1], [], []>} : vector<375x10xf32>, vector<10x4xf32>, vector<375x4xf32> -> vector<375x4xf32>
    %c0_3 = arith.constant 0 : index
    %c0_4 = arith.constant 0 : index
    %14 = vector.load %arg2[%c0_3, %c0_4] : memref<1x4xf32, #tpu.memory_space<vmem>>, vector<1x4xf32>
    %15 = vector.broadcast %14 : vector<1x4xf32> to vector<375x4xf32>
    %16 = arith.addf %13, %15 : vector<375x4xf32>
    %cst_5 = arith.constant 0.000000e+00 : f32
    %17 = vector.broadcast %cst_5 : f32 to vector<375x4xf32>
    %18 = arith.maximumf %16, %17 : vector<375x4xf32>
    %19 = vector.extract_strided_slice %18 {offsets = [0, 0], sizes = [374, 4], strides = [1, 1]} : vector<375x4xf32> to vector<374x4xf32>
    %20 = vector.extract_strided_slice %18 {offsets = [1, 0], sizes = [374, 4], strides = [1, 1]} : vector<375x4xf32> to vector<374x4xf32>
    %21 = arith.maximumf %19, %20 : vector<374x4xf32>
    %c0_6 = arith.constant 0 : index
    %c0_7 = arith.constant 0 : index
    %22 = vector.load %arg14[%c0_6, %c0_7] : memref<374x4xf32, #tpu.memory_space<vmem>>, vector<374x4xf32>
    tpu.vector_store %arg14[%c0_6, %c0_7], %21 {strides = array<i32>} : memref<374x4xf32, #tpu.memory_space<vmem>>, vector<374x4xf32>,
    %c0_8 = arith.constant 0 : index
    %c0_9 = arith.constant 0 : index
    %23 = tpu.strided_load %arg14[%c0_8, %c0_9] {strides = array<i32: 2, 1>} : memref<374x4xf32, #tpu.memory_space<vmem>>, vector<187x4xf32>
    %24 = vector.extract_strided_slice %23 {offsets = [0, 0], sizes = [178, 4], strides = [1, 1]} : vector<187x4xf32> to vector<178x4xf32>
    %25 = vector.extract_strided_slice %23 {offsets = [1, 0], sizes = [178, 4], strides = [1, 1]} : vector<187x4xf32> to vector<178x4xf32>
    %26 = vector.extract_strided_slice %23 {offsets = [2, 0], sizes = [178, 4], strides = [1, 1]} : vector<187x4xf32> to vector<178x4xf32>
    %27 = vector.extract_strided_slice %23 {offsets = [3, 0], sizes = [178, 4], strides = [1, 1]} : vector<187x4xf32> to vector<178x4xf32>
    %28 = vector.extract_strided_slice %23 {offsets = [4, 0], sizes = [178, 4], strides = [1, 1]} : vector<187x4xf32> to vector<178x4xf32>
    %29 = vector.extract_strided_slice %23 {offsets = [5, 0], sizes = [178, 4], strides = [1, 1]} : vector<187x4xf32> to vector<178x4xf32>
    %30 = vector.extract_strided_slice %23 {offsets = [6, 0], sizes = [178, 4], strides = [1, 1]} : vector<187x4xf32> to vector<178x4xf32>
    %31 = vector.extract_strided_slice %23 {offsets = [7, 0], sizes = [178, 4], strides = [1, 1]} : vector<187x4xf32> to vector<178x4xf32>
    %32 = vector.extract_strided_slice %23 {offsets = [8, 0], sizes = [178, 4], strides = [1, 1]} : vector<187x4xf32> to vector<178x4xf32>
    %33 = vector.extract_strided_slice %23 {offsets = [9, 0], sizes = [178, 4], strides = [1, 1]} : vector<187x4xf32> to vector<178x4xf32>
    %34 = tpu.concatenate %24, %25, %26, %27, %28, %29, %30, %31, %32, %33 in 1 : vector<178x4xf32>, vector<178x4xf32>, vector<178x4xf32>, vector<178x4xf32>, vector<178x4xf32>, vector<178x4xf32>, vector<178x4xf32>, vector<178x4xf32>, vector<178x4xf32>, vector<178x4xf32> -> vector<178x40xf32>
    %c0_10 = arith.constant 0 : index
    %c0_11 = arith.constant 0 : index
    %35 = vector.load %arg3[%c0_10, %c0_11] : memref<40x16xf32, #tpu.memory_space<vmem>>, vector<40x16xf32>
    %cst_12 = arith.constant dense<0.000000e+00> : vector<178x16xf32>
    %36 = tpu.matmul %34, %35, %cst_12 {dimension_numbers = #tpu.dot_dimension_numbers<[1], [0], [0], [1], [0, 0, 1, 1], [], []>} : vector<178x40xf32>, vector<40x16xf32>, vector<178x16xf32> -> vector<178x16xf32>
    %c0_13 = arith.constant 0 : index
    %c0_14 = arith.constant 0 : index
    %37 = vector.load %arg4[%c0_13, %c0_14] : memref<1x16xf32, #tpu.memory_space<vmem>>, vector<1x16xf32>
    %38 = vector.broadcast %37 : vector<1x16xf32> to vector<178x16xf32>
    %39 = arith.addf %36, %38 : vector<178x16xf32>
    %cst_15 = arith.constant 0.000000e+00 : f32
    %40 = vector.broadcast %cst_15 : f32 to vector<178x16xf32>
    %41 = arith.maximumf %39, %40 : vector<178x16xf32>
    %42 = vector.extract_strided_slice %41 {offsets = [0, 0], sizes = [177, 16], strides = [1, 1]} : vector<178x16xf32> to vector<177x16xf32>
    %43 = vector.extract_strided_slice %41 {offsets = [1, 0], sizes = [177, 16], strides = [1, 1]} : vector<178x16xf32> to vector<177x16xf32>
    %44 = arith.maximumf %42, %43 : vector<177x16xf32>
    %c0_16 = arith.constant 0 : index
    %c0_17 = arith.constant 0 : index
    %45 = vector.load %arg15[%c0_16, %c0_17] : memref<177x16xf32, #tpu.memory_space<vmem>>, vector<177x16xf32>
    tpu.vector_store %arg15[%c0_16, %c0_17], %44 {strides = array<i32>} : memref<177x16xf32, #tpu.memory_space<vmem>>, vector<177x16xf32>,
    %c0_18 = arith.constant 0 : index
    %c0_19 = arith.constant 0 : index
    %46 = tpu.strided_load %arg15[%c0_18, %c0_19] {strides = array<i32: 2, 1>} : memref<177x16xf32, #tpu.memory_space<vmem>>, vector<89x16xf32>
    %47 = vector.extract_strided_slice %46 {offsets = [0, 0], sizes = [80, 16], strides = [1, 1]} : vector<89x16xf32> to vector<80x16xf32>
    %48 = vector.extract_strided_slice %46 {offsets = [1, 0], sizes = [80, 16], strides = [1, 1]} : vector<89x16xf32> to vector<80x16xf32>
    %49 = vector.extract_strided_slice %46 {offsets = [2, 0], sizes = [80, 16], strides = [1, 1]} : vector<89x16xf32> to vector<80x16xf32>
    %50 = vector.extract_strided_slice %46 {offsets = [3, 0], sizes = [80, 16], strides = [1, 1]} : vector<89x16xf32> to vector<80x16xf32>
    %51 = vector.extract_strided_slice %46 {offsets = [4, 0], sizes = [80, 16], strides = [1, 1]} : vector<89x16xf32> to vector<80x16xf32>
    %52 = vector.extract_strided_slice %46 {offsets = [5, 0], sizes = [80, 16], strides = [1, 1]} : vector<89x16xf32> to vector<80x16xf32>
    %53 = vector.extract_strided_slice %46 {offsets = [6, 0], sizes = [80, 16], strides = [1, 1]} : vector<89x16xf32> to vector<80x16xf32>
    %54 = vector.extract_strided_slice %46 {offsets = [7, 0], sizes = [80, 16], strides = [1, 1]} : vector<89x16xf32> to vector<80x16xf32>
    %55 = vector.extract_strided_slice %46 {offsets = [8, 0], sizes = [80, 16], strides = [1, 1]} : vector<89x16xf32> to vector<80x16xf32>
    %56 = vector.extract_strided_slice %46 {offsets = [9, 0], sizes = [80, 16], strides = [1, 1]} : vector<89x16xf32> to vector<80x16xf32>
    %57 = tpu.concatenate %47, %48, %49, %50, %51, %52, %53, %54, %55, %56 in 1 : vector<80x16xf32>, vector<80x16xf32>, vector<80x16xf32>, vector<80x16xf32>, vector<80x16xf32>, vector<80x16xf32>, vector<80x16xf32>, vector<80x16xf32>, vector<80x16xf32>, vector<80x16xf32> -> vector<80x160xf32>
    %c0_20 = arith.constant 0 : index
    %c0_21 = arith.constant 0 : index
    %58 = vector.load %arg5[%c0_20, %c0_21] : memref<160x32xf32, #tpu.memory_space<vmem>>, vector<160x32xf32>
    %cst_22 = arith.constant dense<0.000000e+00> : vector<80x32xf32>
    %59 = tpu.matmul %57, %58, %cst_22 {dimension_numbers = #tpu.dot_dimension_numbers<[1], [0], [0], [1], [0, 0, 1, 1], [], []>} : vector<80x160xf32>, vector<160x32xf32>, vector<80x32xf32> -> vector<80x32xf32>
    %c0_23 = arith.constant 0 : index
    %c0_24 = arith.constant 0 : index
    %60 = vector.load %arg6[%c0_23, %c0_24] : memref<1x32xf32, #tpu.memory_space<vmem>>, vector<1x32xf32>
    %61 = vector.broadcast %60 : vector<1x32xf32> to vector<80x32xf32>
    %62 = arith.addf %59, %61 : vector<80x32xf32>
    %cst_25 = arith.constant 0.000000e+00 : f32
    %63 = vector.broadcast %cst_25 : f32 to vector<80x32xf32>
    %64 = arith.maximumf %62, %63 : vector<80x32xf32>
    %65 = vector.extract_strided_slice %64 {offsets = [0, 0], sizes = [79, 32], strides = [1, 1]} : vector<80x32xf32> to vector<79x32xf32>
    %66 = vector.extract_strided_slice %64 {offsets = [1, 0], sizes = [79, 32], strides = [1, 1]} : vector<80x32xf32> to vector<79x32xf32>
    %67 = arith.maximumf %65, %66 : vector<79x32xf32>
    %c0_26 = arith.constant 0 : index
    %c0_27 = arith.constant 0 : index
    %68 = vector.load %arg16[%c0_26, %c0_27] : memref<79x32xf32, #tpu.memory_space<vmem>>, vector<79x32xf32>
    tpu.vector_store %arg16[%c0_26, %c0_27], %67 {strides = array<i32>} : memref<79x32xf32, #tpu.memory_space<vmem>>, vector<79x32xf32>,
    %c0_28 = arith.constant 0 : index
    %c0_29 = arith.constant 0 : index
    %69 = tpu.strided_load %arg16[%c0_28, %c0_29] {strides = array<i32: 24, 1>} : memref<79x32xf32, #tpu.memory_space<vmem>>, vector<4x32xf32>
    %c2 = arith.constant 2 : index
    %c0_30 = arith.constant 0 : index
    %70 = tpu.strided_load %arg16[%c2, %c0_30] {strides = array<i32: 24, 1>} : memref<79x32xf32, #tpu.memory_space<vmem>>, vector<4x32xf32>
    %c4 = arith.constant 4 : index
    %c0_31 = arith.constant 0 : index
    %71 = tpu.strided_load %arg16[%c4, %c0_31] {strides = array<i32: 24, 1>} : memref<79x32xf32, #tpu.memory_space<vmem>>, vector<4x32xf32>
    %c6 = arith.constant 6 : index
    %c0_32 = arith.constant 0 : index
    %72 = tpu.strided_load %arg16[%c6, %c0_32] {strides = array<i32: 24, 1>} : memref<79x32xf32, #tpu.memory_space<vmem>>, vector<4x32xf32>
    %73 = tpu.concatenate %69, %70, %71, %72 in 1 : vector<4x32xf32>, vector<4x32xf32>, vector<4x32xf32>, vector<4x32xf32> -> vector<4x128xf32>
    %c0_33 = arith.constant 0 : index
    %c0_34 = arith.constant 0 : index
    %74 = vector.load %arg7[%c0_33, %c0_34] : memref<128x128xf32, #tpu.memory_space<vmem>>, vector<128x128xf32>
    %cst_35 = arith.constant dense<0.000000e+00> : vector<4x128xf32>
    %75 = tpu.matmul %73, %74, %cst_35 {dimension_numbers = #tpu.dot_dimension_numbers<[1], [0], [0], [1], [0, 0, 1, 1], [], []>} : vector<4x128xf32>, vector<128x128xf32>, vector<4x128xf32> -> vector<4x128xf32>
    %c0_36 = arith.constant 0 : index
    %c0_37 = arith.constant 0 : index
    %76 = vector.load %arg8[%c0_36, %c0_37] : memref<1x128xf32, #tpu.memory_space<vmem>>, vector<1x128xf32>
    %77 = vector.broadcast %76 : vector<1x128xf32> to vector<4x128xf32>
    %78 = arith.addf %75, %77 : vector<4x128xf32>
    %cst_38 = arith.constant 0.000000e+00 : f32
    %79 = vector.broadcast %cst_38 : f32 to vector<4x128xf32>
    %80 = arith.maximumf %78, %79 : vector<4x128xf32>
    %cst_39 = arith.constant dense<0.000000e+00> : vector<128xf32>
    %81 = vector.multi_reduction <add>, %80, %cst_39 [0] : vector<4x128xf32> to vector<128xf32>
    %82 = vector.shape_cast %81 : vector<128xf32> to vector<1x128xf32>
    %cst_40 = arith.constant 4.000000e+00 : f32
    %83 = vector.broadcast %cst_40 : f32 to vector<1x128xf32>
    %84 = arith.divf %82, %83 : vector<1x128xf32>
    %85 = vector.broadcast %84 : vector<1x128xf32> to vector<4x128xf32>
    %86 = arith.subf %80, %85 : vector<4x128xf32>
    %87 = vector.broadcast %84 : vector<1x128xf32> to vector<4x128xf32>
    %88 = arith.subf %80, %87 : vector<4x128xf32>
    %89 = arith.mulf %86, %88 : vector<4x128xf32>
    %cst_41 = arith.constant dense<0.000000e+00> : vector<128xf32>
    %90 = vector.multi_reduction <add>, %89, %cst_41 [0] : vector<4x128xf32> to vector<128xf32>
    %91 = vector.shape_cast %90 : vector<128xf32> to vector<1x128xf32>
    %cst_42 = arith.constant 4.000000e+00 : f32
    %92 = vector.broadcast %cst_42 : f32 to vector<1x128xf32>
    %93 = arith.divf %91, %92 : vector<1x128xf32>
    %94 = vector.broadcast %84 : vector<1x128xf32> to vector<4x128xf32>
    %95 = arith.subf %80, %94 : vector<4x128xf32>
    %cst_43 = arith.constant 9.99999974E-6 : f32
    %96 = vector.broadcast %cst_43 : f32 to vector<1x128xf32>
    %97 = arith.addf %93, %96 : vector<1x128xf32>
    %98 = math.rsqrt %97 : vector<1x128xf32>
    %99 = vector.broadcast %98 : vector<1x128xf32> to vector<4x128xf32>
    %100 = arith.mulf %95, %99 : vector<4x128xf32>
    %c0_44 = arith.constant 0 : index
    %c0_45 = arith.constant 0 : index
    %101 = vector.load %arg9[%c0_44, %c0_45] : memref<1x128xf32, #tpu.memory_space<vmem>>, vector<1x128xf32>
    %102 = vector.broadcast %101 : vector<1x128xf32> to vector<4x128xf32>
    %103 = arith.mulf %100, %102 : vector<4x128xf32>
    %c0_46 = arith.constant 0 : index
    %c0_47 = arith.constant 0 : index
    %104 = vector.load %arg10[%c0_46, %c0_47] : memref<1x128xf32, #tpu.memory_space<vmem>>, vector<1x128xf32>
    %105 = vector.broadcast %104 : vector<1x128xf32> to vector<4x128xf32>
    %106 = arith.addf %103, %105 : vector<4x128xf32>
    %c0_48 = arith.constant 0 : index
    %c0_49 = arith.constant 0 : index
    %107 = vector.load %arg11[%c0_48, %c0_49] : memref<128x128xf32, #tpu.memory_space<vmem>>, vector<128x128xf32>
    %cst_50 = arith.constant dense<0.000000e+00> : vector<4x128xf32>
    %108 = tpu.matmul %106, %107, %cst_50 {dimension_numbers = #tpu.dot_dimension_numbers<[1], [0], [0], [1], [0, 0, 1, 1], [], []>} : vector<4x128xf32>, vector<128x128xf32>, vector<4x128xf32> -> vector<4x128xf32>
    %c0_51 = arith.constant 0 : index
    %c0_52 = arith.constant 0 : index
    %109 = vector.load %arg12[%c0_51, %c0_52] : memref<1x128xf32, #tpu.memory_space<vmem>>, vector<1x128xf32>
    %110 = vector.broadcast %109 : vector<1x128xf32> to vector<4x128xf32>
    %111 = arith.addf %108, %110 : vector<4x128xf32>
    %c0_53 = arith.constant 0 : index
    %c0_54 = arith.constant 0 : index
    %112 = vector.load %arg13[%c0_53, %c0_54] : memref<4x128xf32, #tpu.memory_space<vmem>>, vector<4x128xf32>
    tpu.vector_store %arg13[%c0_53, %c0_54], %111 {strides = array<i32>} : memref<4x128xf32, #tpu.memory_space<vmem>>, vector<4x128xf32>,
    return
  }
}

</mosaic_0001>

<bundles_post_ra>
// kernel: extremnet_forward.1
= control target key start
LH: loop header
LB: loop body
LE: loop exit
PB: predicated region body
PF: predicated region fallthrough
CT: control target
= control target key end

     0   :  { %vm12552_vm0 = vcmask 1044480   ;;  %vm140_vm1 = vcmask 1046528   ;;  %vm12559_vm2 = vcmask 1043456   ;;  %vm12556_vm3 = vcmask 1045504   ;;  %s6628_s14 = smov 3   ;;  %s6629_s15 = smov 1   ;;  %s12538_s0 = inlined_call_operand.vmem [shape: f32[384,1], index: 0, kind: input, shape index: {}]   ;;  %s12539_s1 = inlined_call_operand.vmem [shape: f32[10,4], index: 1, kind: input, shape index: {}]   ;;  %s12540_s2 = inlined_call_operand.vmem [shape: f32[1,4], index: 2, kind: input, shape index: {}]   ;;  %s12541_s3 = inlined_call_operand.vmem [shape: f32[40,16], index: 3, kind: input, shape index: {}]   ;;  %s12542_s4 = inlined_call_operand.vmem [shape: f32[1,16], index: 4, kind: input, shape index: {}]   ;;  %s12543_s5 = inlined_call_operand.vmem [shape: f32[160,32], index: 5, kind: input, shape index: {}]   ;;  %s12544_s6 = inlined_call_operand.vmem [shape: f32[1,32], index: 6, kind: input, shape index: {}]   ;;  %s12545_s7 = inlined_call_operand.vmem [shape: f32[128,128], index: 7, kind: input, shape index: {}]   ;;  %s12546_s8 = inlined_call_operand.vmem [shape: f32[1,128], index: 8, kind: input, shape index: {}]   ;;  %s12547_s9 = inlined_call_operand.vmem [shape: f32[1,128], index: 9, kind: input, shape index: {}]   ;;  %s12548_s10 = inlined_call_operand.vmem [shape: f32[1,128], index: 10, kind: input, shape index: {}]   ;;  %s12549_s11 = inlined_call_operand.vmem [shape: f32[128,128], index: 11, kind: input, shape index: {}]   ;;  %s12550_s12 = inlined_call_operand.vmem [shape: f32[1,128], index: 12, kind: input, shape index: {}]   ;;  %s12551_s13 = inlined_call_operand.hbm [shape: f32[4,128], index: 13, kind: output, shape index: {}]  }
   0x1   :  { %v6725_v0 = vld [vmem:[%s12538_s0] sm:$0xff]  ;;  %v6730_v1 = vld [vmem:[%s12538_s0 + $0x8] sm:$0xff]  ;;  %v6741_v8 = vld [vmem:[%s12538_s0 + $0x10] sm:$0xff]  ;;  %vm1087_vm4 = vcmask 1042432  }
   0x2   :  { %v614_v2 = vrot.slane %v6725_v0, 3  ;;  %v615_v3 = vrot.slane %v6730_v1, 3  ;;  %v141_v4 = vrot.slane %v6725_v0, 1  ;;  %v142_v5 = vrot.slane %v6730_v1, 1 }
   0x3   :  { %v851_v6 = vrot.slane %v6725_v0, 4  ;;  %v852_v7 = vrot.slane %v6730_v1, 4  ;;  %v377_v11 = vrot.slane %v6725_v0, 2  ;;  %v378_v12 = vrot.slane %v6730_v1, 2 }
   0x4   :  { %v616_v9 = vsel %vm12552_vm0, %v614_v2, %v615_v3  ;;  %v143_v10 = vsel %vm140_vm1, %v141_v4, %v142_v5  ;;  %v1088_v15 = vrot.slane %v6725_v0, 5  ;;  %v1089_v16 = vrot.slane %v6730_v1, 5 }
   0x5   :  { %709 = vrot.lane.b32.xlu1 %v616_v9, %s6628_s14  ;;  %234 = vrot.lane.b32.xlu0 %v143_v10, %s6629_s15  ;;  %v853_v13 = vsel %vm12559_vm2, %v851_v6, %v852_v7  ;;  %v379_v14 = vsel %vm12556_vm3, %v377_v11, %v378_v12  ;;  %v144_v17 = vrot.slane %v6741_v8, 1 }
   0x6   :  { %18 = vsyncpa [#allocation6], 0  ;;  %s6630_s16 = smov 4   ;;  %s6631_s17 = smov 2   ;;  %v1325_v18 = vrot.slane %v6725_v0, 6  ;;  %v1090_v19 = vsel %vm1087_vm4, %v1088_v15, %v1089_v16  ;;  %v1326_v21 = vrot.slane %v6730_v1, 6 }
   0x7   :  { %v145_v20 = vsel %vm140_vm1, %v142_v5, %v144_v17  ;;  %v380_v22 = vrot.slane %v6741_v8, 2  ;;  %vm1324_vm5 = vcmask 1041408   ;;  %s6632_s18 = smov 5   ;;  %v1562_v23 = vrot.slane %v6725_v0, 7  ;;  %s6633_s19 = smov 6   ;;  %v6776_v31 = vld [vmem:[%s12538_s0 + $0x18] sm:$0xff] }
   0x8   :  { %v1327_v24 = vsel %vm1324_vm5, %v1325_v18, %v1326_v21  ;;  %v1563_v26 = vrot.slane %v6730_v1, 7  ;;  %v617_v27 = vrot.slane %v6741_v8, 3  ;;  %vm12562_vm6 = vcmask 1040384   ;;  %s6634_s22 = smov 7   ;;  %s6635_s23 = smov 8   ;;  %v6806_v46 = vld [vmem:[%s12538_s0 + $0x20] sm:$0xff] }
   0x9   :  { %946 = vrot.lane.b32.xlu1 %v853_v13, %s6630_s16  ;;  %472 = vrot.lane.b32.xlu0 %v379_v14, %s6631_s17  ;;  %v381_v25 = vsel %vm12556_vm3, %v378_v12, %v380_v22  ;;  %v854_v30 = vrot.slane %v6741_v8, 4  ;;  %v1091_v33 = vrot.slane %v6741_v8, 5  ;;  %v146_v34 = vrot.slane %v6776_v31, 1  ;;  %s6636_s24 = smov 9   ;;  %v2515_v42 = vld [vmem:[%s12539_s1 + $0x8] sm:$0x3] }
   0xa   :  { %v1564_v28 = vsel %vm12562_vm6, %v1562_v23, %v1563_v26  ;;  %v618_v29 = vsel %vm12552_vm0, %v615_v3, %v617_v27  ;;  %v382_v37 = vrot.slane %v6776_v31, 2  ;;  %v619_v39 = vrot.slane %v6776_v31, 3  ;;  %v2514_v48 = vld [vmem:[%s12539_s1] sm:$0xff]  ;;  %v6851_v2 = vld [vmem:[%s12538_s0 + $0x28] sm:$0xff]  ;;  %s6644_s21 = smov 32   ;;  %s6645_s25 = smov 36  }
   0xb   :  { %v855_v32 = vsel %vm12559_vm2, %v852_v7, %v854_v30  ;;  %v1092_v35 = vsel %vm1087_vm4, %v1089_v16, %v1091_v33  ;;  %v147_v36 = vsel %vm140_vm1, %v144_v17, %v146_v34  ;;  %v1328_v40 = vrot.slane %v6741_v8, 6  ;;  %v6878_v17 = vld [vmem:[%s12538_s0 + $0x30] sm:$0xff]  ;;  %s6647_s27 = smov 64  }
   0xc   :  { %v383_v38 = vsel %vm12556_vm3, %v380_v22, %v382_v37  ;;  %v856_v41 = vrot.slane %v6776_v31, 4  ;;  %v620_v43 = vsel %vm12552_vm0, %v617_v27, %v619_v39  ;;  %v1565_v45 = vrot.slane %v6741_v8, 7 }
   0xd   :  { %1183 = vrot.lane.b32.xlu1 %v1090_v19, %s6632_s18  ;;  %236 = vrot.lane.b32.xlu0 %v145_v20, %s6629_s15  ;;  %v1329_v44 = vsel %vm1324_vm5, %v1326_v21, %v1328_v40  ;;  %v6637_v47 = vmov 0.0   ;;  %v148_v51 = vrot.slane %v6806_v46, 1  ;;  %vm12557_vm7 = vmmov 0  }
   0xe   :  { %6121 = vmatprep.subr.mxu0 %v6637_v47  ;;  %6415 = vmatprep.subr.mxu1 %v6637_v47  ;;  %v857_v49 = vsel %vm12559_vm2, %v854_v30, %v856_v41  ;;  %v1566_v50 = vsel %vm12562_vm6, %v1563_v26, %v1565_v45  ;;  %v1093_v53 = vrot.slane %v6776_v31, 5  ;;  %v1330_v55 = vrot.slane %v6776_v31, 6 }
   0xf   :  { %6122 = vmatpush3.msk.msra.mxu0 %vm1324_vm5, %v2515_v42  ;;  %6417 = vmatpush3.msk.msra.mxu1 %vm1324_vm5, %v2515_v42  ;;  %v149_v52 = vsel %vm140_vm1, %v146_v34, %v148_v51  ;;  %v384_v56 = vrot.slane %v6806_v46, 2  ;;  %v1567_v59 = vrot.slane %v6776_v31, 7  ;;  %v621_v60 = vrot.slane %v6806_v46, 3  ;;  %v6909_v34 = vld [vmem:[%s12538_s0 + $0x38] sm:$0xff] }
  0x10   :  { %6123 = vmatprep.subr.mxu0 %v6637_v47  ;;  %6125 = vmatprep.mubr.msk.f32.mxu0 %vm12557_vm7, %v6637_v47  ;;  %v1094_v54 = vsel %vm1087_vm4, %v1091_v33, %v1093_v53  ;;  %v1331_v57 = vsel %vm1324_vm5, %v1328_v40, %v1330_v55  ;;  %v858_v63 = vrot.slane %v6806_v46, 4  ;;  %v1095_v4 = vrot.slane %v6806_v46, 5 }
  0x11   :  { %1420 = vrot.lane.b32.xlu1 %v1327_v24, %s6633_s19  ;;  %474 = vrot.lane.b32.xlu0 %v381_v25, %s6631_s17  ;;  %v385_v58 = vsel %vm12556_vm3, %v382_v37, %v384_v56  ;;  %v1568_v61 = vsel %vm12562_vm6, %v1565_v45, %v1567_v59  ;;  %v622_v62 = vsel %vm12552_vm0, %v619_v39, %v621_v60  ;;  %v150_v5 = vrot.slane %v6851_v2, 1 }
  0x12   :  { %6124 = vmatpush3.msra.mxu0 %v2514_v48  ;;  %6416 = vmatprep.subr.mxu1 %v6637_v47  ;;  %v859_v3 = vsel %vm12559_vm2, %v856_v41, %v858_v63  ;;  %v1096_v6 = vsel %vm1087_vm4, %v1093_v53, %v1095_v4  ;;  %v386_v9 = vrot.slane %v6851_v2, 2  ;;  %v623_v11 = vrot.slane %v6851_v2, 3 }
  0x13   :  { %6418 = vmatpush3.msra.mxu1 %v2514_v48  ;;  %6260 = vmatprep.mubr.msk.f32.mxu1 %vm12557_vm7, %v6637_v47  ;;  %v151_v7 = vsel %vm140_vm1, %v148_v51, %v150_v5  ;;  %v1332_v12 = vrot.slane %v6806_v46, 6  ;;  %v860_v15 = vrot.slane %v6851_v2, 4  ;;  %v1569_v16 = vrot.slane %v6806_v46, 7 }
  0x14   :  { %6266 = vmatprep.subr.mxu1 %v6637_v47  ;;  %v387_v10 = vsel %vm12556_vm3, %v384_v56, %v386_v9  ;;  %v624_v13 = vsel %vm12552_vm0, %v621_v60, %v623_v11  ;;  %v1097_v22 = vrot.slane %v6851_v2, 5  ;;  %v1334_v24 = vrot.slane %v6851_v2, 6 }
  0x15   :  { %1657 = vrot.lane.b32.xlu1 %v1564_v28, %s6634_s22  ;;  %711 = vrot.lane.b32.xlu0 %v618_v29, %s6628_s14  ;;  %v1333_v14 = vsel %vm1324_vm5, %v1330_v55, %v1332_v12  ;;  %v861_v18 = vsel %vm12559_vm2, %v858_v63, %v860_v15  ;;  %v1570_v19 = vsel %vm12562_vm6, %v1567_v59, %v1569_v16  ;;  %v388_v25 = vrot.slane %v6878_v17, 2 }
  0x16   :  { %v1098_v23 = vsel %vm1087_vm4, %v1095_v4, %v1097_v22  ;;  %v1335_v26 = vsel %vm1324_vm5, %v1332_v12, %v1334_v24  ;;  %v1571_v28 = vrot.slane %v6851_v2, 7  ;;  %v625_v29 = vrot.slane %v6878_v17, 3  ;;  %v6969_v12 = vld [vmem:[%s12538_s0 + $0x48] sm:$0xff] }
  0x17   :  { %v389_v27 = vsel %vm12556_vm3, %v386_v9, %v388_v25  ;;  %v862_v33 = vrot.slane %v6878_v17, 4  ;;  %v154_v37 = vrot.slane %v6909_v34, 1  ;;  %v390_v40 = vrot.slane %v6909_v34, 2 }
  0x18   :  { %v1572_v30 = vsel %vm12562_vm6, %v1569_v16, %v1571_v28  ;;  %v627_v42 = vrot.slane %v6909_v34, 3  ;;  %v864_v48 = vrot.slane %v6909_v34, 4  ;;  %v1101_v55 = vrot.slane %v6909_v34, 5 }
  0x19   :  { %1798 = vrot.lane.b32.xlu1 %v6730_v1, %s6635_s23  ;;  %948 = vrot.lane.b32.xlu0 %v855_v32, %s6630_s16  ;;  %v626_v32 = vsel %vm12552_vm0, %v623_v11, %v625_v29  ;;  %v391_v41 = vsel %vm12556_vm3, %v388_v25, %v390_v40  ;;  %v1575_v63 = vrot.slane %v6909_v34, 7  ;;  %vm2082_vm8 = vcmask 7168  }
  0x1a   :  { %v865_v51 = vsel %vm12559_vm2, %v862_v33, %v864_v48  ;;  %vm12554_vm9 = vcmask 15360   ;;  %vm2178_vm10 = vcmask 23552   ;;  %vm12555_vm11 = vcmask 31744  }
  0x1b   :  { %vm2274_vm12 = vcmask 39936   ;;  %vm12553_vm13 = vcmask 48128   ;;  %vm2370_vm14 = vcmask 56320   ;;  %vm2418_vm15 = vcmask 64512  }
  0x1d   :  { %1185 = vrot.lane.b32.xlu1 %v1092_v35, %s6632_s18  ;;  %238 = vrot.lane.b32.xlu0 %v147_v36, %s6629_s15  ;;  %v863_v35 = vsel %vm12559_vm2, %v860_v15, %v862_v33  ;;  %v158_v15 = vrot.slane %v6969_v12, 1 }
  0x21   :  { %476 = vrot.lane.b32.xlu1 %v383_v38, %s6631_s17  ;;  %1941 = vrot.lane.b32.xlu0 %v145_v20, %s6636_s24  ;;  %v152_v20 = vrot.slane %v6878_v17, 1 }
  0x23   :  { %v153_v21 = vsel %vm140_vm1, %v150_v5, %v152_v20  ;;  %v155_v39 = vsel %vm140_vm1, %v152_v20, %v154_v37 }
  0x25   :  { %713 = vrot.lane.b32.xlu1 %v620_v43, %s6628_s14  ;;  %1422 = vrot.lane.b32.xlu0 %v1329_v44, %s6633_s19  ;;  %v1336_v43 = vrot.slane %v6878_v17, 6  ;;  %v628_v44 = vsel %vm12552_vm0, %v625_v29, %v627_v42 }
  0x27   :  { %v1337_v45 = vsel %vm1324_vm5, %v1334_v24, %v1336_v43 }
  0x29   :  { %950 = vrot.lane.b32.xlu1 %v857_v49, %s6630_s16  ;;  %1659 = vrot.lane.b32.xlu0 %v1566_v50, %s6634_s22  ;;  %v1573_v49 = vrot.slane %v6878_v17, 7  ;;  %v6936_v50 = vld [vmem:[%s12538_s0 + $0x40] sm:$0xff] }
  0x2a   :  { %v156_v53 = vrot.slane %v6936_v50, 1  ;;  %v866_v9 = vrot.slane %v6936_v50, 4 }
  0x2d   :  { %240 = vrot.lane.b32.xlu1 %v149_v52, %s6629_s15  ;;  %1800 = vrot.lane.b32.xlu0 %v6741_v8, %s6635_s23 }
  0x31   :  { %1943 = vrot.lane.b32.xlu1 %v147_v36, %s6636_s24  ;;  %1187 = vrot.lane.b32.xlu0 %v1094_v54, %s6632_s18  ;;  %v1099_v36 = vrot.slane %v6878_v17, 5  ;;  %v157_v54 = vsel %vm140_vm1, %v154_v37, %v156_v53  ;;  %v1577_v37 = vrot.slane %v6936_v50, 7 }
  0x33   :  { %v1100_v38 = vsel %vm1087_vm4, %v1097_v22, %v1099_v36  ;;  %v1102_v56 = vsel %vm1087_vm4, %v1099_v36, %v1101_v55  ;;  %v394_v22 = vrot.slane %v6969_v12, 2  ;;  %v868_v36 = vrot.slane %v6969_v12, 4 }
  0x35   :  { %1424 = vrot.lane.b32.xlu1 %v1331_v57, %s6633_s19  ;;  %478 = vrot.lane.b32.xlu0 %v385_v58, %s6631_s17  ;;  %v1338_v57 = vrot.slane %v6909_v34, 6  ;;  %v392_v58 = vrot.slane %v6936_v50, 2 }
  0x39   :  { %1661 = vrot.lane.b32.xlu1 %v1568_v61, %s6634_s22  ;;  %715 = vrot.lane.b32.xlu0 %v622_v62, %s6628_s14  ;;  %v1339_v61 = vsel %vm1324_vm5, %v1336_v43, %v1338_v57  ;;  %v393_v62 = vsel %vm12556_vm3, %v390_v40, %v392_v58  ;;  %v7011_v40 = vld [vmem:[%s12538_s0 + $0x50] sm:$0xff] }
  0x3d   :  { %1802 = vrot.lane.b32.xlu1 %v6776_v31, %s6635_s23  ;;  %952 = vrot.lane.b32.xlu0 %v859_v3, %s6630_s16  ;;  %v629_v3 = vrot.slane %v6936_v50, 3 }
  0x41   :  { %1189 = vrot.lane.b32.xlu1 %v1096_v6, %s6632_s18  ;;  %242 = vrot.lane.b32.xlu0 %v151_v7, %s6629_s15  ;;  %v1576_v6 = vsel %vm12562_vm6, %v1573_v49, %v1575_v63 }
  0x45   :  { %480 = vrot.lane.b32.xlu1 %v387_v10, %s6631_s17  ;;  %1945 = vrot.lane.b32.xlu0 %v149_v52, %s6636_s24  ;;  %v1574_v52 = vsel %vm12562_vm6, %v1571_v28, %v1573_v49  ;;  %v1340_v28 = vrot.slane %v6936_v50, 6 }
  0x49   :  { %717 = vrot.lane.b32.xlu1 %v624_v13, %s6628_s14  ;;  %1426 = vrot.lane.b32.xlu0 %v1333_v14, %s6633_s19  ;;  %v867_v13 = vsel %vm12559_vm2, %v864_v48, %v866_v9  ;;  %v1103_v14 = vrot.slane %v6936_v50, 5  ;;  %v160_v48 = vrot.slane %v7011_v40, 1 }
  0x4b   :  { %v1104_v20 = vsel %vm1087_vm4, %v1101_v55, %v1103_v14  ;;  %v1105_v55 = vrot.slane %v6969_v12, 5 }
  0x4d   :  { %954 = vrot.lane.b32.xlu1 %v861_v18, %s6630_s16  ;;  %1663 = vrot.lane.b32.xlu0 %v1570_v19, %s6634_s22 }
  0x51   :  { %244 = vrot.lane.b32.xlu1 %v153_v21, %s6629_s15  ;;  %1804 = vrot.lane.b32.xlu0 %v6806_v46, %s6635_s23 }
  0x55   :  { %1947 = vrot.lane.b32.xlu1 %v151_v7, %s6636_s24  ;;  %1191 = vrot.lane.b32.xlu0 %v1098_v23, %s6632_s18  ;;  %v630_v7 = vsel %vm12552_vm0, %v627_v42, %v629_v3 }
  0x59   :  { %1428 = vrot.lane.b32.xlu1 %v1335_v26, %s6633_s19  ;;  %482 = vrot.lane.b32.xlu0 %v389_v27, %s6631_s17  ;;  %v395_v26 = vsel %vm12556_vm3, %v392_v58, %v394_v22  ;;  %v631_v27 = vrot.slane %v6969_v12, 3  ;;  %v1106_v58 = vsel %vm1087_vm4, %v1103_v14, %v1105_v55 }
  0x5b   :  { %v632_v33 = vsel %vm12552_vm0, %v629_v3, %v631_v27  ;;  %vm2466_vm0 = vcmask 72704  }
  0x5d   :  { %1665 = vrot.lane.b32.xlu1 %v1572_v30, %s6634_s22  ;;  %719 = vrot.lane.b32.xlu0 %v626_v32, %s6628_s14 }
  0x61   :  { %1806 = vrot.lane.b32.xlu1 %v6851_v2, %s6635_s23  ;;  %956 = vrot.lane.b32.xlu0 %v863_v35, %s6630_s16  ;;  %v1341_v35 = vsel %vm1324_vm5, %v1338_v57, %v1340_v28 }
  0x65   :  { %1193 = vrot.lane.b32.xlu1 %v1100_v38, %s6632_s18  ;;  %246 = vrot.lane.b32.xlu0 %v155_v39, %s6629_s15 }
  0x69   :  { %484 = vrot.lane.b32.xlu1 %v391_v41, %s6631_s17  ;;  %1949 = vrot.lane.b32.xlu0 %v153_v21, %s6636_s24  ;;  %v159_v21 = vsel %vm140_vm1, %v156_v53, %v158_v15 }
  0x6d   :  { %721 = vrot.lane.b32.xlu1 %v628_v44, %s6628_s14  ;;  %1430 = vrot.lane.b32.xlu0 %v1337_v45, %s6633_s19  ;;  %v869_v44 = vsel %vm12559_vm2, %v866_v9, %v868_v36  ;;  %v1578_v45 = vsel %vm12562_vm6, %v1575_v63, %v1577_v37  ;;  %v633_v9 = vrot.slane %v7011_v40, 3 }
  0x71   :  { %958 = vrot.lane.b32.xlu1 %v865_v51, %s6630_s16  ;;  %1667 = vrot.lane.b32.xlu0 %v1574_v52, %s6634_s22 }
  0x75   :  { %248 = vrot.lane.b32.xlu1 %v157_v54, %s6629_s15  ;;  %1808 = vrot.lane.b32.xlu0 %v6878_v17, %s6635_s23 }
  0x77   :  { %v710_v59 = vpop.permute.xlu1 %709  ;;  %v235_v60 = vpop.permute.xlu0 %234 }
  0x78   :  { %v2083_v19 = vsel %vm2082_vm8, %v6725_v0, %v235_v60  ;;  %v396_v60 = vrot.slane %v7011_v40, 2 }
  0x79   :  { %1951 = vrot.lane.b32.xlu1 %v155_v39, %s6636_s24  ;;  %1195 = vrot.lane.b32.xlu0 %v1102_v56, %s6632_s18 }
  0x7b   :  { %v947_v4 = vpop.permute.xlu1 %946  ;;  %v473_v5 = vpop.permute.xlu0 %472 }
  0x7c   :  { %v2131_v23 = vsel %vm12554_vm9, %v2083_v19, %v473_v5  ;;  %v870_v19 = vrot.slane %v7011_v40, 4 }
  0x7d   :  { %1432 = vrot.lane.b32.xlu1 %v1339_v61, %s6633_s19  ;;  %486 = vrot.lane.b32.xlu0 %v393_v62, %s6631_s17  ;;  %v2179_v0 = vsel %vm2178_vm10, %v2131_v23, %v710_v59  ;;  %v1342_v59 = vrot.slane %v6969_v12, 6  ;;  %v7080_v23 = vld [vmem:[%s12538_s0 + $0x58] sm:$0xff] }
  0x7e   :  { %v2227_v32 = vsel %vm12555_vm11, %v2179_v0, %v947_v4  ;;  %v1579_v4 = vrot.slane %v6969_v12, 7  ;;  %v1107_v0 = vrot.slane %v7011_v40, 5 }
  0x7f   :  { %v1184_v10 = vpop.permute.xlu1 %1183  ;;  %v6964_v11 = vpop.permute.xlu0 %236 }
  0x80   :  { %v2275_v41 = vsel %vm2274_vm12, %v2227_v32, %v1184_v10  ;;  %v2084_v63 = vsel %vm2082_vm8, %v6730_v1, %v6964_v11  ;;  %v398_v32 = vrot.slane %v7080_v23, 2 }
  0x81   :  { %1669 = vrot.lane.b32.xlu1 %v1576_v6, %s6634_s22  ;;  %723 = vrot.lane.b32.xlu0 %v630_v7, %s6628_s14  ;;  %v1343_v6 = vsel %vm1324_vm5, %v1340_v28, %v1342_v59  ;;  %v397_v7 = vsel %vm12556_vm3, %v394_v22, %v396_v60 }
  0x83   :  { %v1421_v16 = vpop.permute.xlu1 %1420  ;;  %v6976_v18 = vpop.permute.xlu0 %474 }
  0x84   :  { %v2323_v42 = vsel %vm12553_vm13, %v2275_v41, %v1421_v16  ;;  %vm2523_vm13 = vcmask 80896   ;;  %v2132_v3 = vsel %vm12554_vm9, %v2084_v63, %v6976_v18  ;;  %vm12563_vm9 = vcmask 48128  }
  0x85   :  { %1810 = vrot.lane.b32.xlu1 %v6909_v34, %s6635_s23  ;;  %960 = vrot.lane.b32.xlu0 %v867_v13, %s6630_s16  ;;  %v1580_v16 = vsel %vm12562_vm6, %v1577_v37, %v1579_v4  ;;  %v399_v37 = vsel %vm12556_vm3, %v396_v60, %v398_v32  ;;  %vm12566_vm3 = vcmask 31744  }
  0x87   :  { %v1658_v24 = vpop.permute.xlu1 %1657  ;;  %v712_v25 = vpop.permute.xlu0 %711 }
  0x88   :  { %v2371_v43 = vsel %vm2370_vm14, %v2323_v42, %v1658_v24  ;;  %v2180_v5 = vsel %vm2178_vm10, %v2132_v3, %v712_v25  ;;  %v871_v25 = vsel %vm12559_vm2, %v868_v36, %v870_v19  ;;  %v635_v36 = vrot.slane %v7080_v23, 3 }
  0x89   :  { %1197 = vrot.lane.b32.xlu1 %v1104_v20, %s6632_s18  ;;  %250 = vrot.lane.b32.xlu0 %v159_v21, %s6629_s15 }
  0x8b   :  { %v1799_v29 = vpop.permute.xlu1 %1798  ;;  %v949_v30 = vpop.permute.xlu0 %948 }
  0x8c   :  { %v2419_v49 = vsel %vm2418_vm15, %v2371_v43, %v1799_v29  ;;  %v2228_v1 = vsel %vm12555_vm11, %v2180_v5, %v949_v30  ;;  %vm12564_vm11 = vcmask 1044480   ;;  %v1108_v29 = vsel %vm1087_vm4, %v1105_v55, %v1107_v0 }
  0x8d   :  { %488 = vrot.lane.b32.xlu1 %v395_v26, %s6631_s17  ;;  %1953 = vrot.lane.b32.xlu0 %v157_v54, %s6636_s24  ;;  %v7031_v54 = vsel %vm140_vm1, %v158_v15, %v160_v48  ;;  %v634_v18 = vsel %vm12564_vm11, %v631_v27, %v633_v9  ;;  %v162_v26 = vrot.slane %v7080_v23, 1 }
  0x8f   :  { %v1186_v38 = vpop.permute.xlu1 %1185  ;;  %v7006_v39 = vpop.permute.xlu0 %238  ;;  %v163_v30 = vsel %vm140_vm1, %v160_v48, %v162_v26 }
  0x90   :  { %v2276_v13 = vsel %vm2274_vm12, %v2228_v1, %v1186_v38  ;;  %v1344_v38 = vrot.slane %v7011_v40, 6  ;;  %v2085_v43 = vsel %vm2082_vm8, %v6741_v8, %v7006_v39  ;;  %v1581_v8 = vrot.slane %v7011_v40, 7 }
  0x91   :  { %725 = vrot.lane.b32.xlu1 %v632_v33, %s6628_s14  ;;  %1434 = vrot.lane.b32.xlu0 %v1341_v35, %s6633_s19 }
  0x93   :  { %v7024_v51 = vpop.permute.xlu1 %476  ;;  %v1942_v52 = vpop.permute.xlu0 %1941 }
  0x94   :  { %v2467_v53 = vsel %vm2466_vm0, %v2419_v49, %v1942_v52  ;;  %v1345_v49 = vsel %vm1324_vm5, %v1342_v59, %v1344_v38  ;;  %v872_v52 = vrot.slane %v7080_v23, 4  ;;  %v1582_v59 = vsel %vm12562_vm6, %v1579_v4, %v1581_v8 }
  0x95   :  { %962 = vrot.lane.b32.xlu1 %v869_v44, %s6630_s16  ;;  %1671 = vrot.lane.b32.xlu0 %v1578_v45, %s6634_s22  ;;  %v636_v45 = vsel %vm12564_vm11, %v633_v9, %v635_v36  ;;  %v1109_v4 = vrot.slane %v7080_v23, 5  ;;  %v1346_v9 = vrot.slane %v7080_v23, 6  ;;  %vm12569_vm11 = vcmask 1045504  }
  0x96   :  { %6126 = vmatmul.mubr.msk.f32.vlgmr.msra.gmra.mxu0 %vm2523_vm13, %v2467_v53 }
  0x97   :  { %v7034_v56 = vpop.permute.xlu1 %713  ;;  %v1423_v57 = vpop.permute.xlu0 %1422  ;;  %6128 = vmatprep.mubr.msk.f32.mxu0 %vm12557_vm7, %v6637_v47  ;;  %v1110_v1 = vsel %vm1087_vm4, %v1107_v0, %v1109_v4 }
  0x98   :  { %v2324_v14 = vsel %vm12563_vm9, %v2276_v13, %v1423_v57  ;;  %vm12565_vm9 = vcmask 15360  }
  0x99   :  { %252 = vrot.lane.b32.xlu1 %v7031_v54, %s6629_s15  ;;  %1812 = vrot.lane.b32.xlu0 %v6936_v50, %s6635_s23  ;;  %v2133_v44 = vsel %vm12565_vm9, %v2085_v43, %v7024_v51  ;;  %vm12567_vm9 = vcmask 48128  }
  0x9a   :  { %v2181_v48 = vsel %vm2178_vm10, %v2133_v44, %v7034_v56 }
  0x9b   :  { %v951_v61 = vpop.permute.xlu1 %950  ;;  %v1660_v62 = vpop.permute.xlu0 %1659 }
  0x9c   :  { %v2372_v15 = vsel %vm2370_vm14, %v2324_v14, %v1660_v62  ;;  %v2229_v39 = vsel %vm12566_vm3, %v2181_v48, %v951_v61  ;;  %vm12568_vm3 = vcmask 15360  }
  0x9d   :  { %1955 = vrot.lane.b32.xlu1 %v159_v21, %s6636_s24  ;;  %1199 = vrot.lane.b32.xlu0 %v1106_v58, %s6632_s18  ;;  %v873_v58 = vsel %vm12559_vm2, %v870_v19, %v872_v52 }
  0x9f   :  { %v7062_v10 = vpop.permute.xlu1 %240  ;;  %v1801_v11 = vpop.permute.xlu0 %1800 }
  0xa0   :  { %v2420_v20 = vsel %vm2418_vm15, %v2372_v15, %v1801_v11  ;;  %v2086_v15 = vsel %vm2082_vm8, %v6776_v31, %v7062_v10 }
  0xa1   :  { %1436 = vrot.lane.b32.xlu1 %v1343_v6, %s6633_s19  ;;  %490 = vrot.lane.b32.xlu0 %v397_v7, %s6631_s17 }
  0xa3   :  { %v1944_v21 = vpop.permute.xlu1 %1943  ;;  %v1188_v22 = vpop.permute.xlu0 %1187 }
  0xa4   :  { %v2468_v24 = vsel %vm2466_vm0, %v2420_v20, %v1944_v21  ;;  %v2277_v55 = vsel %vm2274_vm12, %v2229_v39, %v1188_v22  ;;  %v1583_v21 = vrot.slane %v7080_v23, 7 }
  0xa5   :  { %1673 = vrot.lane.b32.xlu1 %v1580_v16, %s6634_s22  ;;  %727 = vrot.lane.b32.xlu0 %v634_v18, %s6628_s14  ;;  %v1347_v18 = vsel %vm1324_vm5, %v1344_v38, %v1346_v9 }
  0xa6   :  { %6129 = vmatmul.mubr.msk.f32.gmra.mxu0 %vm2523_vm13, %v2468_v24 }
  0xa7   :  { %v1425_v27 = vpop.permute.xlu1 %1424  ;;  %v479_v28 = vpop.permute.xlu0 %478  ;;  %6131 = vmatprep.mubr.msk.f32.mxu0 %vm12557_vm7, %v6637_v47 }
  0xa8   :  { %v2325_v56 = vsel %vm12567_vm9, %v2277_v55, %v1425_v27  ;;  %v2134_v16 = vsel %vm12568_vm3, %v2086_v15, %v479_v28  ;;  %vm12570_vm9 = vcmask 31744   ;;  %vm12571_vm3 = vcmask 48128  }
  0xa9   :  { %1814 = vrot.lane.b32.xlu1 %v6969_v12, %s6635_s23  ;;  %964 = vrot.lane.b32.xlu0 %v871_v25, %s6630_s16  ;;  %v1584_v27 = vsel %vm12562_vm6, %v1581_v8, %v1583_v21 }
  0xab   :  { %v1662_v33 = vpop.permute.xlu1 %1661  ;;  %v716_v35 = vpop.permute.xlu0 %715 }
  0xac   :  { %v2373_v57 = vsel %vm2370_vm14, %v2325_v56, %v1662_v33  ;;  %v2182_v19 = vsel %vm2178_vm10, %v2134_v16, %v716_v35  ;;  %v7188_v35 = vld [vmem:[%s12538_s0 + $0x68] sm:$0xff] }
  0xad   :  { %1201 = vrot.lane.b32.xlu1 %v1108_v29, %s6632_s18  ;;  %254 = vrot.lane.b32.xlu0 %v163_v30, %s6629_s15  ;;  %v402_v48 = vrot.slane %v7188_v35, 2  ;;  %v639_v8 = vrot.slane %v7188_v35, 3 }
  0xaf   :  { %v1803_v41 = vpop.permute.xlu1 %1802  ;;  %v953_v42 = vpop.permute.xlu0 %952 }
  0xb0   :  { %v2421_v61 = vsel %vm2418_vm15, %v2373_v57, %v1803_v41  ;;  %v2230_v24 = vsel %vm12570_vm9, %v2182_v19, %v953_v42  ;;  %v166_v41 = vrot.slane %v7188_v35, 1  ;;  %vm12573_vm9 = vcmask 1045504  }
  0xb1   :  { %492 = vrot.lane.b32.xlu1 %v399_v37, %s6631_s17  ;;  %1957 = vrot.lane.b32.xlu0 %v7031_v54, %s6636_s24  ;;  %v7126_v54 = vld [vmem:[%s12538_s0 + $0x60] sm:$0xff]  ;;  %v1113_v19 = vrot.slane %v7188_v35, 5 }
  0xb2   :  { %v164_v60 = vrot.slane %v7126_v54, 1  ;;  %v400_v11 = vrot.slane %v7126_v54, 2  ;;  %v637_v22 = vrot.slane %v7126_v54, 3  ;;  %v874_v29 = vrot.slane %v7126_v54, 4 }
  0xb3   :  { %v1190_v51 = vpop.permute.xlu1 %1189  ;;  %v7121_v53 = vpop.permute.xlu0 %242  ;;  %v1111_v38 = vrot.slane %v7126_v54, 5 }
  0xb4   :  { %v7146_v5 = vsel %vm140_vm1, %v162_v26, %v164_v60  ;;  %v401_v20 = vsel %vm12569_vm11, %v398_v32, %v400_v11  ;;  %v2278_v10 = vsel %vm2274_vm12, %v2230_v24, %v1190_v51  ;;  %vm12572_vm11 = vcmask 1044480  }
  0xb5   :  { %729 = vrot.lane.b32.xlu1 %v636_v45, %s6628_s14  ;;  %1438 = vrot.lane.b32.xlu0 %v1345_v49, %s6633_s19  ;;  %v638_v28 = vsel %vm12572_vm11, %v635_v36, %v637_v22  ;;  %v875_v36 = vsel %vm12559_vm2, %v872_v52, %v874_v29  ;;  %v1112_v44 = vsel %vm1087_vm4, %v1109_v4, %v1111_v38  ;;  %v1348_v51 = vrot.slane %v7126_v54, 6 }
  0xb6   :  { %v167_v45 = vsel %vm140_vm1, %v164_v60, %v166_v41  ;;  %v403_v39 = vsel %vm12573_vm9, %v400_v11, %v402_v48  ;;  %v2087_v57 = vsel %vm2082_vm8, %v6806_v46, %v7121_v53  ;;  %v1585_v46 = vrot.slane %v7126_v54, 7 }
  0xb7   :  { %v7139_v62 = vpop.permute.xlu1 %480  ;;  %v1946_v63 = vpop.permute.xlu0 %1945  ;;  %vm12575_vm9 = vcmask 31744   ;;  %v1114_v24 = vsel %vm1087_vm4, %v1111_v38, %v1113_v19 }
  0xb8   :  { %v2469_v3 = vsel %vm2466_vm0, %v2421_v61, %v1946_v63  ;;  %v1349_v61 = vsel %vm1324_vm5, %v1346_v9, %v1348_v51  ;;  %v876_v63 = vrot.slane %v7188_v35, 4 }
  0xb9   :  { %966 = vrot.lane.b32.xlu1 %v873_v58, %s6630_s16  ;;  %1675 = vrot.lane.b32.xlu0 %v1582_v59, %s6634_s22  ;;  %v640_v59 = vsel %vm12572_vm11, %v637_v22, %v639_v8  ;;  %v1350_v22 = vrot.slane %v7188_v35, 6  ;;  %vm12577_vm11 = vcmask 15360  }
  0xba   :  { %6132 = vmatmul.mubr.msk.f32.gmra.mxu0 %vm2523_vm13, %v2469_v3  ;;  %v877_v9 = vsel %vm12559_vm2, %v874_v29, %v876_v63 }
  0xbb   :  { %v7149_v6 = vpop.permute.xlu1 %717  ;;  %v1427_v7 = vpop.permute.xlu0 %1426  ;;  %6134 = vmatprep.mubr.msk.f32.mxu0 %vm12557_vm7, %v6637_v47 }
  0xbc   :  { %v2326_v0 = vsel %vm12571_vm3, %v2278_v10, %v1427_v7  ;;  %vm12574_vm3 = vcmask 15360  }
  0xbd   :  { %256 = vrot.lane.b32.xlu1 %v7146_v5, %s6629_s15  ;;  %1816 = vrot.lane.b32.xlu0 %v7011_v40, %s6635_s23  ;;  %v2135_v58 = vsel %vm12574_vm3, %v2087_v57, %v7139_v62  ;;  %vm12576_vm3 = vcmask 48128  }
  0xbe   :  { %v2183_v60 = vsel %vm2178_vm10, %v2135_v58, %v7149_v6 }
  0xbf   :  { %v955_v13 = vpop.permute.xlu1 %954  ;;  %v1664_v14 = vpop.permute.xlu0 %1663 }
  0xc0   :  { %v2374_v26 = vsel %vm2370_vm14, %v2326_v0, %v1664_v14  ;;  %v2231_v53 = vsel %vm12575_vm9, %v2183_v60, %v955_v13  ;;  %vm12578_vm9 = vcmask 1045504  }
  0xc1   :  { %1959 = vrot.lane.b32.xlu1 %v163_v30, %s6636_s24  ;;  %1203 = vrot.lane.b32.xlu0 %v1110_v1, %s6632_s18  ;;  %v1586_v1 = vsel %vm12562_vm6, %v1583_v21, %v1585_v46 }
  0xc3   :  { %v7172_v25 = vpop.permute.xlu1 %244  ;;  %v1805_v31 = vpop.permute.xlu0 %1804 }
  0xc4   :  { %v2422_v30 = vsel %vm2418_vm15, %v2374_v26, %v1805_v31  ;;  %v2088_v26 = vsel %vm2082_vm8, %v6851_v2, %v7172_v25 }
  0xc5   :  { %1440 = vrot.lane.b32.xlu1 %v1347_v18, %s6633_s19  ;;  %494 = vrot.lane.b32.xlu0 %v401_v20, %s6631_s17 }
  0xc7   :  { %v1948_v32 = vpop.permute.xlu1 %1947  ;;  %v1192_v33 = vpop.permute.xlu0 %1191 }
  0xc8   :  { %v2470_v37 = vsel %vm2466_vm0, %v2422_v30, %v1948_v32  ;;  %v2279_v4 = vsel %vm2274_vm12, %v2231_v53, %v1192_v33  ;;  %v1587_v32 = vrot.slane %v7188_v35, 7 }
  0xc9   :  { %1677 = vrot.lane.b32.xlu1 %v1584_v27, %s6634_s22  ;;  %731 = vrot.lane.b32.xlu0 %v638_v28, %s6628_s14  ;;  %v1351_v28 = vsel %vm1324_vm5, %v1348_v51, %v1350_v22 }
  0xca   :  { %6135 = vmatmul.mubr.msk.f32.gmra.mxu0 %vm2523_vm13, %v2470_v37 }
  0xcb   :  { %v1429_v42 = vpop.permute.xlu1 %1428  ;;  %v483_v43 = vpop.permute.xlu0 %482  ;;  %6137 = vmatprep.mubr.msk.f32.mxu0 %vm12557_vm7, %v6637_v47 }
  0xcc   :  { %v2327_v6 = vsel %vm12576_vm3, %v2279_v4, %v1429_v42  ;;  %v2136_v27 = vsel %vm12577_vm11, %v2088_v26, %v483_v43  ;;  %vm12579_vm3 = vcmask 31744   ;;  %vm12580_vm11 = vcmask 48128  }
  0xcd   :  { %1818 = vrot.lane.b32.xlu1 %v7080_v23, %s6635_s23  ;;  %968 = vrot.lane.b32.xlu0 %v875_v36, %s6630_s16  ;;  %v1588_v42 = vsel %vm12562_vm6, %v1585_v46, %v1587_v32 }
  0xcf   :  { %v1666_v49 = vpop.permute.xlu1 %1665  ;;  %v720_v52 = vpop.permute.xlu0 %719 }
  0xd0   :  { %v2375_v7 = vsel %vm2370_vm14, %v2327_v6, %v1666_v49  ;;  %v2184_v29 = vsel %vm2178_vm10, %v2136_v27, %v720_v52  ;;  %v7292_v52 = vld [vmem:[%s12538_s0 + $0x78] sm:$0xff] }
  0xd1   :  { %1205 = vrot.lane.b32.xlu1 %v1112_v44, %s6632_s18  ;;  %258 = vrot.lane.b32.xlu0 %v167_v45, %s6629_s15  ;;  %v406_v60 = vrot.slane %v7292_v52, 2  ;;  %v643_v46 = vrot.slane %v7292_v52, 3 }
  0xd3   :  { %v1807_v55 = vpop.permute.xlu1 %1806  ;;  %v957_v56 = vpop.permute.xlu0 %956 }
  0xd4   :  { %v2423_v13 = vsel %vm2418_vm15, %v2375_v7, %v1807_v55  ;;  %v2232_v37 = vsel %vm12579_vm3, %v2184_v29, %v957_v56  ;;  %v170_v55 = vrot.slane %v7292_v52, 1  ;;  %vm12582_vm3 = vcmask 1045504  }
  0xd5   :  { %496 = vrot.lane.b32.xlu1 %v403_v39, %s6631_s17  ;;  %1961 = vrot.lane.b32.xlu0 %v7146_v5, %s6636_s24  ;;  %v7232_v5 = vld [vmem:[%s12538_s0 + $0x70] sm:$0xff]  ;;  %v1117_v29 = vrot.slane %v7292_v52, 5 }
  0xd6   :  { %v168_v11 = vrot.slane %v7232_v5, 1  ;;  %v404_v31 = vrot.slane %v7232_v5, 2  ;;  %v641_v33 = vrot.slane %v7232_v5, 3  ;;  %v878_v44 = vrot.slane %v7232_v5, 4 }
  0xd7   :  { %v1194_v62 = vpop.permute.xlu1 %1193  ;;  %v7227_v3 = vpop.permute.xlu0 %246  ;;  %v1115_v51 = vrot.slane %v7232_v5, 5 }
  0xd8   :  { %v7250_v18 = vsel %vm140_vm1, %v166_v41, %v168_v11  ;;  %v405_v30 = vsel %vm12578_vm9, %v402_v48, %v404_v31  ;;  %v2280_v25 = vsel %vm2274_vm12, %v2232_v37, %v1194_v62  ;;  %vm12581_vm9 = vcmask 1044480  }
  0xd9   :  { %733 = vrot.lane.b32.xlu1 %v640_v59, %s6628_s14  ;;  %1442 = vrot.lane.b32.xlu0 %v1349_v61, %s6633_s19  ;;  %v642_v43 = vsel %vm12581_vm9, %v639_v8, %v641_v33  ;;  %v879_v8 = vsel %vm12559_vm2, %v876_v63, %v878_v44  ;;  %v1116_v58 = vsel %vm1087_vm4, %v1113_v19, %v1115_v51  ;;  %v1352_v62 = vrot.slane %v7232_v5, 6 }
  0xda   :  { %v171_v59 = vsel %vm140_vm1, %v168_v11, %v170_v55  ;;  %v407_v53 = vsel %vm12582_vm3, %v404_v31, %v406_v60  ;;  %v2089_v7 = vsel %vm2082_vm8, %v6878_v17, %v7227_v3  ;;  %v1589_v17 = vrot.slane %v7232_v5, 7 }
  0xdb   :  { %v7243_v14 = vpop.permute.xlu1 %484  ;;  %v1950_v15 = vpop.permute.xlu0 %1949  ;;  %vm12584_vm3 = vcmask 31744   ;;  %v1118_v37 = vsel %vm1087_vm4, %v1115_v51, %v1117_v29 }
  0xdc   :  { %v2471_v16 = vsel %vm2466_vm0, %v2423_v13, %v1950_v15  ;;  %v1353_v13 = vsel %vm1324_vm5, %v1350_v22, %v1352_v62  ;;  %v880_v15 = vrot.slane %v7292_v52, 4 }
  0xdd   :  { %970 = vrot.lane.b32.xlu1 %v877_v9, %s6630_s16  ;;  %1679 = vrot.lane.b32.xlu0 %v1586_v1, %s6634_s22  ;;  %v644_v1 = vsel %vm12581_vm9, %v641_v33, %v643_v46  ;;  %v1354_v33 = vrot.slane %v7292_v52, 6  ;;  %vm12586_vm9 = vcmask 15360  }
  0xde   :  { %6138 = vmatmul.mubr.msk.f32.gmra.mxu0 %vm2523_vm13, %v2471_v16  ;;  %v881_v22 = vsel %vm12559_vm2, %v878_v44, %v880_v15 }
  0xdf   :  { %v7253_v20 = vpop.permute.xlu1 %721  ;;  %v1431_v21 = vpop.permute.xlu0 %1430  ;;  %6140 = vmatprep.mubr.msk.f32.mxu0 %vm12557_vm7, %v6637_v47 }
  0xe0   :  { %v2328_v38 = vsel %vm12580_vm11, %v2280_v25, %v1431_v21  ;;  %vm12583_vm11 = vcmask 15360  }
  0xe1   :  { %260 = vrot.lane.b32.xlu1 %v7250_v18, %s6629_s15  ;;  %1820 = vrot.lane.b32.xlu0 %v7126_v54, %s6635_s23  ;;  %v2137_v9 = vsel %vm12583_vm11, %v2089_v7, %v7243_v14  ;;  %vm12585_vm11 = vcmask 48128  }
  0xe2   :  { %v2185_v11 = vsel %vm2178_vm10, %v2137_v9, %v7253_v20 }
  0xe3   :  { %v959_v10 = vpop.permute.xlu1 %958  ;;  %v1668_v0 = vpop.permute.xlu0 %1667 }
  0xe4   :  { %v2376_v41 = vsel %vm2370_vm14, %v2328_v38, %v1668_v0  ;;  %v2233_v3 = vsel %vm12584_vm3, %v2185_v11, %v959_v10  ;;  %vm12587_vm3 = vcmask 1045504  }
  0xe5   :  { %1963 = vrot.lane.b32.xlu1 %v167_v45, %s6636_s24  ;;  %1207 = vrot.lane.b32.xlu0 %v1114_v24, %s6632_s18  ;;  %v1590_v24 = vsel %vm12562_vm6, %v1587_v32, %v1589_v17 }
  0xe7   :  { %v7276_v36 = vpop.permute.xlu1 %248  ;;  %v1809_v2 = vpop.permute.xlu0 %1808 }
  0xe8   :  { %v2424_v45 = vsel %vm2418_vm15, %v2376_v41, %v1809_v2  ;;  %v2090_v41 = vsel %vm2082_vm8, %v6909_v34, %v7276_v36 }
  0xe9   :  { %1444 = vrot.lane.b32.xlu1 %v1351_v28, %s6633_s19  ;;  %498 = vrot.lane.b32.xlu0 %v405_v30, %s6631_s17 }
  0xeb   :  { %v1952_v48 = vpop.permute.xlu1 %1951  ;;  %v1196_v49 = vpop.permute.xlu0 %1195 }
  0xec   :  { %v2472_v39 = vsel %vm2466_vm0, %v2424_v45, %v1952_v48  ;;  %v2281_v19 = vsel %vm2274_vm12, %v2233_v3, %v1196_v49  ;;  %v1591_v48 = vrot.slane %v7292_v52, 7 }
  0xed   :  { %1681 = vrot.lane.b32.xlu1 %v1588_v42, %s6634_s22  ;;  %735 = vrot.lane.b32.xlu0 %v642_v43, %s6628_s14  ;;  %v1355_v43 = vsel %vm1324_vm5, %v1352_v62, %v1354_v33 }
  0xee   :  { %6141 = vmatmul.mubr.msk.f32.gmra.mxu0 %vm2523_vm13, %v2472_v39 }
  0xef   :  { %v1433_v56 = vpop.permute.xlu1 %1432  ;;  %v487_v57 = vpop.permute.xlu0 %486  ;;  %6143 = vmatprep.mubr.msk.f32.mxu0 %vm12557_vm7, %v6637_v47 }
  0xf0   :  { %v2329_v20 = vsel %vm12585_vm11, %v2281_v19, %v1433_v56  ;;  %v2138_v42 = vsel %vm12586_vm9, %v2090_v41, %v487_v57  ;;  %vm12588_vm11 = vcmask 31744   ;;  %vm12589_vm9 = vcmask 48128  }
  0xf1   :  { %1822 = vrot.lane.b32.xlu1 %v7188_v35, %s6635_s23  ;;  %972 = vrot.lane.b32.xlu0 %v879_v8, %s6630_s16  ;;  %v1592_v56 = vsel %vm12562_vm6, %v1589_v17, %v1591_v48 }
  0xf3   :  { %v1670_v61 = vpop.permute.xlu1 %1669  ;;  %v724_v63 = vpop.permute.xlu0 %723 }
  0xf4   :  { %v2377_v21 = vsel %vm2370_vm14, %v2329_v20, %v1670_v61  ;;  %v2186_v44 = vsel %vm2178_vm10, %v2138_v42, %v724_v63  ;;  %v7396_v63 = vld [vmem:[%s12538_s0 + $0x88] sm:$0xff] }
  0xf5   :  { %1209 = vrot.lane.b32.xlu1 %v1116_v58, %s6632_s18  ;;  %262 = vrot.lane.b32.xlu0 %v171_v59, %s6629_s15  ;;  %v410_v11 = vrot.slane %v7396_v63, 2  ;;  %v647_v17 = vrot.slane %v7396_v63, 3 }
  0xf7   :  { %v1811_v4 = vpop.permute.xlu1 %1810  ;;  %v961_v6 = vpop.permute.xlu0 %960 }
  0xf8   :  { %v2425_v10 = vsel %vm2418_vm15, %v2377_v21, %v1811_v4  ;;  %v2234_v39 = vsel %vm12588_vm11, %v2186_v44, %v961_v6  ;;  %v174_v4 = vrot.slane %v7396_v63, 1  ;;  %vm12591_vm11 = vcmask 1045504  }
  0xf9   :  { %500 = vrot.lane.b32.xlu1 %v407_v53, %s6631_s17  ;;  %1965 = vrot.lane.b32.xlu0 %v7250_v18, %s6636_s24  ;;  %v7336_v18 = vld [vmem:[%s12538_s0 + $0x80] sm:$0xff]  ;;  %v1121_v44 = vrot.slane %v7396_v63, 5 }
  0xfa   :  { %v172_v31 = vrot.slane %v7336_v18, 1  ;;  %v408_v2 = vrot.slane %v7336_v18, 2  ;;  %v645_v49 = vrot.slane %v7336_v18, 3  ;;  %v882_v58 = vrot.slane %v7336_v18, 4 }
  0xfb   :  { %v1198_v14 = vpop.permute.xlu1 %1197  ;;  %v7331_v16 = vpop.permute.xlu0 %250  ;;  %v1119_v62 = vrot.slane %v7336_v18, 5 }
  0xfc   :  { %v7354_v28 = vsel %vm140_vm1, %v170_v55, %v172_v31  ;;  %v409_v45 = vsel %vm12587_vm3, %v406_v60, %v408_v2  ;;  %v2282_v36 = vsel %vm2274_vm12, %v2234_v39, %v1198_v14  ;;  %vm12590_vm3 = vcmask 1044480  }
  0xfd   :  { %737 = vrot.lane.b32.xlu1 %v644_v1, %s6628_s14  ;;  %1446 = vrot.lane.b32.xlu0 %v1353_v13, %s6633_s19  ;;  %v646_v57 = vsel %vm12590_vm3, %v643_v46, %v645_v49  ;;  %v883_v46 = vsel %vm12559_vm2, %v880_v15, %v882_v58  ;;  %v1120_v9 = vsel %vm1087_vm4, %v1117_v29, %v1119_v62  ;;  %v1356_v14 = vrot.slane %v7336_v18, 6 }
  0xfe   :  { %v175_v1 = vsel %vm140_vm1, %v172_v31, %v174_v4  ;;  %v411_v3 = vsel %vm12591_vm11, %v408_v2, %v410_v11  ;;  %v2091_v21 = vsel %vm2082_vm8, %v6936_v50, %v7331_v16  ;;  %v1593_v50 = vrot.slane %v7336_v18, 7 }
  0xff   :  { %v7347_v0 = vpop.permute.xlu1 %488  ;;  %v1954_v26 = vpop.permute.xlu0 %1953  ;;  %vm12593_vm11 = vcmask 31744   ;;  %v1122_v39 = vsel %vm1087_vm4, %v1119_v62, %v1121_v44 }
 0x100   :  { %v2473_v27 = vsel %vm2466_vm0, %v2425_v10, %v1954_v26  ;;  %v1357_v10 = vsel %vm1324_vm5, %v1354_v33, %v1356_v14  ;;  %v884_v26 = vrot.slane %v7396_v63, 4 }
 0x101   :  { %974 = vrot.lane.b32.xlu1 %v881_v22, %s6630_s16  ;;  %1683 = vrot.lane.b32.xlu0 %v1590_v24, %s6634_s22  ;;  %v648_v24 = vsel %vm12590_vm3, %v645_v49, %v647_v17  ;;  %v1358_v49 = vrot.slane %v7396_v63, 6  ;;  %vm12595_vm3 = vcmask 15360  }
 0x102   :  { %6144 = vmatmul.mubr.msk.f32.gmra.mxu0 %vm2523_vm13, %v2473_v27  ;;  %v885_v33 = vsel %vm12559_vm2, %v882_v58, %v884_v26 }
 0x103   :  { %v7357_v30 = vpop.permute.xlu1 %725  ;;  %v1435_v32 = vpop.permute.xlu0 %1434  ;;  %6146 = vmatprep.mubr.msk.f32.mxu0 %vm12557_vm7, %v6637_v47 }
 0x104   :  { %v2330_v51 = vsel %vm12589_vm9, %v2282_v36, %v1435_v32  ;;  %vm12592_vm9 = vcmask 15360  }
 0x105   :  { %264 = vrot.lane.b32.xlu1 %v7354_v28, %s6629_s15  ;;  %1824 = vrot.lane.b32.xlu0 %v7232_v5, %s6635_s23  ;;  %v2139_v22 = vsel %vm12592_vm9, %v2091_v21, %v7347_v0  ;;  %vm12594_vm9 = vcmask 48128  }
 0x106   :  { %v2187_v31 = vsel %vm2178_vm10, %v2139_v22, %v7357_v30 }
 0x107   :  { %v963_v25 = vpop.permute.xlu1 %962  ;;  %v1672_v38 = vpop.permute.xlu0 %1671 }
 0x108   :  { %v2378_v55 = vsel %vm2370_vm14, %v2330_v51, %v1672_v38  ;;  %v2235_v16 = vsel %vm12593_vm11, %v2187_v31, %v963_v25  ;;  %vm12596_vm11 = vcmask 1045504  }
 0x109   :  { %1967 = vrot.lane.b32.xlu1 %v171_v59, %s6636_s24  ;;  %1211 = vrot.lane.b32.xlu0 %v1118_v37, %s6632_s18  ;;  %v1594_v37 = vsel %vm12562_vm6, %v1591_v48, %v1593_v50 }
 0x10b   :  { %v7380_v8 = vpop.permute.xlu1 %252  ;;  %v1813_v34 = vpop.permute.xlu0 %1812 }
 0x10c   :  { %v2426_v59 = vsel %vm2418_vm15, %v2378_v55, %v1813_v34  ;;  %v2092_v55 = vsel %vm2082_vm8, %v6969_v12, %v7380_v8 }
 0x10d   :  { %1448 = vrot.lane.b32.xlu1 %v1355_v43, %s6633_s19  ;;  %502 = vrot.lane.b32.xlu0 %v409_v45, %s6631_s17 }
 0x10f   :  { %v1956_v60 = vpop.permute.xlu1 %1955  ;;  %v1200_v61 = vpop.permute.xlu0 %1199 }
 0x110   :  { %v2474_v53 = vsel %vm2466_vm0, %v2426_v59, %v1956_v60  ;;  %v2283_v29 = vsel %vm2274_vm12, %v2235_v16, %v1200_v61  ;;  %v1595_v60 = vrot.slane %v7396_v63, 7 }
 0x111   :  { %1685 = vrot.lane.b32.xlu1 %v1592_v56, %s6634_s22  ;;  %739 = vrot.lane.b32.xlu0 %v646_v57, %s6628_s14  ;;  %v1359_v57 = vsel %vm1324_vm5, %v1356_v14, %v1358_v49 }
 0x112   :  { %6147 = vmatmul.mubr.msk.f32.gmra.mxu0 %vm2523_vm13, %v2474_v53 }
 0x113   :  { %v1437_v6 = vpop.permute.xlu1 %1436  ;;  %v491_v7 = vpop.permute.xlu0 %490  ;;  %6149 = vmatprep.mubr.msk.f32.mxu0 %vm12557_vm7, %v6637_v47 }
 0x114   :  { %v2331_v30 = vsel %vm12594_vm9, %v2283_v29, %v1437_v6  ;;  %v2140_v56 = vsel %vm12595_vm3, %v2092_v55, %v491_v7  ;;  %vm12597_vm9 = vcmask 31744   ;;  %vm12598_vm3 = vcmask 48128  }
 0x115   :  { %1826 = vrot.lane.b32.xlu1 %v7292_v52, %s6635_s23  ;;  %976 = vrot.lane.b32.xlu0 %v883_v46, %s6630_s16  ;;  %v1596_v6 = vsel %vm12562_vm6, %v1593_v50, %v1595_v60 }
 0x117   :  { %v1674_v13 = vpop.permute.xlu1 %1673  ;;  %v728_v15 = vpop.permute.xlu0 %727 }
 0x118   :  { %v2379_v32 = vsel %vm2370_vm14, %v2331_v30, %v1674_v13  ;;  %v2188_v58 = vsel %vm2178_vm10, %v2140_v56, %v728_v15  ;;  %v7500_v15 = vld [vmem:[%s12538_s0 + $0x98] sm:$0xff] }
 0x119   :  { %1213 = vrot.lane.b32.xlu1 %v1120_v9, %s6632_s18  ;;  %266 = vrot.lane.b32.xlu0 %v175_v1, %s6629_s15  ;;  %v414_v31 = vrot.slane %v7500_v15, 2  ;;  %v651_v50 = vrot.slane %v7500_v15, 3 }
 0x11b   :  { %v1815_v19 = vpop.permute.xlu1 %1814  ;;  %v965_v20 = vpop.permute.xlu0 %964 }
 0x11c   :  { %v2427_v25 = vsel %vm2418_vm15, %v2379_v32, %v1815_v19  ;;  %v2236_v53 = vsel %vm12597_vm9, %v2188_v58, %v965_v20  ;;  %v178_v19 = vrot.slane %v7500_v15, 1  ;;  %vm12600_vm9 = vcmask 1045504  }
 0x11d   :  { %504 = vrot.lane.b32.xlu1 %v411_v3, %s6631_s17  ;;  %1969 = vrot.lane.b32.xlu0 %v7354_v28, %s6636_s24  ;;  %v7440_v28 = vld [vmem:[%s12538_s0 + $0x90] sm:$0xff]  ;;  %v1125_v58 = vrot.slane %v7500_v15, 5 }
 0x11e   :  { %v176_v2 = vrot.slane %v7440_v28, 1  ;;  %v412_v34 = vrot.slane %v7440_v28, 2  ;;  %v649_v61 = vrot.slane %v7440_v28, 3  ;;  %v886_v9 = vrot.slane %v7440_v28, 4 }
 0x11f   :  { %v1202_v0 = vpop.permute.xlu1 %1201  ;;  %v7435_v27 = vpop.permute.xlu0 %254  ;;  %v1123_v14 = vrot.slane %v7440_v28, 5 }
 0x120   :  { %v7458_v43 = vsel %vm140_vm1, %v174_v4, %v176_v2  ;;  %v413_v59 = vsel %vm12596_vm11, %v410_v11, %v412_v34  ;;  %v2284_v8 = vsel %vm2274_vm12, %v2236_v53, %v1202_v0  ;;  %vm12599_vm11 = vcmask 1044480  }
 0x121   :  { %741 = vrot.lane.b32.xlu1 %v648_v24, %s6628_s14  ;;  %1450 = vrot.lane.b32.xlu0 %v1357_v10, %s6633_s19  ;;  %v650_v7 = vsel %vm12599_vm11, %v647_v17, %v649_v61  ;;  %v887_v17 = vsel %vm12559_vm2, %v884_v26, %v886_v9  ;;  %v1124_v22 = vsel %vm1087_vm4, %v1121_v44, %v1123_v14  ;;  %v1360_v0 = vrot.slane %v7440_v28, 6 }
 0x122   :  { %v179_v24 = vsel %vm140_vm1, %v176_v2, %v178_v19  ;;  %v415_v16 = vsel %vm12600_vm9, %v412_v34, %v414_v31  ;;  %v2093_v32 = vsel %vm2082_vm8, %v7011_v40, %v7435_v27  ;;  %v1597_v40 = vrot.slane %v7440_v28, 7 }
 0x123   :  { %v7451_v38 = vpop.permute.xlu1 %492  ;;  %v1958_v41 = vpop.permute.xlu0 %1957  ;;  %vm12602_vm9 = vcmask 31744   ;;  %v1126_v53 = vsel %vm1087_vm4, %v1123_v14, %v1125_v58 }
 0x124   :  { %v2475_v42 = vsel %vm2466_vm0, %v2427_v25, %v1958_v41  ;;  %v1361_v25 = vsel %vm1324_vm5, %v1358_v49, %v1360_v0  ;;  %v888_v41 = vrot.slane %v7500_v15, 4 }
 0x125   :  { %978 = vrot.lane.b32.xlu1 %v885_v33, %s6630_s16  ;;  %1687 = vrot.lane.b32.xlu0 %v1594_v37, %s6634_s22  ;;  %v652_v37 = vsel %vm12599_vm11, %v649_v61, %v651_v50  ;;  %v1362_v61 = vrot.slane %v7500_v15, 6  ;;  %vm12604_vm11 = vcmask 15360  }
 0x126   :  { %6150 = vmatmul.mubr.msk.f32.gmra.mxu0 %vm2523_vm13, %v2475_v42  ;;  %v889_v49 = vsel %vm12559_vm2, %v886_v9, %v888_v41 }
 0x127   :  { %v7461_v45 = vpop.permute.xlu1 %729  ;;  %v1439_v48 = vpop.permute.xlu0 %1438  ;;  %6152 = vmatprep.mubr.msk.f32.mxu0 %vm12557_vm7, %v6637_v47 }
 0x128   :  { %v2332_v62 = vsel %vm12598_vm3, %v2284_v8, %v1439_v48  ;;  %vm12601_vm3 = vcmask 15360  }
 0x129   :  { %268 = vrot.lane.b32.xlu1 %v7458_v43, %s6629_s15  ;;  %1828 = vrot.lane.b32.xlu0 %v7336_v18, %s6635_s23  ;;  %v2141_v33 = vsel %vm12601_vm3, %v2093_v32, %v7451_v38  ;;  %vm12603_vm3 = vcmask 48128  }
 0x12a   :  { %v2189_v2 = vsel %vm2178_vm10, %v2141_v33, %v7461_v45 }
 0x12b   :  { %v967_v36 = vpop.permute.xlu1 %966  ;;  %v1676_v51 = vpop.permute.xlu0 %1675 }
 0x12c   :  { %v2380_v4 = vsel %vm2370_vm14, %v2332_v62, %v1676_v51  ;;  %v2237_v27 = vsel %vm12602_vm9, %v2189_v2, %v967_v36  ;;  %vm12605_vm9 = vcmask 1045504  }
 0x12d   :  { %1971 = vrot.lane.b32.xlu1 %v175_v1, %s6636_s24  ;;  %1215 = vrot.lane.b32.xlu0 %v1122_v39, %s6632_s18  ;;  %v1598_v39 = vsel %vm12562_vm6, %v1595_v60, %v1597_v40 }
 0x12f   :  { %v7484_v46 = vpop.permute.xlu1 %256  ;;  %v1817_v12 = vpop.permute.xlu0 %1816 }
 0x130   :  { %v2428_v1 = vsel %vm2418_vm15, %v2380_v4, %v1817_v12  ;;  %v2094_v4 = vsel %vm2082_vm8, %v7080_v23, %v7484_v46 }
 0x131   :  { %1452 = vrot.lane.b32.xlu1 %v1359_v57, %s6633_s19  ;;  %506 = vrot.lane.b32.xlu0 %v413_v59, %s6631_s17 }
 0x133   :  { %v1960_v11 = vpop.permute.xlu1 %1959  ;;  %v1204_v13 = vpop.permute.xlu0 %1203 }
 0x134   :  { %v2476_v3 = vsel %vm2466_vm0, %v2428_v1, %v1960_v11  ;;  %v2285_v44 = vsel %vm2274_vm12, %v2237_v27, %v1204_v13  ;;  %v1599_v11 = vrot.slane %v7500_v15, 7 }
 0x135   :  { %1689 = vrot.lane.b32.xlu1 %v1596_v6, %s6634_s22  ;;  %743 = vrot.lane.b32.xlu0 %v650_v7, %s6628_s14  ;;  %v1363_v7 = vsel %vm1324_vm5, %v1360_v0, %v1362_v61 }
 0x136   :  { %6153 = vmatmul.mubr.msk.f32.gmra.mxu0 %vm2523_vm13, %v2476_v3 }
 0x137   :  { %v1441_v20 = vpop.permute.xlu1 %1440  ;;  %v495_v21 = vpop.permute.xlu0 %494  ;;  %6155 = vmatprep.mubr.msk.f32.mxu0 %vm12557_vm7, %v6637_v47 }
 0x138   :  { %v2333_v45 = vsel %vm12603_vm3, %v2285_v44, %v1441_v20  ;;  %v2142_v6 = vsel %vm12604_vm11, %v2094_v4, %v495_v21  ;;  %vm12606_vm3 = vcmask 31744   ;;  %vm12607_vm11 = vcmask 48128  }
 0x139   :  { %1830 = vrot.lane.b32.xlu1 %v7396_v63, %s6635_s23  ;;  %980 = vrot.lane.b32.xlu0 %v887_v17, %s6630_s16  ;;  %v1600_v21 = vsel %vm12562_vm6, %v1597_v40, %v1599_v11 }
 0x13b   :  { %v1678_v10 = vpop.permute.xlu1 %1677  ;;  %v732_v26 = vpop.permute.xlu0 %731 }
 0x13c   :  { %v2381_v48 = vsel %vm2370_vm14, %v2333_v45, %v1678_v10  ;;  %v2190_v9 = vsel %vm2178_vm10, %v2142_v6, %v732_v26 }
 0x13d   :  { %1217 = vrot.lane.b32.xlu1 %v1124_v22, %s6632_s18  ;;  %270 = vrot.lane.b32.xlu0 %v179_v24, %s6629_s15 }
 0x13f   :  { %v1819_v29 = vpop.permute.xlu1 %1818  ;;  %v969_v30 = vpop.permute.xlu0 %968 }
 0x140   :  { %v2429_v36 = vsel %vm2418_vm15, %v2381_v48, %v1819_v29  ;;  %v2238_v23 = vsel %vm12606_vm3, %v2190_v9, %v969_v30  ;;  %vm12609_vm3 = vcmask 1045504  }
 0x141   :  { %508 = vrot.lane.b32.xlu1 %v415_v16, %s6631_s17  ;;  %1973 = vrot.lane.b32.xlu0 %v7458_v43, %s6636_s24  ;;  %v7544_v43 = vld [vmem:[%s12538_s0 + $0xa0] sm:$0xff]  ;;  %v7612_v16 = vld [vmem:[%s12538_s0 + $0xa8] sm:$0xff] }
 0x142   :  { %v180_v34 = vrot.slane %v7544_v43, 1  ;;  %v416_v12 = vrot.slane %v7544_v43, 2  ;;  %v653_v13 = vrot.slane %v7544_v43, 3  ;;  %v1127_v30 = vrot.slane %v7544_v43, 5 }
 0x143   :  { %v1206_v38 = vpop.permute.xlu1 %1205  ;;  %v7539_v42 = vpop.permute.xlu0 %258  ;;  %v182_v32 = vrot.slane %v7612_v16, 1  ;;  %v655_v44 = vrot.slane %v7612_v16, 3  ;;  %v1364_v48 = vrot.slane %v7544_v43, 6 }
 0x144   :  { %v7564_v57 = vsel %vm140_vm1, %v178_v19, %v180_v34  ;;  %v417_v1 = vsel %vm12605_vm9, %v414_v31, %v416_v12  ;;  %v2286_v17 = vsel %vm2274_vm12, %v2238_v23, %v1206_v38  ;;  %vm12608_vm9 = vcmask 1044480   ;;  %v7642_v38 = vld [vmem:[%s12540_s2] ss:$0 sm:$0xff] }
 0x145   :  { %745 = vrot.lane.b32.xlu1 %v652_v37, %s6628_s14  ;;  %1454 = vrot.lane.b32.xlu0 %v1361_v25, %s6633_s19  ;;  %v654_v22 = vsel %vm12608_vm9, %v651_v50, %v653_v13  ;;  %v1128_v2 = vsel %vm1087_vm4, %v1125_v58, %v1127_v30  ;;  %v7634_v25 = vsel %vm140_vm1, %v180_v34, %v182_v32 }
 0x147   :  { %v7557_v51 = vpop.permute.xlu1 %496  ;;  %v1962_v55 = vpop.permute.xlu0 %1961 }
 0x148   :  { %v2477_v56 = vsel %vm2466_vm0, %v2429_v36, %v1962_v55  ;;  %v2095_v36 = vsel %vm2082_vm8, %v7126_v54, %v7539_v42  ;;  %v1365_v54 = vsel %vm1324_vm5, %v1362_v61, %v1364_v48  ;;  %v892_v42 = vrot.slane %v7612_v16, 4 }
 0x149   :  { %982 = vrot.lane.b32.xlu1 %v889_v49, %s6630_s16  ;;  %1691 = vrot.lane.b32.xlu0 %v1598_v39, %s6634_s22 }
 0x14a   :  { %6156 = vmatmul.mubr.msk.f32.gmra.mxu0 %vm2523_vm13, %v2477_v56  ;;  %v656_v56 = vsel %vm12608_vm9, %v653_v13, %v655_v44 }
 0x14b   :  { %v7567_v59 = vpop.permute.xlu1 %733  ;;  %v1443_v60 = vpop.permute.xlu0 %1442  ;;  %6158 = vmatprep.mubr.msk.f32.mxu0 %vm12557_vm7, %v6637_v47 }
 0x14c   :  { %v2334_v14 = vsel %vm12607_vm11, %v2286_v17, %v1443_v60  ;;  %vm12610_vm11 = vcmask 15360  }
 0x14d   :  { %272 = vrot.lane.b32.xlu1 %v7564_v57, %s6629_s15  ;;  %1832 = vrot.lane.b32.xlu0 %v7440_v28, %s6635_s23  ;;  %v2143_v55 = vsel %vm12610_vm11, %v2095_v36, %v7557_v51  ;;  %v1601_v51 = vrot.slane %v7544_v43, 7  ;;  %vm12612_vm11 = vcmask 48128  }
 0x14e   :  { %v2191_v58 = vsel %vm2178_vm10, %v2143_v55, %v7567_v59  ;;  %v7681_v59 = vld [vmem:[%s12538_s0 + $0xb0] sm:$0xff] }
 0x14f   :  { %v7578_v8 = vpop.permute.xlu1 %970  ;;  %v1680_v62 = vpop.permute.xlu0 %1679  ;;  %v1602_v13 = vsel %vm12562_vm6, %v1599_v11, %v1601_v51  ;;  %v184_v23 = vrot.slane %v7681_v59, 1 }
 0x150   :  { %v2382_v19 = vsel %vm2370_vm14, %v2334_v14, %v1680_v62 }
 0x151   :  { %1975 = vrot.lane.b32.xlu1 %v179_v24, %s6636_s24  ;;  %1219 = vrot.lane.b32.xlu0 %v1126_v53, %s6632_s18  ;;  %v890_v24 = vrot.slane %v7544_v43, 4 }
 0x153   :  { %v7594_v46 = vpop.permute.xlu1 %260  ;;  %v1821_v3 = vpop.permute.xlu0 %1820  ;;  %v891_v50 = vsel %vm12559_vm2, %v888_v41, %v890_v24  ;;  %v418_v41 = vrot.slane %v7612_v16, 2 }
 0x154   :  { %v2430_v31 = vsel %vm2418_vm15, %v2382_v19, %v1821_v3 }
 0x155   :  { %1456 = vrot.lane.b32.xlu1 %v1363_v7, %s6633_s19  ;;  %510 = vrot.lane.b32.xlu0 %v417_v1, %s6631_s17  ;;  %v419_v45 = vsel %vm12609_vm3, %v416_v12, %v418_v41  ;;  %vm12611_vm3 = vcmask 31744   ;;  %v893_v1 = vsel %vm12559_vm2, %v890_v24, %v892_v42  ;;  %v7709_v24 = vsel %vm140_vm1, %v182_v32, %v184_v23 }
 0x156   :  { %v2734_v20 = vpop.f32.mrf.mxu0  ;;  %v2239_v53 = vsel %vm12611_vm3, %v2191_v58, %v7578_v8  ;;  %vm12613_vm9 = vmmov %vm12611_vm3  ;;  %vm12614_vm3 = vcmask 15360  }
 0x157   :  { %v1964_v10 = vpop.permute.xlu1 %1963  ;;  %v1208_v26 = vpop.permute.xlu0 %1207  ;;  %v2735_v49 = vadd.f32 %v7642_v38, %v2734_v20 }
 0x158   :  { %v2478_v0 = vsel %vm2466_vm0, %v2430_v31, %v1964_v10  ;;  %v6127_v29 = vpop.f32.mrf.mxu0  ;;  %v2287_v61 = vsel %vm2274_vm12, %v2239_v53, %v1208_v26  ;;  %v1129_v31 = vrot.slane %v7612_v16, 5 }
 0x159   :  { %1693 = vrot.lane.b32.xlu1 %v1600_v21, %s6634_s22  ;;  %747 = vrot.lane.b32.xlu0 %v654_v22, %s6628_s14 }
 0x15a   :  { %6159 = vmatmul.mubr.msk.f32.gmra.mxu0 %vm2523_vm13, %v2478_v0  ;;  %v1366_v0 = vrot.slane %v7612_v16, 6  ;;  %v1130_v29 = vsel %vm1087_vm4, %v1127_v30, %v1129_v31 }
 0x15b   :  { %v1445_v33 = vpop.permute.xlu1 %1444  ;;  %v7623_v37 = vpop.permute.xlu0 %498  ;;  %6161 = vmatprep.mubr.msk.f32.mxu0 %vm12557_vm7, %v6637_v47 }
 0x15c   :  { %v2335_v7 = vsel %vm12612_vm11, %v2287_v61, %v1445_v33  ;;  %v1367_v30 = vsel %vm1324_vm5, %v1364_v48, %v1366_v0  ;;  %vm12615_vm11 = vcmask 1045504  }
 0x15d   :  { %1834 = vrot.lane.b32.xlu1 %v7500_v15, %s6635_s23  ;;  %984 = vrot.lane.b32.xlu0 %v891_v50, %s6630_s16  ;;  %v420_v50 = vrot.slane %v7681_v59, 2 }
 0x15f   :  { %v1682_v40 = vpop.permute.xlu1 %1681  ;;  %v7637_v27 = vpop.permute.xlu0 %735 }
 0x160   :  { %v2383_v8 = vsel %vm2370_vm14, %v2335_v7, %v1682_v40 }
 0x161   :  { %1221 = vrot.lane.b32.xlu1 %v1128_v2, %s6632_s18  ;;  %274 = vrot.lane.b32.xlu0 %v7634_v25, %s6629_s15  ;;  %v2096_v2 = vsel %vm2082_vm8, %v7188_v35, %v7594_v46  ;;  %v1603_v35 = vrot.slane %v7612_v16, 7  ;;  %v657_v46 = vrot.slane %v7681_v59, 3 }
 0x162   :  { %v2144_v40 = vsel %vm12614_vm3, %v2096_v2, %v7623_v37  ;;  %vm12616_vm3 = vcmask 48128  }
 0x163   :  { %v1823_v39 = vpop.permute.xlu1 %1822  ;;  %v973_v34 = vpop.permute.xlu0 %972  ;;  %v1604_v55 = vsel %vm12562_vm6, %v1601_v51, %v1603_v35 }
 0x164   :  { %v2431_v17 = vsel %vm2418_vm15, %v2383_v8, %v1823_v39 }
 0x165   :  { %512 = vrot.lane.b32.xlu1 %v419_v45, %s6631_s17  ;;  %1977 = vrot.lane.b32.xlu0 %v7564_v57, %s6636_s24  ;;  %v2968_v57 = vmax.f32 %v2735_v49, 0.0  ;;  %v2192_v45 = vsel %vm2178_vm10, %v2144_v40, %v7637_v27  ;;  %v421_v49 = vsel %vm12615_vm11, %v418_v41, %v420_v50  ;;  %vm12617_vm11 = vcmask 1044480  }
 0x166   :  { %v2739_v60 = vpop.f32.mrf.mxu0  ;;  %v2240_v37 = vsel %vm12613_vm9, %v2192_v45, %v973_v34  ;;  %v658_v34 = vsel %vm12617_vm11, %v655_v44, %v657_v46  ;;  %vm12619_vm11 = vcmask 15360  }
 0x167   :  { %v7674_v12 = vadd.f32 %v7642_v38, %v2739_v60  ;;  %v1210_v62 = vpop.permute.xlu1 %1209  ;;  %v7676_v4 = vpop.permute.xlu0 %262  ;;  %v3062_v3 = vrot.slane %v2968_v57, 1 }
 0x168   :  { %v6130_v6 = vpop.f32.mrf.mxu0  ;;  %v2288_v36 = vsel %vm2274_vm12, %v2240_v37, %v1210_v62 }
 0x169   :  { %v2969_v9 = vmax.f32 %v7674_v12, 0.0  ;;  %749 = vrot.lane.b32.xlu1 %v656_v56, %s6628_s14  ;;  %1458 = vrot.lane.b32.xlu0 %v1365_v54, %s6633_s19  ;;  %v894_v56 = vrot.slane %v7681_v59, 4  ;;  %v1131_v6 = vrot.slane %v7681_v59, 5 }
 0x16b   :  { %v3063_v14 = vrot.slane %v2969_v9, 1  ;;  %v7699_v19 = vpop.permute.xlu1 %500  ;;  %v1966_v20 = vpop.permute.xlu0 %1965  ;;  %v895_v44 = vsel %vm12559_vm2, %v892_v42, %v894_v56 }
 0x16c   :  { %v2479_v21 = vsel %vm2466_vm0, %v2431_v17, %v1966_v20  ;;  %v1132_v17 = vsel %vm1087_vm4, %v1129_v31, %v1131_v6 }
 0x16d   :  { %v3064_v22 = vsel %vm140_vm1, %v3062_v3, %v3063_v14  ;;  %986 = vrot.lane.b32.xlu1 %v893_v1, %s6630_s16  ;;  %1695 = vrot.lane.b32.xlu0 %v1602_v13, %s6634_s22 }
 0x16e   :  { %v3202_v11 = vmax.f32 %v2968_v57, %v3064_v22  ;;  %6162 = vmatmul.mubr.msk.f32.gmra.mxu0 %vm2523_vm13, %v2479_v21  ;;  %v7768_v57 = vld [vmem:[%s12538_s0 + $0xb8] sm:$0xff] }
 0x16f   :  { %v7712_v10 = vpop.permute.xlu1 %737  ;;  %v1447_v26 = vpop.permute.xlu0 %1446  ;;  %6164 = vmatprep.mubr.msk.f32.mxu0 %vm12557_vm7, %v6637_v47  ;;  %v186_v7 = vrot.slane %v7768_v57, 1  ;;  %v422_v21 = vrot.slane %v7768_v57, 2  ;;  %v659_v12 = vrot.slane %v7768_v57, 3 }
 0x170   :  { %3249 = vst.msk [vmem:[#allocation2] sm:$0xff] %vm12613_vm9, %v3202_v11  ;;  %v2336_v48 = vsel %vm12616_vm3, %v2288_v36, %v1447_v26  ;;  %vm12618_vm3 = vcmask 1045504   ;;  %v2097_v26 = vsel %vm2082_vm8, %v7232_v5, %v7676_v4  ;;  %v896_v4 = vrot.slane %v7768_v57, 4 }
 0x171   :  { %276 = vrot.lane.b32.xlu1 %v7709_v24, %s6629_s15  ;;  %1836 = vrot.lane.b32.xlu0 %v7544_v43, %s6635_s23  ;;  %v7796_v20 = vsel %vm140_vm1, %v184_v23, %v186_v7  ;;  %v1368_v23 = vrot.slane %v7681_v59, 6 }
 0x173   :  { %v7726_v32 = vpop.permute.xlu1 %974  ;;  %v1684_v33 = vpop.permute.xlu0 %1683  ;;  %v1369_v5 = vsel %vm1324_vm5, %v1366_v0, %v1368_v23 }
 0x174   :  { %v2384_v27 = vsel %vm2370_vm14, %v2336_v48, %v1684_v33 }
 0x175   :  { %1979 = vrot.lane.b32.xlu1 %v7634_v25, %s6636_s24  ;;  %1223 = vrot.lane.b32.xlu0 %v1130_v29, %s6632_s18  ;;  %v2145_v29 = vsel %vm12619_vm11, %v2097_v26, %v7699_v19  ;;  %v1605_v19 = vrot.slane %v7681_v59, 7  ;;  %vm12622_vm11 = vcmask 48128  }
 0x176   :  { %v2193_v33 = vsel %vm2178_vm10, %v2145_v29, %v7712_v10  ;;  %v7838_v10 = vld [vmem:[%s12538_s0 + $0xc0] sm:$0xff] }
 0x177   :  { %v7747_v25 = vpop.permute.xlu1 %264  ;;  %v1825_v39 = vpop.permute.xlu0 %1824  ;;  %v1606_v36 = vsel %vm12562_vm6, %v1603_v35, %v1605_v19  ;;  %v188_v48 = vrot.slane %v7838_v10, 1  ;;  %v898_v26 = vrot.slane %v7838_v10, 4 }
 0x178   :  { %v2432_v58 = vsel %vm2418_vm15, %v2384_v27, %v1825_v39  ;;  %v897_v39 = vsel %vm12559_vm2, %v894_v56, %v896_v4 }
 0x179   :  { %1460 = vrot.lane.b32.xlu1 %v1367_v30, %s6633_s19  ;;  %514 = vrot.lane.b32.xlu0 %v421_v49, %s6631_s17  ;;  %v7866_v35 = vsel %vm140_vm1, %v186_v7, %v188_v48 }
 0x17a   :  { %v2744_v41 = vpop.f32.mrf.mxu0 }
 0x17b   :  { %v7763_v60 = vadd.f32 %v7642_v38, %v2744_v41  ;;  %v1968_v54 = vpop.permute.xlu1 %1967  ;;  %v1212_v53 = vpop.permute.xlu0 %1211 }
 0x17c   :  { %v2480_v51 = vsel %vm2466_vm0, %v2432_v58, %v1968_v54  ;;  %v6133_v62 = vpop.f32.mrf.mxu0  ;;  %v1133_v54 = vrot.slane %v7768_v57, 5 }
 0x17d   :  { %v2970_v61 = vmax.f32 %v7763_v60, 0.0  ;;  %1697 = vrot.lane.b32.xlu1 %v1604_v55, %s6634_s22  ;;  %751 = vrot.lane.b32.xlu0 %v658_v34, %s6628_s14  ;;  %v1370_v62 = vrot.slane %v7768_v57, 6 }
 0x17e   :  { %6165 = vmatmul.mubr.msk.f32.gmra.mxu0 %vm2523_vm13, %v2480_v51 }
 0x17f   :  { %v3065_v8 = vrot.slane %v2970_v61, 1  ;;  %v1449_v1 = vpop.permute.xlu1 %1448  ;;  %v7780_v13 = vpop.permute.xlu0 %502  ;;  %6167 = vmatprep.mubr.msk.f32.mxu0 %vm12557_vm7, %v6637_v47 }
 0x181   :  { %v3066_v3 = vsel %vm140_vm1, %v3063_v14, %v3065_v8  ;;  %1838 = vrot.lane.b32.xlu1 %v7612_v16, %s6635_s23  ;;  %988 = vrot.lane.b32.xlu0 %v895_v44, %s6630_s16  ;;  %v424_v44 = vrot.slane %v7838_v10, 2 }
 0x182   :  { %v3203_v42 = vmax.f32 %v2969_v9, %v3066_v3  ;;  %v423_v9 = vsel %vm12618_vm3, %v420_v50, %v422_v21  ;;  %vm12621_vm3 = vcmask 31744  }
 0x183   :  { %v1686_v14 = vpop.permute.xlu1 %1685  ;;  %v7799_v22 = vpop.permute.xlu0 %739  ;;  %v2241_v40 = vsel %vm12621_vm3, %v2193_v33, %v7726_v32 }
 0x184   :  { %3250 = vst.msk [vmem:[#allocation2 + $0x8] sm:$0xff] %vm12613_vm9, %v3203_v42  ;;  %vm12620_vm9 = vcmask 1044480   ;;  %v2289_v0 = vsel %vm2274_vm12, %v2241_v40, %v1212_v53 }
 0x185   :  { %1225 = vrot.lane.b32.xlu1 %v1132_v17, %s6632_s18  ;;  %278 = vrot.lane.b32.xlu0 %v7796_v20, %s6629_s15  ;;  %v660_v50 = vsel %vm12620_vm9, %v657_v46, %v659_v12  ;;  %v2337_v46 = vsel %vm12622_vm11, %v2289_v0, %v1449_v1  ;;  %vm12623_vm9 = vmmov %vm12621_vm3  ;;  %v2098_v1 = vsel %vm2082_vm8, %v7292_v52, %v7747_v25  ;;  %vm12624_vm3 = vcmask 15360  }
 0x186   :  { %v2385_v32 = vsel %vm2370_vm14, %v2337_v46, %v1686_v14  ;;  %v2146_v3 = vsel %vm12624_vm3, %v2098_v1, %v7780_v13  ;;  %vm12625_vm11 = vcmask 1045504   ;;  %v1607_v52 = vrot.slane %v7768_v57, 7 }
 0x187   :  { %v1827_v11 = vpop.permute.xlu1 %1826  ;;  %v977_v31 = vpop.permute.xlu0 %976  ;;  %v2194_v42 = vsel %vm2178_vm10, %v2146_v3, %v7799_v22  ;;  %v425_v17 = vsel %vm12625_vm11, %v422_v21, %v424_v44  ;;  %v661_v25 = vrot.slane %v7838_v10, 3  ;;  %vm12626_vm3 = vcmask 48128  }
 0x188   :  { %v2433_v27 = vsel %vm2418_vm15, %v2385_v32, %v1827_v11  ;;  %v2242_v13 = vsel %vm12623_vm9, %v2194_v42, %v977_v31  ;;  %v1608_v11 = vsel %vm12562_vm6, %v1605_v19, %v1607_v52  ;;  %vm12627_vm11 = vcmask 1044480  }
 0x189   :  { %516 = vrot.lane.b32.xlu1 %v423_v9, %s6631_s17  ;;  %1981 = vrot.lane.b32.xlu0 %v7709_v24, %s6636_s24  ;;  %v662_v31 = vsel %vm12627_vm11, %v659_v12, %v661_v25  ;;  %v899_v12 = vsel %vm12559_vm2, %v896_v4, %v898_v26  ;;  %v1135_v0 = vrot.slane %v7838_v10, 5  ;;  %vm12629_vm11 = vcmask 15360  }
 0x18a   :  { %v2749_v2 = vpop.f32.mrf.mxu0 }
 0x18b   :  { %v7831_v24 = vadd.f32 %v7642_v38, %v2749_v2  ;;  %v1214_v30 = vpop.permute.xlu1 %1213  ;;  %v7833_v45 = vpop.permute.xlu0 %266 }
 0x18c   :  { %v6136_v49 = vpop.f32.mrf.mxu0  ;;  %v2290_v9 = vsel %vm2274_vm12, %v2242_v13, %v1214_v30 }
 0x18d   :  { %v2971_v37 = vmax.f32 %v7831_v24, 0.0  ;;  %753 = vrot.lane.b32.xlu1 %v660_v50, %s6628_s14  ;;  %1462 = vrot.lane.b32.xlu0 %v1369_v5, %s6633_s19  ;;  %v7925_v5 = vld [vmem:[%s12538_s0 + $0xc8] sm:$0xff] }
 0x18e   :  { %v190_v49 = vrot.slane %v7925_v5, 1  ;;  %v663_v24 = vrot.slane %v7925_v5, 3 }
 0x18f   :  { %v3067_v41 = vrot.slane %v2971_v37, 1  ;;  %v7856_v55 = vpop.permute.xlu1 %504  ;;  %v1970_v34 = vpop.permute.xlu0 %1969 }
 0x190   :  { %v2481_v58 = vsel %vm2466_vm0, %v2433_v27, %v1970_v34  ;;  %v1136_v27 = vsel %vm1087_vm4, %v1133_v54, %v1135_v0  ;;  %v7953_v34 = vsel %vm140_vm1, %v188_v48, %v190_v49  ;;  %v1372_v48 = vrot.slane %v7838_v10, 6 }
 0x191   :  { %v3068_v60 = vsel %vm140_vm1, %v3065_v8, %v3067_v41  ;;  %990 = vrot.lane.b32.xlu1 %v897_v39, %s6630_s16  ;;  %1699 = vrot.lane.b32.xlu0 %v1606_v36, %s6634_s22 }
 0x192   :  { %v3204_v56 = vmax.f32 %v2970_v61, %v3068_v60  ;;  %6168 = vmatmul.mubr.msk.f32.gmra.mxu0 %vm2523_vm13, %v2481_v58  ;;  %v1134_v61 = vsel %vm1087_vm4, %v1131_v6, %v1133_v54  ;;  %v1371_v6 = vsel %vm1324_vm5, %v1368_v23, %v1370_v62  ;;  %v426_v58 = vrot.slane %v7925_v5, 2 }
 0x193   :  { %v7869_v53 = vpop.permute.xlu1 %741  ;;  %v1451_v51 = vpop.permute.xlu0 %1450  ;;  %6170 = vmatprep.mubr.msk.f32.mxu0 %vm12557_vm7, %v6637_v47 }
 0x194   :  { %3251 = vst.msk [vmem:[#allocation2 + $0x10] sm:$0xff] %vm12623_vm9, %v3204_v56  ;;  %v2338_v23 = vsel %vm12626_vm3, %v2290_v9, %v1451_v51  ;;  %vm12628_vm3 = vcmask 1045504   ;;  %v2099_v51 = vsel %vm2082_vm8, %v7336_v18, %v7833_v45  ;;  %v1373_v18 = vsel %vm1324_vm5, %v1370_v62, %v1372_v48 }
 0x195   :  { %280 = vrot.lane.b32.xlu1 %v7866_v35, %s6629_s15  ;;  %1840 = vrot.lane.b32.xlu0 %v7681_v59, %s6635_s23  ;;  %v900_v45 = vrot.slane %v7925_v5, 4 }
 0x197   :  { %v7883_v7 = vpop.permute.xlu1 %978  ;;  %v1688_v8 = vpop.permute.xlu0 %1687 }
 0x198   :  { %v2386_v22 = vsel %vm2370_vm14, %v2338_v23, %v1688_v8 }
 0x199   :  { %1983 = vrot.lane.b32.xlu1 %v7796_v20, %s6636_s24  ;;  %1227 = vrot.lane.b32.xlu0 %v1134_v61, %s6632_s18  ;;  %v2147_v61 = vsel %vm12629_vm11, %v2099_v51, %v7856_v55  ;;  %v1609_v55 = vrot.slane %v7838_v10, 7  ;;  %vm12632_vm11 = vcmask 48128  }
 0x19a   :  { %v2195_v8 = vsel %vm2178_vm10, %v2147_v61, %v7869_v53  ;;  %v7995_v53 = vld [vmem:[%s12538_s0 + $0xd0] sm:$0xff] }
 0x19b   :  { %v7904_v20 = vpop.permute.xlu1 %268  ;;  %v1829_v14 = vpop.permute.xlu0 %1828  ;;  %v1610_v9 = vsel %vm12562_vm6, %v1607_v52, %v1609_v55  ;;  %v192_v23 = vrot.slane %v7995_v53, 1  ;;  %v902_v51 = vrot.slane %v7995_v53, 4 }
 0x19c   :  { %v2434_v29 = vsel %vm2418_vm15, %v2386_v22, %v1829_v14  ;;  %v901_v14 = vsel %vm12559_vm2, %v898_v26, %v900_v45 }
 0x19d   :  { %1464 = vrot.lane.b32.xlu1 %v1371_v6, %s6633_s19  ;;  %518 = vrot.lane.b32.xlu0 %v425_v17, %s6631_s17  ;;  %v8023_v52 = vsel %vm140_vm1, %v190_v49, %v192_v23 }
 0x19e   :  { %v2754_v21 = vpop.f32.mrf.mxu0 }
 0x19f   :  { %v7920_v50 = vadd.f32 %v7642_v38, %v2754_v21  ;;  %v1972_v33 = vpop.permute.xlu1 %1971  ;;  %v1216_v2 = vpop.permute.xlu0 %1215 }
 0x1a0   :  { %v2482_v19 = vsel %vm2466_vm0, %v2434_v29, %v1972_v33  ;;  %v6139_v40 = vpop.f32.mrf.mxu0  ;;  %v1137_v33 = vrot.slane %v7925_v5, 5 }
 0x1a1   :  { %v2972_v30 = vmax.f32 %v7920_v50, 0.0  ;;  %1701 = vrot.lane.b32.xlu1 %v1608_v11, %s6634_s22  ;;  %755 = vrot.lane.b32.xlu0 %v662_v31, %s6628_s14  ;;  %v1374_v40 = vrot.slane %v7925_v5, 6 }
 0x1a2   :  { %6171 = vmatmul.mubr.msk.f32.gmra.mxu0 %vm2523_vm13, %v2482_v19 }
 0x1a3   :  { %v3069_v46 = vrot.slane %v2972_v30, 1  ;;  %v1453_v32 = vpop.permute.xlu1 %1452  ;;  %v7937_v39 = vpop.permute.xlu0 %506  ;;  %6173 = vmatprep.mubr.msk.f32.mxu0 %vm12557_vm7, %v6637_v47 }
 0x1a5   :  { %v3070_v36 = vsel %vm140_vm1, %v3067_v41, %v3069_v46  ;;  %1842 = vrot.lane.b32.xlu1 %v7768_v57, %s6635_s23  ;;  %992 = vrot.lane.b32.xlu0 %v899_v12, %s6630_s16  ;;  %v428_v12 = vrot.slane %v7995_v53, 2 }
 0x1a6   :  { %v3205_v4 = vmax.f32 %v2971_v37, %v3070_v36  ;;  %v427_v37 = vsel %vm12628_vm3, %v424_v44, %v426_v58  ;;  %vm12631_vm3 = vcmask 31744  }
 0x1a7   :  { %v1690_v41 = vpop.permute.xlu1 %1689  ;;  %v7956_v60 = vpop.permute.xlu0 %743  ;;  %v2243_v3 = vsel %vm12631_vm3, %v2195_v8, %v7883_v7 }
 0x1a8   :  { %3252 = vst.msk [vmem:[#allocation2 + $0x18] sm:$0xff] %vm12623_vm9, %v3205_v4  ;;  %vm12630_vm9 = vcmask 1044480   ;;  %v2291_v62 = vsel %vm2274_vm12, %v2243_v3, %v1216_v2 }
 0x1a9   :  { %1229 = vrot.lane.b32.xlu1 %v1136_v27, %s6632_s18  ;;  %282 = vrot.lane.b32.xlu0 %v7953_v34, %s6629_s15  ;;  %v664_v44 = vsel %vm12630_vm9, %v661_v25, %v663_v24  ;;  %v2339_v25 = vsel %vm12632_vm11, %v2291_v62, %v1453_v32  ;;  %vm12633_vm9 = vmmov %vm12631_vm3  ;;  %v2100_v32 = vsel %vm2082_vm8, %v7396_v63, %v7904_v20  ;;  %vm12634_vm3 = vcmask 15360  }
 0x1aa   :  { %v2387_v7 = vsel %vm2370_vm14, %v2339_v25, %v1690_v41  ;;  %v2148_v36 = vsel %vm12634_vm3, %v2100_v32, %v7937_v39  ;;  %vm12635_vm11 = vcmask 1045504   ;;  %v1611_v63 = vrot.slane %v7925_v5, 7 }
 0x1ab   :  { %v1831_v56 = vpop.permute.xlu1 %1830  ;;  %v981_v54 = vpop.permute.xlu0 %980  ;;  %v2196_v4 = vsel %vm2178_vm10, %v2148_v36, %v7956_v60  ;;  %v429_v27 = vsel %vm12635_vm11, %v426_v58, %v428_v12  ;;  %v665_v20 = vrot.slane %v7995_v53, 3  ;;  %vm12636_vm3 = vcmask 48128  }
 0x1ac   :  { %v2435_v22 = vsel %vm2418_vm15, %v2387_v7, %v1831_v56  ;;  %v2244_v39 = vsel %vm12633_vm9, %v2196_v4, %v981_v54  ;;  %v1612_v56 = vsel %vm12562_vm6, %v1609_v55, %v1611_v63  ;;  %vm12637_vm11 = vcmask 1044480  }
 0x1ad   :  { %520 = vrot.lane.b32.xlu1 %v427_v37, %s6631_s17  ;;  %1985 = vrot.lane.b32.xlu0 %v7866_v35, %s6636_s24  ;;  %v666_v54 = vsel %vm12637_vm11, %v663_v24, %v665_v20  ;;  %v903_v24 = vsel %vm12559_vm2, %v900_v45, %v902_v51  ;;  %v1139_v62 = vrot.slane %v7995_v53, 5  ;;  %vm12639_vm11 = vcmask 15360  }
 0x1ae   :  { %v2759_v1 = vpop.f32.mrf.mxu0 }
 0x1af   :  { %v7988_v35 = vadd.f32 %v7642_v38, %v2759_v1  ;;  %v1218_v6 = vpop.permute.xlu1 %1217  ;;  %v7990_v42 = vpop.permute.xlu0 %270 }
 0x1b0   :  { %v6142_v17 = vpop.f32.mrf.mxu0  ;;  %v2292_v37 = vsel %vm2274_vm12, %v2244_v39, %v1218_v6 }
 0x1b1   :  { %v2973_v13 = vmax.f32 %v7988_v35, 0.0  ;;  %757 = vrot.lane.b32.xlu1 %v664_v44, %s6628_s14  ;;  %1466 = vrot.lane.b32.xlu0 %v1373_v18, %s6633_s19  ;;  %v8082_v18 = vld [vmem:[%s12538_s0 + $0xd8] sm:$0xff] }
 0x1b2   :  { %v194_v17 = vrot.slane %v8082_v18, 1  ;;  %v667_v35 = vrot.slane %v8082_v18, 3 }
 0x1b3   :  { %v3071_v21 = vrot.slane %v2973_v13, 1  ;;  %v8013_v11 = vpop.permute.xlu1 %508  ;;  %v1974_v31 = vpop.permute.xlu0 %1973 }
 0x1b4   :  { %v2483_v29 = vsel %vm2466_vm0, %v2435_v22, %v1974_v31  ;;  %v1140_v22 = vsel %vm1087_vm4, %v1137_v33, %v1139_v62  ;;  %v8110_v31 = vsel %vm140_vm1, %v192_v23, %v194_v17  ;;  %v1376_v23 = vrot.slane %v7995_v53, 6 }
 0x1b5   :  { %v3072_v50 = vsel %vm140_vm1, %v3069_v46, %v3071_v21  ;;  %994 = vrot.lane.b32.xlu1 %v901_v14, %s6630_s16  ;;  %1703 = vrot.lane.b32.xlu0 %v1610_v9, %s6634_s22 }
 0x1b6   :  { %v3206_v26 = vmax.f32 %v2972_v30, %v3072_v50  ;;  %6174 = vmatmul.mubr.msk.f32.gmra.mxu0 %vm2523_vm13, %v2483_v29  ;;  %v1138_v30 = vsel %vm1087_vm4, %v1135_v0, %v1137_v33  ;;  %v1375_v0 = vsel %vm1324_vm5, %v1372_v48, %v1374_v40  ;;  %v430_v29 = vrot.slane %v8082_v18, 2 }
 0x1b7   :  { %v8026_v2 = vpop.permute.xlu1 %745  ;;  %v1455_v19 = vpop.permute.xlu0 %1454  ;;  %6176 = vmatprep.mubr.msk.f32.mxu0 %vm12557_vm7, %v6637_v47 }
 0x1b8   :  { %3253 = vst.msk [vmem:[#allocation2 + $0x20] sm:$0xff] %vm12633_vm9, %v3206_v26  ;;  %v2340_v48 = vsel %vm12636_vm3, %v2292_v37, %v1455_v19  ;;  %vm12638_vm3 = vcmask 1045504   ;;  %v2101_v19 = vsel %vm2082_vm8, %v7440_v28, %v7990_v42  ;;  %v1377_v28 = vsel %vm1324_vm5, %v1374_v40, %v1376_v23 }
 0x1b9   :  { %284 = vrot.lane.b32.xlu1 %v8023_v52, %s6629_s15  ;;  %1844 = vrot.lane.b32.xlu0 %v7838_v10, %s6635_s23  ;;  %v904_v42 = vrot.slane %v8082_v18, 4 }
 0x1bb   :  { %v8040_v49 = vpop.permute.xlu1 %982  ;;  %v1692_v46 = vpop.permute.xlu0 %1691 }
 0x1bc   :  { %v2388_v60 = vsel %vm2370_vm14, %v2340_v48, %v1692_v46 }
 0x1bd   :  { %1987 = vrot.lane.b32.xlu1 %v7953_v34, %s6636_s24  ;;  %1231 = vrot.lane.b32.xlu0 %v1138_v30, %s6632_s18  ;;  %v2149_v30 = vsel %vm12639_vm11, %v2101_v19, %v8013_v11  ;;  %v1613_v11 = vrot.slane %v7995_v53, 7  ;;  %vm12642_vm11 = vcmask 48128  }
 0x1be   :  { %v2197_v46 = vsel %vm2178_vm10, %v2149_v30, %v8026_v2  ;;  %v8152_v2 = vld [vmem:[%s12538_s0 + $0xe0] sm:$0xff] }
 0x1bf   :  { %v8061_v34 = vpop.permute.xlu1 %272  ;;  %v1833_v41 = vpop.permute.xlu0 %1832  ;;  %v1614_v37 = vsel %vm12562_vm6, %v1611_v63, %v1613_v11  ;;  %v196_v48 = vrot.slane %v8152_v2, 1  ;;  %v906_v19 = vrot.slane %v8152_v2, 4 }
 0x1c0   :  { %v2436_v61 = vsel %vm2418_vm15, %v2388_v60, %v1833_v41  ;;  %v905_v41 = vsel %vm12559_vm2, %v902_v51, %v904_v42 }
 0x1c1   :  { %1468 = vrot.lane.b32.xlu1 %v1375_v0, %s6633_s19  ;;  %522 = vrot.lane.b32.xlu0 %v429_v27, %s6631_s17  ;;  %v8180_v63 = vsel %vm140_vm1, %v194_v17, %v196_v48 }
 0x1c2   :  { %v2764_v58 = vpop.f32.mrf.mxu0 }
 0x1c3   :  { %v8077_v44 = vadd.f32 %v7642_v38, %v2764_v58  ;;  %v1976_v8 = vpop.permute.xlu1 %1975  ;;  %v1220_v1 = vpop.permute.xlu0 %1219 }
 0x1c4   :  { %v2484_v55 = vsel %vm2466_vm0, %v2436_v61, %v1976_v8  ;;  %v6145_v3 = vpop.f32.mrf.mxu0  ;;  %v1141_v8 = vrot.slane %v8082_v18, 5 }
 0x1c5   :  { %v2974_v6 = vmax.f32 %v8077_v44, 0.0  ;;  %1705 = vrot.lane.b32.xlu1 %v1612_v56, %s6634_s22  ;;  %759 = vrot.lane.b32.xlu0 %v666_v54, %s6628_s14  ;;  %v1378_v3 = vrot.slane %v8082_v18, 6 }
 0x1c6   :  { %6177 = vmatmul.mubr.msk.f32.gmra.mxu0 %vm2523_vm13, %v2484_v55 }
 0x1c7   :  { %v3073_v25 = vrot.slane %v2974_v6, 1  ;;  %v1457_v7 = vpop.permute.xlu1 %1456  ;;  %v8094_v14 = vpop.permute.xlu0 %510  ;;  %6179 = vmatprep.mubr.msk.f32.mxu0 %vm12557_vm7, %v6637_v47 }
 0x1c9   :  { %v3074_v9 = vsel %vm140_vm1, %v3071_v21, %v3073_v25  ;;  %1846 = vrot.lane.b32.xlu1 %v7925_v5, %s6635_s23  ;;  %996 = vrot.lane.b32.xlu0 %v903_v24, %s6630_s16  ;;  %v432_v24 = vrot.slane %v8152_v2, 2 }
 0x1ca   :  { %v3207_v45 = vmax.f32 %v2973_v13, %v3074_v9  ;;  %v431_v13 = vsel %vm12638_vm3, %v428_v12, %v430_v29  ;;  %vm12641_vm3 = vcmask 31744  }
 0x1cb   :  { %v1694_v21 = vpop.permute.xlu1 %1693  ;;  %v8113_v50 = vpop.permute.xlu0 %747  ;;  %v2245_v36 = vsel %vm12641_vm3, %v2197_v46, %v8040_v49 }
 0x1cc   :  { %3254 = vst.msk [vmem:[#allocation2 + $0x28] sm:$0xff] %vm12633_vm9, %v3207_v45  ;;  %vm12640_vm9 = vcmask 1044480   ;;  %v2293_v40 = vsel %vm2274_vm12, %v2245_v36, %v1220_v1 }
 0x1cd   :  { %1233 = vrot.lane.b32.xlu1 %v1140_v22, %s6632_s18  ;;  %286 = vrot.lane.b32.xlu0 %v8110_v31, %s6629_s15  ;;  %v668_v12 = vsel %vm12640_vm9, %v665_v20, %v667_v35  ;;  %v2341_v20 = vsel %vm12642_vm11, %v2293_v40, %v1457_v7  ;;  %vm12643_vm9 = vmmov %vm12641_vm3  ;;  %v2102_v7 = vsel %vm2082_vm8, %v7500_v15, %v8061_v34  ;;  %vm12644_vm3 = vcmask 15360  }
 0x1ce   :  { %v2389_v49 = vsel %vm2370_vm14, %v2341_v20, %v1694_v21  ;;  %v2150_v9 = vsel %vm12644_vm3, %v2102_v7, %v8094_v14  ;;  %vm12645_vm11 = vcmask 1045504   ;;  %v1615_v15 = vrot.slane %v8082_v18, 7 }
 0x1cf   :  { %v1835_v26 = vpop.permute.xlu1 %1834  ;;  %v985_v33 = vpop.permute.xlu0 %984  ;;  %v2198_v45 = vsel %vm2178_vm10, %v2150_v9, %v8113_v50  ;;  %v433_v22 = vsel %vm12645_vm11, %v430_v29, %v432_v24  ;;  %v669_v34 = vrot.slane %v8152_v2, 3  ;;  %vm12646_vm3 = vcmask 48128  }
 0x1d0   :  { %v2437_v60 = vsel %vm2418_vm15, %v2389_v49, %v1835_v26  ;;  %v2246_v14 = vsel %vm12643_vm9, %v2198_v45, %v985_v33  ;;  %v1616_v26 = vsel %vm12562_vm6, %v1613_v11, %v1615_v15  ;;  %vm12647_vm11 = vcmask 1044480  }
 0x1d1   :  { %524 = vrot.lane.b32.xlu1 %v431_v13, %s6631_s17  ;;  %1989 = vrot.lane.b32.xlu0 %v8023_v52, %s6636_s24  ;;  %v670_v33 = vsel %vm12647_vm11, %v667_v35, %v669_v34  ;;  %v907_v35 = vsel %vm12559_vm2, %v904_v42, %v906_v19  ;;  %v1143_v40 = vrot.slane %v8152_v2, 5  ;;  %vm12649_vm11 = vcmask 15360  }
 0x1d2   :  { %v2769_v32 = vpop.f32.mrf.mxu0 }
 0x1d3   :  { %v8145_v52 = vadd.f32 %v7642_v38, %v2769_v32  ;;  %v1222_v0 = vpop.permute.xlu1 %1221  ;;  %v8147_v4 = vpop.permute.xlu0 %274 }
 0x1d4   :  { %v6148_v27 = vpop.f32.mrf.mxu0  ;;  %v2294_v13 = vsel %vm2274_vm12, %v2246_v14, %v1222_v0 }
 0x1d5   :  { %v2975_v39 = vmax.f32 %v8145_v52, 0.0  ;;  %761 = vrot.lane.b32.xlu1 %v668_v12, %s6628_s14  ;;  %1470 = vrot.lane.b32.xlu0 %v1377_v28, %s6633_s19  ;;  %v8239_v28 = vld [vmem:[%s12538_s0 + $0xe8] sm:$0xff] }
 0x1d6   :  { %v198_v27 = vrot.slane %v8239_v28, 1  ;;  %v671_v52 = vrot.slane %v8239_v28, 3 }
 0x1d7   :  { %v3075_v58 = vrot.slane %v2975_v39, 1  ;;  %v8170_v56 = vpop.permute.xlu1 %512  ;;  %v1978_v54 = vpop.permute.xlu0 %1977 }
 0x1d8   :  { %v2485_v61 = vsel %vm2466_vm0, %v2437_v60, %v1978_v54  ;;  %v1144_v60 = vsel %vm1087_vm4, %v1141_v8, %v1143_v40  ;;  %v8267_v54 = vsel %vm140_vm1, %v196_v48, %v198_v27  ;;  %v1380_v48 = vrot.slane %v8152_v2, 6 }
 0x1d9   :  { %v3076_v44 = vsel %vm140_vm1, %v3073_v25, %v3075_v58  ;;  %998 = vrot.lane.b32.xlu1 %v905_v41, %s6630_s16  ;;  %1707 = vrot.lane.b32.xlu0 %v1614_v37, %s6634_s22 }
 0x1da   :  { %v3208_v51 = vmax.f32 %v2974_v6, %v3076_v44  ;;  %6180 = vmatmul.mubr.msk.f32.gmra.mxu0 %vm2523_vm13, %v2485_v61  ;;  %v1142_v6 = vsel %vm1087_vm4, %v1139_v62, %v1141_v8  ;;  %v1379_v62 = vsel %vm1324_vm5, %v1376_v23, %v1378_v3  ;;  %v434_v61 = vrot.slane %v8239_v28, 2 }
 0x1db   :  { %v8183_v1 = vpop.permute.xlu1 %749  ;;  %v1459_v55 = vpop.permute.xlu0 %1458  ;;  %6182 = vmatprep.mubr.msk.f32.mxu0 %vm12557_vm7, %v6637_v47 }
 0x1dc   :  { %3255 = vst.msk [vmem:[#allocation2 + $0x30] sm:$0xff] %vm12643_vm9, %v3208_v51  ;;  %v2342_v23 = vsel %vm12646_vm3, %v2294_v13, %v1459_v55  ;;  %vm12648_vm3 = vcmask 1045504   ;;  %v2103_v55 = vsel %vm2082_vm8, %v7544_v43, %v8147_v4  ;;  %v1381_v43 = vsel %vm1324_vm5, %v1378_v3, %v1380_v48 }
 0x1dd   :  { %288 = vrot.lane.b32.xlu1 %v8180_v63, %s6629_s15  ;;  %1848 = vrot.lane.b32.xlu0 %v7995_v53, %s6635_s23  ;;  %v908_v4 = vrot.slane %v8239_v28, 4 }
 0x1df   :  { %v8197_v17 = vpop.permute.xlu1 %986  ;;  %v1696_v25 = vpop.permute.xlu0 %1695 }
 0x1e0   :  { %v2390_v50 = vsel %vm2370_vm14, %v2342_v23, %v1696_v25 }
 0x1e1   :  { %1991 = vrot.lane.b32.xlu1 %v8110_v31, %s6636_s24  ;;  %1235 = vrot.lane.b32.xlu0 %v1142_v6, %s6632_s18  ;;  %v2151_v6 = vsel %vm12649_vm11, %v2103_v55, %v8170_v56  ;;  %v1617_v56 = vrot.slane %v8152_v2, 7  ;;  %vm12652_vm11 = vcmask 48128  }
 0x1e2   :  { %v2199_v25 = vsel %vm2178_vm10, %v2151_v6, %v8183_v1  ;;  %v8309_v1 = vld [vmem:[%s12538_s0 + $0xf0] sm:$0xff] }
 0x1e3   :  { %v8218_v31 = vpop.permute.xlu1 %276  ;;  %v1837_v21 = vpop.permute.xlu0 %1836  ;;  %v1618_v13 = vsel %vm12562_vm6, %v1615_v15, %v1617_v56  ;;  %v200_v23 = vrot.slane %v8309_v1, 1  ;;  %v910_v55 = vrot.slane %v8309_v1, 4 }
 0x1e4   :  { %v2438_v30 = vsel %vm2418_vm15, %v2390_v50, %v1837_v21  ;;  %v909_v21 = vsel %vm12559_vm2, %v906_v19, %v908_v4 }
 0x1e5   :  { %1472 = vrot.lane.b32.xlu1 %v1379_v62, %s6633_s19  ;;  %526 = vrot.lane.b32.xlu0 %v433_v22, %s6631_s17  ;;  %v8337_v15 = vsel %vm140_vm1, %v198_v27, %v200_v23 }
 0x1e6   :  { %v2774_v29 = vpop.f32.mrf.mxu0 }
 0x1e7   :  { %v8234_v12 = vadd.f32 %v7642_v38, %v2774_v29  ;;  %v1980_v46 = vpop.permute.xlu1 %1979  ;;  %v1224_v32 = vpop.permute.xlu0 %1223 }
 0x1e8   :  { %v2486_v11 = vsel %vm2466_vm0, %v2438_v30, %v1980_v46  ;;  %v6151_v36 = vpop.f32.mrf.mxu0  ;;  %v1145_v46 = vrot.slane %v8239_v28, 5 }
 0x1e9   :  { %v2976_v0 = vmax.f32 %v8234_v12, 0.0  ;;  %1709 = vrot.lane.b32.xlu1 %v1616_v26, %s6634_s22  ;;  %763 = vrot.lane.b32.xlu0 %v670_v33, %s6628_s14  ;;  %v1382_v36 = vrot.slane %v8239_v28, 6 }
 0x1ea   :  { %6183 = vmatmul.mubr.msk.f32.gmra.mxu0 %vm2523_vm13, %v2486_v11 }
 0x1eb   :  { %v3077_v20 = vrot.slane %v2976_v0, 1  ;;  %v1461_v49 = vpop.permute.xlu1 %1460  ;;  %v8251_v41 = vpop.permute.xlu0 %514  ;;  %6185 = vmatprep.mubr.msk.f32.mxu0 %vm12557_vm7, %v6637_v47 }
 0x1ed   :  { %v3078_v37 = vsel %vm140_vm1, %v3075_v58, %v3077_v20  ;;  %1850 = vrot.lane.b32.xlu1 %v8082_v18, %s6635_s23  ;;  %1000 = vrot.lane.b32.xlu0 %v907_v35, %s6630_s16  ;;  %v436_v35 = vrot.slane %v8309_v1, 2 }
 0x1ee   :  { %v3209_v42 = vmax.f32 %v2975_v39, %v3078_v37  ;;  %v435_v39 = vsel %vm12648_vm3, %v432_v24, %v434_v61  ;;  %vm12651_vm3 = vcmask 31744  }
 0x1ef   :  { %v1698_v58 = vpop.permute.xlu1 %1697  ;;  %v8270_v44 = vpop.permute.xlu0 %751  ;;  %v2247_v9 = vsel %vm12651_vm3, %v2199_v25, %v8197_v17 }
 0x1f0   :  { %3256 = vst.msk [vmem:[#allocation2 + $0x38] sm:$0xff] %vm12643_vm9, %v3209_v42  ;;  %vm12650_vm9 = vcmask 1044480   ;;  %v2295_v3 = vsel %vm2274_vm12, %v2247_v9, %v1224_v32 }
 0x1f1   :  { %1237 = vrot.lane.b32.xlu1 %v1144_v60, %s6632_s18  ;;  %290 = vrot.lane.b32.xlu0 %v8267_v54, %s6629_s15  ;;  %v672_v24 = vsel %vm12650_vm9, %v669_v34, %v671_v52  ;;  %v2343_v34 = vsel %vm12652_vm11, %v2295_v3, %v1461_v49  ;;  %vm12653_vm9 = vmmov %vm12651_vm3  ;;  %v2104_v49 = vsel %vm2082_vm8, %v7612_v16, %v8218_v31  ;;  %vm12654_vm3 = vcmask 15360  }
 0x1f2   :  { %v2391_v17 = vsel %vm2370_vm14, %v2343_v34, %v1698_v58  ;;  %v2152_v37 = vsel %vm12654_vm3, %v2104_v49, %v8251_v41  ;;  %vm12655_vm11 = vcmask 1045504   ;;  %v1619_v16 = vrot.slane %v8239_v28, 7 }
 0x1f3   :  { %v1839_v51 = vpop.permute.xlu1 %1838  ;;  %v989_v8 = vpop.permute.xlu0 %988  ;;  %v2200_v42 = vsel %vm2178_vm10, %v2152_v37, %v8270_v44  ;;  %v437_v60 = vsel %vm12655_vm11, %v434_v61, %v436_v35  ;;  %v673_v31 = vrot.slane %v8309_v1, 3  ;;  %vm12656_vm3 = vcmask 48128  }
 0x1f4   :  { %v2439_v50 = vsel %vm2418_vm15, %v2391_v17, %v1839_v51  ;;  %v2248_v41 = vsel %vm12653_vm9, %v2200_v42, %v989_v8  ;;  %v1620_v51 = vsel %vm12562_vm6, %v1617_v56, %v1619_v16  ;;  %vm12657_vm11 = vcmask 1044480  }
 0x1f5   :  { %528 = vrot.lane.b32.xlu1 %v435_v39, %s6631_s17  ;;  %1993 = vrot.lane.b32.xlu0 %v8180_v63, %s6636_s24  ;;  %v674_v8 = vsel %vm12657_vm11, %v671_v52, %v673_v31  ;;  %v1147_v52 = vrot.slane %v8309_v1, 5  ;;  %vm12659_vm11 = vcmask 15360  }
 0x1f6   :  { %v2779_v7 = vpop.f32.mrf.mxu0 }
 0x1f7   :  { %v8302_v63 = vadd.f32 %v7642_v38, %v2779_v7  ;;  %v1226_v62 = vpop.permute.xlu1 %1225  ;;  %v8304_v45 = vpop.permute.xlu0 %278 }
 0x1f8   :  { %v6154_v22 = vpop.f32.mrf.mxu0  ;;  %v2296_v39 = vsel %vm2274_vm12, %v2248_v41, %v1226_v62 }
 0x1f9   :  { %v2977_v14 = vmax.f32 %v8302_v63, 0.0  ;;  %765 = vrot.lane.b32.xlu1 %v672_v24, %s6628_s14  ;;  %1474 = vrot.lane.b32.xlu0 %v1381_v43, %s6633_s19  ;;  %v8396_v43 = vld [vmem:[%s12538_s0 + $0xf8] sm:$0xff] }
 0x1fa   :  { %v202_v3 = vrot.slane %v8396_v43, 1  ;;  %v675_v63 = vrot.slane %v8396_v43, 3 }
 0x1fb   :  { %v3079_v29 = vrot.slane %v2977_v14, 1  ;;  %v8327_v26 = vpop.permute.xlu1 %516  ;;  %v1982_v33 = vpop.permute.xlu0 %1981 }
 0x1fc   :  { %v2487_v30 = vsel %vm2466_vm0, %v2439_v50, %v1982_v33  ;;  %v8424_v50 = vsel %vm140_vm1, %v200_v23, %v202_v3  ;;  %v438_v33 = vrot.slane %v8396_v43, 2  ;;  %v1384_v23 = vrot.slane %v8309_v1, 6 }
 0x1fd   :  { %v3080_v12 = vsel %vm140_vm1, %v3077_v20, %v3079_v29  ;;  %1002 = vrot.lane.b32.xlu1 %v909_v21, %s6630_s16  ;;  %1711 = vrot.lane.b32.xlu0 %v1618_v13, %s6634_s22  ;;  %v1148_v13 = vsel %vm1087_vm4, %v1145_v46, %v1147_v52 }
 0x1fe   :  { %v3210_v19 = vmax.f32 %v2976_v0, %v3080_v12  ;;  %6186 = vmatmul.mubr.msk.f32.gmra.mxu0 %vm2523_vm13, %v2487_v30  ;;  %v1146_v0 = vsel %vm1087_vm4, %v1143_v40, %v1145_v46  ;;  %v1383_v40 = vsel %vm1324_vm5, %v1380_v48, %v1382_v36  ;;  %v2105_v46 = vsel %vm2082_vm8, %v7681_v59, %v8304_v45 }
 0x1ff   :  { %v8340_v32 = vpop.permute.xlu1 %753  ;;  %v1463_v11 = vpop.permute.xlu0 %1462  ;;  %6188 = vmatprep.mubr.msk.f32.mxu0 %vm12557_vm7, %v6637_v47  ;;  %v1385_v59 = vsel %vm1324_vm5, %v1382_v36, %v1384_v23  ;;  %v912_v45 = vrot.slane %v8396_v43, 4  ;;  %v8471_v36 = vld [vmem:[%s12538_s0 + $0x100] sm:$0xff] }
 0x200   :  { %3257 = vst.msk [vmem:[#allocation2 + $0x40] sm:$0xff] %vm12653_vm9, %v3210_v19  ;;  %v2344_v48 = vsel %vm12656_vm3, %v2296_v39, %v1463_v11  ;;  %vm12658_vm3 = vcmask 1045504   ;;  %v2153_v11 = vsel %vm12659_vm11, %v2105_v46, %v8327_v26  ;;  %v1621_v26 = vrot.slane %v8309_v1, 7 }
 0x201   :  { %292 = vrot.lane.b32.xlu1 %v8337_v15, %s6629_s15  ;;  %1852 = vrot.lane.b32.xlu0 %v8152_v2, %s6635_s23  ;;  %vm12662_vm11 = vcmask 48128   ;;  %v914_v46 = vrot.slane %v8471_v36, 4 }
 0x202   :  { %v1622_v39 = vsel %vm12562_vm6, %v1619_v16, %v1621_v26 }
 0x203   :  { %v8354_v27 = vpop.permute.xlu1 %990  ;;  %v1700_v20 = vpop.permute.xlu0 %1699 }
 0x204   :  { %v2392_v44 = vsel %vm2370_vm14, %v2344_v48, %v1700_v20  ;;  %v204_v48 = vrot.slane %v8471_v36, 1 }
 0x205   :  { %1995 = vrot.lane.b32.xlu1 %v8267_v54, %s6636_s24  ;;  %1239 = vrot.lane.b32.xlu0 %v1146_v0, %s6632_s18 }
 0x206   :  { %v8499_v16 = vsel %vm140_vm1, %v202_v3, %v204_v48 }
 0x207   :  { %v8375_v54 = vpop.permute.xlu1 %280  ;;  %v1841_v58 = vpop.permute.xlu0 %1840 }
 0x208   :  { %v2440_v6 = vsel %vm2418_vm15, %v2392_v44, %v1841_v58  ;;  %v913_v58 = vsel %vm12559_vm2, %v910_v55, %v912_v45 }
 0x209   :  { %1476 = vrot.lane.b32.xlu1 %v1383_v40, %s6633_s19  ;;  %530 = vrot.lane.b32.xlu0 %v437_v60, %s6631_s17 }
 0x20a   :  { %v2784_v61 = vpop.f32.mrf.mxu0 }
 0x20b   :  { %v8391_v24 = vadd.f32 %v7642_v38, %v2784_v61  ;;  %v1984_v25 = vpop.permute.xlu1 %1983  ;;  %v1228_v7 = vpop.permute.xlu0 %1227  ;;  %v911_v38 = vsel %vm12559_vm2, %v908_v4, %v910_v55 }
 0x20c   :  { %v2488_v56 = vsel %vm2466_vm0, %v2440_v6, %v1984_v25  ;;  %v6157_v9 = vpop.f32.mrf.mxu0  ;;  %v1149_v25 = vrot.slane %v8396_v43, 5 }
 0x20d   :  { %v2978_v62 = vmax.f32 %v8391_v24, 0.0  ;;  %1713 = vrot.lane.b32.xlu1 %v1620_v51, %s6634_s22  ;;  %767 = vrot.lane.b32.xlu0 %v674_v8, %s6628_s14  ;;  %v1386_v9 = vrot.slane %v8396_v43, 6 }
 0x20e   :  { %6189 = vmatmul.mubr.msk.f32.gmra.mxu0 %vm2523_vm13, %v2488_v56 }
 0x20f   :  { %v3081_v22 = vrot.slane %v2978_v62, 1  ;;  %v1465_v34 = vpop.permute.xlu1 %1464  ;;  %v8408_v17 = vpop.permute.xlu0 %518  ;;  %6191 = vmatprep.mubr.msk.f32.mxu0 %vm12557_vm7, %v6637_v47 }
 0x211   :  { %v3082_v21 = vsel %vm140_vm1, %v3079_v29, %v3081_v22  ;;  %1854 = vrot.lane.b32.xlu1 %v8239_v28, %s6635_s23  ;;  %1004 = vrot.lane.b32.xlu0 %v911_v38, %s6630_s16  ;;  %v440_v38 = vrot.slane %v8471_v36, 2 }
 0x212   :  { %v3211_v4 = vmax.f32 %v2977_v14, %v3082_v21  ;;  %v439_v14 = vsel %vm12658_vm3, %v436_v35, %v438_v33  ;;  %v2201_v35 = vsel %vm2178_vm10, %v2153_v11, %v8340_v32  ;;  %vm12661_vm3 = vcmask 31744  }
 0x213   :  { %v1702_v29 = vpop.permute.xlu1 %1701  ;;  %v8427_v30 = vpop.permute.xlu0 %755  ;;  %v2249_v49 = vsel %vm12661_vm3, %v2201_v35, %v8354_v27 }
 0x214   :  { %3258 = vst.msk [vmem:[#allocation2 + $0x48] sm:$0xff] %vm12653_vm9, %v3211_v4  ;;  %vm12660_vm9 = vcmask 1044480   ;;  %v2297_v42 = vsel %vm2274_vm12, %v2249_v49, %v1228_v7 }
 0x215   :  { %1241 = vrot.lane.b32.xlu1 %v1148_v13, %s6632_s18  ;;  %294 = vrot.lane.b32.xlu0 %v8424_v50, %s6629_s15  ;;  %v676_v0 = vsel %vm12660_vm9, %v673_v31, %v675_v63  ;;  %v2345_v27 = vsel %vm12662_vm11, %v2297_v42, %v1465_v34  ;;  %vm12663_vm9 = vmmov %vm12661_vm3  ;;  %v2106_v34 = vsel %vm2082_vm8, %v7768_v57, %v8375_v54  ;;  %vm12664_vm3 = vcmask 15360  }
 0x216   :  { %v2393_v41 = vsel %vm2370_vm14, %v2345_v27, %v1702_v29  ;;  %v2154_v21 = vsel %vm12664_vm3, %v2106_v34, %v8408_v17  ;;  %vm12665_vm11 = vcmask 1045504   ;;  %v1623_v57 = vrot.slane %v8396_v43, 7 }
 0x217   :  { %v1843_v12 = vpop.permute.xlu1 %1842  ;;  %v993_v19 = vpop.permute.xlu0 %992  ;;  %v2202_v4 = vsel %vm2178_vm10, %v2154_v21, %v8427_v30  ;;  %v441_v13 = vsel %vm12665_vm11, %v438_v33, %v440_v38  ;;  %v677_v54 = vrot.slane %v8471_v36, 3  ;;  %vm12666_vm3 = vcmask 48128  }
 0x218   :  { %v2441_v44 = vsel %vm2418_vm15, %v2393_v41, %v1843_v12  ;;  %v2250_v17 = vsel %vm12663_vm9, %v2202_v4, %v993_v19  ;;  %v1624_v12 = vsel %vm12562_vm6, %v1621_v26, %v1623_v57  ;;  %vm12667_vm11 = vcmask 1044480  }
 0x219   :  { %532 = vrot.lane.b32.xlu1 %v439_v14, %s6631_s17  ;;  %1997 = vrot.lane.b32.xlu0 %v8337_v15, %s6636_s24  ;;  %v8461_v15 = vld [vmem:[%s12540_s2] ss:$0 sm:$0xff]  ;;  %v678_v19 = vsel %vm12667_vm11, %v675_v63, %v677_v54  ;;  %v915_v63 = vsel %vm12559_vm2, %v912_v45, %v914_v46  ;;  %v1151_v42 = vrot.slane %v8471_v36, 5  ;;  %vm12669_vm11 = vcmask 15360  }
 0x21a   :  { %v2789_v20 = vpop.f32.mrf.mxu0 }
 0x21b   :  { %v8464_v37 = vadd.f32 %v8461_v15, %v2789_v20  ;;  %v1230_v32 = vpop.permute.xlu1 %1229  ;;  %v8466_v40 = vpop.permute.xlu0 %282 }
 0x21c   :  { %v6160_v60 = vpop.f32.mrf.mxu0  ;;  %v2298_v14 = vsel %vm2274_vm12, %v2250_v17, %v1230_v32 }
 0x21d   :  { %v2979_v31 = vmax.f32 %v8464_v37, 0.0  ;;  %769 = vrot.lane.b32.xlu1 %v676_v0, %s6628_s14  ;;  %1478 = vrot.lane.b32.xlu0 %v1385_v59, %s6633_s19  ;;  %v8558_v59 = vld [vmem:[%s12538_s0 + $0x108] sm:$0xff] }
 0x21e   :  { %v206_v60 = vrot.slane %v8558_v59, 1  ;;  %v679_v37 = vrot.slane %v8558_v59, 3 }
 0x21f   :  { %v3083_v61 = vrot.slane %v2979_v31, 1  ;;  %v8489_v51 = vpop.permute.xlu1 %520  ;;  %v1986_v8 = vpop.permute.xlu0 %1985 }
 0x220   :  { %v2489_v6 = vsel %vm2466_vm0, %v2441_v44, %v1986_v8  ;;  %v1152_v44 = vsel %vm1087_vm4, %v1149_v25, %v1151_v42  ;;  %v8586_v8 = vsel %vm140_vm1, %v204_v48, %v206_v60  ;;  %v1388_v48 = vrot.slane %v8471_v36, 6 }
 0x221   :  { %v3084_v24 = vsel %vm140_vm1, %v3081_v22, %v3083_v61  ;;  %1006 = vrot.lane.b32.xlu1 %v913_v58, %s6630_s16  ;;  %1715 = vrot.lane.b32.xlu0 %v1622_v39, %s6634_s22 }
 0x222   :  { %v3212_v55 = vmax.f32 %v2978_v62, %v3084_v24  ;;  %6192 = vmatmul.mubr.msk.f32.gmra.mxu0 %vm2523_vm13, %v2489_v6  ;;  %v1150_v62 = vsel %vm1087_vm4, %v1147_v52, %v1149_v25  ;;  %v1387_v52 = vsel %vm1324_vm5, %v1384_v23, %v1386_v9  ;;  %v442_v6 = vrot.slane %v8558_v59, 2 }
 0x223   :  { %v8502_v7 = vpop.permute.xlu1 %757  ;;  %v1467_v56 = vpop.permute.xlu0 %1466  ;;  %6194 = vmatprep.mubr.msk.f32.mxu0 %vm12557_vm7, %v6637_v47 }
 0x224   :  { %3259 = vst.msk [vmem:[#allocation2 + $0x50] sm:$0xff] %vm12663_vm9, %v3212_v55  ;;  %v2346_v23 = vsel %vm12666_vm3, %v2298_v14, %v1467_v56  ;;  %vm12668_vm3 = vcmask 1045504   ;;  %v2107_v56 = vsel %vm2082_vm8, %v7838_v10, %v8466_v40  ;;  %v1389_v10 = vsel %vm1324_vm5, %v1386_v9, %v1388_v48 }
 0x225   :  { %296 = vrot.lane.b32.xlu1 %v8499_v16, %s6629_s15  ;;  %1856 = vrot.lane.b32.xlu0 %v8309_v1, %s6635_s23  ;;  %v916_v40 = vrot.slane %v8558_v59, 4 }
 0x227   :  { %v8516_v3 = vpop.permute.xlu1 %994  ;;  %v1704_v22 = vpop.permute.xlu0 %1703 }
 0x228   :  { %v2394_v30 = vsel %vm2370_vm14, %v2346_v23, %v1704_v22 }
 0x229   :  { %1999 = vrot.lane.b32.xlu1 %v8424_v50, %s6636_s24  ;;  %1243 = vrot.lane.b32.xlu0 %v1150_v62, %s6632_s18  ;;  %v2155_v62 = vsel %vm12669_vm11, %v2107_v56, %v8489_v51  ;;  %v1625_v51 = vrot.slane %v8471_v36, 7  ;;  %vm12672_vm11 = vcmask 48128  }
 0x22a   :  { %v2203_v22 = vsel %vm2178_vm10, %v2155_v62, %v8502_v7  ;;  %v8628_v7 = vld [vmem:[%s12538_s0 + $0x110] sm:$0xff] }
 0x22b   :  { %v8537_v50 = vpop.permute.xlu1 %284  ;;  %v1845_v29 = vpop.permute.xlu0 %1844  ;;  %v1626_v14 = vsel %vm12562_vm6, %v1623_v57, %v1625_v51  ;;  %v208_v23 = vrot.slane %v8628_v7, 1  ;;  %v918_v56 = vrot.slane %v8628_v7, 4 }
 0x22c   :  { %v2442_v11 = vsel %vm2418_vm15, %v2394_v30, %v1845_v29  ;;  %v917_v29 = vsel %vm12559_vm2, %v914_v46, %v916_v40 }
 0x22d   :  { %1480 = vrot.lane.b32.xlu1 %v1387_v52, %s6633_s19  ;;  %534 = vrot.lane.b32.xlu0 %v441_v13, %s6631_s17  ;;  %v8656_v57 = vsel %vm140_vm1, %v206_v60, %v208_v23 }
 0x22e   :  { %v2794_v33 = vpop.f32.mrf.mxu0 }
 0x22f   :  { %v8553_v0 = vadd.f32 %v8461_v15, %v2794_v33  ;;  %v1988_v35 = vpop.permute.xlu1 %1987  ;;  %v1232_v20 = vpop.permute.xlu0 %1231 }
 0x230   :  { %v2490_v26 = vsel %vm2466_vm0, %v2442_v11, %v1988_v35  ;;  %v6163_v49 = vpop.f32.mrf.mxu0  ;;  %v1153_v35 = vrot.slane %v8558_v59, 5 }
 0x231   :  { %v2980_v32 = vmax.f32 %v8553_v0, 0.0  ;;  %1717 = vrot.lane.b32.xlu1 %v1624_v12, %s6634_s22  ;;  %771 = vrot.lane.b32.xlu0 %v678_v19, %s6628_s14  ;;  %v1390_v49 = vrot.slane %v8558_v59, 6 }
 0x232   :  { %6195 = vmatmul.mubr.msk.f32.gmra.mxu0 %vm2523_vm13, %v2490_v26 }
 0x233   :  { %v3085_v27 = vrot.slane %v2980_v32, 1  ;;  %v1469_v41 = vpop.permute.xlu1 %1468  ;;  %v8570_v58 = vpop.permute.xlu0 %522  ;;  %6197 = vmatprep.mubr.msk.f32.mxu0 %vm12557_vm7, %v6637_v47 }
 0x235   :  { %v3086_v39 = vsel %vm140_vm1, %v3083_v61, %v3085_v27  ;;  %1858 = vrot.lane.b32.xlu1 %v8396_v43, %s6635_s23  ;;  %1008 = vrot.lane.b32.xlu0 %v915_v63, %s6630_s16  ;;  %v444_v63 = vrot.slane %v8628_v7, 2 }
 0x236   :  { %v3213_v45 = vmax.f32 %v2979_v31, %v3086_v39  ;;  %v443_v31 = vsel %vm12668_vm3, %v440_v38, %v442_v6  ;;  %vm12671_vm3 = vcmask 31744  }
 0x237   :  { %v1706_v61 = vpop.permute.xlu1 %1705  ;;  %v8589_v24 = vpop.permute.xlu0 %759  ;;  %v2251_v21 = vsel %vm12671_vm3, %v2203_v22, %v8516_v3 }
 0x238   :  { %3260 = vst.msk [vmem:[#allocation2 + $0x58] sm:$0xff] %vm12663_vm9, %v3213_v45  ;;  %vm12670_vm9 = vcmask 1044480   ;;  %v2299_v9 = vsel %vm2274_vm12, %v2251_v21, %v1232_v20 }
 0x239   :  { %1245 = vrot.lane.b32.xlu1 %v1152_v44, %s6632_s18  ;;  %298 = vrot.lane.b32.xlu0 %v8586_v8, %s6629_s15  ;;  %v680_v38 = vsel %vm12670_vm9, %v677_v54, %v679_v37  ;;  %v2347_v54 = vsel %vm12672_vm11, %v2299_v9, %v1469_v41  ;;  %vm12673_vm9 = vmmov %vm12671_vm3  ;;  %v2108_v41 = vsel %vm2082_vm8, %v7925_v5, %v8537_v50  ;;  %vm12674_vm3 = vcmask 15360  }
 0x23a   :  { %v2395_v3 = vsel %vm2370_vm14, %v2347_v54, %v1706_v61  ;;  %v2156_v39 = vsel %vm12674_vm3, %v2108_v41, %v8570_v58  ;;  %vm12675_vm11 = vcmask 1045504   ;;  %v1627_v5 = vrot.slane %v8558_v59, 7 }
 0x23b   :  { %v1847_v55 = vpop.permute.xlu1 %1846  ;;  %v997_v25 = vpop.permute.xlu0 %996  ;;  %v2204_v45 = vsel %vm2178_vm10, %v2156_v39, %v8589_v24  ;;  %v445_v44 = vsel %vm12675_vm11, %v442_v6, %v444_v63  ;;  %v681_v50 = vrot.slane %v8628_v7, 3  ;;  %vm12676_vm3 = vcmask 48128  }
 0x23c   :  { %v2443_v30 = vsel %vm2418_vm15, %v2395_v3, %v1847_v55  ;;  %v2252_v58 = vsel %vm12673_vm9, %v2204_v45, %v997_v25  ;;  %v1628_v55 = vsel %vm12562_vm6, %v1625_v51, %v1627_v5  ;;  %vm12677_vm11 = vcmask 1044480  }
 0x23d   :  { %536 = vrot.lane.b32.xlu1 %v443_v31, %s6631_s17  ;;  %2001 = vrot.lane.b32.xlu0 %v8499_v16, %s6636_s24  ;;  %v682_v25 = vsel %vm12677_vm11, %v679_v37, %v681_v50  ;;  %v919_v37 = vsel %vm12559_vm2, %v916_v40, %v918_v56  ;;  %v1155_v9 = vrot.slane %v8628_v7, 5  ;;  %vm12679_vm11 = vcmask 15360  }
 0x23e   :  { %v2799_v34 = vpop.f32.mrf.mxu0 }
 0x23f   :  { %v8621_v16 = vadd.f32 %v8461_v15, %v2799_v34  ;;  %v1234_v52 = vpop.permute.xlu1 %1233  ;;  %v8623_v4 = vpop.permute.xlu0 %286 }
 0x240   :  { %v6166_v13 = vpop.f32.mrf.mxu0  ;;  %v2300_v31 = vsel %vm2274_vm12, %v2252_v58, %v1234_v52 }
 0x241   :  { %v2981_v17 = vmax.f32 %v8621_v16, 0.0  ;;  %773 = vrot.lane.b32.xlu1 %v680_v38, %s6628_s14  ;;  %1482 = vrot.lane.b32.xlu0 %v1389_v10, %s6633_s19  ;;  %v8715_v10 = vld [vmem:[%s12538_s0 + $0x118] sm:$0xff] }
 0x242   :  { %v210_v13 = vrot.slane %v8715_v10, 1  ;;  %v683_v16 = vrot.slane %v8715_v10, 3 }
 0x243   :  { %v3087_v33 = vrot.slane %v2981_v17, 1  ;;  %v8646_v12 = vpop.permute.xlu1 %524  ;;  %v1990_v19 = vpop.permute.xlu0 %1989 }
 0x244   :  { %v2491_v11 = vsel %vm2466_vm0, %v2443_v30, %v1990_v19  ;;  %v1156_v30 = vsel %vm1087_vm4, %v1153_v35, %v1155_v9  ;;  %v8743_v19 = vsel %vm140_vm1, %v208_v23, %v210_v13  ;;  %v1392_v23 = vrot.slane %v8628_v7, 6 }
 0x245   :  { %v3088_v0 = vsel %vm140_vm1, %v3085_v27, %v3087_v33  ;;  %1010 = vrot.lane.b32.xlu1 %v917_v29, %s6630_s16  ;;  %1719 = vrot.lane.b32.xlu0 %v1626_v14, %s6634_s22 }
 0x246   :  { %v3214_v46 = vmax.f32 %v2980_v32, %v3088_v0  ;;  %6198 = vmatmul.mubr.msk.f32.gmra.mxu0 %vm2523_vm13, %v2491_v11  ;;  %v1154_v32 = vsel %vm1087_vm4, %v1151_v42, %v1153_v35  ;;  %v1391_v42 = vsel %vm1324_vm5, %v1388_v48, %v1390_v49  ;;  %v446_v11 = vrot.slane %v8715_v10, 2 }
 0x247   :  { %v8659_v20 = vpop.permute.xlu1 %761  ;;  %v1471_v26 = vpop.permute.xlu0 %1470  ;;  %6200 = vmatprep.mubr.msk.f32.mxu0 %vm12557_vm7, %v6637_v47 }
 0x248   :  { %3261 = vst.msk [vmem:[#allocation2 + $0x60] sm:$0xff] %vm12673_vm9, %v3214_v46  ;;  %v2348_v48 = vsel %vm12676_vm3, %v2300_v31, %v1471_v26  ;;  %vm12678_vm3 = vcmask 1045504   ;;  %v2109_v26 = vsel %vm2082_vm8, %v7995_v53, %v8623_v4  ;;  %v1393_v53 = vsel %vm1324_vm5, %v1390_v49, %v1392_v23 }
 0x249   :  { %300 = vrot.lane.b32.xlu1 %v8656_v57, %s6629_s15  ;;  %1860 = vrot.lane.b32.xlu0 %v8471_v36, %s6635_s23  ;;  %v920_v4 = vrot.slane %v8715_v10, 4 }
 0x24b   :  { %v8673_v60 = vpop.permute.xlu1 %998  ;;  %v1708_v27 = vpop.permute.xlu0 %1707 }
 0x24c   :  { %v2396_v24 = vsel %vm2370_vm14, %v2348_v48, %v1708_v27 }
 0x24d   :  { %2003 = vrot.lane.b32.xlu1 %v8586_v8, %s6636_s24  ;;  %1247 = vrot.lane.b32.xlu0 %v1154_v32, %s6632_s18  ;;  %v2157_v32 = vsel %vm12679_vm11, %v2109_v26, %v8646_v12  ;;  %v1629_v12 = vrot.slane %v8628_v7, 7  ;;  %vm12682_vm11 = vcmask 48128  }
 0x24e   :  { %v2205_v27 = vsel %vm2178_vm10, %v2157_v32, %v8659_v20  ;;  %v8785_v20 = vld [vmem:[%s12538_s0 + $0x120] sm:$0xff] }
 0x24f   :  { %v8694_v8 = vpop.permute.xlu1 %288  ;;  %v1849_v61 = vpop.permute.xlu0 %1848  ;;  %v1630_v31 = vsel %vm12562_vm6, %v1627_v5, %v1629_v12  ;;  %v212_v48 = vrot.slane %v8785_v20, 1  ;;  %v922_v26 = vrot.slane %v8785_v20, 4 }
 0x250   :  { %v2444_v62 = vsel %vm2418_vm15, %v2396_v24, %v1849_v61  ;;  %v921_v61 = vsel %vm12559_vm2, %v918_v56, %v920_v4 }
 0x251   :  { %1484 = vrot.lane.b32.xlu1 %v1391_v42, %s6633_s19  ;;  %538 = vrot.lane.b32.xlu0 %v445_v44, %s6631_s17  ;;  %v8813_v5 = vsel %vm140_vm1, %v210_v13, %v212_v48 }
 0x252   :  { %v2804_v6 = vpop.f32.mrf.mxu0 }
 0x253   :  { %v8710_v38 = vadd.f32 %v8461_v15, %v2804_v6  ;;  %v1992_v22 = vpop.permute.xlu1 %1991  ;;  %v1236_v34 = vpop.permute.xlu0 %1235 }
 0x254   :  { %v2492_v51 = vsel %vm2466_vm0, %v2444_v62, %v1992_v22  ;;  %v6169_v21 = vpop.f32.mrf.mxu0  ;;  %v1157_v22 = vrot.slane %v8715_v10, 5 }
 0x255   :  { %v2982_v52 = vmax.f32 %v8710_v38, 0.0  ;;  %1721 = vrot.lane.b32.xlu1 %v1628_v55, %s6634_s22  ;;  %775 = vrot.lane.b32.xlu0 %v682_v25, %s6628_s14  ;;  %v1394_v21 = vrot.slane %v8715_v10, 6 }
 0x256   :  { %6201 = vmatmul.mubr.msk.f32.gmra.mxu0 %vm2523_vm13, %v2492_v51 }
 0x257   :  { %v3089_v54 = vrot.slane %v2982_v52, 1  ;;  %v1473_v3 = vpop.permute.xlu1 %1472  ;;  %v8727_v29 = vpop.permute.xlu0 %526  ;;  %6203 = vmatprep.mubr.msk.f32.mxu0 %vm12557_vm7, %v6637_v47 }
 0x259   :  { %v3090_v14 = vsel %vm140_vm1, %v3087_v33, %v3089_v54  ;;  %1862 = vrot.lane.b32.xlu1 %v8558_v59, %s6635_s23  ;;  %1012 = vrot.lane.b32.xlu0 %v919_v37, %s6630_s16  ;;  %v448_v37 = vrot.slane %v8785_v20, 2 }
 0x25a   :  { %v3215_v40 = vmax.f32 %v2981_v17, %v3090_v14  ;;  %v447_v17 = vsel %vm12678_vm3, %v444_v63, %v446_v11  ;;  %vm12681_vm3 = vcmask 31744  }
 0x25b   :  { %v1710_v33 = vpop.permute.xlu1 %1709  ;;  %v8746_v0 = vpop.permute.xlu0 %763  ;;  %v2253_v39 = vsel %vm12681_vm3, %v2205_v27, %v8673_v60 }
 0x25c   :  { %3262 = vst.msk [vmem:[#allocation2 + $0x68] sm:$0xff] %vm12673_vm9, %v3215_v40  ;;  %vm12680_vm9 = vcmask 1044480   ;;  %v2301_v49 = vsel %vm2274_vm12, %v2253_v39, %v1236_v34 }
 0x25d   :  { %1249 = vrot.lane.b32.xlu1 %v1156_v30, %s6632_s18  ;;  %302 = vrot.lane.b32.xlu0 %v8743_v19, %s6629_s15  ;;  %v684_v63 = vsel %vm12680_vm9, %v681_v50, %v683_v16  ;;  %v2349_v50 = vsel %vm12682_vm11, %v2301_v49, %v1473_v3  ;;  %vm12683_vm9 = vmmov %vm12681_vm3  ;;  %v2110_v3 = vsel %vm2082_vm8, %v8082_v18, %v8694_v8  ;;  %vm12684_vm3 = vcmask 15360  }
 0x25e   :  { %v2397_v60 = vsel %vm2370_vm14, %v2349_v50, %v1710_v33  ;;  %v2158_v14 = vsel %vm12684_vm3, %v2110_v3, %v8727_v29  ;;  %vm12685_vm11 = vcmask 1045504   ;;  %v1631_v18 = vrot.slane %v8715_v10, 7 }
 0x25f   :  { %v1851_v46 = vpop.permute.xlu1 %1850  ;;  %v1001_v35 = vpop.permute.xlu0 %1000  ;;  %v2206_v40 = vsel %vm2178_vm10, %v2158_v14, %v8746_v0  ;;  %v449_v30 = vsel %vm12685_vm11, %v446_v11, %v448_v37  ;;  %v685_v8 = vrot.slane %v8785_v20, 3  ;;  %vm12686_vm3 = vcmask 48128  }
 0x260   :  { %v2445_v24 = vsel %vm2418_vm15, %v2397_v60, %v1851_v46  ;;  %v2254_v29 = vsel %vm12683_vm9, %v2206_v40, %v1001_v35  ;;  %v1632_v46 = vsel %vm12562_vm6, %v1629_v12, %v1631_v18  ;;  %vm12687_vm11 = vcmask 1044480  }
 0x261   :  { %540 = vrot.lane.b32.xlu1 %v447_v17, %s6631_s17  ;;  %2005 = vrot.lane.b32.xlu0 %v8656_v57, %s6636_s24  ;;  %v686_v35 = vsel %vm12687_vm11, %v683_v16, %v685_v8  ;;  %v923_v16 = vsel %vm12559_vm2, %v920_v4, %v922_v26  ;;  %v1159_v49 = vrot.slane %v8785_v20, 5  ;;  %vm12689_vm11 = vcmask 15360  }
 0x262   :  { %v2809_v41 = vpop.f32.mrf.mxu0 }
 0x263   :  { %v8778_v57 = vadd.f32 %v8461_v15, %v2809_v41  ;;  %v1238_v42 = vpop.permute.xlu1 %1237  ;;  %v8780_v45 = vpop.permute.xlu0 %290 }
 0x264   :  { %v6172_v44 = vpop.f32.mrf.mxu0  ;;  %v2302_v17 = vsel %vm2274_vm12, %v2254_v29, %v1238_v42 }
 0x265   :  { %v2983_v58 = vmax.f32 %v8778_v57, 0.0  ;;  %777 = vrot.lane.b32.xlu1 %v684_v63, %s6628_s14  ;;  %1486 = vrot.lane.b32.xlu0 %v1393_v53, %s6633_s19  ;;  %v8872_v53 = vld [vmem:[%s12538_s0 + $0x128] sm:$0xff] }
 0x266   :  { %v214_v44 = vrot.slane %v8872_v53, 1  ;;  %v687_v57 = vrot.slane %v8872_v53, 3 }
 0x267   :  { %v3091_v6 = vrot.slane %v2983_v58, 1  ;;  %v8803_v55 = vpop.permute.xlu1 %528  ;;  %v1994_v25 = vpop.permute.xlu0 %1993 }
 0x268   :  { %v2493_v62 = vsel %vm2466_vm0, %v2445_v24, %v1994_v25  ;;  %v1160_v24 = vsel %vm1087_vm4, %v1157_v22, %v1159_v49  ;;  %v8900_v25 = vsel %vm140_vm1, %v212_v48, %v214_v44  ;;  %v1396_v48 = vrot.slane %v8785_v20, 6 }
 0x269   :  { %v3092_v38 = vsel %vm140_vm1, %v3089_v54, %v3091_v6  ;;  %1014 = vrot.lane.b32.xlu1 %v921_v61, %s6630_s16  ;;  %1723 = vrot.lane.b32.xlu0 %v1630_v31, %s6634_s22 }
 0x26a   :  { %v3216_v56 = vmax.f32 %v2982_v52, %v3092_v38  ;;  %6204 = vmatmul.mubr.msk.f32.gmra.mxu0 %vm2523_vm13, %v2493_v62  ;;  %v1158_v52 = vsel %vm1087_vm4, %v1155_v9, %v1157_v22  ;;  %v1395_v9 = vsel %vm1324_vm5, %v1392_v23, %v1394_v21  ;;  %v450_v62 = vrot.slane %v8872_v53, 2 }
 0x26b   :  { %v8816_v34 = vpop.permute.xlu1 %765  ;;  %v1475_v51 = vpop.permute.xlu0 %1474  ;;  %6206 = vmatprep.mubr.msk.f32.mxu0 %vm12557_vm7, %v6637_v47 }
 0x26c   :  { %3263 = vst.msk [vmem:[#allocation2 + $0x70] sm:$0xff] %vm12683_vm9, %v3216_v56  ;;  %v2350_v23 = vsel %vm12686_vm3, %v2302_v17, %v1475_v51  ;;  %vm12688_vm3 = vcmask 1045504   ;;  %v2111_v51 = vsel %vm2082_vm8, %v8152_v2, %v8780_v45  ;;  %v1397_v2 = vsel %vm1324_vm5, %v1394_v21, %v1396_v48 }
 0x26d   :  { %304 = vrot.lane.b32.xlu1 %v8813_v5, %s6629_s15  ;;  %1864 = vrot.lane.b32.xlu0 %v8628_v7, %s6635_s23  ;;  %v924_v45 = vrot.slane %v8872_v53, 4 }
 0x26f   :  { %v8830_v13 = vpop.permute.xlu1 %1002  ;;  %v1712_v54 = vpop.permute.xlu0 %1711 }
 0x270   :  { %v2398_v0 = vsel %vm2370_vm14, %v2350_v23, %v1712_v54 }
 0x271   :  { %2007 = vrot.lane.b32.xlu1 %v8743_v19, %s6636_s24  ;;  %1251 = vrot.lane.b32.xlu0 %v1158_v52, %s6632_s18  ;;  %v2159_v52 = vsel %vm12689_vm11, %v2111_v51, %v8803_v55  ;;  %v1633_v55 = vrot.slane %v8785_v20, 7  ;;  %vm12692_vm11 = vcmask 48128  }
 0x272   :  { %v2207_v54 = vsel %vm2178_vm10, %v2159_v52, %v8816_v34  ;;  %v8942_v34 = vld [vmem:[%s12538_s0 + $0x130] sm:$0xff] }
 0x273   :  { %v8851_v19 = vpop.permute.xlu1 %292  ;;  %v1853_v33 = vpop.permute.xlu0 %1852  ;;  %v1634_v17 = vsel %vm12562_vm6, %v1631_v18, %v1633_v55  ;;  %v216_v23 = vrot.slane %v8942_v34, 1  ;;  %v926_v51 = vrot.slane %v8942_v34, 4 }
 0x274   :  { %v2446_v32 = vsel %vm2418_vm15, %v2398_v0, %v1853_v33  ;;  %v925_v33 = vsel %vm12559_vm2, %v922_v26, %v924_v45 }
 0x275   :  { %1488 = vrot.lane.b32.xlu1 %v1395_v9, %s6633_s19  ;;  %542 = vrot.lane.b32.xlu0 %v449_v30, %s6631_s17  ;;  %v8970_v18 = vsel %vm140_vm1, %v214_v44, %v216_v23 }
 0x276   :  { %v2814_v11 = vpop.f32.mrf.mxu0 }
 0x277   :  { %v8867_v63 = vadd.f32 %v8461_v15, %v2814_v11  ;;  %v1996_v27 = vpop.permute.xlu1 %1995  ;;  %v1240_v41 = vpop.permute.xlu0 %1239 }
 0x278   :  { %v2494_v12 = vsel %vm2466_vm0, %v2446_v32, %v1996_v27  ;;  %v6175_v39 = vpop.f32.mrf.mxu0  ;;  %v1161_v27 = vrot.slane %v8872_v53, 5 }
 0x279   :  { %v2984_v42 = vmax.f32 %v8867_v63, 0.0  ;;  %1725 = vrot.lane.b32.xlu1 %v1632_v46, %s6634_s22  ;;  %779 = vrot.lane.b32.xlu0 %v686_v35, %s6628_s14  ;;  %v1398_v39 = vrot.slane %v8872_v53, 6 }
 0x27a   :  { %6207 = vmatmul.mubr.msk.f32.gmra.mxu0 %vm2523_vm13, %v2494_v12 }
 0x27b   :  { %v3093_v50 = vrot.slane %v2984_v42, 1  ;;  %v1477_v60 = vpop.permute.xlu1 %1476  ;;  %v8884_v61 = vpop.permute.xlu0 %530  ;;  %6209 = vmatprep.mubr.msk.f32.mxu0 %vm12557_vm7, %v6637_v47 }
 0x27d   :  { %v3094_v31 = vsel %vm140_vm1, %v3091_v6, %v3093_v50  ;;  %1866 = vrot.lane.b32.xlu1 %v8715_v10, %s6635_s23  ;;  %1016 = vrot.lane.b32.xlu0 %v923_v16, %s6630_s16  ;;  %v452_v16 = vrot.slane %v8942_v34, 2 }
 0x27e   :  { %v3217_v4 = vmax.f32 %v2983_v58, %v3094_v31  ;;  %v451_v58 = vsel %vm12688_vm3, %v448_v37, %v450_v62  ;;  %vm12691_vm3 = vcmask 31744  }
 0x27f   :  { %v1714_v6 = vpop.permute.xlu1 %1713  ;;  %v8903_v38 = vpop.permute.xlu0 %767  ;;  %v2255_v14 = vsel %vm12691_vm3, %v2207_v54, %v8830_v13 }
 0x280   :  { %3264 = vst.msk [vmem:[#allocation2 + $0x78] sm:$0xff] %vm12683_vm9, %v3217_v4  ;;  %vm12690_vm9 = vcmask 1044480   ;;  %v2303_v21 = vsel %vm2274_vm12, %v2255_v14, %v1240_v41 }
 0x281   :  { %1253 = vrot.lane.b32.xlu1 %v1160_v24, %s6632_s18  ;;  %306 = vrot.lane.b32.xlu0 %v8900_v25, %s6629_s15  ;;  %v688_v37 = vsel %vm12690_vm9, %v685_v8, %v687_v57  ;;  %v2351_v8 = vsel %vm12692_vm11, %v2303_v21, %v1477_v60  ;;  %vm12693_vm9 = vmmov %vm12691_vm3  ;;  %v2112_v60 = vsel %vm2082_vm8, %v8239_v28, %v8851_v19  ;;  %vm12694_vm3 = vcmask 15360  }
 0x282   :  { %v2399_v13 = vsel %vm2370_vm14, %v2351_v8, %v1714_v6  ;;  %v2160_v31 = vsel %vm12694_vm3, %v2112_v60, %v8884_v61  ;;  %vm12695_vm11 = vcmask 1045504   ;;  %v1635_v28 = vrot.slane %v8872_v53, 7 }
 0x283   :  { %v1855_v56 = vpop.permute.xlu1 %1854  ;;  %v1005_v22 = vpop.permute.xlu0 %1004  ;;  %v2208_v4 = vsel %vm2178_vm10, %v2160_v31, %v8903_v38  ;;  %v453_v24 = vsel %vm12695_vm11, %v450_v62, %v452_v16  ;;  %v689_v19 = vrot.slane %v8942_v34, 3  ;;  %vm12696_vm3 = vcmask 48128  }
 0x284   :  { %v2447_v0 = vsel %vm2418_vm15, %v2399_v13, %v1855_v56  ;;  %v2256_v61 = vsel %vm12693_vm9, %v2208_v4, %v1005_v22  ;;  %v1636_v56 = vsel %vm12562_vm6, %v1633_v55, %v1635_v28  ;;  %vm12697_vm11 = vcmask 1044480  }
 0x285   :  { %544 = vrot.lane.b32.xlu1 %v451_v58, %s6631_s17  ;;  %2009 = vrot.lane.b32.xlu0 %v8813_v5, %s6636_s24  ;;  %v690_v22 = vsel %vm12697_vm11, %v687_v57, %v689_v19  ;;  %v927_v57 = vsel %vm12559_vm2, %v924_v45, %v926_v51  ;;  %v1163_v21 = vrot.slane %v8942_v34, 5  ;;  %vm12699_vm11 = vcmask 15360  }
 0x286   :  { %v2819_v3 = vpop.f32.mrf.mxu0 }
 0x287   :  { %v8935_v5 = vadd.f32 %v8461_v15, %v2819_v3  ;;  %v1242_v9 = vpop.permute.xlu1 %1241  ;;  %v8937_v40 = vpop.permute.xlu0 %294 }
 0x288   :  { %v6178_v30 = vpop.f32.mrf.mxu0  ;;  %v2304_v58 = vsel %vm2274_vm12, %v2256_v61, %v1242_v9 }
 0x289   :  { %v2985_v29 = vmax.f32 %v8935_v5, 0.0  ;;  %781 = vrot.lane.b32.xlu1 %v688_v37, %s6628_s14  ;;  %1490 = vrot.lane.b32.xlu0 %v1397_v2, %s6633_s19  ;;  %v9029_v2 = vld [vmem:[%s12538_s0 + $0x138] sm:$0xff] }
 0x28a   :  { %v218_v30 = vrot.slane %v9029_v2, 1  ;;  %v691_v5 = vrot.slane %v9029_v2, 3 }
 0x28b   :  { %v3095_v11 = vrot.slane %v2985_v29, 1  ;;  %v8960_v46 = vpop.permute.xlu1 %532  ;;  %v1998_v35 = vpop.permute.xlu0 %1997 }
 0x28c   :  { %v2495_v32 = vsel %vm2466_vm0, %v2447_v0, %v1998_v35  ;;  %v1164_v0 = vsel %vm1087_vm4, %v1161_v27, %v1163_v21  ;;  %v9057_v35 = vsel %vm140_vm1, %v216_v23, %v218_v30  ;;  %v1400_v23 = vrot.slane %v8942_v34, 6 }
 0x28d   :  { %v3096_v63 = vsel %vm140_vm1, %v3093_v50, %v3095_v11  ;;  %1018 = vrot.lane.b32.xlu1 %v925_v33, %s6630_s16  ;;  %1727 = vrot.lane.b32.xlu0 %v1634_v17, %s6634_s22 }
 0x28e   :  { %v3218_v26 = vmax.f32 %v2984_v42, %v3096_v63  ;;  %6210 = vmatmul.mubr.msk.f32.gmra.mxu0 %vm2523_vm13, %v2495_v32  ;;  %v1162_v42 = vsel %vm1087_vm4, %v1159_v49, %v1161_v27  ;;  %v1399_v49 = vsel %vm1324_vm5, %v1396_v48, %v1398_v39  ;;  %v454_v32 = vrot.slane %v9029_v2, 2 }
 0x28f   :  { %v8973_v41 = vpop.permute.xlu1 %769  ;;  %v1479_v12 = vpop.permute.xlu0 %1478  ;;  %6212 = vmatprep.mubr.msk.f32.mxu0 %vm12557_vm7, %v6637_v47 }
 0x290   :  { %3265 = vst.msk [vmem:[#allocation2 + $0x80] sm:$0xff] %vm12693_vm9, %v3218_v26  ;;  %v2352_v48 = vsel %vm12696_vm3, %v2304_v58, %v1479_v12  ;;  %vm12698_vm3 = vcmask 1045504   ;;  %v2113_v12 = vsel %vm2082_vm8, %v8309_v1, %v8937_v40  ;;  %v1401_v1 = vsel %vm1324_vm5, %v1398_v39, %v1400_v23 }
 0x291   :  { %308 = vrot.lane.b32.xlu1 %v8970_v18, %s6629_s15  ;;  %1868 = vrot.lane.b32.xlu0 %v8785_v20, %s6635_s23  ;;  %v928_v40 = vrot.slane %v9029_v2, 4 }
 0x293   :  { %v8987_v44 = vpop.permute.xlu1 %1006  ;;  %v1716_v50 = vpop.permute.xlu0 %1715 }
 0x294   :  { %v2400_v38 = vsel %vm2370_vm14, %v2352_v48, %v1716_v50 }
 0x295   :  { %2011 = vrot.lane.b32.xlu1 %v8900_v25, %s6636_s24  ;;  %1255 = vrot.lane.b32.xlu0 %v1162_v42, %s6632_s18  ;;  %v2161_v42 = vsel %vm12699_vm11, %v2113_v12, %v8960_v46  ;;  %v1637_v46 = vrot.slane %v8942_v34, 7  ;;  %vm12702_vm11 = vcmask 48128  }
 0x296   :  { %v2209_v50 = vsel %vm2178_vm10, %v2161_v42, %v8973_v41  ;;  %v9099_v41 = vld [vmem:[%s12538_s0 + $0x140] sm:$0xff] }
 0x297   :  { %v9008_v25 = vpop.permute.xlu1 %296  ;;  %v1857_v6 = vpop.permute.xlu0 %1856  ;;  %v1638_v58 = vsel %vm12562_vm6, %v1635_v28, %v1637_v46  ;;  %v220_v48 = vrot.slane %v9099_v41, 1  ;;  %v930_v12 = vrot.slane %v9099_v41, 4 }
 0x298   :  { %v2448_v52 = vsel %vm2418_vm15, %v2400_v38, %v1857_v6  ;;  %v929_v6 = vsel %vm12559_vm2, %v926_v51, %v928_v40 }
 0x299   :  { %1492 = vrot.lane.b32.xlu1 %v1399_v49, %s6633_s19  ;;  %546 = vrot.lane.b32.xlu0 %v453_v24, %s6631_s17  ;;  %v9127_v28 = vsel %vm140_vm1, %v218_v30, %v220_v48 }
 0x29a   :  { %v2824_v62 = vpop.f32.mrf.mxu0 }
 0x29b   :  { %v9024_v37 = vadd.f32 %v8461_v15, %v2824_v62  ;;  %v2000_v54 = vpop.permute.xlu1 %1999  ;;  %v1244_v3 = vpop.permute.xlu0 %1243 }
 0x29c   :  { %v2496_v55 = vsel %vm2466_vm0, %v2448_v52, %v2000_v54  ;;  %v6181_v14 = vpop.f32.mrf.mxu0  ;;  %v1165_v54 = vrot.slane %v9029_v2, 5 }
 0x29d   :  { %v2986_v9 = vmax.f32 %v9024_v37, 0.0  ;;  %1729 = vrot.lane.b32.xlu1 %v1636_v56, %s6634_s22  ;;  %783 = vrot.lane.b32.xlu0 %v690_v22, %s6628_s14  ;;  %v1402_v14 = vrot.slane %v9029_v2, 6 }
 0x29e   :  { %6213 = vmatmul.mubr.msk.f32.gmra.mxu0 %vm2523_vm13, %v2496_v55 }
 0x29f   :  { %v3097_v8 = vrot.slane %v2986_v9, 1  ;;  %v1481_v13 = vpop.permute.xlu1 %1480  ;;  %v9041_v33 = vpop.permute.xlu0 %534  ;;  %6215 = vmatprep.mubr.msk.f32.mxu0 %vm12557_vm7, %v6637_v47 }
 0x2a1   :  { %v3098_v17 = vsel %vm140_vm1, %v3095_v11, %v3097_v8  ;;  %1870 = vrot.lane.b32.xlu1 %v8872_v53, %s6635_s23  ;;  %1020 = vrot.lane.b32.xlu0 %v927_v57, %s6630_s16  ;;  %v456_v57 = vrot.slane %v9099_v41, 2 }
 0x2a2   :  { %v3219_v45 = vmax.f32 %v2985_v29, %v3098_v17  ;;  %v455_v29 = vsel %vm12698_vm3, %v452_v16, %v454_v32  ;;  %vm12701_vm3 = vcmask 31744  }
 0x2a3   :  { %v1718_v11 = vpop.permute.xlu1 %1717  ;;  %v9060_v63 = vpop.permute.xlu0 %771  ;;  %v2257_v31 = vsel %vm12701_vm3, %v2209_v50, %v8987_v44 }
 0x2a4   :  { %3266 = vst.msk [vmem:[#allocation2 + $0x88] sm:$0xff] %vm12693_vm9, %v3219_v45  ;;  %vm12700_vm9 = vcmask 1044480   ;;  %v2305_v39 = vsel %vm2274_vm12, %v2257_v31, %v1244_v3 }
 0x2a5   :  { %1257 = vrot.lane.b32.xlu1 %v1164_v0, %s6632_s18  ;;  %310 = vrot.lane.b32.xlu0 %v9057_v35, %s6629_s15  ;;  %v692_v16 = vsel %vm12700_vm9, %v689_v19, %v691_v5  ;;  %v2353_v19 = vsel %vm12702_vm11, %v2305_v39, %v1481_v13  ;;  %vm12703_vm9 = vmmov %vm12701_vm3  ;;  %v2114_v13 = vsel %vm2082_vm8, %v8396_v43, %v9008_v25  ;;  %vm12704_vm3 = vcmask 15360  }
 0x2a6   :  { %v2401_v44 = vsel %vm2370_vm14, %v2353_v19, %v1718_v11  ;;  %v2162_v17 = vsel %vm12704_vm3, %v2114_v13, %v9041_v33  ;;  %vm12705_vm11 = vcmask 1045504   ;;  %v1639_v43 = vrot.slane %v9029_v2, 7 }
 0x2a7   :  { %v1859_v26 = vpop.permute.xlu1 %1858  ;;  %v1009_v27 = vpop.permute.xlu0 %1008  ;;  %v2210_v45 = vsel %vm2178_vm10, %v2162_v17, %v9060_v63  ;;  %v457_v0 = vsel %vm12705_vm11, %v454_v32, %v456_v57  ;;  %v693_v25 = vrot.slane %v9099_v41, 3  ;;  %vm12706_vm3 = vcmask 48128  }
 0x2a8   :  { %v2449_v38 = vsel %vm2418_vm15, %v2401_v44, %v1859_v26  ;;  %v2258_v33 = vsel %vm12703_vm9, %v2210_v45, %v1009_v27  ;;  %v1640_v26 = vsel %vm12562_vm6, %v1637_v46, %v1639_v43  ;;  %vm12707_vm11 = vcmask 1044480  }
 0x2a9   :  { %548 = vrot.lane.b32.xlu1 %v455_v29, %s6631_s17  ;;  %2013 = vrot.lane.b32.xlu0 %v8970_v18, %s6636_s24  ;;  %v694_v27 = vsel %vm12707_vm11, %v691_v5, %v693_v25  ;;  %v1167_v5 = vrot.slane %v9099_v41, 5  ;;  %vm12709_vm11 = vcmask 15360  }
 0x2aa   :  { %v2829_v60 = vpop.f32.mrf.mxu0 }
 0x2ab   :  { %v9092_v18 = vadd.f32 %v8461_v15, %v2829_v60  ;;  %v1246_v49 = vpop.permute.xlu1 %1245  ;;  %v9094_v4 = vpop.permute.xlu0 %298 }
 0x2ac   :  { %v6184_v24 = vpop.f32.mrf.mxu0  ;;  %v2306_v29 = vsel %vm2274_vm12, %v2258_v33, %v1246_v49 }
 0x2ad   :  { %v2987_v61 = vmax.f32 %v9092_v18, 0.0  ;;  %785 = vrot.lane.b32.xlu1 %v692_v16, %s6628_s14  ;;  %1494 = vrot.lane.b32.xlu0 %v1401_v1, %s6633_s19  ;;  %v9186_v1 = vld [vmem:[%s12538_s0 + $0x148] sm:$0xff] }
 0x2ae   :  { %v222_v39 = vrot.slane %v9186_v1, 1  ;;  %v695_v18 = vrot.slane %v9186_v1, 3 }
 0x2af   :  { %v3099_v62 = vrot.slane %v2987_v61, 1  ;;  %v9117_v56 = vpop.permute.xlu1 %536  ;;  %v2002_v22 = vpop.permute.xlu0 %2001 }
 0x2b0   :  { %v2497_v52 = vsel %vm2466_vm0, %v2449_v38, %v2002_v22  ;;  %v9214_v38 = vsel %vm140_vm1, %v220_v48, %v222_v39  ;;  %v458_v22 = vrot.slane %v9186_v1, 2  ;;  %v1404_v48 = vrot.slane %v9099_v41, 6 }
 0x2b1   :  { %v3100_v37 = vsel %vm140_vm1, %v3097_v8, %v3099_v62  ;;  %1022 = vrot.lane.b32.xlu1 %v929_v6, %s6630_s16  ;;  %1731 = vrot.lane.b32.xlu0 %v1638_v58, %s6634_s22  ;;  %v1168_v58 = vsel %vm1087_vm4, %v1165_v54, %v1167_v5 }
 0x2b2   :  { %v3220_v51 = vmax.f32 %v2986_v9, %v3100_v37  ;;  %6216 = vmatmul.mubr.msk.f32.gmra.mxu0 %vm2523_vm13, %v2497_v52  ;;  %v1166_v9 = vsel %vm1087_vm4, %v1163_v21, %v1165_v54  ;;  %v1403_v21 = vsel %vm1324_vm5, %v1400_v23, %v1402_v14  ;;  %v2115_v54 = vsel %vm2082_vm8, %v8471_v36, %v9094_v4 }
 0x2b3   :  { %v9130_v3 = vpop.permute.xlu1 %773  ;;  %v1483_v55 = vpop.permute.xlu0 %1482  ;;  %6218 = vmatprep.mubr.msk.f32.mxu0 %vm12557_vm7, %v6637_v47  ;;  %v1405_v36 = vsel %vm1324_vm5, %v1402_v14, %v1404_v48  ;;  %v932_v4 = vrot.slane %v9186_v1, 4  ;;  %v9261_v14 = vld [vmem:[%s12538_s0 + $0x150] sm:$0xff] }
 0x2b4   :  { %3267 = vst.msk [vmem:[#allocation2 + $0x90] sm:$0xff] %vm12703_vm9, %v3220_v51  ;;  %v2354_v23 = vsel %vm12706_vm3, %v2306_v29, %v1483_v55  ;;  %vm12708_vm3 = vcmask 1045504   ;;  %v2163_v55 = vsel %vm12709_vm11, %v2115_v54, %v9117_v56  ;;  %v1641_v56 = vrot.slane %v9099_v41, 7 }
 0x2b5   :  { %312 = vrot.lane.b32.xlu1 %v9127_v28, %s6629_s15  ;;  %1872 = vrot.lane.b32.xlu0 %v8942_v34, %s6635_s23  ;;  %vm12712_vm11 = vcmask 48128  }
 0x2b6   :  { %v1642_v29 = vsel %vm12562_vm6, %v1639_v43, %v1641_v56 }
 0x2b7   :  { %v9144_v30 = vpop.permute.xlu1 %1010  ;;  %v1720_v8 = vpop.permute.xlu0 %1719 }
 0x2b8   :  { %v2402_v63 = vsel %vm2370_vm14, %v2354_v23, %v1720_v8  ;;  %v224_v23 = vrot.slane %v9261_v14, 1 }
 0x2b9   :  { %2015 = vrot.lane.b32.xlu1 %v9057_v35, %s6636_s24  ;;  %1259 = vrot.lane.b32.xlu0 %v1166_v9, %s6632_s18 }
 0x2ba   :  { %v9289_v43 = vsel %vm140_vm1, %v222_v39, %v224_v23 }
 0x2bb   :  { %v9165_v35 = vpop.permute.xlu1 %300  ;;  %v1861_v11 = vpop.permute.xlu0 %1860 }
 0x2bc   :  { %v2450_v42 = vsel %vm2418_vm15, %v2402_v63, %v1861_v11  ;;  %v933_v11 = vsel %vm12559_vm2, %v930_v12, %v932_v4 }
 0x2bd   :  { %1496 = vrot.lane.b32.xlu1 %v1403_v21, %s6633_s19  ;;  %550 = vrot.lane.b32.xlu0 %v457_v0, %s6631_s17 }
 0x2be   :  { %v2834_v32 = vpop.f32.mrf.mxu0 }
 0x2bf   :  { %v9181_v16 = vadd.f32 %v8461_v15, %v2834_v32  ;;  %v2004_v50 = vpop.permute.xlu1 %2003  ;;  %v1248_v60 = vpop.permute.xlu0 %1247  ;;  %v931_v15 = vsel %vm12559_vm2, %v928_v40, %v930_v12 }
 0x2c0   :  { %v2498_v46 = vsel %vm2466_vm0, %v2450_v42, %v2004_v50  ;;  %v6187_v31 = vpop.f32.mrf.mxu0  ;;  %v1169_v50 = vrot.slane %v9186_v1, 5 }
 0x2c1   :  { %v2988_v49 = vmax.f32 %v9181_v16, 0.0  ;;  %1733 = vrot.lane.b32.xlu1 %v1640_v26, %s6634_s22  ;;  %787 = vrot.lane.b32.xlu0 %v694_v27, %s6628_s14  ;;  %v1406_v31 = vrot.slane %v9186_v1, 6 }
 0x2c2   :  { %6219 = vmatmul.mubr.msk.f32.gmra.mxu0 %vm2523_vm13, %v2498_v46 }
 0x2c3   :  { %v3101_v24 = vrot.slane %v2988_v49, 1  ;;  %v1485_v19 = vpop.permute.xlu1 %1484  ;;  %v9198_v44 = vpop.permute.xlu0 %538  ;;  %6221 = vmatprep.mubr.msk.f32.mxu0 %vm12557_vm7, %v6637_v47 }
 0x2c5   :  { %v3102_v6 = vsel %vm140_vm1, %v3099_v62, %v3101_v24  ;;  %1874 = vrot.lane.b32.xlu1 %v9029_v2, %s6635_s23  ;;  %1024 = vrot.lane.b32.xlu0 %v931_v15, %s6630_s16  ;;  %v460_v15 = vrot.slane %v9261_v14, 2 }
 0x2c6   :  { %v3221_v40 = vmax.f32 %v2987_v61, %v3102_v6  ;;  %v459_v61 = vsel %vm12708_vm3, %v456_v57, %v458_v22  ;;  %v2211_v57 = vsel %vm2178_vm10, %v2163_v55, %v9130_v3  ;;  %vm12711_vm3 = vcmask 31744  }
 0x2c7   :  { %v1722_v62 = vpop.permute.xlu1 %1721  ;;  %v9217_v52 = vpop.permute.xlu0 %775  ;;  %v2259_v13 = vsel %vm12711_vm3, %v2211_v57, %v9144_v30 }
 0x2c8   :  { %3268 = vst.msk [vmem:[#allocation2 + $0x98] sm:$0xff] %vm12703_vm9, %v3221_v40  ;;  %vm12710_vm9 = vcmask 1044480   ;;  %v2307_v45 = vsel %vm2274_vm12, %v2259_v13, %v1248_v60 }
 0x2c9   :  { %1261 = vrot.lane.b32.xlu1 %v1168_v58, %s6632_s18  ;;  %314 = vrot.lane.b32.xlu0 %v9214_v38, %s6629_s15  ;;  %v696_v9 = vsel %vm12710_vm9, %v693_v25, %v695_v18  ;;  %v2355_v30 = vsel %vm12712_vm11, %v2307_v45, %v1485_v19  ;;  %vm12713_vm9 = vmmov %vm12711_vm3  ;;  %v2116_v19 = vsel %vm2082_vm8, %v8558_v59, %v9165_v35  ;;  %vm12714_vm3 = vcmask 15360  }
 0x2ca   :  { %v2403_v33 = vsel %vm2370_vm14, %v2355_v30, %v1722_v62  ;;  %v2164_v6 = vsel %vm12714_vm3, %v2116_v19, %v9198_v44  ;;  %vm12715_vm11 = vcmask 1045504   ;;  %v1643_v59 = vrot.slane %v9186_v1, 7 }
 0x2cb   :  { %v1863_v37 = vpop.permute.xlu1 %1862  ;;  %v1013_v51 = vpop.permute.xlu0 %1012  ;;  %v461_v40 = vsel %vm12715_vm11, %v458_v22, %v460_v15  ;;  %v697_v35 = vrot.slane %v9261_v14, 3  ;;  %vm12716_vm3 = vcmask 48128   ;;  %vm12717_vm11 = vcmask 1044480  }
 0x2cc   :  { %v2451_v63 = vsel %vm2418_vm15, %v2403_v33, %v1863_v37 }
 0x2cd   :  { %552 = vrot.lane.b32.xlu1 %v459_v61, %s6631_s17  ;;  %2017 = vrot.lane.b32.xlu0 %v9127_v28, %s6636_s24  ;;  %v9251_v28 = vld [vmem:[%s12540_s2] ss:$0 sm:$0xff]  ;;  %v698_v37 = vsel %vm12717_vm11, %v695_v18, %v697_v35  ;;  %vm12719_vm11 = vcmask 15360  }
 0x2ce   :  { %v2839_v8 = vpop.f32.mrf.mxu0 }
 0x2cf   :  { %v9254_v17 = vadd.f32 %v9251_v28, %v2839_v8  ;;  %v1250_v3 = vpop.permute.xlu1 %1249  ;;  %v9256_v21 = vpop.permute.xlu0 %302  ;;  %v9348_v8 = vld [vmem:[%s12538_s0 + $0x158] sm:$0xff] }
 0x2d0   :  { %v6190_v0 = vpop.f32.mrf.mxu0  ;;  %v226_v45 = vrot.slane %v9348_v8, 1 }
 0x2d1   :  { %v2989_v25 = vmax.f32 %v9254_v17, 0.0  ;;  %789 = vrot.lane.b32.xlu1 %v696_v9, %s6628_s14  ;;  %1498 = vrot.lane.b32.xlu0 %v1405_v36, %s6633_s19  ;;  %v699_v17 = vrot.slane %v9348_v8, 3 }
 0x2d3   :  { %v3103_v32 = vrot.slane %v2989_v25, 1  ;;  %v9279_v26 = vpop.permute.xlu1 %540  ;;  %v2006_v27 = vpop.permute.xlu0 %2005 }
 0x2d4   :  { %v2499_v42 = vsel %vm2466_vm0, %v2451_v63, %v2006_v27  ;;  %v9376_v63 = vsel %vm140_vm1, %v224_v23, %v226_v45  ;;  %v462_v27 = vrot.slane %v9348_v8, 2  ;;  %v1408_v23 = vrot.slane %v9261_v14, 6 }
 0x2d5   :  { %v3104_v16 = vsel %vm140_vm1, %v3101_v24, %v3103_v32  ;;  %1026 = vrot.lane.b32.xlu1 %v933_v11, %s6630_s16  ;;  %1735 = vrot.lane.b32.xlu0 %v1642_v29, %s6634_s22 }
 0x2d6   :  { %v3222_v12 = vmax.f32 %v2988_v49, %v3104_v16  ;;  %6222 = vmatmul.mubr.msk.f32.gmra.mxu0 %vm2523_vm13, %v2499_v42  ;;  %v1170_v49 = vsel %vm1087_vm4, %v1167_v5, %v1169_v50  ;;  %v2212_v5 = vsel %vm2178_vm10, %v2164_v6, %v9217_v52 }
 0x2d7   :  { %v9292_v60 = vpop.permute.xlu1 %777  ;;  %v1487_v46 = vpop.permute.xlu0 %1486  ;;  %6224 = vmatprep.mubr.msk.f32.mxu0 %vm12557_vm7, %v6637_v47  ;;  %v2260_v44 = vsel %vm12713_vm9, %v2212_v5, %v1013_v51  ;;  %v934_v51 = vrot.slane %v9261_v14, 4 }
 0x2d8   :  { %3269 = vst.msk [vmem:[#allocation2 + $0xa0] sm:$0xff] %vm12713_vm9, %v3222_v12  ;;  %v2308_v62 = vsel %vm2274_vm12, %v2260_v44, %v1250_v3  ;;  %v1171_v3 = vrot.slane %v9261_v14, 5 }
 0x2d9   :  { %316 = vrot.lane.b32.xlu1 %v9289_v43, %s6629_s15  ;;  %1876 = vrot.lane.b32.xlu0 %v9099_v41, %s6635_s23  ;;  %v1407_v41 = vsel %vm1324_vm5, %v1404_v48, %v1406_v31  ;;  %v2356_v61 = vsel %vm12716_vm3, %v2308_v62, %v1487_v46  ;;  %v1644_v48 = vsel %vm12562_vm6, %v1641_v56, %v1643_v59  ;;  %vm12718_vm3 = vcmask 1045504  }
 0x2da   :  { %v935_v18 = vsel %vm12559_vm2, %v932_v4, %v934_v51  ;;  %v1172_v29 = vsel %vm1087_vm4, %v1169_v50, %v1171_v3  ;;  %v2117_v50 = vsel %vm2082_vm8, %v8628_v7, %v9256_v21  ;;  %v1409_v7 = vsel %vm1324_vm5, %v1406_v31, %v1408_v23 }
 0x2db   :  { %v9306_v39 = vpop.permute.xlu1 %1014  ;;  %v1724_v24 = vpop.permute.xlu0 %1723  ;;  %v2165_v46 = vsel %vm12719_vm11, %v2117_v50, %v9279_v26  ;;  %v936_v21 = vrot.slane %v9348_v8, 4  ;;  %v1645_v26 = vrot.slane %v9261_v14, 7  ;;  %vm12722_vm11 = vcmask 48128  }
 0x2dc   :  { %v2404_v52 = vsel %vm2370_vm14, %v2356_v61, %v1724_v24 }
 0x2dd   :  { %2019 = vrot.lane.b32.xlu1 %v9214_v38, %s6636_s24  ;;  %1263 = vrot.lane.b32.xlu0 %v1170_v49, %s6632_s18  ;;  %v937_v44 = vsel %vm12559_vm2, %v934_v51, %v936_v21 }
 0x2df   :  { %v9327_v58 = vpop.permute.xlu1 %304  ;;  %v1865_v38 = vpop.permute.xlu0 %1864 }
 0x2e0   :  { %v2452_v54 = vsel %vm2418_vm15, %v2404_v52, %v1865_v38  ;;  %v1646_v38 = vsel %vm12562_vm6, %v1643_v59, %v1645_v26 }
 0x2e1   :  { %1500 = vrot.lane.b32.xlu1 %v1407_v41, %s6633_s19  ;;  %554 = vrot.lane.b32.xlu0 %v461_v40, %s6631_s17 }
 0x2e2   :  { %v2844_v22 = vpop.f32.mrf.mxu0 }
 0x2e3   :  { %v9343_v55 = vadd.f32 %v9251_v28, %v2844_v22  ;;  %v2008_v9 = vpop.permute.xlu1 %2007  ;;  %v1252_v57 = vpop.permute.xlu0 %1251 }
 0x2e4   :  { %v2500_v36 = vsel %vm2466_vm0, %v2452_v54, %v2008_v9  ;;  %v6193_v56 = vpop.f32.mrf.mxu0 }
 0x2e5   :  { %v2990_v13 = vmax.f32 %v9343_v55, 0.0  ;;  %1737 = vrot.lane.b32.xlu1 %v1644_v48, %s6634_s22  ;;  %791 = vrot.lane.b32.xlu0 %v698_v37, %s6628_s14  ;;  %v1173_v55 = vrot.slane %v9348_v8, 5 }
 0x2e6   :  { %6225 = vmatmul.mubr.msk.f32.gmra.mxu0 %vm2523_vm13, %v2500_v36  ;;  %v1410_v36 = vrot.slane %v9348_v8, 6 }
 0x2e7   :  { %v3105_v0 = vrot.slane %v2990_v13, 1  ;;  %v1489_v30 = vpop.permute.xlu1 %1488  ;;  %v9360_v33 = vpop.permute.xlu0 %542  ;;  %6227 = vmatprep.mubr.msk.f32.mxu0 %vm12557_vm7, %v6637_v47  ;;  %v1174_v56 = vsel %vm1087_vm4, %v1171_v3, %v1173_v55 }
 0x2e9   :  { %v3106_v11 = vsel %vm140_vm1, %v3103_v32, %v3105_v0  ;;  %1878 = vrot.lane.b32.xlu1 %v9186_v1, %s6635_s23  ;;  %1028 = vrot.lane.b32.xlu0 %v935_v18, %s6630_s16 }
 0x2ea   :  { %v3223_v4 = vmax.f32 %v2989_v25, %v3106_v11  ;;  %v463_v25 = vsel %vm12718_vm3, %v460_v15, %v462_v27  ;;  %v2213_v15 = vsel %vm2178_vm10, %v2165_v46, %v9292_v60  ;;  %vm12721_vm3 = vcmask 31744   ;;  %v9418_v60 = vld [vmem:[%s12538_s0 + $0x160] sm:$0xff] }
 0x2eb   :  { %v1726_v32 = vpop.permute.xlu1 %1725  ;;  %v9379_v42 = vpop.permute.xlu0 %779  ;;  %v2261_v19 = vsel %vm12721_vm3, %v2213_v15, %v9306_v39  ;;  %v228_v62 = vrot.slane %v9418_v60, 1  ;;  %v9514_v15 = vld [vmem:[%s12538_s0 + $0x168] sm:$0xff] }
 0x2ec   :  { %3270 = vst.msk [vmem:[#allocation2 + $0xa8] sm:$0xff] %vm12713_vm9, %v3223_v4  ;;  %vm12720_vm9 = vcmask 1044480   ;;  %v2309_v31 = vsel %vm2274_vm12, %v2261_v19, %v1252_v57 }
 0x2ed   :  { %1265 = vrot.lane.b32.xlu1 %v1172_v29, %s6632_s18  ;;  %318 = vrot.lane.b32.xlu0 %v9376_v63, %s6629_s15  ;;  %v700_v49 = vsel %vm12720_vm9, %v697_v35, %v699_v17  ;;  %v2357_v40 = vsel %vm12722_vm11, %v2309_v31, %v1489_v30  ;;  %v9449_v54 = vsel %vm140_vm1, %v226_v45, %v228_v62  ;;  %vm12723_vm9 = vmmov %vm12721_vm3  ;;  %vm12724_vm3 = vcmask 15360  }
 0x2ee   :  { %v2405_v39 = vsel %vm2370_vm14, %v2357_v40, %v1726_v32  ;;  %vm12725_vm11 = vcmask 1045504  }
 0x2ef   :  { %v1867_v16 = vpop.permute.xlu1 %1866  ;;  %v1017_v12 = vpop.permute.xlu0 %1016 }
 0x2f0   :  { %v2453_v61 = vsel %vm2418_vm15, %v2405_v39, %v1867_v16  ;;  %v938_v16 = vrot.slane %v9418_v60, 4 }
 0x2f1   :  { %556 = vrot.lane.b32.xlu1 %v463_v25, %s6631_s17  ;;  %2021 = vrot.lane.b32.xlu0 %v9289_v43, %s6636_s24 }
 0x2f2   :  { %v2849_v24 = vpop.f32.mrf.mxu0  ;;  %v939_v19 = vsel %vm12559_vm2, %v936_v21, %v938_v16 }
 0x2f3   :  { %v9411_v43 = vadd.f32 %v9251_v28, %v2849_v24  ;;  %v1254_v6 = vpop.permute.xlu1 %1253  ;;  %v9413_v41 = vpop.permute.xlu0 %306  ;;  %v9519_v24 = vld [vmem:[%s12538_s0 + $0x170] sm:$0xff] }
 0x2f4   :  { %v6196_v5 = vpop.f32.mrf.mxu0  ;;  %v9533_v31 = vrot.slane %v9519_v24, 1 }
 0x2f5   :  { %v2991_v35 = vmax.f32 %v9411_v43, 0.0  ;;  %793 = vrot.lane.b32.xlu1 %v700_v49, %s6628_s14  ;;  %1502 = vrot.lane.b32.xlu0 %v1409_v7, %s6633_s19  ;;  %v466_v43 = vrot.slane %v9514_v15, 2 }
 0x2f7   :  { %v9436_v52 = vrot.slane %v2991_v35, 1  ;;  %v9438_v22 = vpop.permute.xlu1 %544  ;;  %v2010_v48 = vpop.permute.xlu0 %2009 }
 0x2f8   :  { %v2501_v37 = vsel %vm2466_vm0, %v2453_v61, %v2010_v48  ;;  %v1175_v48 = vrot.slane %v9418_v60, 5 }
 0x2f9   :  { %v3108_v51 = vsel %vm140_vm1, %v3105_v0, %v9436_v52  ;;  %1030 = vrot.lane.b32.xlu1 %v937_v44, %s6630_s16  ;;  %1739 = vrot.lane.b32.xlu0 %v1646_v38, %s6634_s22  ;;  %v2118_v0 = vsel %vm2082_vm8, %v8715_v10, %v9327_v58  ;;  %v1647_v58 = vrot.slane %v9348_v8, 7 }
 0x2fa   :  { %v3224_v59 = vmax.f32 %v2990_v13, %v3108_v51  ;;  %6228 = vmatmul.mubr.msk.f32.gmra.mxu0 %vm2523_vm13, %v2501_v37  ;;  %v464_v13 = vrot.slane %v9418_v60, 2  ;;  %v2166_v30 = vsel %vm12724_vm3, %v2118_v0, %v9360_v33  ;;  %v701_v33 = vrot.slane %v9418_v60, 3 }
 0x2fb   :  { %v9452_v9 = vpop.permute.xlu1 %781  ;;  %v1491_v57 = vpop.permute.xlu0 %1490  ;;  %6230 = vmatprep.mubr.msk.f32.mxu0 %vm12557_vm7, %v6637_v47  ;;  %v2214_v3 = vsel %vm2178_vm10, %v2166_v30, %v9379_v42  ;;  %vm12726_vm3 = vcmask 48128   ;;  %v1648_v25 = vsel %vm12562_vm6, %v1645_v26, %v1647_v58 }
 0x2fc   :  { %3271 = vst.msk [vmem:[#allocation2 + $0xb0] sm:$0xff] %vm12723_vm9, %v3224_v59  ;;  %v465_v10 = vsel %vm12725_vm11, %v462_v27, %v464_v13  ;;  %v2262_v11 = vsel %vm12723_vm9, %v2214_v3, %v1017_v12  ;;  %vm12727_vm11 = vcmask 1044480  }
 0x2fd   :  { %320 = vrot.lane.b32.xlu1 %v9449_v54, %s6629_s15  ;;  %1880 = vrot.lane.b32.xlu0 %v9261_v14, %s6635_s23  ;;  %v1411_v14 = vsel %vm1324_vm5, %v1408_v23, %v1410_v36  ;;  %v702_v23 = vsel %vm12727_vm11, %v699_v17, %v701_v33  ;;  %vm12729_vm11 = vcmask 1045504  }
 0x2ff   :  { %v9468_v18 = vpop.permute.xlu1 %1018  ;;  %v1728_v45 = vpop.permute.xlu0 %1727 }
 0x301   :  { %2023 = vrot.lane.b32.xlu1 %v9376_v63, %s6636_s24  ;;  %1267 = vrot.lane.b32.xlu0 %v1174_v56, %s6632_s18  ;;  %v2310_v63 = vsel %vm2274_vm12, %v2262_v11, %v1254_v6  ;;  %v230_v6 = vrot.slane %v9514_v15, 1 }
 0x302   :  { %v2358_v32 = vsel %vm12726_vm3, %v2310_v63, %v1491_v57  ;;  %v2119_v57 = vsel %vm2082_vm8, %v8785_v20, %v9413_v41  ;;  %vm12728_vm3 = vcmask 15360   ;;  %v703_v41 = vrot.slane %v9514_v15, 3 }
 0x303   :  { %v9491_v4 = vpop.permute.xlu1 %308  ;;  %v1869_v29 = vpop.permute.xlu0 %1868  ;;  %v2406_v42 = vsel %vm2370_vm14, %v2358_v32, %v1728_v45  ;;  %v9550_v38 = vsel %vm140_vm1, %v230_v6, %v9533_v31  ;;  %v9555_v61 = vsel %vm140_vm1, %v228_v62, %v230_v6  ;;  %v1176_v62 = vsel %vm1087_vm4, %v1173_v55, %v1175_v48 }
 0x304   :  { %v2454_v12 = vsel %vm2418_vm15, %v2406_v42, %v1869_v29  ;;  %v2167_v56 = vsel %vm12728_vm3, %v2119_v57, %v9438_v22  ;;  %v1412_v22 = vrot.slane %v9418_v60, 6  ;;  %vm12731_vm3 = vcmask 31744  }
 0x305   :  { %1504 = vrot.lane.b32.xlu1 %v1411_v14, %s6633_s19  ;;  %558 = vrot.lane.b32.xlu0 %v465_v10, %s6631_s17  ;;  %v2215_v55 = vsel %vm2178_vm10, %v2167_v56, %v9452_v9  ;;  %v1649_v29 = vrot.slane %v9418_v60, 7  ;;  %v705_v42 = vrot.slane %v9519_v24, 3 }
 0x306   :  { %v2854_v27 = vpop.f32.mrf.mxu0  ;;  %v1413_v32 = vsel %vm1324_vm5, %v1410_v36, %v1412_v22 }
 0x307   :  { %v9509_v50 = vadd.f32 %v9251_v28, %v2854_v27  ;;  %v2012_v46 = vpop.permute.xlu1 %2011  ;;  %v1256_v49 = vpop.permute.xlu0 %1255  ;;  %v1650_v36 = vsel %vm12562_vm6, %v1647_v58, %v1649_v29 }
 0x308   :  { %v2502_v17 = vsel %vm2466_vm0, %v2454_v12, %v2012_v46  ;;  %v6199_v7 = vpop.f32.mrf.mxu0 }
 0x309   :  { %v2992_v26 = vmax.f32 %v9509_v50, 0.0  ;;  %1741 = vrot.lane.b32.xlu1 %v1648_v25, %s6634_s22  ;;  %795 = vrot.lane.b32.xlu0 %v702_v23, %s6628_s14  ;;  %v940_v7 = vrot.slane %v9514_v15, 4 }
 0x30a   :  { %6231 = vmatmul.mubr.msk.f32.gmra.mxu0 %vm2523_vm13, %v2502_v17 }
 0x30b   :  { %v3109_v5 = vrot.slane %v2992_v26, 1  ;;  %v1493_v40 = vpop.permute.xlu1 %1492  ;;  %v9537_v39 = vpop.permute.xlu0 %546  ;;  %6233 = vmatprep.mubr.msk.f32.mxu0 %vm12557_vm7, %v6637_v47  ;;  %v941_v58 = vsel %vm12559_vm2, %v938_v16, %v940_v7  ;;  %v1179_v16 = vrot.slane %v9519_v24, 5 }
 0x30d   :  { %v3110_v44 = vsel %vm140_vm1, %v9436_v52, %v3109_v5  ;;  %1882 = vrot.lane.b32.xlu1 %v9348_v8, %s6635_s23  ;;  %1032 = vrot.lane.b32.xlu0 %v939_v19, %s6630_s16  ;;  %v942_v19 = vrot.slane %v9519_v24, 4 }
 0x30e   :  { %v3225_v21 = vmax.f32 %v2991_v35, %v3110_v44  ;;  %v468_v35 = vrot.slane %v9519_v24, 2 }
 0x30f   :  { %v1730_v52 = vpop.permute.xlu1 %1729  ;;  %v9558_v37 = vpop.permute.xlu0 %783  ;;  %v943_v8 = vsel %vm12559_vm2, %v940_v7, %v942_v19 }
 0x310   :  { %3272 = vst.msk [vmem:[#allocation2 + $0xb8] sm:$0xff] %vm12723_vm9, %v3225_v21  ;;  %v469_v45 = vsel %vm12729_vm11, %v466_v43, %v468_v35  ;;  %vm12730_vm9 = vmmov %vm12729_vm11  ;;  %vm12732_vm11 = vcmask 48128  }
 0x311   :  { %324 = vrot.lane.b32.xlu1 %v9550_v38, %s6629_s15  ;;  %322 = vrot.lane.b32.xlu0 %v9555_v61, %s6629_s15  ;;  %v467_v20 = vsel %vm12730_vm9, %v464_v13, %v466_v43  ;;  %vm12733_vm9 = vcmask 1044480  }
 0x312   :  { %v704_v63 = vsel %vm12733_vm9, %v701_v33, %v703_v41 }
 0x313   :  { %v1871_v51 = vpop.permute.xlu1 %1870  ;;  %v1021_v59 = vpop.permute.xlu0 %1020 }
 0x315   :  { %2025 = vrot.lane.b32.xlu1 %v9449_v54, %s6636_s24  ;;  %1269 = vrot.lane.b32.xlu0 %v1176_v62, %s6632_s18  ;;  %v2263_v54 = vsel %vm12731_vm3, %v2215_v55, %v9468_v18  ;;  %vm12734_vm3 = vmmov %vm12733_vm9  ;;  %vm12736_vm9 = vcmask 15360  }
 0x316   :  { %v2859_v0 = vpop.f32.mrf.mxu0  ;;  %v2311_v9 = vsel %vm2274_vm12, %v2263_v54, %v1256_v49  ;;  %v706_v17 = vsel %vm12734_vm3, %v703_v41, %v705_v42 }
 0x317   :  { %v9593_v30 = vadd.f32 %v9251_v28, %v2859_v0  ;;  %v1258_v14 = vpop.permute.xlu1 %1257  ;;  %v9595_v3 = vpop.permute.xlu0 %310  ;;  %v2359_v11 = vsel %vm12732_vm11, %v2311_v9, %v1493_v40  ;;  %vm12735_vm11 = vcmask 31744   ;;  %v2120_v40 = vsel %vm2082_vm8, %v8872_v53, %v9491_v4  ;;  %v9667_v53 = vld [vmem:[%s12538_s0 + $0x178] sm:$0xff] }
 0x318   :  { %v6202_v10 = vpop.f32.mrf.mxu0  ;;  %v2407_v18 = vsel %vm2370_vm14, %v2359_v11, %v1730_v52  ;;  %v2168_v44 = vsel %vm12736_vm9, %v2120_v40, %v9537_v39  ;;  %v1177_v52 = vrot.slane %v9514_v15, 5  ;;  %vm12737_vm3 = vmmov %vm12735_vm11  ;;  %vm12739_vm9 = vcmask 1045504  }
 0x319   :  { %v2993_v13 = vmax.f32 %v9593_v30, 0.0  ;;  %562 = vrot.lane.b32.xlu1 %v469_v45, %s6631_s17  ;;  %560 = vrot.lane.b32.xlu0 %v467_v20, %s6631_s17  ;;  %v2455_v27 = vsel %vm2418_vm15, %v2407_v18, %v1871_v51  ;;  %v2216_v21 = vsel %vm2178_vm10, %v2168_v44, %v9558_v37  ;;  %v470_v45 = vrot.slane %v9667_v53, 2 }
 0x31a   :  { %v2264_v43 = vsel %vm12737_vm3, %v2216_v21, %v1021_v59  ;;  %v1180_v57 = vsel %vm1087_vm4, %v1177_v52, %v1179_v16  ;;  %v1178_v56 = vsel %vm1087_vm4, %v1175_v48, %v1177_v52  ;;  %v1414_v48 = vrot.slane %v9514_v15, 6 }
 0x31b   :  { %v3111_v25 = vrot.slane %v2993_v13, 1  ;;  %v9616_v23 = vpop.permute.xlu1 %548  ;;  %v2014_v12 = vpop.permute.xlu0 %2013  ;;  %v2312_v4 = vsel %vm2274_vm12, %v2264_v43, %v1258_v14  ;;  %v1416_v10 = vrot.slane %v9519_v24, 6  ;;  %v471_v11 = vsel %vm12739_vm9, %v468_v35, %v470_v45 }
 0x31c   :  { %v2503_v46 = vsel %vm2466_vm0, %v2455_v27, %v2014_v12  ;;  %v944_v30 = vrot.slane %v9667_v53, 4  ;;  %vm12741_vm9 = vcmask 15360   ;;  %v1939_v45 = vrot.slane %v9667_v53, 1 }
 0x31d   :  { %v3112_v33 = vsel %vm140_vm1, %v3109_v5, %v3111_v25  ;;  %797 = vrot.lane.b32.xlu1 %v704_v63, %s6628_s14  ;;  %1506 = vrot.lane.b32.xlu0 %v1413_v32, %s6633_s19  ;;  %v1417_v12 = vsel %vm1324_vm5, %v1414_v48, %v1416_v10 }
 0x31e   :  { %v3226_v49 = vmax.f32 %v2992_v26, %v3112_v33  ;;  %6234 = vmatmul.mubr.msk.f32.gmra.mxu0 %vm2523_vm13, %v2503_v46  ;;  %v1415_v46 = vsel %vm1324_vm5, %v1412_v22, %v1414_v48  ;;  %v1651_v33 = vrot.slane %v9514_v15, 7 }
 0x31f   :  { %v9635_v6 = vpop.permute.xlu1 %785  ;;  %v1495_v5 = vpop.permute.xlu0 %1494  ;;  %6236 = vmatprep.mubr.msk.f32.mxu0 %vm12557_vm7, %v6637_v47 }
 0x320   :  { %3273 = vst.msk [vmem:[#allocation2 + $0xc0] sm:$0xff] %vm12735_vm11, %v3226_v49  ;;  %vm12738_vm11 = vcmask 48128  }
 0x321   :  { %1743 = vrot.lane.b32.xlu1 %v1650_v36, %s6634_s22  ;;  %799 = vrot.lane.b32.xlu0 %v706_v17, %s6628_s14  ;;  %v2360_v39 = vsel %vm12738_vm11, %v2312_v4, %v1495_v5  ;;  %vm12740_vm11 = vcmask 1044480   ;;  %v2121_v5 = vsel %vm2082_vm8, %v8942_v34, %v9595_v3 }
 0x323   :  { %v9648_v50 = vpop.permute.xlu1 %1022  ;;  %v1732_v26 = vpop.permute.xlu0 %1731 }
 0x324   :  { %v2408_v37 = vsel %vm2370_vm14, %v2360_v39, %v1732_v26 }
 0x325   :  { %1036 = vrot.lane.b32.xlu1 %v943_v8, %s6630_s16  ;;  %1034 = vrot.lane.b32.xlu0 %v941_v58, %s6630_s16  ;;  %v2169_v8 = vsel %vm12741_vm9, %v2121_v5, %v9616_v23  ;;  %vm12743_vm9 = vmmov %vm12737_vm3 }
 0x327   :  { %v9662_v62 = vpop.permute.xlu1 %312  ;;  %v1873_v51 = vpop.permute.xlu0 %1872 }
 0x328   :  { %v2456_v55 = vsel %vm2418_vm15, %v2408_v37, %v1873_v51 }
 0x329   :  { %326 = vrot.lane.b32.xlu1 %v9533_v31, %s6629_s15  ;;  %1884 = vrot.lane.b32.xlu0 %v9418_v60, %s6635_s23  ;;  %v2217_v60 = vsel %vm2178_vm10, %v2169_v8, %v9635_v6  ;;  %s6640_s15 = smov 16  }
 0x32a   :  { %v2864_v59 = vpop.f32.mrf.mxu0  ;;  %v2265_v34 = vsel %vm12737_vm3, %v2217_v60, %v9648_v50  ;;  %v1181_v50 = vrot.slane %v9667_v53, 5 }
 0x32b   :  { %v9685_v0 = vadd.f32 %v9251_v28, %v2864_v59  ;;  %v2016_v20 = vpop.permute.xlu1 %2015  ;;  %v1260_v41 = vpop.permute.xlu0 %1259 }
 0x32c   :  { %v2504_v54 = vsel %vm2466_vm0, %v2456_v55, %v2016_v20  ;;  %v6205_v14 = vpop.f32.mrf.mxu0  ;;  %v2313_v40 = vsel %vm2274_vm12, %v2265_v34, %v1260_v41  ;;  %v1940_v20 = vsel %vm140_vm1, %v9533_v31, %v1939_v45  ;;  %v1655_v41 = vrot.slane %v9667_v53, 7 }
 0x32d   :  { %v2994_v9 = vmax.f32 %v9685_v0, 0.0  ;;  %1273 = vrot.lane.b32.xlu1 %v1180_v57, %s6632_s18  ;;  %1271 = vrot.lane.b32.xlu0 %v1178_v56, %s6632_s18  ;;  %v1182_v57 = vsel %vm1087_vm4, %v1179_v16, %v1181_v50  ;;  %v1418_v56 = vrot.slane %v9667_v53, 6 }
 0x32e   :  { %6237 = vmatmul.mubr.msk.f32.gmra.mxu0 %vm2523_vm13, %v2504_v54 }
 0x32f   :  { %v3113_v18 = vrot.slane %v2994_v9, 1  ;;  %v1497_v63 = vpop.permute.xlu1 %1496  ;;  %v9697_v32 = vpop.permute.xlu0 %550  ;;  %6239 = vmatprep.mubr.msk.f32.mxu0 %vm12557_vm7, %v6637_v47  ;;  %v1419_v16 = vsel %vm1324_vm5, %v1416_v10, %v1418_v56 }
 0x331   :  { %v3114_v27 = vsel %vm140_vm1, %v3111_v25, %v3113_v18  ;;  %564 = vrot.lane.b32.xlu1 %v471_v11, %s6631_s17  ;;  %2027 = vrot.lane.b32.xlu0 %v9555_v61, %s6636_s24  ;;  %v707_v25 = vrot.slane %v9667_v53, 3  ;;  %v1652_v61 = vsel %vm12562_vm6, %v1649_v29, %v1651_v33 }
 0x332   :  { %v3227_v35 = vmax.f32 %v2993_v13, %v3114_v27  ;;  %v1653_v13 = vrot.slane %v9519_v24, 7 }
 0x333   :  { %v1734_v36 = vpop.permute.xlu1 %1733  ;;  %v788_v49 = vpop.permute.xlu0 %787  ;;  %v708_v22 = vsel %vm12740_vm11, %v705_v42, %v707_v25  ;;  %v945_v42 = vsel %vm12559_vm2, %v942_v19, %v944_v30  ;;  %vm12742_vm11 = vcmask 48128  }
 0x334   :  { %3274 = vst.msk [vmem:[#allocation2 + $0xc8] sm:$0xff] %vm12737_vm3, %v3227_v35  ;;  %v1654_v58 = vsel %vm12562_vm6, %v1651_v33, %v1653_v13  ;;  %v2361_v6 = vsel %vm12742_vm11, %v2313_v40, %v1497_v63  ;;  %vm12744_vm3 = vcmask 15360   ;;  %v1656_v48 = vsel %vm12562_vm6, %v1653_v13, %v1655_v41  ;;  %vm12745_vm11 = vmmov %vm12743_vm9  ;;  %v9803_v63 = vld [vmem:[#allocation2] ss:$2 sm:$0xff] }
 0x335   :  { %1510 = vrot.lane.b32.xlu1 %v1417_v12, %s6633_s19  ;;  %1508 = vrot.lane.b32.xlu0 %v1415_v46, %s6633_s19  ;;  %v2409_v19 = vsel %vm2370_vm14, %v2361_v6, %v1734_v36  ;;  %v3367_v35 = vrot.slane %v9803_v63, 1  ;;  %v3481_v5 = vrot.slane %v9803_v63, 2  ;;  %v3709_v6 = vrot.slane %v9803_v63, 4 }
 0x337   :  { %v1875_v17 = vpop.permute.xlu1 %1874  ;;  %v1025_v7 = vpop.permute.xlu0 %1024 }
 0x338   :  { %v2457_v52 = vsel %vm2418_vm15, %v2409_v19, %v1875_v17  ;;  %v9824_v17 = vld [vmem:[#allocation2 + $0x20] ss:$2 sm:$0xff] }
 0x339   :  { %1745 = vrot.lane.b32.xlu1 %v1652_v61, %s6634_s22  ;;  %801 = vrot.lane.b32.xlu0 %v708_v22, %s6628_s14  ;;  %v3370_v34 = vrot.slane %v9824_v17, 1  ;;  %s6639_s14 = smov 12  }
 0x33a   :  { %v2869_v29 = vpop.f32.mrf.mxu0 }
 0x33b   :  { %v9742_v3 = vadd.f32 %v9251_v28, %v2869_v29  ;;  %v1262_v23 = vpop.permute.xlu1 %1261  ;;  %v9744_v26 = vpop.permute.xlu0 %314 }
 0x33c   :  { %v6208_v44 = vpop.f32.mrf.mxu0 }
 0x33d   :  { %v2995_v21 = vmax.f32 %v9742_v3, 0.0  ;;  %1038 = vrot.lane.b32.xlu1 %v945_v42, %s6630_s16  ;;  %1747 = vrot.lane.b32.xlu0 %v1654_v58, %s6634_s22  ;;  %v3823_v3 = vrot.slane %v9803_v63, 5 }
 0x33f   :  { %v9756_v43 = vrot.slane %v2995_v21, 1  ;;  %v9758_v51 = vpop.permute.xlu1 %552  ;;  %v2018_v4 = vpop.permute.xlu0 %2017 }
 0x340   :  { %v2505_v39 = vsel %vm2466_vm0, %v2457_v52, %v2018_v4  ;;  %v3484_v4 = vrot.slane %v9824_v17, 2 }
 0x341   :  { %v3116_v37 = vsel %vm140_vm1, %v3113_v18, %v9756_v43  ;;  %1888 = vrot.lane.b32.xlu1 %v9519_v24, %s6635_s23  ;;  %1886 = vrot.lane.b32.xlu0 %v9514_v15, %s6635_s23  ;;  %v9796_v24 = vld [vmem:[#allocation2 + $0x10] ss:$2 sm:$0xff] }
 0x342   :  { %v3228_v59 = vmax.f32 %v2994_v9, %v3116_v37  ;;  %6240 = vmatmul.mubr.msk.f32.gmra.mxu0 %vm2523_vm13, %v2505_v39  ;;  %v2122_v9 = vsel %vm2082_vm8, %v9029_v2, %v9662_v62  ;;  %v3368_v62 = vrot.slane %v9796_v24, 1  ;;  %v3482_v30 = vrot.slane %v9796_v24, 2 }
 0x343   :  { %v9773_v55 = vpop.permute.xlu1 %789  ;;  %v1499_v0 = vpop.permute.xlu0 %1498  ;;  %6242 = vmatprep.mubr.msk.f32.mxu0 %vm12557_vm7, %v6637_v47  ;;  %v3824_v39 = vrot.slane %v9796_v24, 5 }
 0x344   :  { %3275 = vst.msk [vmem:[#allocation2 + $0xd0] sm:$0xff] %vm12743_vm9, %v3228_v59  ;;  %vm12746_vm9 = vcmask 48128   ;;  %v3369_v22 = vsel %vm140_vm1, %v3367_v35, %v3368_v62  ;;  %v9855_v52 = vsel %vm140_vm1, %v3368_v62, %v3370_v34  ;;  %v3938_v59 = vrot.slane %v9796_v24, 6 }
 0x345   :  { %2029 = vrot.lane.b32.xlu1 %v9550_v38, %s6636_s24  ;;  %1275 = vrot.lane.b32.xlu0 %v1182_v57, %s6632_s18  ;;  %v2170_v38 = vsel %vm12744_vm3, %v2122_v9, %v9697_v32  ;;  %vm12747_vm3 = vcmask 1044480   ;;  %v6592_v57 = vld [vmem:[%s12538_s0 + $0x140] sm:$0xff]  ;;  %v4052_v35 = vrot.slane %v9803_v63, 7 }
 0x346   :  { %v2218_v31 = vsel %vm2178_vm10, %v2170_v38, %v788_v49  ;;  %v2123_v56 = vsel %vm2082_vm8, %v6592_v57, %v9744_v26  ;;  %v3937_v26 = vrot.slane %v9803_v63, 6 }
 0x347   :  { %v9787_v54 = vpop.permute.xlu1 %1026  ;;  %v1736_v14 = vpop.permute.xlu0 %1735  ;;  %v2266_v10 = vsel %vm12745_vm11, %v2218_v31, %v1025_v7  ;;  %v3595_v7 = vrot.slane %v9803_v63, 3  ;;  %vm12748_vm11 = vcmask 1045504  }
 0x348   :  { %v2314_v2 = vsel %vm2274_vm12, %v2266_v10, %v1262_v23  ;;  %v3483_v58 = vsel %vm12748_vm11, %v3481_v5, %v3482_v30  ;;  %v3710_v23 = vrot.slane %v9796_v24, 4 }
 0x349   :  { %1512 = vrot.lane.b32.xlu1 %v1419_v16, %s6633_s19  ;;  %2031 = vrot.lane.b32.xlu0 %v1940_v20, %s6636_s24  ;;  %v2362_v32 = vsel %vm12746_vm9, %v2314_v2, %v1499_v0  ;;  %vm12749_vm9 = vcmask 31744   ;;  %v3825_v0 = vsel %vm1087_vm4, %v3823_v3, %v3824_v39  ;;  %v3598_v16 = vrot.slane %v9824_v17, 3  ;;  %s6641_s19 = smov 20  }
 0x34a   :  { %v2410_v27 = vsel %vm2370_vm14, %v2362_v32, %v1736_v14  ;;  %v3712_v2 = vrot.slane %v9824_v17, 4 }
 0x34b   :  { %v9801_v11 = vpop.permute.xlu1 %316  ;;  %v1877_v18 = vpop.permute.xlu0 %1876 }
 0x34c   :  { %v2458_v46 = vsel %vm2418_vm15, %v2410_v27, %v1877_v18  ;;  %v9906_v27 = vld [vmem:[#allocation2 + $0x30] ss:$2 sm:$0xff] }
 0x34d   :  { %1890 = vrot.lane.b32.xlu1 %v9667_v53, %s6635_s23  ;;  %1749 = vrot.lane.b32.xlu0 %v1656_v48, %s6634_s22  ;;  %v3596_v53 = vrot.slane %v9796_v24, 3  ;;  %s6642_s22 = smov 24   ;;  %v3600_v3 = vrot.slane %v9906_v27, 3 }
 0x34e   :  { %v2874_v12 = vpop.f32.mrf.mxu0 }
 0x34f   :  { %v9815_v33 = vadd.f32 %v9251_v28, %v2874_v12  ;;  %v2020_v25 = vpop.permute.xlu1 %2019  ;;  %v1264_v36 = vpop.permute.xlu0 %1263  ;;  %v3597_v42 = vsel %vm12747_vm3, %v3595_v7, %v3596_v53  ;;  %vm12750_vm3 = vmmov %vm12748_vm11  ;;  %vm12751_vm11 = vcmask 15360  }
 0x350   :  { %v2506_v49 = vsel %vm2466_vm0, %v2458_v46, %v2020_v25  ;;  %v6211_v61 = vpop.f32.mrf.mxu0  ;;  %v2171_v20 = vsel %vm12751_vm11, %v2123_v56, %v9758_v51  ;;  %v3939_v51 = vsel %vm1324_vm5, %v3937_v26, %v3938_v59  ;;  %vm12753_vm11 = vcmask 48128  }
 0x351   :  { %v2996_v13 = vmax.f32 %v9815_v33, 0.0  ;;  %3412 = vrot.lane.b32.xlu1 %v3369_v22, %s6630_s16  ;;  %2033 = vrot.lane.b32.xlu0 %v1939_v45, %s6636_s24  ;;  %v3485_v45 = vsel %vm12750_vm3, %v3482_v30, %v3484_v4  ;;  %v2219_v41 = vsel %vm2178_vm10, %v2171_v20, %v9773_v55  ;;  %vm12752_vm3 = vcmask 1044480   ;;  %s6643_s24 = smov 28  }
 0x352   :  { %6243 = vmatmul.mubr.msk.f32.gmra.mxu0 %vm2523_vm13, %v2506_v49  ;;  %v2267_v9 = vsel %vm12749_vm9, %v2219_v41, %v9787_v54  ;;  %v3599_v55 = vsel %vm12752_vm3, %v3596_v53, %v3598_v16  ;;  %v4053_v54 = vrot.slane %v9796_v24, 7  ;;  %v3713_v22 = vsel %vm12559_vm2, %v3710_v23, %v3712_v2 }
 0x353   :  { %v9831_v8 = vrot.slane %v2996_v13, 1  ;;  %v1501_v60 = vpop.permute.xlu1 %1500  ;;  %v9833_v29 = vpop.permute.xlu0 %554  ;;  %6245 = vmatprep.mubr.msk.f32.mxu0 %vm12557_vm7, %v6637_v47  ;;  %v2315_v10 = vsel %vm2274_vm12, %v2267_v9, %v1264_v36  ;;  %v3372_v30 = vrot.slane %v9906_v27, 1  ;;  %v3826_v33 = vrot.slane %v9824_v17, 5  ;;  %v10003_v9 = vld [vmem:[#allocation2 + $0x40] ss:$2 sm:$0xff] }
 0x354   :  { %v2363_v62 = vsel %vm12753_vm11, %v2315_v10, %v1501_v60  ;;  %v4054_v53 = vsel %vm12562_vm6, %v4052_v35, %v4053_v54  ;;  %vm12754_vm3 = vcmask 15360   ;;  %vm12755_vm11 = vmmov %vm12749_vm9 }
 0x355   :  { %v3118_v40 = vsel %vm140_vm1, %v9756_v43, %v9831_v8  ;;  %3640 = vrot.lane.b32.xlu1 %v3597_v42, %s6639_s14  ;;  %3526 = vrot.lane.b32.xlu0 %v3483_v58, %s6635_s23  ;;  %v3711_v43 = vsel %vm12559_vm2, %v3709_v6, %v3710_v23  ;;  %v3940_v23 = vrot.slane %v9824_v17, 6 }
 0x356   :  { %v3229_v44 = vmax.f32 %v2995_v21, %v3118_v40  ;;  %v2124_v40 = vsel %vm2082_vm8, %v9186_v1, %v9801_v11 }
 0x357   :  { %v1738_v19 = vpop.permute.xlu1 %1737  ;;  %v9849_v50 = vpop.permute.xlu0 %791  ;;  %v2172_v6 = vsel %vm12754_vm3, %v2124_v40, %v9833_v29  ;;  %v3941_v29 = vsel %vm1324_vm5, %v3938_v59, %v3940_v23  ;;  %vm12757_vm3 = vcmask 48128  }
 0x358   :  { %3276 = vst.msk [vmem:[#allocation2 + $0xd8] sm:$0xff] %vm12749_vm9, %v3229_v44  ;;  %v2411_v12 = vsel %vm2370_vm14, %v2363_v62, %v1738_v19  ;;  %v3486_v44 = vrot.slane %v9906_v27, 2  ;;  %v2220_v19 = vsel %vm2178_vm10, %v2172_v6, %v9849_v50  ;;  %v4055_v50 = vrot.slane %v9824_v17, 7 }
 0x359   :  { %3414 = vrot.lane.b32.xlu1 %v9855_v52, %s6630_s16  ;;  %3754 = vrot.lane.b32.xlu0 %v3711_v43, %s6640_s15  ;;  %v4057_v6 = vrot.slane %v9906_v27, 7 }
 0x35a   :  { %v4056_v26 = vsel %vm12562_vm6, %v4053_v54, %v4055_v50 }
 0x35b   :  { %v1879_v21 = vpop.permute.xlu1 %1878  ;;  %v9864_v37 = vpop.permute.xlu0 %1028 }
 0x35c   :  { %v2459_v46 = vsel %vm2418_vm15, %v2411_v12, %v1879_v21  ;;  %v2268_v1 = vsel %vm12755_vm11, %v2220_v19, %v9864_v37  ;;  %vm12758_vm11 = vcmask 1044480  }
 0x35d   :  { %3528 = vrot.lane.b32.xlu1 %v3485_v45, %s6635_s23  ;;  %3868 = vrot.lane.b32.xlu0 %v3825_v0, %s6641_s19  ;;  %v3601_v41 = vsel %vm12758_vm11, %v3598_v16, %v3600_v3  ;;  %vm12761_vm11 = vcmask 15360  }
 0x35e   :  { %v2879_v14 = vpop.f32.mrf.mxu0 }
 0x35f   :  { %v9889_v38 = vadd.f32 %v9251_v28, %v2879_v14  ;;  %v1266_v31 = vpop.permute.xlu1 %1265  ;;  %v9891_v48 = vpop.permute.xlu0 %318  ;;  %v3714_v14 = vrot.slane %v9906_v27, 4 }
 0x360   :  { %v6214_v18 = vpop.f32.mrf.mxu0 }
 0x361   :  { %v2997_v32 = vmax.f32 %v9889_v38, 0.0  ;;  %3642 = vrot.lane.b32.xlu1 %v3599_v55, %s6639_s14  ;;  %3982 = vrot.lane.b32.xlu0 %v3939_v51, %s6642_s22  ;;  %v3715_v16 = vsel %vm12559_vm2, %v3712_v2, %v3714_v14  ;;  %v3828_v18 = vrot.slane %v9906_v27, 5  ;;  %v3374_v55 = vrot.slane %v10003_v9, 1 }
 0x363   :  { %v9913_v25 = vrot.slane %v2997_v32, 1  ;;  %v9915_v36 = vpop.permute.xlu1 %556  ;;  %v2022_v49 = vpop.permute.xlu0 %2021  ;;  %v3829_v2 = vsel %vm1087_vm4, %v3826_v33, %v3828_v18 }
 0x364   :  { %v2507_v61 = vsel %vm2466_vm0, %v2459_v46, %v2022_v49  ;;  %v3375_v46 = vsel %vm140_vm1, %v3372_v30, %v3374_v55  ;;  %v3942_v49 = vrot.slane %v9906_v27, 6 }
 0x365   :  { %v3120_v7 = vsel %vm140_vm1, %v9831_v8, %v9913_v25  ;;  %3756 = vrot.lane.b32.xlu1 %v3713_v22, %s6640_s15  ;;  %4099 = vrot.lane.b32.xlu0 %v4054_v53, %s6643_s24  ;;  %v9943_v8 = vsel %vm140_vm1, %v3370_v34, %v3372_v30  ;;  %v3827_v34 = vsel %vm1087_vm4, %v3824_v39, %v3826_v33  ;;  %v3602_v30 = vrot.slane %v10003_v9, 3  ;;  %v10060_v33 = vld [vmem:[%s12540_s2] ss:$0 sm:$0xff] }
 0x366   :  { %v3230_v5 = vmax.f32 %v2996_v13, %v3120_v7  ;;  %6246 = vmatmul.mubr.msk.f32.gmra.mxu0 %vm2523_vm13, %v2507_v61  ;;  %v2316_v39 = vsel %vm2274_vm12, %v2268_v1, %v1266_v31  ;;  %v6593_v61 = vld [vmem:[%s12538_s0 + $0x150] sm:$0xff] }
 0x367   :  { %v9933_v60 = vpop.permute.xlu1 %793  ;;  %v1503_v42 = vpop.permute.xlu0 %1502  ;;  %6248 = vmatprep.mubr.msk.f32.mxu0 %vm12557_vm7, %v6637_v47  ;;  %v2125_v22 = vsel %vm2082_vm8, %v6593_v61, %v9891_v48 }
 0x368   :  { %3277 = vst.msk [vmem:[#allocation2 + $0xe0] sm:$0xff] %vm12749_vm9, %v3230_v5  ;;  %vm12756_vm9 = vcmask 1045504   ;;  %v2364_v21 = vsel %vm12757_vm3, %v2316_v39, %v1503_v42  ;;  %vm12760_vm3 = vcmask 1045504   ;;  %v2173_v7 = vsel %vm12761_vm11, %v2125_v22, %v9915_v36  ;;  %v10155_v22 = vld [vmem:[#allocation2 + $0x60] ss:$2 sm:$0xff] }
 0x369   :  { %3416 = vrot.lane.b32.xlu1 %v9943_v8, %s6630_s16  ;;  %4168 = vrot.lane.b32.xlu0 %v9796_v24, %s6644_s21  ;;  %v2221_v5 = vsel %vm2178_vm10, %v2173_v7, %v9933_v60  ;;  %v3943_v60 = vsel %vm1324_vm5, %v3940_v23, %v3942_v49  ;;  %vm12763_vm11 = vcmask 48128   ;;  %v10082_v23 = vld [vmem:[#allocation2 + $0x50] ss:$2 sm:$0xff] }
 0x36b   :  { %v9950_v13 = vpop.permute.xlu1 %1030  ;;  %v1740_v58 = vpop.permute.xlu0 %1739 }
 0x36c   :  { %v2412_v37 = vsel %vm2370_vm14, %v2364_v21, %v1740_v58 }
 0x36d   :  { %4239 = vrot.lane.b32.xlu1 %v9855_v52, %s6645_s25  ;;  %3870 = vrot.lane.b32.xlu0 %v3827_v34, %s6641_s19  ;;  %v3487_v52 = vsel %vm12756_vm9, %v3484_v4, %v3486_v44  ;;  %vm12759_vm9 = vcmask 31744  }
 0x36e   :  { %v2269_v48 = vsel %vm12759_vm9, %v2221_v5, %v9950_v13 }
 0x36f   :  { %v9969_v11 = vpop.permute.xlu1 %320  ;;  %v1881_v43 = vpop.permute.xlu0 %1880 }
 0x370   :  { %v2460_v59 = vsel %vm2418_vm15, %v2412_v37, %v1881_v43 }
 0x371   :  { %3984 = vrot.lane.b32.xlu1 %v3941_v29, %s6642_s22  ;;  %3530 = vrot.lane.b32.xlu0 %v3487_v52, %s6635_s23 }
 0x372   :  { %v2884_v57 = vpop.f32.mrf.mxu0 }
 0x373   :  { %v9988_v56 = vadd.f32 %v9251_v28, %v2884_v57  ;;  %v2024_v45 = vpop.permute.xlu1 %2023  ;;  %v1268_v4 = vpop.permute.xlu0 %1267  ;;  %v4058_v57 = vsel %vm12562_vm6, %v4055_v50, %v4057_v6  ;;  %v3830_v50 = vrot.slane %v10003_v9, 5 }
 0x374   :  { %v2508_v0 = vsel %vm2466_vm0, %v2460_v59, %v2024_v45  ;;  %v6217_v20 = vpop.f32.mrf.mxu0  ;;  %v3376_v59 = vrot.slane %v10082_v23, 1 }
 0x375   :  { %v2998_v28 = vmax.f32 %v9988_v56, 0.0  ;;  %4101 = vrot.lane.b32.xlu1 %v4056_v26, %s6643_s24  ;;  %3644 = vrot.lane.b32.xlu0 %v3601_v41, %s6639_s14  ;;  %v3831_v41 = vsel %vm1087_vm4, %v3828_v18, %v3830_v50  ;;  %v4059_v18 = vrot.slane %v10003_v9, 7 }
 0x376   :  { %6249 = vmatmul.mubr.msk.f32.gmra.mxu0 %vm2523_vm13, %v2508_v0 }
 0x377   :  { %v3121_v31 = vrot.slane %v2998_v28, 1  ;;  %v1505_v51 = vpop.permute.xlu1 %1504  ;;  %v10008_v10 = vpop.permute.xlu0 %558  ;;  %6251 = vmatprep.mubr.msk.f32.mxu0 %vm12557_vm7, %v6637_v47 }
 0x379   :  { %v3122_v54 = vsel %vm140_vm1, %v9913_v25, %v3121_v31  ;;  %4170 = vrot.lane.b32.xlu1 %v9824_v17, %s6644_s21  ;;  %3758 = vrot.lane.b32.xlu0 %v3715_v16, %s6640_s15  ;;  %v3488_v25 = vrot.slane %v10003_v9, 2  ;;  %v10110_v17 = vsel %vm140_vm1, %v3374_v55, %v3376_v59  ;;  %v3604_v55 = vrot.slane %v10082_v23, 3 }
 0x37a   :  { %v3231_v62 = vmax.f32 %v2997_v32, %v3122_v54 }
 0x37b   :  { %v1742_v12 = vpop.permute.xlu1 %1741  ;;  %v10024_v35 = vpop.permute.xlu0 %795  ;;  %v3489_v53 = vsel %vm12760_vm3, %v3486_v44, %v3488_v25  ;;  %vm12762_vm3 = vcmask 1044480   ;;  %v3716_v44 = vrot.slane %v10003_v9, 4 }
 0x37c   :  { %3278 = vst.msk [vmem:[#allocation2 + $0xe8] sm:$0xff] %vm12759_vm9, %v3231_v62  ;;  %v3603_v13 = vsel %vm12762_vm3, %v3600_v3, %v3602_v30  ;;  %vm12764_vm3 = vcmask 1045504  }
 0x37d   :  { %3872 = vrot.lane.b32.xlu1 %v3829_v2, %s6641_s19  ;;  %3418 = vrot.lane.b32.xlu0 %v3375_v46, %s6630_s16  ;;  %v3717_v37 = vsel %vm12559_vm2, %v3714_v14, %v3716_v44  ;;  %v3944_v14 = vrot.slane %v10003_v9, 6 }
 0x37f   :  { %v1883_v38 = vpop.permute.xlu1 %1882  ;;  %v10036_v32 = vpop.permute.xlu0 %1032  ;;  %v3945_v16 = vsel %vm1324_vm5, %v3942_v49, %v3944_v14  ;;  %v3718_v49 = vrot.slane %v10082_v23, 4 }
 0x381   :  { %3532 = vrot.lane.b32.xlu1 %v3489_v53, %s6635_s23  ;;  %4241 = vrot.lane.b32.xlu0 %v9943_v8, %s6645_s25  ;;  %v2317_v8 = vsel %vm2274_vm12, %v2269_v48, %v1268_v4  ;;  %v3719_v48 = vsel %vm12559_vm2, %v3716_v44, %v3718_v49 }
 0x382   :  { %v2889_v42 = vpop.f32.mrf.mxu0  ;;  %v2365_v19 = vsel %vm12763_vm11, %v2317_v8, %v1505_v51  ;;  %vm12765_vm11 = vcmask 1044480   ;;  %v3378_v8 = vrot.slane %v10155_v22, 1 }
 0x383   :  { %v10063_v58 = vadd.f32 %v10060_v33, %v2889_v42  ;;  %v10065_v36 = vpop.permute.xlu1 %324  ;;  %v10067_v40 = vpop.permute.xlu0 %322  ;;  %v2413_v43 = vsel %vm2370_vm14, %v2365_v19, %v1742_v12 }
 0x384   :  { %v6220_v34 = vpop.f32.mrf.mxu0  ;;  %v2461_v29 = vsel %vm2418_vm15, %v2413_v43, %v1883_v38  ;;  %v3605_v38 = vsel %vm12765_vm11, %v3602_v30, %v3604_v55  ;;  %v6595_v30 = vld [vmem:[%s12538_s0 + $0x158] sm:$0xff] }
 0x385   :  { %v2999_v1 = vmax.f32 %v10063_v58, 0.0  ;;  %3646 = vrot.lane.b32.xlu1 %v3603_v13, %s6639_s14  ;;  %3986 = vrot.lane.b32.xlu0 %v3943_v60, %s6642_s22  ;;  %v2126_v42 = vsel %vm2082_vm8, %v6595_v30, %v9969_v11  ;;  %v3832_v60 = vrot.slane %v10082_v23, 5  ;;  %v3492_v58 = vrot.slane %v10155_v22, 2 }
 0x387   :  { %v3123_v39 = vrot.slane %v2999_v1, 1  ;;  %v2026_v52 = vpop.permute.xlu1 %2025  ;;  %v10088_v3 = vpop.permute.xlu0 %1269 }
 0x388   :  { %v2509_v21 = vsel %vm2466_vm0, %v2461_v29, %v2026_v52  ;;  %v3833_v29 = vsel %vm1087_vm4, %v3830_v50, %v3832_v60 }
 0x389   :  { %v3124_v45 = vsel %vm140_vm1, %v3121_v31, %v3123_v39  ;;  %3760 = vrot.lane.b32.xlu1 %v3717_v37, %s6640_s15  ;;  %4103 = vrot.lane.b32.xlu0 %v4058_v57, %s6643_s24  ;;  %v3606_v57 = vrot.slane %v10155_v22, 3 }
 0x38a   :  { %v3232_v4 = vmax.f32 %v2998_v28, %v3124_v45  ;;  %6252 = vmatmul.mubr.msk.f32.gmra.mxu0 %vm2523_vm13, %v2509_v21  ;;  %v3490_v28 = vrot.slane %v10082_v23, 2 }
 0x38b   :  { %v10102_v0 = vpop.permute.xlu1 %562  ;;  %v10104_v20 = vpop.permute.xlu0 %560  ;;  %6254 = vmatprep.mubr.msk.f32.mxu0 %vm12557_vm7, %v6637_v47 }
 0x38c   :  { %3279 = vst.msk [vmem:[#allocation2 + $0xf0] sm:$0xff] %vm12759_vm9, %v3232_v4  ;;  %vm12766_vm9 = vcmask 15360  }
 0x38d   :  { %3420 = vrot.lane.b32.xlu1 %v10110_v17, %s6630_s16  ;;  %4172 = vrot.lane.b32.xlu0 %v9906_v27, %s6644_s21  ;;  %v3491_v27 = vsel %vm12764_vm3, %v3488_v25, %v3490_v28  ;;  %v4060_v25 = vsel %vm12562_vm6, %v4057_v6, %v4059_v18  ;;  %v2174_v34 = vsel %vm12766_vm9, %v2126_v42, %v10008_v10  ;;  %vm12767_vm3 = vcmask 31744  }
 0x38e   :  { %v2222_v6 = vsel %vm2178_vm10, %v2174_v34, %v10024_v35  ;;  %vm12768_vm11 = vmmov %vm12767_vm3  ;;  %v3379_v35 = vsel %vm140_vm1, %v3376_v59, %v3378_v8  ;;  %vm12769_vm9 = vcmask 48128   ;;  %v3946_v59 = vrot.slane %v10082_v23, 6  ;;  %v6596_v34 = vld [vmem:[%s12538_s0 + $0x160] sm:$0xff] }
 0x38f   :  { %v10117_v56 = vpop.permute.xlu1 %797  ;;  %v1507_v26 = vpop.permute.xlu0 %1506  ;;  %v2270_v44 = vsel %vm12767_vm3, %v2222_v6, %v10036_v32  ;;  %vm12770_vm3 = vcmask 1045504  }
 0x390   :  { %v2318_v10 = vsel %vm2274_vm12, %v2270_v44, %v10088_v3  ;;  %v3493_v37 = vsel %vm12770_vm3, %v3490_v28, %v3492_v58  ;;  %vm12773_vm3 = vcmask 15360  }
 0x391   :  { %4243 = vrot.lane.b32.xlu1 %v3375_v46, %s6645_s25  ;;  %3874 = vrot.lane.b32.xlu0 %v3831_v41, %s6641_s19 }
 0x393   :  { %v1744_v31 = vpop.permute.xlu1 %1743  ;;  %v10126_v51 = vpop.permute.xlu0 %799 }
 0x395   :  { %3988 = vrot.lane.b32.xlu1 %v3945_v16, %s6642_s22  ;;  %3534 = vrot.lane.b32.xlu0 %v3491_v27, %s6635_s23  ;;  %v4061_v16 = vrot.slane %v10082_v23, 7 }
 0x396   :  { %v2894_v54 = vpop.f32.mrf.mxu0 }
 0x397   :  { %v10139_v62 = vadd.f32 %v10060_v33, %v2894_v54  ;;  %v10141_v12 = vpop.permute.xlu1 %1036  ;;  %v10143_v2 = vpop.permute.xlu0 %1034  ;;  %v10224_v54 = vld [vmem:[#allocation2 + $0x70] ss:$2 sm:$0xff] }
 0x398   :  { %v6223_v46 = vpop.f32.mrf.mxu0 }
 0x399   :  { %v3000_v61 = vmax.f32 %v10139_v62, 0.0  ;;  %4105 = vrot.lane.b32.xlu1 %v4060_v25, %s6643_s24  ;;  %3648 = vrot.lane.b32.xlu0 %v3605_v38, %s6639_s14  ;;  %v4062_v38 = vsel %vm12562_vm6, %v4059_v18, %v4061_v16  ;;  %v2127_v18 = vsel %vm2082_vm8, %v6596_v34, %v10067_v40 }
 0x39a   :  { %v2175_v62 = vsel %vm12773_vm3, %v2127_v18, %v10104_v20  ;;  %v2128_v20 = vsel %vm2082_vm8, %v9514_v15, %v10065_v36  ;;  %v4525_v18 = vld [vmem:[%s12541_s3 + $0x18] sm:$0xff] }
 0x39b   :  { %v3125_v53 = vrot.slane %v3000_v61, 1  ;;  %v10159_v7 = vpop.permute.xlu1 %326  ;;  %v1885_v5 = vpop.permute.xlu0 %1884  ;;  %v2223_v40 = vsel %vm2178_vm10, %v2175_v62, %v10117_v56  ;;  %v3494_v56 = vrot.slane %v10224_v54, 2 }
 0x39d   :  { %v3126_v13 = vsel %vm140_vm1, %v3123_v39, %v3125_v53  ;;  %4174 = vrot.lane.b32.xlu1 %v10003_v9, %s6644_s21  ;;  %3762 = vrot.lane.b32.xlu0 %v3719_v48, %s6640_s15 }
 0x39e   :  { %v3233_v11 = vmax.f32 %v2999_v1, %v3126_v13  ;;  %v2366_v1 = vsel %vm12769_vm9, %v2318_v10, %v1507_v26  ;;  %vm12772_vm9 = vcmask 31744   ;;  %v3834_v13 = vrot.slane %v10155_v22, 5 }
 0x39f   :  { %v10181_v19 = vpop.permute.xlu1 %1273  ;;  %v1272_v43 = vpop.permute.xlu0 %1271  ;;  %v2414_v32 = vsel %vm2370_vm14, %v2366_v1, %v1744_v31  ;;  %v3720_v31 = vrot.slane %v10155_v22, 4 }
 0x3a0   :  { %3280 = vst.msk [vmem:[#allocation2 + $0xf8] sm:$0xff] %vm12768_vm11, %v3233_v11  ;;  %v2462_v39 = vsel %vm2418_vm15, %v2414_v32, %v1885_v5  ;;  %vm12771_vm11 = vcmask 1044480   ;;  %v3380_v5 = vrot.slane %v10224_v54, 1  ;;  %v3948_v11 = vrot.slane %v10155_v22, 6 }
 0x3a1   :  { %3876 = vrot.lane.b32.xlu1 %v3833_v29, %s6641_s19  ;;  %3422 = vrot.lane.b32.xlu0 %v3379_v35, %s6630_s16  ;;  %v3607_v28 = vsel %vm12771_vm11, %v3604_v55, %v3606_v57  ;;  %vm12774_vm11 = vmmov %vm12772_vm9  ;;  %v3835_v10 = vsel %vm1087_vm4, %v3832_v60, %v3834_v13 }
 0x3a3   :  { %v10196_v52 = vpop.permute.xlu1 %564  ;;  %v2028_v3 = vpop.permute.xlu0 %2027 }
 0x3a4   :  { %v2510_v21 = vsel %vm2466_vm0, %v2462_v39, %v2028_v3  ;;  %v3608_v3 = vrot.slane %v10224_v54, 3 }
 0x3a5   :  { %3536 = vrot.lane.b32.xlu1 %v3493_v37, %s6635_s23  ;;  %4245 = vrot.lane.b32.xlu0 %v10110_v17, %s6645_s25  ;;  %v3947_v17 = vsel %vm1324_vm5, %v3944_v14, %v3946_v59  ;;  %v3721_v14 = vsel %vm12559_vm2, %v3718_v49, %v3720_v31 }
 0x3a6   :  { %v2899_v45 = vpop.f32.mrf.mxu0  ;;  %6255 = vmatmul.mubr.msk.f32.gmra.mxu0 %vm2523_vm13, %v2510_v21 }
 0x3a7   :  { %v10209_v4 = vadd.f32 %v10060_v33, %v2899_v45  ;;  %v1511_v50 = vpop.permute.xlu1 %1510  ;;  %v1509_v26 = vpop.permute.xlu0 %1508  ;;  %6257 = vmatprep.mubr.msk.f32.mxu0 %vm12557_vm7, %v6637_v47 }
 0x3a8   :  { %v6226_v41 = vpop.f32.mrf.mxu0 }
 0x3a9   :  { %v3001_v27 = vmax.f32 %v10209_v4, 0.0  ;;  %3650 = vrot.lane.b32.xlu1 %v3607_v28, %s6639_s14  ;;  %3990 = vrot.lane.b32.xlu0 %v3947_v17, %s6642_s22 }
 0x3ab   :  { %v10228_v46 = vrot.slane %v3001_v27, 1  ;;  %v1746_v55 = vpop.permute.xlu1 %1745  ;;  %v802_v25 = vpop.permute.xlu0 %801 }
 0x3ad   :  { %v3128_v30 = vsel %vm140_vm1, %v3125_v53, %v10228_v46  ;;  %3764 = vrot.lane.b32.xlu1 %v3721_v14, %s6640_s15  ;;  %4107 = vrot.lane.b32.xlu0 %v4062_v38, %s6643_s24  ;;  %v10254_v53 = vsel %vm140_vm1, %v3378_v8, %v3380_v5  ;;  %v3722_v38 = vrot.slane %v10224_v54, 4 }
 0x3ae   :  { %v3234_v42 = vmax.f32 %v3000_v61, %v3128_v30  ;;  %v2271_v61 = vsel %vm12774_vm11, %v2223_v40, %v10143_v2  ;;  %v4526_v30 = vld [vmem:[%s12541_s3 + $0x20] sm:$0xff] }
 0x3af   :  { %v1039_v48 = vpop.permute.xlu1 %1038  ;;  %v1748_v49 = vpop.permute.xlu0 %1747  ;;  %v2319_v44 = vsel %vm2274_vm12, %v2271_v61, %v1272_v43  ;;  %v3723_v40 = vsel %vm12559_vm2, %v3720_v31, %v3722_v38  ;;  %v3836_v61 = vrot.slane %v10224_v54, 5 }
 0x3b0   :  { %3281 = vst.msk [vmem:[#allocation2 + $0x100] sm:$0xff] %vm12772_vm9, %v3234_v42  ;;  %vm12775_vm9 = vmmov %vm12773_vm3  ;;  %vm12776_vm3 = vcmask 48128  }
 0x3b1   :  { %3424 = vrot.lane.b32.xlu1 %v10254_v53, %s6630_s16  ;;  %4176 = vrot.lane.b32.xlu0 %v10082_v23, %s6644_s21  ;;  %v2176_v2 = vsel %vm12775_vm9, %v2128_v20, %v10102_v0  ;;  %v2367_v29 = vsel %vm12776_vm3, %v2319_v44, %v1509_v26  ;;  %v3949_v0 = vsel %vm1324_vm5, %v3946_v59, %v3948_v11  ;;  %vm12777_vm9 = vcmask 1045504   ;;  %v4524_v20 = vld [vmem:[%s12541_s3 + $0x10] sm:$0xff] }
 0x3b2   :  { %v2224_v15 = vsel %vm2178_vm10, %v2176_v2, %v10126_v51  ;;  %v2415_v36 = vsel %vm2370_vm14, %v2367_v29, %v1746_v55  ;;  %v3837_v29 = vsel %vm1087_vm4, %v3834_v13, %v3836_v61 }
 0x3b3   :  { %v1889_v6 = vpop.permute.xlu1 %1888  ;;  %v1887_v8 = vpop.permute.xlu0 %1886  ;;  %v2272_v43 = vsel %vm12774_vm11, %v2224_v15, %v10141_v12  ;;  %v3495_v12 = vsel %vm12777_vm9, %v3492_v58, %v3494_v56  ;;  %vm12778_vm11 = vcmask 15360   ;;  %vm12780_vm9 = vcmask 31744   ;;  %v4523_v15 = vld [vmem:[%s12541_s3 + $0x8] sm:$0xff] }
 0x3b4   :  { %v2463_v60 = vsel %vm2418_vm15, %v2415_v36, %v1887_v8  ;;  %v2320_v39 = vsel %vm2274_vm12, %v2272_v43, %v10181_v19  ;;  %v6597_v19 = vld [vmem:[%s12538_s0 + $0x170] sm:$0xff] }
 0x3b5   :  { %4247 = vrot.lane.b32.xlu1 %v3379_v35, %s6645_s25  ;;  %3878 = vrot.lane.b32.xlu0 %v3835_v10, %s6641_s19  ;;  %v4063_v35 = vrot.slane %v10155_v22, 7  ;;  %v2368_v21 = vsel %vm12776_vm3, %v2320_v39, %v1511_v50  ;;  %v2129_v37 = vsel %vm2082_vm8, %v6597_v19, %v10159_v7  ;;  %vm12779_vm8 = vcmask 1044480  }
 0x3b6   :  { %v2416_v59 = vsel %vm2370_vm14, %v2368_v21, %v1748_v49  ;;  %v2177_v58 = vsel %vm12778_vm11, %v2129_v37, %v10196_v52  ;;  %v3609_v52 = vsel %vm12779_vm8, %v3606_v57, %v3608_v3  ;;  %v4065_v19 = vrot.slane %v10224_v54, 7 }
 0x3b7   :  { %v2030_v1 = vpop.permute.xlu1 %2029  ;;  %v1276_v32 = vpop.permute.xlu0 %1275  ;;  %v2464_v50 = vsel %vm2418_vm15, %v2416_v59, %v1889_v6  ;;  %v4064_v7 = vsel %vm12562_vm6, %v4061_v16, %v4063_v35  ;;  %v2225_v17 = vsel %vm2178_vm10, %v2177_v58, %v802_v25  ;;  %v10338_v25 = vld [vmem:[#allocation2 + $0x80] ss:$2 sm:$0xff]  ;;  %vm12781_vm10 = vmmov %vm12776_vm3  ;;  %v10429_v59 = vld [vmem:[#allocation2 + $0x90] ss:$2 sm:$0xff]  ;;  %vm4354_vm11 = vcmask 97280  }
 0x3b8   :  { %v2511_v51 = vsel %vm2466_vm0, %v2463_v60, %v2030_v1  ;;  %v2273_v23 = vsel %vm12780_vm9, %v2225_v17, %v1039_v48  ;;  %v3382_v6 = vrot.slane %v10338_v25, 1  ;;  %v3610_v60 = vrot.slane %v10338_v25, 3  ;;  %vm12786_vm3 = vmmov %vm12780_vm9 }
 0x3b9   :  { %3992 = vrot.lane.b32.xlu1 %v3949_v0, %s6642_s22  ;;  %3538 = vrot.lane.b32.xlu0 %v3495_v12, %s6635_s23  ;;  %v2321_v42 = vsel %vm2274_vm12, %v2273_v23, %v1276_v32  ;;  %vm12782_vm12 = vmmov %vm12780_vm9  ;;  %v3950_v1 = vrot.slane %v10224_v54, 6  ;;  %v3724_v21 = vrot.slane %v10338_v25, 4 }
 0x3ba   :  { %v2904_v45 = vpop.f32.mrf.mxu0  ;;  %6258 = vmatmul.mubr.msk.f32.gmra.mxu0 %vm2523_vm13, %v2511_v51  ;;  %v3383_v4 = vsel %vm140_vm1, %v3380_v5, %v3382_v6  ;;  %v4522_v5 = vld [vmem:[%s12541_s3] sm:$0xff]  ;;  %s6646_s3 = smov 48  }
 0x3bb   :  { %v10316_v26 = vadd.f32 %v10060_v33, %v2904_v45  ;;  %v1513_v41 = vpop.permute.xlu1 %1512  ;;  %v2032_v28 = vpop.permute.xlu0 %2031 }
 0x3bc   :  { %v6229_v55 = vpop.f32.mrf.mxu0  ;;  %v2512_v14 = vsel %vm2466_vm0, %v2464_v50, %v2032_v28  ;;  %v2369_v49 = vsel %vm12781_vm10, %v2321_v42, %v1513_v41  ;;  %v4066_v50 = vsel %vm12562_vm6, %v4063_v35, %v4065_v19  ;;  %v3384_v41 = vrot.slane %v10429_v59, 1 }
 0x3bd   :  { %v3002_v16 = vmax.f32 %v10316_v26, 0.0  ;;  %4109 = vrot.lane.b32.xlu1 %v4064_v7, %s6643_s24  ;;  %3652 = vrot.lane.b32.xlu0 %v3609_v52, %s6639_s14  ;;  %v3838_v35 = vrot.slane %v10338_v25, 5  ;;  %vm4426_vm10 = vcmask 195584  }
 0x3be   :  { %6261 = vmatmul.mubr.msk.f32.vlgmr.msra.gmra.mxu1 %vm2523_vm13, %v2512_v14 }
 0x3bf   :  { %v10344_v57 = vrot.slane %v3002_v16, 1  ;;  %v1891_v34 = vpop.permute.xlu1 %1890  ;;  %v1750_v48 = vpop.permute.xlu0 %1749  ;;  %6263 = vmatprep.mubr.msk.f32.mxu1 %vm12557_vm7, %v6637_v47  ;;  %6267 = vmatpush3.msra.mxu1 %v4526_v30  ;;  %v3952_v30 = vrot.slane %v10338_v25, 6  ;;  %v3839_v23 = vsel %vm1087_vm4, %v3836_v61, %v3838_v35 }
 0x3c0   :  { %v2417_v62 = vsel %vm2370_vm14, %v2369_v49, %v1750_v48  ;;  %6268 = vmatprep.subr.mxu1 %v6637_v47  ;;  %vm12785_vm14 = vmmov %vm12780_vm9  ;;  %vm4402_vm9 = vcmask 162816  }
 0x3c1   :  { %v3130_v8 = vsel %vm140_vm1, %v10228_v46, %v10344_v57  ;;  %4178 = vrot.lane.b32.xlu1 %v10155_v22, %s6644_s21  ;;  %3766 = vrot.lane.b32.xlu0 %v3723_v40, %s6640_s15  ;;  %v2465_v10 = vsel %vm2418_vm15, %v2417_v62, %v1891_v34  ;;  %v10461_v22 = vsel %vm140_vm1, %v3382_v6, %v3384_v41  ;;  %v4067_v34 = vrot.slane %v10338_v25, 7 }
 0x3c2   :  { %v3235_v31 = vmax.f32 %v3001_v27, %v3130_v8  ;;  %6269 = vmatpush3.msra.mxu1 %v4525_v18  ;;  %v3496_v27 = vrot.slane %v10338_v25, 2  ;;  %v3612_v62 = vrot.slane %v10429_v59, 3 }
 0x3c3   :  { %v3413_v44 = vpop.permute.xlu1 %3412  ;;  %v2034_v2 = vpop.permute.xlu0 %2033  ;;  %6270 = vmatprep.subr.mxu1 %v6637_v47 }
 0x3c4   :  { %3282 = vst.msk [vmem:[#allocation2 + $0x108] sm:$0xff] %vm12782_vm12, %v3235_v31  ;;  %v2513_v46 = vsel %vm2466_vm0, %v2465_v10, %v2034_v2  ;;  %6271 = vmatpush3.msra.mxu1 %v4524_v20  ;;  %vm12783_vm0 = vcmask 1045504   ;;  %v4308_v26 = vsel %vm12786_vm3, %v9803_v63, %v3413_v44  ;;  %vm12561_vm12 = vcmask 228352  }
 0x3c5   :  { %3880 = vrot.lane.b32.xlu1 %v3837_v29, %s6641_s19  ;;  %3426 = vrot.lane.b32.xlu0 %v3383_v4, %s6630_s16  ;;  %v3497_v43 = vsel %vm12783_vm0, %v3494_v56, %v3496_v27  ;;  %vm4474_vm0 = vcmask 261120   ;;  %vm4534_vm3 = vcmask 326656  }
 0x3c6   :  { %6264 = vmatmul.mubr.msk.f32.gmra.mxu1 %vm2523_vm13, %v2513_v46  ;;  %6272 = vmatprep.subr.mxu1 %v6637_v47  ;;  %vm12784_vm13 = vmmov %vm12779_vm8  ;;  %vm12560_vm8 = vcmask 130048   ;;  %v4068_v46 = vsel %vm12562_vm6, %v4065_v19, %v4067_v34 }
 0x3c7   :  { %v3641_v13 = vpop.permute.xlu1 %3640  ;;  %v3527_v36 = vpop.permute.xlu0 %3526  ;;  %6273 = vmatpush3.msra.mxu1 %v4523_v15  ;;  %6276 = vmatprep.mubr.msk.f32.mxu1 %vm12557_vm7, %v6637_v47  ;;  %v3611_v12 = vsel %vm12784_vm13, %v3608_v3, %v3610_v60  ;;  %vm12787_vm13 = vcmask 1045504   ;;  %v10514_v15 = vld [vmem:[#allocation2 + $0xa0] ss:$2 sm:$0xff] }
 0x3c8   :  { %6274 = vmatprep.subr.mxu1 %v6637_v47  ;;  %v4331_v14 = vsel %vm2418_vm15, %v4308_v26, %v3527_v36  ;;  %v3500_v19 = vrot.slane %v10514_v15, 2 }
 0x3c9   :  { %3540 = vrot.lane.b32.xlu1 %v3497_v43, %s6635_s23  ;;  %4249 = vrot.lane.b32.xlu0 %v10254_v53, %s6645_s25  ;;  %v3951_v53 = vsel %vm1324_vm5, %v3948_v11, %v3950_v1  ;;  %v3725_v11 = vsel %vm12559_vm2, %v3722_v38, %v3724_v21  ;;  %v4355_v63 = vsel %vm4354_vm11, %v4331_v14, %v3641_v13 }
 0x3ca   :  { %v2909_v32 = vpop.f32.mrf.mxu0  ;;  %6275 = vmatpush3.msra.mxu1 %v4522_v5 }
 0x3cb   :  { %v10411_v0 = vadd.f32 %v10060_v33, %v2909_v32  ;;  %v10413_v39 = vpop.permute.xlu1 %3414  ;;  %v3755_v51 = vpop.permute.xlu0 %3754  ;;  %5475 = vmatprep.subr.mxu1 %v6637_v47 }
 0x3cc   :  { %v6232_v56 = vpop.f32.mrf.mxu0  ;;  %v4379_v42 = vsel %vm12560_vm8, %v4355_v63, %v3755_v51 }
 0x3cd   :  { %v3003_v37 = vmax.f32 %v10411_v0, 0.0  ;;  %3654 = vrot.lane.b32.xlu1 %v3611_v12, %s6639_s14  ;;  %3994 = vrot.lane.b32.xlu0 %v3951_v53, %s6642_s22 }
 0x3cf   :  { %v10433_v45 = vrot.slane %v3003_v37, 1  ;;  %v10435_v3 = vpop.permute.xlu1 %3528  ;;  %v3869_v58 = vpop.permute.xlu0 %3868 }
 0x3d0   :  { %v4403_v48 = vsel %vm4402_vm9, %v4379_v42, %v3869_v58 }
 0x3d1   :  { %v3132_v28 = vsel %vm140_vm1, %v10344_v57, %v10433_v45  ;;  %3768 = vrot.lane.b32.xlu1 %v3725_v11, %s6640_s15  ;;  %4111 = vrot.lane.b32.xlu0 %v4066_v50, %s6643_s24  ;;  %v3614_v11 = vrot.slane %v10514_v15, 3  ;;  %v3954_v50 = vrot.slane %v10429_v59, 6 }
 0x3d2   :  { %v3236_v7 = vmax.f32 %v3002_v16, %v3132_v28  ;;  %v3498_v16 = vrot.slane %v10429_v59, 2 }
 0x3d3   :  { %v10453_v17 = vpop.permute.xlu1 %3642  ;;  %v3983_v55 = vpop.permute.xlu0 %3982 }
 0x3d4   :  { %3283 = vst.msk [vmem:[#allocation2 + $0x110] sm:$0xff] %vm12785_vm14, %v3236_v7  ;;  %v3499_v18 = vsel %vm12787_vm13, %v3496_v27, %v3498_v16  ;;  %v4427_v40 = vsel %vm4426_vm10, %v4403_v48, %v3983_v55  ;;  %vm4498_vm14 = vcmask 293888   ;;  %vm12788_vm13 = vcmask 1044480  }
 0x3d5   :  { %3428 = vrot.lane.b32.xlu1 %v10461_v22, %s6630_s16  ;;  %4180 = vrot.lane.b32.xlu0 %v10224_v54, %s6644_s21  ;;  %v3953_v54 = vsel %vm1324_vm5, %v3950_v1, %v3952_v30  ;;  %v3613_v29 = vsel %vm12788_vm13, %v3610_v60, %v3612_v62  ;;  %v3840_v60 = vrot.slane %v10429_v59, 5  ;;  %v3386_v1 = vrot.slane %v10514_v15, 1 }
 0x3d6   :  { %vm12789_vm13 = vcmask 31744  }
 0x3d7   :  { %v10471_v52 = vpop.permute.xlu1 %3756  ;;  %v4100_v38 = vpop.permute.xlu0 %4099  ;;  %v3841_v53 = vsel %vm1087_vm4, %v3838_v35, %v3840_v60 }
 0x3d8   :  { %v4451_v61 = vsel %vm12561_vm12, %v4427_v40, %v4100_v38 }
 0x3d9   :  { %4251 = vrot.lane.b32.xlu1 %v3383_v4, %s6645_s25  ;;  %3882 = vrot.lane.b32.xlu0 %v3839_v23, %s6641_s19  ;;  %v3726_v4 = vrot.slane %v10429_v59, 4 }
 0x3db   :  { %v10484_v57 = vpop.permute.xlu1 %3416  ;;  %v4169_v49 = vpop.permute.xlu0 %4168  ;;  %v3727_v43 = vsel %vm12559_vm2, %v3724_v21, %v3726_v4  ;;  %v3387_v21 = vsel %vm140_vm1, %v3384_v41, %v3386_v1 }
 0x3dc   :  { %v4475_v8 = vsel %vm4474_vm0, %v4451_v61, %v4169_v49 }
 0x3dd   :  { %3996 = vrot.lane.b32.xlu1 %v3953_v54, %s6642_s22  ;;  %3542 = vrot.lane.b32.xlu0 %v3499_v18, %s6635_s23 }
 0x3de   :  { %v2914_v6 = vpop.f32.mrf.mxu0 }
 0x3df   :  { %v10501_v20 = vadd.f32 %v10060_v33, %v2914_v6  ;;  %v4240_v31 = vpop.permute.xlu1 %4239  ;;  %v3871_v44 = vpop.permute.xlu0 %3870 }
 0x3e0   :  { %v4499_v10 = vsel %vm4498_vm14, %v4475_v8, %v4240_v31  ;;  %v6235_v2 = vpop.f32.mrf.mxu0  ;;  %v3842_v31 = vrot.slane %v10514_v15, 5 }
 0x3e1   :  { %v3004_v27 = vmax.f32 %v10501_v20, 0.0  ;;  %4113 = vrot.lane.b32.xlu1 %v4068_v46, %s6643_s24  ;;  %3656 = vrot.lane.b32.xlu0 %v3613_v29, %s6639_s14  ;;  %v6598_v2 = vld [vmem:[#allocation2 + $0x20] ss:$2 sm:$0xff] }
 0x3e2   :  { %6277 = vmatmul.mubr.msk.f32.vlgmr.msra.gmra.mxu1 %vm4534_vm3, %v4499_v10  ;;  %v3843_v29 = vsel %vm1087_vm4, %v3840_v60, %v3842_v31  ;;  %v4071_v60 = vrot.slane %v10514_v15, 7 }
 0x3e3   :  { %v3133_v13 = vrot.slane %v3004_v27, 1  ;;  %v3985_v36 = vpop.permute.xlu1 %3984  ;;  %v10517_v5 = vpop.permute.xlu0 %3530  ;;  %6279 = vmatprep.mubr.msk.f32.mxu1 %vm12557_vm7, %v6637_v47  ;;  %vm12790_vm7 = vcmask 1045504  }
 0x3e4   :  { %v3501_v58 = vsel %vm12790_vm7, %v3498_v16, %v3500_v19  ;;  %vm12791_vm7 = vcmask 1044480   ;;  %v10582_v16 = vld [vmem:[#allocation2 + $0xb0] ss:$2 sm:$0xff] }
 0x3e5   :  { %v3134_v32 = vsel %vm140_vm1, %v10433_v45, %v3133_v13  ;;  %4182 = vrot.lane.b32.xlu1 %v10338_v25, %s6644_s21  ;;  %3770 = vrot.lane.b32.xlu0 %v3727_v43, %s6640_s15  ;;  %v4309_v45 = vsel %vm12789_vm13, %v9796_v24, %v10413_v39  ;;  %v3388_v40 = vrot.slane %v10582_v16, 1 }
 0x3e6   :  { %v3237_v51 = vmax.f32 %v3003_v37, %v3134_v32  ;;  %v4332_v41 = vsel %vm2418_vm15, %v4309_v45, %v10435_v3  ;;  %v4069_v3 = vrot.slane %v10429_v59, 7 }
 0x3e7   :  { %v4102_v56 = vpop.permute.xlu1 %4101  ;;  %v10533_v12 = vpop.permute.xlu0 %3644  ;;  %v4356_v28 = vsel %vm4354_vm11, %v4332_v41, %v10453_v17  ;;  %v3955_v17 = vsel %vm1324_vm5, %v3952_v30, %v3954_v50 }
 0x3e8   :  { %3284 = vst.msk [vmem:[#allocation2 + $0x118] sm:$0xff] %vm12789_vm13, %v3237_v51  ;;  %v4380_v39 = vsel %vm12560_vm8, %v4356_v28, %v10471_v52  ;;  %v3728_v52 = vrot.slane %v10514_v15, 4  ;;  %vm12792_vm13 = vmmov 0   ;;  %v4072_v41 = vsel %vm12562_vm6, %v4069_v3, %v4071_v60 }
 0x3e9   :  { %3884 = vrot.lane.b32.xlu1 %v3841_v53, %s6641_s19  ;;  %3430 = vrot.lane.b32.xlu0 %v3387_v21, %s6630_s16  ;;  %v4404_v26 = vsel %vm4402_vm9, %v4380_v39, %v3871_v44 }
 0x3ea   :  { %v4428_v38 = vsel %vm4426_vm10, %v4404_v26, %v3985_v36  ;;  %v3729_v18 = vsel %vm12559_vm2, %v3726_v4, %v3728_v52  ;;  %v3956_v4 = vrot.slane %v10514_v15, 6 }
 0x3eb   :  { %v4171_v0 = vpop.permute.xlu1 %4170  ;;  %v3759_v37 = vpop.permute.xlu0 %3758  ;;  %v4452_v63 = vsel %vm12561_vm12, %v4428_v38, %v4102_v56  ;;  %v3616_v56 = vrot.slane %v10582_v16, 3 }
 0x3ec   :  { %v4476_v42 = vsel %vm4474_vm0, %v4452_v63, %v4171_v0 }
 0x3ed   :  { %3544 = vrot.lane.b32.xlu1 %v3501_v58, %s6635_s23  ;;  %4253 = vrot.lane.b32.xlu0 %v10461_v22, %s6645_s25  ;;  %v3615_v22 = vsel %vm12791_vm7, %v3612_v62, %v3614_v11  ;;  %v4070_v62 = vsel %vm12562_vm6, %v4067_v34, %v4069_v3  ;;  %vm12793_vm7 = vcmask 31744   ;;  %v10615_v34 = vsel %vm140_vm1, %v3386_v1, %v3388_v40 }
 0x3ee   :  { %v2919_v24 = vpop.f32.mrf.mxu0  ;;  %vm12794_vm2 = vmmov %vm12793_vm7 }
 0x3ef   :  { %v10565_v7 = vadd.f32 %v10060_v33, %v2919_v24  ;;  %v3873_v55 = vpop.permute.xlu1 %3872  ;;  %v10567_v35 = vpop.permute.xlu0 %3418  ;;  %v4310_v46 = vsel %vm12794_vm2, %v6598_v2, %v10484_v57  ;;  %vm12795_vm2 = vcmask 1045504   ;;  %v3730_v24 = vrot.slane %v10582_v16, 4 }
 0x3f0   :  { %v6238_v14 = vpop.f32.mrf.mxu0 }
 0x3f1   :  { %v3005_v23 = vmax.f32 %v10565_v7, 0.0  ;;  %3658 = vrot.lane.b32.xlu1 %v3615_v22, %s6639_s14  ;;  %3998 = vrot.lane.b32.xlu0 %v3955_v17, %s6642_s22  ;;  %v3844_v22 = vrot.slane %v10582_v16, 5 }
 0x3f3   :  { %v10588_v49 = vrot.slane %v3005_v23, 1  ;;  %v10590_v30 = vpop.permute.xlu1 %3532  ;;  %v4242_v54 = vpop.permute.xlu0 %4241 }
 0x3f4   :  { %v4500_v48 = vsel %vm4498_vm14, %v4476_v42, %v4242_v54 }
 0x3f5   :  { %v3136_v61 = vsel %vm140_vm1, %v3133_v13, %v10588_v49  ;;  %3772 = vrot.lane.b32.xlu1 %v3729_v18, %s6640_s15  ;;  %4115 = vrot.lane.b32.xlu0 %v4070_v62, %s6643_s24  ;;  %v4333_v13 = vsel %vm2418_vm15, %v4310_v46, %v10517_v5  ;;  %v3957_v5 = vsel %vm1324_vm5, %v3954_v50, %v3956_v4  ;;  %v6599_v18 = vld [vmem:[#allocation2 + $0x30] ss:$2 sm:$0xff] }
 0x3f6   :  { %v3238_v6 = vmax.f32 %v3004_v27, %v3136_v61  ;;  %6280 = vmatmul.mubr.msk.f32.gmra.mxu1 %vm4534_vm3, %v4500_v48  ;;  %v3502_v27 = vrot.slane %v10582_v16, 2  ;;  %v4357_v36 = vsel %vm4354_vm11, %v4333_v13, %v10533_v12 }
 0x3f7   :  { %v10607_v8 = vpop.permute.xlu1 %3646  ;;  %v3987_v20 = vpop.permute.xlu0 %3986  ;;  %6282 = vmatprep.mubr.msk.f32.mxu1 %vm12792_vm13, %v6637_v47  ;;  %v4381_v57 = vsel %vm12560_vm8, %v4357_v36, %v3759_v37 }
 0x3f8   :  { %3285 = vst.msk [vmem:[#allocation2 + $0x120] sm:$0xff] %vm12793_vm7, %v3238_v6  ;;  %v4405_v32 = vsel %vm4402_vm9, %v4381_v57, %v3873_v55  ;;  %v3503_v51 = vsel %vm12795_vm2, %v3500_v19, %v3502_v27  ;;  %vm12796_vm7 = vcmask 1044480   ;;  %v10670_v55 = vld [vmem:[#allocation2 + $0xc0] ss:$2 sm:$0xff]  ;;  %vm12797_vm2 = vcmask 1043456  }
 0x3f9   :  { %3432 = vrot.lane.b32.xlu1 %v10615_v34, %s6630_s16  ;;  %4184 = vrot.lane.b32.xlu0 %v10429_v59, %s6644_s21  ;;  %v4429_v12 = vsel %vm4426_vm10, %v4405_v32, %v3987_v20  ;;  %v3617_v28 = vsel %vm12796_vm7, %v3614_v11, %v3616_v56  ;;  %v3731_v11 = vsel %vm12797_vm2, %v3728_v52, %v3730_v24  ;;  %v3390_v17 = vrot.slane %v10670_v55, 1 }
 0x3fa   :  { %vm12798_vm7 = vcmask 31744   ;;  %v3845_v52 = vsel %vm1087_vm4, %v3842_v31, %v3844_v22  ;;  %v3504_v48 = vrot.slane %v10670_v55, 2  ;;  %v3618_v6 = vrot.slane %v10670_v55, 3 }
 0x3fb   :  { %v10622_v44 = vpop.permute.xlu1 %3760  ;;  %v4104_v10 = vpop.permute.xlu0 %4103  ;;  %vm12799_vm2 = vmmov %vm12798_vm7 }
 0x3fc   :  { %v4453_v53 = vsel %vm12561_vm12, %v4429_v12, %v4104_v10  ;;  %v4311_v62 = vsel %vm12799_vm2, %v6599_v18, %v10567_v35  ;;  %vm12801_vm2 = vcmask 1044480  }
 0x3fd   :  { %4255 = vrot.lane.b32.xlu1 %v3387_v21, %s6645_s25  ;;  %3886 = vrot.lane.b32.xlu0 %v3843_v29, %s6641_s19  ;;  %v4334_v20 = vsel %vm2418_vm15, %v4311_v62, %v10590_v30  ;;  %v4073_v30 = vrot.slane %v10582_v16, 7 }
 0x3fe   :  { %v4358_v31 = vsel %vm4354_vm11, %v4334_v20, %v10607_v8 }
 0x3ff   :  { %v10638_v43 = vpop.permute.xlu1 %3420  ;;  %v4173_v1 = vpop.permute.xlu0 %4172  ;;  %v4382_v10 = vsel %vm12560_vm8, %v4358_v31, %v10622_v44  ;;  %v3732_v44 = vrot.slane %v10670_v55, 4 }
 0x400   :  { %v4477_v0 = vsel %vm4474_vm0, %v4453_v53, %v4173_v1  ;;  %v10737_v1 = vld [vmem:[#allocation2 + $0xd0] ss:$2 sm:$0xff] }
 0x401   :  { %4000 = vrot.lane.b32.xlu1 %v3957_v5, %s6642_s22  ;;  %3546 = vrot.lane.b32.xlu0 %v3503_v51, %s6635_s23 }
 0x402   :  { %v2924_v21 = vpop.f32.mrf.mxu0 }
 0x403   :  { %v10655_v37 = vadd.f32 %v10060_v33, %v2924_v21  ;;  %v4244_v45 = vpop.permute.xlu1 %4243  ;;  %v3875_v58 = vpop.permute.xlu0 %3874  ;;  %v4074_v21 = vsel %vm12562_vm6, %v4071_v60, %v4073_v30 }
 0x404   :  { %v4501_v19 = vsel %vm4498_vm14, %v4477_v0, %v4244_v45  ;;  %v6241_v50 = vpop.f32.mrf.mxu0  ;;  %v3392_v0 = vrot.slane %v10737_v1, 1 }
 0x405   :  { %v3006_v39 = vmax.f32 %v10655_v37, 0.0  ;;  %4117 = vrot.lane.b32.xlu1 %v4072_v41, %s6643_s24  ;;  %3660 = vrot.lane.b32.xlu0 %v3617_v28, %s6639_s14  ;;  %v3846_v41 = vrot.slane %v10670_v55, 5 }
 0x406   :  { %6283 = vmatmul.mubr.msk.f32.gmra.mxu1 %vm4534_vm3, %v4501_v19  ;;  %v10772_v60 = vsel %vm140_vm1, %v3390_v17, %v3392_v0 }
 0x407   :  { %v3137_v26 = vrot.slane %v3006_v39, 1  ;;  %v3989_v3 = vpop.permute.xlu1 %3988  ;;  %v10675_v14 = vpop.permute.xlu0 %3534  ;;  %6285 = vmatprep.mubr.msk.f32.mxu1 %vm12792_vm13, %v6637_v47 }
 0x409   :  { %v3138_v38 = vsel %vm140_vm1, %v10588_v49, %v3137_v26  ;;  %4186 = vrot.lane.b32.xlu1 %v10514_v15, %s6644_s21  ;;  %3774 = vrot.lane.b32.xlu0 %v3731_v11, %s6640_s15  ;;  %v3391_v49 = vsel %vm140_vm1, %v3388_v40, %v3390_v17  ;;  %v3958_v40 = vrot.slane %v10582_v16, 6 }
 0x40a   :  { %v3239_v63 = vmax.f32 %v3005_v23, %v3138_v38 }
 0x40b   :  { %v4106_v42 = vpop.permute.xlu1 %4105  ;;  %v10691_v54 = vpop.permute.xlu0 %3648  ;;  %v3959_v8 = vsel %vm1324_vm5, %v3956_v4, %v3958_v40 }
 0x40c   :  { %3286 = vst.msk [vmem:[#allocation2 + $0x128] sm:$0xff] %vm12798_vm7, %v3239_v63  ;;  %vm12800_vm7 = vcmask 1045504  }
 0x40d   :  { %3888 = vrot.lane.b32.xlu1 %v3845_v52, %s6641_s19  ;;  %3434 = vrot.lane.b32.xlu0 %v3391_v49, %s6630_s16  ;;  %v3505_v61 = vsel %vm12800_vm7, %v3502_v27, %v3504_v48  ;;  %v4406_v27 = vsel %vm4402_vm9, %v4382_v10, %v3875_v58  ;;  %vm12802_vm7 = vcmask 1043456   ;;  %v3620_v52 = vrot.slane %v10737_v1, 3  ;;  %v10828_v10 = vld [vmem:[#allocation2 + $0xe0] ss:$2 sm:$0xff] }
 0x40e   :  { %v4430_v36 = vsel %vm4426_vm10, %v4406_v27, %v3989_v3  ;;  %v3733_v53 = vsel %vm12802_vm7, %v3730_v24, %v3732_v44  ;;  %v3506_v3 = vrot.slane %v10737_v1, 2 }
 0x40f   :  { %v4175_v7 = vpop.permute.xlu1 %4174  ;;  %v3763_v23 = vpop.permute.xlu0 %3762  ;;  %v4454_v32 = vsel %vm12561_vm12, %v4430_v36, %v4106_v42 }
 0x410   :  { %v4478_v5 = vsel %vm4474_vm0, %v4454_v32, %v4175_v7 }
 0x411   :  { %3548 = vrot.lane.b32.xlu1 %v3505_v61, %s6635_s23  ;;  %4257 = vrot.lane.b32.xlu0 %v10615_v34, %s6645_s25  ;;  %v3619_v34 = vsel %vm12801_vm2, %v3616_v56, %v3618_v6  ;;  %vm12803_vm2 = vcmask 31744  }
 0x412   :  { %v2929_v35 = vpop.f32.mrf.mxu0  ;;  %vm12804_vm7 = vmmov %vm12803_vm2 }
 0x413   :  { %v10720_v2 = vadd.f32 %v10060_v33, %v2929_v35  ;;  %v3877_v46 = vpop.permute.xlu1 %3876  ;;  %v10722_v29 = vpop.permute.xlu0 %3422  ;;  %v4312_v24 = vsel %vm12804_vm7, %v10003_v9, %v10638_v43  ;;  %vm12806_vm7 = vcmask 1044480   ;;  %v3734_v35 = vrot.slane %v10737_v1, 4 }
 0x414   :  { %v6244_v13 = vpop.f32.mrf.mxu0  ;;  %v4335_v11 = vsel %vm2418_vm15, %v4312_v24, %v10675_v14  ;;  %v3621_v31 = vsel %vm12806_vm7, %v3618_v6, %v3620_v52  ;;  %vm12808_vm7 = vcmask 31744  }
 0x415   :  { %v3007_v57 = vmax.f32 %v10720_v2, 0.0  ;;  %3662 = vrot.lane.b32.xlu1 %v3619_v34, %s6639_s14  ;;  %4002 = vrot.lane.b32.xlu0 %v3959_v8, %s6642_s22  ;;  %v4359_v17 = vsel %vm4354_vm11, %v4335_v11, %v10691_v54  ;;  %v3848_v13 = vrot.slane %v10737_v1, 5  ;;  %v3394_v34 = vrot.slane %v10828_v10, 1 }
 0x416   :  { %v4383_v9 = vsel %vm12560_vm8, %v4359_v17, %v3763_v23  ;;  %v3736_v17 = vrot.slane %v10828_v10, 4 }
 0x417   :  { %v10743_v51 = vrot.slane %v3007_v57, 1  ;;  %v10745_v4 = vpop.permute.xlu1 %3536  ;;  %v4246_v56 = vpop.permute.xlu0 %4245  ;;  %v4407_v63 = vsel %vm4402_vm9, %v4383_v9, %v3877_v46 }
 0x418   :  { %v4502_v12 = vsel %vm4498_vm14, %v4478_v5, %v4246_v56  ;;  %v3508_v56 = vrot.slane %v10828_v10, 2 }
 0x419   :  { %v3140_v45 = vsel %vm140_vm1, %v3137_v26, %v10743_v51  ;;  %3776 = vrot.lane.b32.xlu1 %v3733_v53, %s6640_s15  ;;  %4119 = vrot.lane.b32.xlu0 %v4074_v21, %s6643_s24  ;;  %v3960_v26 = vrot.slane %v10670_v55, 6 }
 0x41a   :  { %v3240_v58 = vmax.f32 %v3006_v39, %v3140_v45  ;;  %6286 = vmatmul.mubr.msk.f32.gmra.mxu1 %vm4534_vm3, %v4502_v12  ;;  %v3847_v39 = vsel %vm1087_vm4, %v3844_v22, %v3846_v41  ;;  %v4075_v22 = vrot.slane %v10670_v55, 7  ;;  %v6600_v12 = vld [vmem:[#allocation2 + $0x50] ss:$2 sm:$0xff]  ;;  %v3962_v45 = vrot.slane %v10737_v1, 6 }
 0x41b   :  { %v10764_v19 = vpop.permute.xlu1 %3650  ;;  %v3991_v50 = vpop.permute.xlu0 %3990  ;;  %6288 = vmatprep.mubr.msk.f32.mxu1 %vm12792_vm13, %v6637_v47  ;;  %v3961_v14 = vsel %vm1324_vm5, %v3958_v40, %v3960_v26 }
 0x41c   :  { %3287 = vst.msk [vmem:[#allocation2 + $0x130] sm:$0xff] %vm12803_vm2, %v3240_v58  ;;  %vm12805_vm2 = vcmask 1045504   ;;  %v4431_v54 = vsel %vm4426_vm10, %v4407_v63, %v3991_v50  ;;  %v4076_v20 = vsel %vm12562_vm6, %v4073_v30, %v4075_v22  ;;  %v3963_v11 = vsel %vm1324_vm5, %v3960_v26, %v3962_v45  ;;  %v10903_v63 = vld [vmem:[#allocation2 + $0xf0] ss:$2 sm:$0xff] }
 0x41d   :  { %3436 = vrot.lane.b32.xlu1 %v10772_v60, %s6630_s16  ;;  %4188 = vrot.lane.b32.xlu0 %v10582_v16, %s6644_s21  ;;  %v3507_v42 = vsel %vm12805_vm2, %v3504_v48, %v3506_v3  ;;  %vm12807_vm2 = vcmask 1043456  }
 0x41e   :  { %v3735_v6 = vsel %vm12807_vm2, %v3732_v44, %v3734_v35  ;;  %v3849_v44 = vsel %vm1087_vm4, %v3846_v41, %v3848_v13  ;;  %vm12809_vm2 = vmmov %vm12808_vm7 }
 0x41f   :  { %v10779_v37 = vpop.permute.xlu1 %3764  ;;  %v4108_v28 = vpop.permute.xlu0 %4107  ;;  %v4313_v53 = vsel %vm12809_vm2, %v6600_v12, %v10722_v29  ;;  %vm12811_vm2 = vcmask 1044480   ;;  %v3624_v12 = vrot.slane %v10903_v63, 3 }
 0x420   :  { %v4336_v58 = vsel %vm2418_vm15, %v4313_v53, %v10745_v4 }
 0x421   :  { %4259 = vrot.lane.b32.xlu1 %v3391_v49, %s6645_s25  ;;  %3890 = vrot.lane.b32.xlu0 %v3847_v39, %s6641_s19  ;;  %v4455_v49 = vsel %vm12561_vm12, %v4431_v54, %v4108_v28  ;;  %v4360_v50 = vsel %vm4354_vm11, %v4336_v58, %v10764_v19  ;;  %v10883_v28 = vld [vmem:[%s12540_s2] ss:$0 sm:$0xff] }
 0x422   :  { %v4384_v41 = vsel %vm12560_vm8, %v4360_v50, %v10779_v37 }
 0x423   :  { %v10796_v43 = vpop.permute.xlu1 %3424  ;;  %v4177_v38 = vpop.permute.xlu0 %4176 }
 0x424   :  { %v4479_v23 = vsel %vm4474_vm0, %v4455_v49, %v4177_v38 }
 0x425   :  { %4004 = vrot.lane.b32.xlu1 %v3961_v14, %s6642_s22  ;;  %3550 = vrot.lane.b32.xlu0 %v3507_v42, %s6635_s23 }
 0x426   :  { %v2934_v7 = vpop.f32.mrf.mxu0 }
 0x427   :  { %v10813_v18 = vadd.f32 %v10060_v33, %v2934_v7  ;;  %v4248_v62 = vpop.permute.xlu1 %4247  ;;  %v3879_v61 = vpop.permute.xlu0 %3878 }
 0x428   :  { %v4503_v48 = vsel %vm4498_vm14, %v4479_v23, %v4248_v62  ;;  %v6247_v40 = vpop.f32.mrf.mxu0  ;;  %v3396_v62 = vrot.slane %v10903_v63, 1 }
 0x429   :  { %v3008_v33 = vmax.f32 %v10813_v18, 0.0  ;;  %4121 = vrot.lane.b32.xlu1 %v4076_v20, %s6643_s24  ;;  %3664 = vrot.lane.b32.xlu0 %v3621_v31, %s6639_s14  ;;  %v3850_v31 = vrot.slane %v10828_v10, 5 }
 0x42a   :  { %6289 = vmatmul.mubr.msk.f32.gmra.mxu1 %vm4534_vm3, %v4503_v48 }
 0x42b   :  { %v3141_v46 = vrot.slane %v3008_v33, 1  ;;  %v3993_v30 = vpop.permute.xlu1 %3992  ;;  %v10833_v27 = vpop.permute.xlu0 %3538  ;;  %6291 = vmatprep.mubr.msk.f32.mxu1 %vm12792_vm13, %v6637_v47 }
 0x42d   :  { %v3142_v8 = vsel %vm140_vm1, %v10743_v51, %v3141_v46  ;;  %4190 = vrot.lane.b32.xlu1 %v10670_v55, %s6644_s21  ;;  %3778 = vrot.lane.b32.xlu0 %v3735_v6, %s6640_s15  ;;  %v10858_v51 = vsel %vm140_vm1, %v3392_v0, %v3394_v34  ;;  %v3622_v0 = vrot.slane %v10828_v10, 3  ;;  %v3964_v6 = vrot.slane %v10828_v10, 6 }
 0x42e   :  { %v3241_v36 = vmax.f32 %v3007_v57, %v3142_v8 }
 0x42f   :  { %v4110_v32 = vpop.permute.xlu1 %4109  ;;  %v10849_v5 = vpop.permute.xlu0 %3652  ;;  %v3623_v37 = vsel %vm12811_vm2, %v3620_v52, %v3622_v0  ;;  %vm12813_vm2 = vcmask 31744  }
 0x430   :  { %3288 = vst.msk [vmem:[#allocation2 + $0x138] sm:$0xff] %vm12808_vm7, %v3241_v36  ;;  %vm12810_vm7 = vcmask 1045504  }
 0x431   :  { %3892 = vrot.lane.b32.xlu1 %v3849_v44, %s6641_s19  ;;  %3438 = vrot.lane.b32.xlu0 %v10858_v51, %s6630_s16  ;;  %v3509_v21 = vsel %vm12810_vm7, %v3506_v3, %v3508_v56  ;;  %v4408_v3 = vsel %vm4402_vm9, %v4384_v41, %v3879_v61  ;;  %vm12812_vm7 = vcmask 1043456   ;;  %v4079_v44 = vrot.slane %v10828_v10, 7 }
 0x432   :  { %v4432_v9 = vsel %vm4426_vm10, %v4408_v3, %v3993_v30  ;;  %v3737_v7 = vsel %vm12812_vm7, %v3734_v35, %v3736_v17  ;;  %vm12814_vm7 = vmmov %vm12813_vm2  ;;  %v3851_v30 = vsel %vm1087_vm4, %v3848_v13, %v3850_v31  ;;  %v3738_v3 = vrot.slane %v10903_v63, 4 }
 0x433   :  { %v4179_v2 = vpop.permute.xlu1 %4178  ;;  %v3767_v57 = vpop.permute.xlu0 %3766  ;;  %v4456_v14 = vsel %vm12561_vm12, %v4432_v9, %v4110_v32 }
 0x434   :  { %v4480_v42 = vsel %vm4474_vm0, %v4456_v14, %v4179_v2  ;;  %v3852_v14 = vrot.slane %v10903_v63, 5 }
 0x435   :  { %3552 = vrot.lane.b32.xlu1 %v3509_v21, %s6635_s23  ;;  %4261 = vrot.lane.b32.xlu0 %v10772_v60, %s6645_s25  ;;  %v4077_v60 = vrot.slane %v10737_v1, 7 }
 0x436   :  { %v2939_v29 = vpop.f32.mrf.mxu0 }
 0x437   :  { %v10886_v24 = vadd.f32 %v10883_v28, %v2939_v29  ;;  %v3881_v4 = vpop.permute.xlu1 %3880  ;;  %v10888_v39 = vpop.permute.xlu0 %3426  ;;  %v4078_v23 = vsel %vm12562_vm6, %v4075_v22, %v4077_v60  ;;  %v10938_v22 = vsel %vm140_vm1, %v3394_v34, %v3396_v62  ;;  %v3510_v34 = vrot.slane %v10903_v63, 2 }
 0x438   :  { %v6250_v19 = vpop.f32.mrf.mxu0  ;;  %v4080_v41 = vsel %vm12562_vm6, %v4077_v60, %v4079_v44 }
 0x439   :  { %v3009_v38 = vmax.f32 %v10886_v24, 0.0  ;;  %3666 = vrot.lane.b32.xlu1 %v3623_v37, %s6639_s14  ;;  %4006 = vrot.lane.b32.xlu0 %v3963_v11, %s6642_s22  ;;  %v10994_v37 = vld [vmem:[#allocation2 + $0x100] ss:$2 sm:$0xff]  ;;  %v6603_v24 = vld [vmem:[#allocation2 + $0x70] ss:$2 sm:$0xff] }
 0x43b   :  { %v10909_v52 = vrot.slane %v3009_v38, 1  ;;  %v10911_v26 = vpop.permute.xlu1 %3540  ;;  %v4250_v54 = vpop.permute.xlu0 %4249 }
 0x43c   :  { %v4504_v49 = vsel %vm4498_vm14, %v4480_v42, %v4250_v54  ;;  %v3398_v42 = vrot.slane %v10994_v37, 1 }
 0x43d   :  { %v3144_v61 = vsel %vm140_vm1, %v3141_v46, %v10909_v52  ;;  %3780 = vrot.lane.b32.xlu1 %v3737_v7, %s6640_s15  ;;  %4123 = vrot.lane.b32.xlu0 %v4078_v23, %s6643_s24 }
 0x43e   :  { %v3242_v48 = vmax.f32 %v3008_v33, %v3144_v61  ;;  %6292 = vmatmul.mubr.msk.f32.gmra.mxu1 %vm4534_vm3, %v4504_v49  ;;  %v6602_v33 = vld [vmem:[#allocation2 + $0x60] ss:$2 sm:$0xff]  ;;  %v3399_v61 = vsel %vm140_vm1, %v3396_v62, %v3398_v42  ;;  %v3966_v62 = vrot.slane %v10903_v63, 6 }
 0x43f   :  { %v10930_v40 = vpop.permute.xlu1 %3654  ;;  %v3995_v20 = vpop.permute.xlu0 %3994  ;;  %6294 = vmatprep.mubr.msk.f32.mxu1 %vm12792_vm13, %v6637_v47  ;;  %v4314_v46 = vsel %vm12814_vm7, %v6602_v33, %v10796_v43  ;;  %vm12816_vm7 = vcmask 1044480  }
 0x440   :  { %3289 = vst.msk [vmem:[#allocation2 + $0x140] sm:$0xff] %vm12813_vm2, %v3242_v48  ;;  %v4337_v8 = vsel %vm2418_vm15, %v4314_v46, %v10833_v27  ;;  %v3965_v27 = vsel %vm1324_vm5, %v3962_v45, %v3964_v6  ;;  %vm12815_vm2 = vcmask 1045504  }
 0x441   :  { %3440 = vrot.lane.b32.xlu1 %v10938_v22, %s6630_s16  ;;  %4192 = vrot.lane.b32.xlu0 %v10737_v1, %s6644_s21  ;;  %v4361_v36 = vsel %vm4354_vm11, %v4337_v8, %v10849_v5  ;;  %v4081_v8 = vrot.slane %v10903_v63, 7 }
 0x442   :  { %v4385_v43 = vsel %vm12560_vm8, %v4361_v36, %v3767_v57 }
 0x443   :  { %v10945_v18 = vpop.permute.xlu1 %3768  ;;  %v4112_v35 = vpop.permute.xlu0 %4111  ;;  %v4409_v2 = vsel %vm4402_vm9, %v4385_v43, %v3881_v4  ;;  %v3625_v4 = vsel %vm12816_vm7, %v3622_v0, %v3624_v12  ;;  %vm12818_vm7 = vcmask 31744  }
 0x444   :  { %v4433_v5 = vsel %vm4426_vm10, %v4409_v2, %v3995_v20 }
 0x445   :  { %4263 = vrot.lane.b32.xlu1 %v10858_v51, %s6645_s25  ;;  %3894 = vrot.lane.b32.xlu0 %v3851_v30, %s6641_s19  ;;  %v3511_v51 = vsel %vm12815_vm2, %v3508_v56, %v3510_v34  ;;  %v4457_v57 = vsel %vm12561_vm12, %v4433_v5, %v4112_v35  ;;  %vm12817_vm2 = vcmask 1043456   ;;  %v3626_v35 = vrot.slane %v10994_v37, 3 }
 0x446   :  { %v3739_v0 = vsel %vm12817_vm2, %v3736_v17, %v3738_v3  ;;  %v3853_v17 = vsel %vm1087_vm4, %v3850_v31, %v3852_v14  ;;  %vm12819_vm2 = vmmov %vm12818_vm7  ;;  %v4082_v5 = vsel %vm12562_vm6, %v4079_v44, %v4081_v8  ;;  %v3854_v44 = vrot.slane %v10994_v37, 5 }
 0x447   :  { %v10962_v32 = vpop.permute.xlu1 %3428  ;;  %v4181_v13 = vpop.permute.xlu0 %4180 }
 0x448   :  { %v4481_v21 = vsel %vm4474_vm0, %v4457_v57, %v4181_v13 }
 0x449   :  { %4008 = vrot.lane.b32.xlu1 %v3965_v27, %s6642_s22  ;;  %3554 = vrot.lane.b32.xlu0 %v3511_v51, %s6635_s23 }
 0x44a   :  { %v2944_v53 = vpop.f32.mrf.mxu0 }
 0x44b   :  { %v10979_v58 = vadd.f32 %v10883_v28, %v2944_v53  ;;  %v4252_v45 = vpop.permute.xlu1 %4251  ;;  %v3883_v50 = vpop.permute.xlu0 %3882 }
 0x44c   :  { %v4505_v56 = vsel %vm4498_vm14, %v4481_v21, %v4252_v45  ;;  %v6253_v29 = vpop.f32.mrf.mxu0 }
 0x44d   :  { %v3010_v19 = vmax.f32 %v10979_v58, 0.0  ;;  %4125 = vrot.lane.b32.xlu1 %v4080_v41, %s6643_s24  ;;  %3668 = vrot.lane.b32.xlu0 %v3625_v4, %s6639_s14 }
 0x44e   :  { %6295 = vmatmul.mubr.msk.f32.gmra.mxu1 %vm4534_vm3, %v4505_v56 }
 0x44f   :  { %v10999_v11 = vrot.slane %v3010_v19, 1  ;;  %v3997_v60 = vpop.permute.xlu1 %3996  ;;  %v11001_v9 = vpop.permute.xlu0 %3542  ;;  %6297 = vmatprep.mubr.msk.f32.mxu1 %vm12792_vm13, %v6637_v47 }
 0x451   :  { %v3146_v54 = vsel %vm140_vm1, %v10909_v52, %v10999_v11  ;;  %4194 = vrot.lane.b32.xlu1 %v10828_v10, %s6644_s21  ;;  %3782 = vrot.lane.b32.xlu0 %v3739_v0, %s6640_s15  ;;  %v3512_v52 = vrot.slane %v10994_v37, 2  ;;  %v3968_v0 = vrot.slane %v10994_v37, 6 }
 0x452   :  { %v3243_v49 = vmax.f32 %v3009_v38, %v3146_v54  ;;  %v4315_v38 = vsel %vm12819_vm2, %v6603_v24, %v10888_v39  ;;  %vm12821_vm2 = vcmask 1044480  }
 0x453   :  { %v4114_v7 = vpop.permute.xlu1 %4113  ;;  %v3657_v23 = vpop.permute.xlu0 %3656  ;;  %v4338_v33 = vsel %vm2418_vm15, %v4315_v38, %v10911_v26  ;;  %v3627_v26 = vsel %vm12821_vm2, %v3624_v12, %v3626_v35  ;;  %vm12823_vm2 = vcmask 31744  }
 0x454   :  { %3290 = vst.msk [vmem:[#allocation2 + $0x148] sm:$0xff] %vm12818_vm7, %v3243_v49  ;;  %vm12820_vm7 = vcmask 1045504   ;;  %v4362_v46 = vsel %vm4354_vm11, %v4338_v33, %v10930_v40  ;;  %v3740_v40 = vrot.slane %v10994_v37, 4  ;;  %v4316_v4 = vsel %vm12823_vm2, %v10338_v25, %v10962_v32 }
 0x455   :  { %3896 = vrot.lane.b32.xlu1 %v3853_v17, %s6641_s19  ;;  %3442 = vrot.lane.b32.xlu0 %v3399_v61, %s6630_s16  ;;  %v3513_v31 = vsel %vm12820_vm7, %v3510_v34, %v3512_v52  ;;  %v4386_v39 = vsel %vm12560_vm8, %v4362_v46, %v10945_v18  ;;  %v11056_v18 = vld [vmem:[#allocation2 + $0x110] ss:$2 sm:$0xff]  ;;  %vm12822_vm7 = vcmask 1043456   ;;  %v4339_v54 = vsel %vm2418_vm15, %v4316_v4, %v11001_v9 }
 0x456   :  { %v4410_v36 = vsel %vm4402_vm9, %v4386_v39, %v3883_v50  ;;  %v3400_v57 = vrot.slane %v11056_v18, 1  ;;  %v3742_v58 = vrot.slane %v11056_v18, 4  ;;  %v3970_v4 = vrot.slane %v11056_v18, 6 }
 0x457   :  { %v4183_v48 = vpop.permute.xlu1 %4182  ;;  %v3771_v20 = vpop.permute.xlu0 %3770  ;;  %v4434_v43 = vsel %vm4426_vm10, %v4410_v36, %v3997_v60  ;;  %v3855_v60 = vsel %vm1087_vm4, %v3852_v14, %v3854_v44 }
 0x458   :  { %v4458_v13 = vsel %vm12561_vm12, %v4434_v43, %v4114_v7  ;;  %v11080_v45 = vsel %vm140_vm1, %v3398_v42, %v3400_v57  ;;  %v3514_v42 = vrot.slane %v11056_v18, 2  ;;  %v4363_v7 = vsel %vm4354_vm11, %v4339_v54, %v3657_v23 }
 0x459   :  { %3556 = vrot.lane.b32.xlu1 %v3513_v31, %s6635_s23  ;;  %4265 = vrot.lane.b32.xlu0 %v10938_v22, %s6645_s25  ;;  %v3967_v22 = vsel %vm1324_vm5, %v3964_v6, %v3966_v62  ;;  %v4482_v2 = vsel %vm4474_vm0, %v4458_v13, %v4183_v48  ;;  %v3741_v6 = vsel %vm12822_vm7, %v3738_v3, %v3740_v40  ;;  %v4083_v48 = vrot.slane %v10994_v37, 7 }
 0x45a   :  { %v4387_v25 = vsel %vm12560_vm8, %v4363_v7, %v3771_v20  ;;  %vm12824_vm7 = vcmask 1045504   ;;  %v3628_v20 = vrot.slane %v11056_v18, 3 }
 0x45b   :  { %v3885_v30 = vpop.permute.xlu1 %3884  ;;  %v11042_v34 = vpop.permute.xlu0 %3430  ;;  %v3515_v23 = vsel %vm12824_vm7, %v3512_v52, %v3514_v42  ;;  %vm12825_vm7 = vcmask 1044480  }
 0x45c   :  { %v4411_v9 = vsel %vm4402_vm9, %v4387_v25, %v3885_v30  ;;  %v3629_v30 = vsel %vm12825_vm7, %v3626_v35, %v3628_v20  ;;  %vm12827_vm7 = vcmask 31744  }
 0x45d   :  { %3670 = vrot.lane.b32.xlu1 %v3627_v26, %s6639_s14  ;;  %4010 = vrot.lane.b32.xlu0 %v3967_v22, %s6642_s22 }
 0x45f   :  { %v11060_v27 = vpop.permute.xlu1 %3544  ;;  %v4254_v51 = vpop.permute.xlu0 %4253 }
 0x460   :  { %v4506_v12 = vsel %vm4498_vm14, %v4482_v2, %v4254_v51 }
 0x461   :  { %3784 = vrot.lane.b32.xlu1 %v3741_v6, %s6640_s15  ;;  %4127 = vrot.lane.b32.xlu0 %v4082_v5, %s6643_s24 }
 0x462   :  { %6298 = vmatmul.mubr.msk.f32.gmra.mxu1 %vm4534_vm3, %v4506_v12 }
 0x463   :  { %v11073_v53 = vpop.permute.xlu1 %3658  ;;  %v3999_v21 = vpop.permute.xlu0 %3998  ;;  %6300 = vmatprep.mubr.msk.f32.mxu1 %vm12792_vm13, %v6637_v47 }
 0x464   :  { %v4435_v24 = vsel %vm4426_vm10, %v4411_v9, %v3999_v21 }
 0x465   :  { %3444 = vrot.lane.b32.xlu1 %v11080_v45, %s6630_s16  ;;  %4196 = vrot.lane.b32.xlu0 %v10903_v63, %s6644_s21 }
 0x466   :  { %v2949_v50 = vpop.f32.mrf.mxu0 }
 0x467   :  { %v11088_v56 = vadd.f32 %v10883_v28, %v2949_v50  ;;  %v11090_v29 = vpop.permute.xlu1 %3772  ;;  %v4116_v41 = vpop.permute.xlu0 %4115 }
 0x468   :  { %v6256_v3 = vpop.f32.mrf.mxu0 }
 0x469   :  { %v3011_v49 = vmax.f32 %v11088_v56, 0.0  ;;  %4267 = vrot.lane.b32.xlu1 %v3399_v61, %s6645_s25  ;;  %3898 = vrot.lane.b32.xlu0 %v3855_v60, %s6641_s19  ;;  %v3969_v61 = vsel %vm1324_vm5, %v3966_v62, %v3968_v0  ;;  %v4459_v62 = vsel %vm12561_vm12, %v4435_v24, %v4116_v41 }
 0x46b   :  { %v11107_v32 = vrot.slane %v3011_v49, 1  ;;  %v11109_v14 = vpop.permute.xlu1 %3432  ;;  %v4185_v17 = vpop.permute.xlu0 %4184 }
 0x46c   :  { %v4483_v33 = vsel %vm4474_vm0, %v4459_v62, %v4185_v17 }
 0x46d   :  { %v3148_v38 = vsel %vm140_vm1, %v10999_v11, %v11107_v32  ;;  %4012 = vrot.lane.b32.xlu1 %v3969_v61, %s6642_s22  ;;  %3558 = vrot.lane.b32.xlu0 %v3515_v23, %s6635_s23  ;;  %v4084_v11 = vsel %vm12562_vm6, %v4081_v8, %v4083_v48  ;;  %v3856_v8 = vrot.slane %v11056_v18, 5 }
 0x46e   :  { %v3244_v31 = vmax.f32 %v3010_v19, %v3148_v38  ;;  %v11141_v19 = vld [vmem:[#allocation2 + $0x120] ss:$2 sm:$0xff] }
 0x46f   :  { %v4256_v52 = vpop.permute.xlu1 %4255  ;;  %v3887_v46 = vpop.permute.xlu0 %3886  ;;  %v3402_v22 = vrot.slane %v11141_v19, 1  ;;  %v3857_v2 = vsel %vm1087_vm4, %v3854_v44, %v3856_v8  ;;  %v3516_v51 = vrot.slane %v11141_v19, 2  ;;  %v4317_v44 = vsel %vm12827_vm7, %v10429_v59, %v11042_v34 }
 0x470   :  { %3291 = vst.msk [vmem:[#allocation2 + $0x150] sm:$0xff] %vm12823_vm2, %v3244_v31  ;;  %v4507_v39 = vsel %vm4498_vm14, %v4483_v33, %v4256_v52  ;;  %vm12826_vm2 = vcmask 1043456   ;;  %v3630_v41 = vrot.slane %v11141_v19, 3  ;;  %v4340_v3 = vsel %vm2418_vm15, %v4317_v44, %v11060_v27  ;;  %v11213_v31 = vld [vmem:[#allocation2 + $0x130] ss:$2 sm:$0xff] }
 0x471   :  { %4129 = vrot.lane.b32.xlu1 %v4084_v11, %s6643_s24  ;;  %3672 = vrot.lane.b32.xlu0 %v3629_v30, %s6639_s14  ;;  %v3743_v35 = vsel %vm12826_vm2, %v3740_v40, %v3742_v58  ;;  %v11166_v40 = vsel %vm140_vm1, %v3400_v57, %v3402_v22  ;;  %vm12828_vm2 = vcmask 1045504   ;;  %v4364_v59 = vsel %vm4354_vm11, %v4340_v3, %v11073_v53 }
 0x472   :  { %6301 = vmatmul.mubr.msk.f32.gmra.mxu1 %vm4534_vm3, %v4507_v39  ;;  %v3517_v57 = vsel %vm12828_vm2, %v3514_v42, %v3516_v51  ;;  %v4388_v42 = vsel %vm12560_vm8, %v4364_v59, %v11090_v29  ;;  %v4085_v27 = vrot.slane %v11056_v18, 7  ;;  %vm12829_vm7 = vcmask 1044480  }
 0x473   :  { %v4001_v36 = vpop.permute.xlu1 %4000  ;;  %v11144_v26 = vpop.permute.xlu0 %3546  ;;  %6303 = vmatprep.mubr.msk.f32.mxu1 %vm12792_vm13, %v6637_v47  ;;  %v4412_v9 = vsel %vm4402_vm9, %v4388_v42, %v3887_v46  ;;  %v3631_v53 = vsel %vm12829_vm7, %v3628_v20, %v3630_v41  ;;  %v3744_v29 = vrot.slane %v11141_v19, 4  ;;  %vm12830_vm2 = vcmask 31744  }
 0x474   :  { %v4436_v23 = vsel %vm4426_vm10, %v4412_v9, %v4001_v36  ;;  %vm12831_vm7 = vcmask 1043456   ;;  %v4086_v56 = vsel %vm12562_vm6, %v4083_v48, %v4085_v27  ;;  %v3518_v3 = vrot.slane %v11213_v31, 2 }
 0x475   :  { %4198 = vrot.lane.b32.xlu1 %v10994_v37, %s6644_s21  ;;  %3786 = vrot.lane.b32.xlu0 %v3743_v35, %s6640_s15  ;;  %v3745_v39 = vsel %vm12831_vm7, %v3742_v58, %v3744_v29  ;;  %vm3295_vm7 = vcmask 29696  }
 0x477   :  { %v4118_v43 = vpop.permute.xlu1 %4117  ;;  %v11156_v13 = vpop.permute.xlu0 %3660 }
 0x478   :  { %v4460_v20 = vsel %vm12561_vm12, %v4436_v23, %v4118_v43 }
 0x479   :  { %3900 = vrot.lane.b32.xlu1 %v3857_v2, %s6641_s19  ;;  %3446 = vrot.lane.b32.xlu0 %v11166_v40, %s6630_s16 }
 0x47a   :  { %v2954_v12 = vpop.f32.mrf.mxu0 }
 0x47b   :  { %v2955_v6 = vadd.f32 %v10883_v28, %v2954_v12  ;;  %v4187_v5 = vpop.permute.xlu1 %4186  ;;  %v11173_v21 = vpop.permute.xlu0 %3774  ;;  %v3858_v12 = vrot.slane %v11141_v19, 5 }
 0x47c   :  { %v6259_v50 = vpop.f32.mrf.mxu0 }
 0x47d   :  { %v3012_v60 = vmax.f32 %v2955_v6, 0.0  ;;  %3560 = vrot.lane.b32.xlu1 %v3517_v57, %s6635_s23  ;;  %4269 = vrot.lane.b32.xlu0 %v11080_v45, %s6645_s25  ;;  %v3971_v45 = vsel %vm1324_vm5, %v3968_v0, %v3970_v4  ;;  %v4484_v0 = vsel %vm4474_vm0, %v4460_v20, %v4187_v5  ;;  %v4318_v50 = vsel %vm12830_vm2, %v10514_v15, %v11109_v14 }
 0x47e   :  { %v2959_v34 = vpop.f32.mrf.mxu1  ;;  %v3972_v57 = vrot.slane %v11141_v19, 6 }
 0x47f   :  { %v3149_v54 = vrot.slane %v3012_v60, 1  ;;  %v2960_v7 = vadd.f32 %v10883_v28, %v2959_v34  ;;  %v11193_v25 = vpop.permute.xlu1 %3888  ;;  %v11195_v17 = vpop.permute.xlu0 %3434 }
 0x480   :  { %v6262_v61 = vpop.f32.mrf.mxu1 }
 0x481   :  { %v3150_v24 = vsel %vm140_vm1, %v11107_v32, %v3149_v54  ;;  %v3013_v38 = vmax.f32 %v2960_v7, 0.0  ;;  %3674 = vrot.lane.b32.xlu1 %v3631_v53, %s6639_s14  ;;  %4014 = vrot.lane.b32.xlu0 %v3971_v45, %s6642_s22 }
 0x482   :  { %v3245_v62 = vmax.f32 %v3011_v49, %v3150_v24  ;;  %v3404_v49 = vrot.slane %v11213_v31, 1  ;;  %v3746_v24 = vrot.slane %v11213_v31, 4 }
 0x483   :  { %v3151_v33 = vrot.slane %v3013_v38, 1  ;;  %v11219_v52 = vpop.permute.xlu1 %3548  ;;  %v4258_v46 = vpop.permute.xlu0 %4257 }
 0x484   :  { %3292 = vst.msk [vmem:[#allocation2 + $0x158] sm:$0xff] %vm12830_vm2, %v3245_v62  ;;  %v4508_v32 = vsel %vm4498_vm14, %v4484_v0, %v4258_v46  ;;  %v11247_v2 = vsel %vm140_vm1, %v3402_v22, %v3404_v49  ;;  %v3859_v22 = vsel %vm1087_vm4, %v3856_v8, %v3858_v12 }
 0x485   :  { %v3152_v11 = vsel %vm140_vm1, %v3149_v54, %v3151_v33  ;;  %3788 = vrot.lane.b32.xlu1 %v3745_v39, %s6640_s15  ;;  %4131 = vrot.lane.b32.xlu0 %v4086_v56, %s6643_s24 }
 0x486   :  { %v3246_v30 = vmax.f32 %v3012_v60, %v3152_v11  ;;  %v2964_v36 = vpop.f32.mrf.mxu1  ;;  %6304 = vmatmul.mubr.msk.f32.gmra.mxu1 %vm4534_vm3, %v4508_v32  ;;  %v4341_v60 = vsel %vm2418_vm15, %v4318_v50, %v11144_v26  ;;  %v4087_v26 = vrot.slane %v11141_v19, 7 }
 0x487   :  { %v2965_v58 = vadd.f32 %v10883_v28, %v2964_v36  ;;  %v11237_v35 = vpop.permute.xlu1 %3662  ;;  %v4003_v43 = vpop.permute.xlu0 %4002  ;;  %6306 = vmatprep.mubr.msk.f32.mxu1 %vm12792_vm13, %v6637_v47  ;;  %v4365_v15 = vsel %vm4354_vm11, %v4341_v60, %v11156_v13  ;;  %v3973_v13 = vsel %vm1324_vm5, %v3970_v4, %v3972_v57 }
 0x488   :  { %3293 = vst.msk [vmem:[#allocation2 + $0x160] sm:$0xff] %vm12830_vm2, %v3246_v30  ;;  %v6265_v48 = vpop.f32.mrf.mxu1  ;;  %v4389_v8 = vsel %vm12560_vm8, %v4365_v15, %v11173_v21  ;;  %vm12832_vm8 = vcmask 1045504   ;;  %v3632_v21 = vrot.slane %v11213_v31, 3  ;;  %v4319_v30 = vsel %vm12830_vm2, %v10582_v16, %v11195_v17 }
 0x489   :  { %v3014_v6 = vmax.f32 %v2965_v58, 0.0  ;;  %3448 = vrot.lane.b32.xlu1 %v11247_v2, %s6630_s16  ;;  %4200 = vrot.lane.b32.xlu0 %v11056_v18, %s6644_s21  ;;  %v4413_v7 = vsel %vm4402_vm9, %v4389_v8, %v11193_v25 }
 0x48a   :  { %v4437_v9 = vsel %vm4426_vm10, %v4413_v7, %v4003_v43  ;;  %v4342_v43 = vsel %vm2418_vm15, %v4319_v30, %v11219_v52 }
 0x48b   :  { %v3153_v28 = vrot.slane %v3014_v6, 1  ;;  %v11254_v5 = vpop.permute.xlu1 %3776  ;;  %v4120_v44 = vpop.permute.xlu0 %4119  ;;  %v4366_v48 = vsel %vm4354_vm11, %v4342_v43, %v11237_v35 }
 0x48c   :  { %v4461_v25 = vsel %vm12561_vm12, %v4437_v9, %v4120_v44 }
 0x48d   :  { %v3154_v59 = vsel %vm140_vm1, %v3151_v33, %v3153_v28  ;;  %v3248_v34 = vmax.f32 %v3014_v6, %v3153_v28  ;;  %4271 = vrot.lane.b32.xlu1 %v11166_v40, %s6645_s25  ;;  %3902 = vrot.lane.b32.xlu0 %v3859_v22, %s6641_s19  ;;  %v3519_v40 = vsel %vm12832_vm8, %v3516_v51, %v3518_v3  ;;  %vm12833_vm8 = vcmask 1044480   ;;  %v11359_v22 = vld [vmem:[#allocation2 + $0x150] ss:$2 sm:$0xff] }
 0x48e   :  { %v3247_v14 = vmax.f32 %v3013_v38, %v3154_v59  ;;  %v4088_v51 = vsel %vm12562_vm6, %v4085_v27, %v4087_v26  ;;  %v3633_v23 = vsel %vm12833_vm8, %v3630_v41, %v3632_v21  ;;  %v11306_v38 = vld [vmem:[#allocation2 + $0x140] ss:$2 sm:$0xff]  ;;  %v3860_v27 = vrot.slane %v11213_v31, 5 }
 0x48f   :  { %3296 = vst.msk [vmem:[#allocation2 + $0x170] sm:$0x3f] %vm3295_vm7, %v3248_v34  ;;  %v11274_v42 = vpop.permute.xlu1 %3436  ;;  %v4189_v54 = vpop.permute.xlu0 %4188  ;;  %vm12834_vm7 = vcmask 1043456   ;;  %v3406_v0 = vrot.slane %v11306_v38, 1  ;;  %v3520_v56 = vrot.slane %v11306_v38, 2  ;;  %vm12835_vm8 = vcmask 1045504  }
 0x490   :  { %3294 = vst.msk [vmem:[#allocation2 + $0x168] sm:$0xff] %vm12830_vm2, %v3247_v14  ;;  %v4485_v61 = vsel %vm4474_vm0, %v4461_v25, %v4189_v54  ;;  %v3747_v41 = vsel %vm12834_vm7, %v3744_v29, %v3746_v24  ;;  %v3861_v32 = vsel %vm1087_vm4, %v3858_v12, %v3860_v27  ;;  %v3634_v58 = vrot.slane %v11306_v38, 3  ;;  %v11398_v25 = vld [vmem:[%s12542_s4] ss:$0 sm:$0xff] }
 0x491   :  { %4016 = vrot.lane.b32.xlu1 %v3973_v13, %s6642_s22  ;;  %3562 = vrot.lane.b32.xlu0 %v3519_v40, %s6635_s23  ;;  %v3407_v39 = vsel %vm140_vm1, %v3404_v49, %v3406_v0  ;;  %v3521_v36 = vsel %vm12835_vm8, %v3518_v3, %v3520_v56  ;;  %v3974_v49 = vrot.slane %v11213_v31, 6  ;;  %vm12836_vm7 = vcmask 130048  }
 0x492   :  { %v4390_v17 = vsel %vm12836_vm7, %v4366_v48, %v11254_v5  ;;  %v4089_v28 = vrot.slane %v11213_v31, 7  ;;  %vm12837_vm2 = vcmask 1044480   ;;  %vm12838_vm8 = vcmask 1043456  }
 0x493   :  { %v4260_v53 = vpop.permute.xlu1 %4259  ;;  %v3891_v45 = vpop.permute.xlu0 %3890  ;;  %v3635_v50 = vsel %vm12837_vm2, %v3632_v21, %v3634_v58  ;;  %v3975_v35 = vsel %vm1324_vm5, %v3972_v57, %v3974_v49  ;;  %v3408_v8 = vrot.slane %v11359_v22, 1  ;;  %vm12839_vm7 = vcmask 31744  }
 0x494   :  { %v4509_v4 = vsel %vm4498_vm14, %v4485_v61, %v4260_v53  ;;  %v4414_v44 = vsel %vm4402_vm9, %v4390_v17, %v3891_v45  ;;  %v4090_v14 = vsel %vm12562_vm6, %v4087_v26, %v4089_v28  ;;  %v3862_v26 = vrot.slane %v11306_v38, 5 }
 0x495   :  { %4133 = vrot.lane.b32.xlu1 %v4088_v51, %s6643_s24  ;;  %3676 = vrot.lane.b32.xlu0 %v3633_v23, %s6639_s14  ;;  %v11383_v13 = vsel %vm140_vm1, %v3406_v0, %v3408_v8  ;;  %v4320_v9 = vsel %vm12839_vm7, %v10670_v55, %v11274_v42  ;;  %v3976_v53 = vrot.slane %v11306_v38, 6  ;;  %v3522_v45 = vrot.slane %v11359_v22, 2 }
 0x496   :  { %6307 = vmatmul.mubr.msk.f32.gmra.mxu1 %vm4534_vm3, %v4509_v4  ;;  %v3863_v61 = vsel %vm1087_vm4, %v3860_v27, %v3862_v26  ;;  %vm12840_vm2 = vcmask 130048   ;;  %v3636_v27 = vrot.slane %v11359_v22, 3  ;;  %vm12842_vm7 = vcmask 1044480  }
 0x497   :  { %v4005_v20 = vpop.permute.xlu1 %4004  ;;  %v11309_v62 = vpop.permute.xlu0 %3550  ;;  %6309 = vmatprep.mubr.msk.f32.mxu1 %vm12792_vm13, %v6637_v47  ;;  %v3750_v48 = vrot.slane %v11359_v22, 4  ;;  %v11440_v17 = vld [vmem:[#allocation2 + $0x160] ss:$2 sm:$0xff] }
 0x498   :  { %v4438_v5 = vsel %vm4426_vm10, %v4414_v44, %v4005_v20  ;;  %v3637_v43 = vsel %vm12842_vm7, %v3634_v58, %v3636_v27  ;;  %vm12845_vm7 = vcmask 31744  }
 0x499   :  { %4202 = vrot.lane.b32.xlu1 %v11141_v19, %s6644_s21  ;;  %3790 = vrot.lane.b32.xlu0 %v3747_v41, %s6640_s15 }
 0x49b   :  { %v4122_v33 = vpop.permute.xlu1 %4121  ;;  %v3665_v46 = vpop.permute.xlu0 %3664 }
 0x49c   :  { %v4462_v3 = vsel %vm12561_vm12, %v4438_v5, %v4122_v33 }
 0x49d   :  { %3904 = vrot.lane.b32.xlu1 %v3861_v32, %s6641_s19  ;;  %3450 = vrot.lane.b32.xlu0 %v3407_v39, %s6630_s16 }
 0x49f   :  { %v4191_v29 = vpop.permute.xlu1 %4190  ;;  %v3779_v11 = vpop.permute.xlu0 %3778 }
 0x4a0   :  { %v4486_v60 = vsel %vm4474_vm0, %v4462_v3, %v4191_v29 }
 0x4a1   :  { %3564 = vrot.lane.b32.xlu1 %v3521_v36, %s6635_s23  ;;  %4273 = vrot.lane.b32.xlu0 %v11247_v2, %s6645_s25  ;;  %v3748_v2 = vrot.slane %v11306_v38, 4 }
 0x4a2   :  { %v4670_v16 = vpop.f32.mrf.mxu1 }
 0x4a3   :  { %v3893_v12 = vpop.permute.xlu1 %3892  ;;  %v11345_v6 = vpop.permute.xlu0 %3438  ;;  %v3749_v57 = vsel %vm12838_vm8, %v3746_v24, %v3748_v2  ;;  %v4671_v4 = vadd.f32 %v11398_v25, %v4670_v16  ;;  %v4091_v24 = vrot.slane %v11306_v38, 7  ;;  %vm12841_vm8 = vcmask 1045504  }
 0x4a4   :  { %v6278_v52 = vpop.f32.mrf.mxu1  ;;  %v3523_v41 = vsel %vm12841_vm8, %v3520_v56, %v3522_v45  ;;  %vm12844_vm8 = vcmask 130048  }
 0x4a5   :  { %3678 = vrot.lane.b32.xlu1 %v3635_v50, %s6639_s14  ;;  %4018 = vrot.lane.b32.xlu0 %v3975_v35, %s6642_s22  ;;  %v4784_v32 = vmax.f32 %v4671_v4, 0.0  ;;  %v3864_v50 = vrot.slane %v11359_v22, 5  ;;  %v11452_v35 = vrot.slane %v11440_v17, 1 }
 0x4a7   :  { %v11363_v59 = vpop.permute.xlu1 %3552  ;;  %v4262_v34 = vpop.permute.xlu0 %4261 }
 0x4a8   :  { %v4510_v15 = vsel %vm4498_vm14, %v4486_v60, %v4262_v34 }
 0x4a9   :  { %3792 = vrot.lane.b32.xlu1 %v3749_v57, %s6640_s15  ;;  %4135 = vrot.lane.b32.xlu0 %v4090_v14, %s6643_s24  ;;  %v3524_v57 = vrot.slane %v11440_v17, 2 }
 0x4aa   :  { %6310 = vmatmul.mubr.msk.f32.gmra.mxu1 %vm4534_vm3, %v4510_v15  ;;  %v3411_v15 = vsel %vm140_vm1, %v3408_v8, %v11452_v35  ;;  %v3978_v8 = vrot.slane %v11359_v22, 6 }
 0x4ab   :  { %v11376_v54 = vpop.permute.xlu1 %3666  ;;  %v4007_v7 = vpop.permute.xlu0 %4006  ;;  %6312 = vmatprep.mubr.msk.f32.mxu1 %vm12792_vm13, %v6637_v47 }
 0x4ad   :  { %3452 = vrot.lane.b32.xlu1 %v11383_v13, %s6630_s16  ;;  %4204 = vrot.lane.b32.xlu0 %v11213_v31, %s6644_s21  ;;  %v4343_v31 = vsel %vm2418_vm15, %v4320_v9, %v11309_v62  ;;  %v3977_v62 = vsel %vm1324_vm5, %v3974_v49, %v3976_v53  ;;  %v4092_v49 = vsel %vm12562_vm6, %v4089_v28, %v4091_v24  ;;  %v3638_v9 = vrot.slane %v11440_v17, 3 }
 0x4ae   :  { %v4367_v55 = vsel %vm4354_vm11, %v4343_v31, %v3665_v46 }
 0x4af   :  { %v11390_v40 = vpop.permute.xlu1 %3780  ;;  %v4124_v21 = vpop.permute.xlu0 %4123  ;;  %v4391_v42 = vsel %vm12840_vm2, %v4367_v55, %v3779_v11  ;;  %vm12843_vm2 = vcmask 1043456  }
 0x4b0   :  { %v4415_v20 = vsel %vm4402_vm9, %v4391_v42, %v3893_v12  ;;  %v4830_v12 = vrot.slane %v4784_v32, 1  ;;  %v3751_v58 = vsel %vm12843_vm2, %v3748_v2, %v3750_v48  ;;  %v3865_v2 = vsel %vm1087_vm4, %v3862_v26, %v3864_v50 }
 0x4b1   :  { %4275 = vrot.lane.b32.xlu1 %v3407_v39, %s6645_s25  ;;  %3906 = vrot.lane.b32.xlu0 %v3863_v61, %s6641_s19  ;;  %v4439_v0 = vsel %vm4426_vm10, %v4415_v20, %v4007_v7  ;;  %vm12846_vm2 = vcmask 1045504  }
 0x4b2   :  { %v4463_v33 = vsel %vm12561_vm12, %v4439_v0, %v4124_v21  ;;  %v4321_v21 = vsel %vm12845_vm7, %v10737_v1, %v11345_v6  ;;  %v3525_v26 = vsel %vm12846_vm2, %v3522_v45, %v3524_v57  ;;  %vm12847_vm7 = vcmask 1044480  }
 0x4b3   :  { %v11410_v51 = vpop.permute.xlu1 %3440  ;;  %v4193_v23 = vpop.permute.xlu0 %4192  ;;  %v4344_v61 = vsel %vm2418_vm15, %v4321_v21, %v11363_v59  ;;  %v4093_v59 = vrot.slane %v11359_v22, 7  ;;  %vm12848_vm2 = vcmask 1043456  }
 0x4b4   :  { %v4487_v39 = vsel %vm4474_vm0, %v4463_v33, %v4193_v23  ;;  %v4368_v31 = vsel %vm4354_vm11, %v4344_v61, %v11376_v54  ;;  %v3979_v54 = vsel %vm1324_vm5, %v3976_v53, %v3978_v8 }
 0x4b5   :  { %4020 = vrot.lane.b32.xlu1 %v3977_v62, %s6642_s22  ;;  %3566 = vrot.lane.b32.xlu0 %v3523_v41, %s6635_s23  ;;  %v4392_v6 = vsel %vm12844_vm8, %v4368_v31, %v11390_v40  ;;  %v3752_v40 = vrot.slane %v11440_v17, 4 }
 0x4b6   :  { %v4675_v46 = vpop.f32.mrf.mxu1 }
 0x4b7   :  { %v11427_v29 = vadd.f32 %v11398_v25, %v4675_v46  ;;  %v4264_v11 = vpop.permute.xlu1 %4263  ;;  %v3895_v30 = vpop.permute.xlu0 %3894 }
 0x4b8   :  { %v4511_v56 = vsel %vm4498_vm14, %v4487_v39, %v4264_v11  ;;  %v6281_v36 = vpop.f32.mrf.mxu1  ;;  %v4416_v4 = vsel %vm4402_vm9, %v4392_v6, %v3895_v30  ;;  %v4094_v39 = vsel %vm12562_vm6, %v4091_v24, %v4093_v59 }
 0x4b9   :  { %v4785_v16 = vmax.f32 %v11427_v29, 0.0  ;;  %4137 = vrot.lane.b32.xlu1 %v4092_v49, %s6643_s24  ;;  %3680 = vrot.lane.b32.xlu0 %v3637_v43, %s6639_s14  ;;  %v3866_v36 = vrot.slane %v11440_v17, 5 }
 0x4ba   :  { %6313 = vmatmul.mubr.msk.f32.gmra.mxu1 %vm4534_vm3, %v4511_v56 }
 0x4bb   :  { %v4831_v44 = vrot.slane %v4785_v16, 1  ;;  %v4009_v52 = vpop.permute.xlu1 %4008  ;;  %v11443_v28 = vpop.permute.xlu0 %3554  ;;  %6315 = vmatprep.mubr.msk.f32.mxu1 %vm12792_vm13, %v6637_v47 }
 0x4bc   :  { %v4440_v20 = vsel %vm4426_vm10, %v4416_v4, %v4009_v52 }
 0x4bd   :  { %v4832_v5 = vsel %vm140_vm1, %v4830_v12, %v4831_v44  ;;  %4206 = vrot.lane.b32.xlu1 %v11306_v38, %s6644_s21  ;;  %3794 = vrot.lane.b32.xlu0 %v3751_v58, %s6640_s15 }
 0x4be   :  { %v4898_v3 = vmax.f32 %v4784_v32, %v4832_v5  ;;  %v3753_v32 = vsel %vm12848_vm2, %v3750_v48, %v3752_v40  ;;  %v3867_v48 = vsel %vm1087_vm4, %v3864_v50, %v3866_v36  ;;  %vm12850_vm2 = vmmov %vm12844_vm8  ;;  %v4095_v5 = vrot.slane %v11440_v17, 7 }
 0x4bf   :  { %v4126_v60 = vpop.permute.xlu1 %4125  ;;  %v3669_v34 = vpop.permute.xlu0 %3668 }
 0x4c0   :  { %4921 = vst.msk [vmem:[#allocation3] sm:$0xff] %vm12844_vm8, %v4898_v3  ;;  %v4464_v41 = vsel %vm12561_vm12, %v4440_v20, %v4126_v60 }
 0x4c1   :  { %3908 = vrot.lane.b32.xlu1 %v3865_v2, %s6641_s19  ;;  %3454 = vrot.lane.b32.xlu0 %v3411_v15, %s6630_s16 }
 0x4c3   :  { %v4195_v14 = vpop.permute.xlu1 %4194  ;;  %v3783_v7 = vpop.permute.xlu0 %3782 }
 0x4c4   :  { %v4488_v0 = vsel %vm4474_vm0, %v4464_v41, %v4195_v14 }
 0x4c5   :  { %3568 = vrot.lane.b32.xlu1 %v3525_v26, %s6635_s23  ;;  %4277 = vrot.lane.b32.xlu0 %v11383_v13, %s6645_s25  ;;  %v3639_v13 = vsel %vm12847_vm7, %v3636_v27, %v3638_v9  ;;  %vm12849_vm7 = vcmask 31744   ;;  %v4096_v26 = vsel %vm12562_vm6, %v4093_v59, %v4095_v5 }
 0x4c6   :  { %v4680_v1 = vpop.f32.mrf.mxu1  ;;  %v4322_v43 = vsel %vm12849_vm7, %v10828_v10, %v11410_v51 }
 0x4c7   :  { %v11487_v45 = vadd.f32 %v11398_v25, %v4680_v1  ;;  %v3897_v55 = vpop.permute.xlu1 %3896  ;;  %v11489_v42 = vpop.permute.xlu0 %3442  ;;  %v4345_v12 = vsel %vm2418_vm15, %v4322_v43, %v11443_v28 }
 0x4c8   :  { %v6284_v23 = vpop.f32.mrf.mxu1 }
 0x4c9   :  { %v4786_v62 = vmax.f32 %v11487_v45, 0.0  ;;  %3682 = vrot.lane.b32.xlu1 %v3639_v13, %s6639_s14  ;;  %4022 = vrot.lane.b32.xlu0 %v3979_v54, %s6642_s22 }
 0x4cb   :  { %v4833_v27 = vrot.slane %v4786_v62, 1  ;;  %v11508_v33 = vpop.permute.xlu1 %3556  ;;  %v4266_v53 = vpop.permute.xlu0 %4265 }
 0x4cc   :  { %v4512_v46 = vsel %vm4498_vm14, %v4488_v0, %v4266_v53 }
 0x4cd   :  { %v4834_v29 = vsel %vm140_vm1, %v4831_v44, %v4833_v27  ;;  %3796 = vrot.lane.b32.xlu1 %v3753_v32, %s6640_s15  ;;  %4139 = vrot.lane.b32.xlu0 %v4094_v39, %s6643_s24  ;;  %v4369_v44 = vsel %vm4354_vm11, %v4345_v12, %v3669_v34 }
 0x4ce   :  { %v4899_v11 = vmax.f32 %v4785_v16, %v4834_v29  ;;  %6316 = vmatmul.mubr.msk.f32.gmra.mxu1 %vm4534_vm3, %v4512_v46  ;;  %v3980_v16 = vrot.slane %v11440_v17, 6  ;;  %v4393_v52 = vsel %vm12850_vm2, %v4369_v44, %v3783_v7 }
 0x4cf   :  { %v11521_v30 = vpop.permute.xlu1 %3670  ;;  %v4011_v56 = vpop.permute.xlu0 %4010  ;;  %6318 = vmatprep.mubr.msk.f32.mxu1 %vm12792_vm13, %v6637_v47  ;;  %v4417_v51 = vsel %vm4402_vm9, %v4393_v52, %v3897_v55 }
 0x4d0   :  { %4922 = vst.msk [vmem:[#allocation3 + $0x8] sm:$0xff] %vm12844_vm8, %v4899_v11  ;;  %v3981_v50 = vsel %vm1324_vm5, %v3978_v8, %v3980_v16  ;;  %v4441_v3 = vsel %vm4426_vm10, %v4417_v51, %v4011_v56  ;;  %vm12851_vm8 = vmmov %vm12850_vm2 }
 0x4d1   :  { %3456 = vrot.lane.b32.xlu1 %v11452_v35, %s6630_s16  ;;  %4208 = vrot.lane.b32.xlu0 %v11359_v22, %s6644_s21 }
 0x4d3   :  { %v3785_v24 = vpop.permute.xlu1 %3784  ;;  %v4128_v49 = vpop.permute.xlu0 %4127 }
 0x4d4   :  { %v4465_v28 = vsel %vm12561_vm12, %v4441_v3, %v4128_v49 }
 0x4d5   :  { %4279 = vrot.lane.b32.xlu1 %v3411_v15, %s6645_s25  ;;  %3910 = vrot.lane.b32.xlu0 %v3867_v48, %s6641_s19 }
 0x4d7   :  { %v11544_v58 = vpop.permute.xlu1 %3444  ;;  %v4197_v10 = vpop.permute.xlu0 %4196 }
 0x4d8   :  { %v4489_v34 = vsel %vm4474_vm0, %v4465_v28, %v4197_v10  ;;  %v4324_v44 = vsel %vm12849_vm7, %v10994_v37, %v11544_v58  ;;  %v11611_v10 = vld [vmem:[#allocation3] ss:$2 sm:$0xff] }
 0x4d9   :  { %4024 = vrot.lane.b32.xlu1 %v3981_v50, %s6642_s22  ;;  %3570 = vrot.lane.b32.xlu0 %v3524_v57, %s6635_s23  ;;  %v3343_v57 = vld [vmem:[#allocation2 + $0x170] ss:$2 sm:$0x7] }
 0x4da   :  { %v4685_v60 = vpop.f32.mrf.mxu1  ;;  %v4237_v6 = vrot.slane %v3343_v57, 1  ;;  %v4097_v13 = vrot.slane %v3343_v57, 7 }
 0x4db   :  { %v4686_v2 = vadd.f32 %v11398_v25, %v4685_v60  ;;  %v4268_v15 = vpop.permute.xlu1 %4267  ;;  %v3899_v14 = vpop.permute.xlu0 %3898 }
 0x4dc   :  { %v4513_v7 = vsel %vm4498_vm14, %v4489_v34, %v4268_v15  ;;  %v6287_v21 = vpop.f32.mrf.mxu1  ;;  %v4238_v23 = vsel %vm140_vm1, %v11452_v35, %v4237_v6  ;;  %v4098_v45 = vsel %vm12562_vm6, %v4095_v5, %v4097_v13  ;;  %v4979_v34 = vrot.slane %v11611_v10, 1  ;;  %v5431_v13 = vld [vmem:[%s12543_s5 + $0x68] sm:$0xff] }
 0x4dd   :  { %v4787_v8 = vmax.f32 %v4686_v2, 0.0  ;;  %4141 = vrot.lane.b32.xlu1 %v4096_v26, %s6643_s24  ;;  %3684 = vrot.lane.b32.xlu0 %v3638_v9, %s6639_s14 }
 0x4de   :  { %6319 = vmatmul.mubr.msk.f32.gmra.mxu1 %vm4534_vm3, %v4513_v7 }
 0x4df   :  { %v4835_v61 = vrot.slane %v4787_v8, 1  ;;  %v4013_v31 = vpop.permute.xlu1 %4012  ;;  %v3559_v1 = vpop.permute.xlu0 %3558  ;;  %6321 = vmatprep.mubr.msk.f32.mxu1 %vm12792_vm13, %v6637_v47 }
 0x4e0   :  { %v4347_v52 = vsel %vm2418_vm15, %v4324_v44, %v3559_v1 }
 0x4e1   :  { %v4836_v55 = vsel %vm140_vm1, %v4833_v27, %v4835_v61  ;;  %4210 = vrot.lane.b32.xlu1 %v11440_v17, %s6644_s21  ;;  %3798 = vrot.lane.b32.xlu0 %v3752_v40, %s6640_s15  ;;  %v4323_v40 = vsel %vm12849_vm7, %v10903_v63, %v11489_v42 }
 0x4e2   :  { %v4900_v9 = vmax.f32 %v4786_v62, %v4836_v55  ;;  %v4346_v62 = vsel %vm2418_vm15, %v4323_v40, %v11508_v33  ;;  %v5430_v40 = vld [vmem:[%s12543_s5 + $0x60] sm:$0xff] }
 0x4e3   :  { %v4130_v59 = vpop.permute.xlu1 %4129  ;;  %v3673_v4 = vpop.permute.xlu0 %3672  ;;  %v4370_v35 = vsel %vm4354_vm11, %v4346_v62, %v11521_v30 }
 0x4e4   :  { %4923 = vst.msk [vmem:[#allocation3 + $0x10] sm:$0xff] %vm12851_vm8, %v4900_v9  ;;  %v4394_v0 = vsel %vm12850_vm2, %v4370_v35, %v3785_v24  ;;  %vm12852_vm8 = vmmov %vm12850_vm2  ;;  %v4371_v51 = vsel %vm4354_vm11, %v4347_v52, %v3673_v4  ;;  %v5433_v9 = vld [vmem:[%s12543_s5 + $0x78] sm:$0xff] }
 0x4e5   :  { %4281 = vrot.lane.b32.xlu1 %v4238_v23, %s6645_s25  ;;  %3912 = vrot.lane.b32.xlu0 %v3866_v36, %s6641_s19  ;;  %v4418_v63 = vsel %vm4402_vm9, %v4394_v0, %v3899_v14  ;;  %v5428_v0 = vld [vmem:[%s12543_s5 + $0x50] sm:$0xff] }
 0x4e6   :  { %v4442_v33 = vsel %vm4426_vm10, %v4418_v63, %v4013_v31  ;;  %5476 = vmatpush1.msra.mxu1 %v5433_v9  ;;  %v5419_v9 = vld [vmem:[%s12543_s5 + $0x8] sm:$0xff] }
 0x4e7   :  { %v4199_v54 = vpop.permute.xlu1 %4198  ;;  %v3787_v20 = vpop.permute.xlu0 %3786  ;;  %v4466_v39 = vsel %vm12561_vm12, %v4442_v33, %v4130_v59  ;;  %v5432_v59 = vld [vmem:[%s12543_s5 + $0x70] sm:$0xff]  ;;  %5477 = vmatprep.subr.mxu1 %v6637_v47 }
 0x4e8   :  { %v4490_v29 = vsel %vm4474_vm0, %v4466_v39, %v4199_v54  ;;  %v4395_v50 = vsel %vm12850_vm2, %v4371_v51, %v3787_v20  ;;  %5478 = vmatpush1.msra.mxu1 %v5432_v59  ;;  %v5424_v51 = vld [vmem:[%s12543_s5 + $0x30] sm:$0xff] }
 0x4e9   :  { %4143 = vrot.lane.b32.xlu1 %v4098_v45, %s6643_s24  ;;  %4026 = vrot.lane.b32.xlu0 %v3980_v16, %s6642_s22  ;;  %v5429_v45 = vld [vmem:[%s12543_s5 + $0x58] sm:$0xff]  ;;  %s6648_s22 = smov 80   ;;  %s6649_s24 = smov 96  }
 0x4ea   :  { %v4690_v41 = vpop.f32.mrf.mxu1  ;;  %5479 = vmatprep.subr.mxu1 %v6637_v47 }
 0x4eb   :  { %v4691_v27 = vadd.f32 %v11398_v25, %v4690_v41  ;;  %v3901_v53 = vpop.permute.xlu1 %3900  ;;  %v11591_v46 = vpop.permute.xlu0 %3446  ;;  %5480 = vmatpush1.msra.mxu1 %v5431_v13  ;;  %v5132_v13 = vrot.slane %v11611_v10, 4 }
 0x4ec   :  { %v6290_v42 = vpop.f32.mrf.mxu1  ;;  %v4419_v60 = vsel %vm4402_vm9, %v4395_v50, %v3901_v53  ;;  %5481 = vmatprep.subr.mxu1 %v6637_v47  ;;  %v4325_v41 = vsel %vm12849_vm7, %v11056_v18, %v11591_v46 }
 0x4ed   :  { %v4788_v32 = vmax.f32 %v4691_v27, 0.0  ;;  %4283 = vrot.lane.b32.xlu1 %v4237_v6, %s6645_s25  ;;  %4212 = vrot.lane.b32.xlu0 %v3343_v57, %s6644_s21  ;;  %v5427_v42 = vld [vmem:[%s12543_s5 + $0x48] sm:$0xff] }
 0x4ee   :  { %5482 = vmatpush1.msra.mxu1 %v5430_v40 }
 0x4ef   :  { %v4837_v11 = vrot.slane %v4788_v32, 1  ;;  %v11599_v30 = vpop.permute.xlu1 %3560  ;;  %v4270_v56 = vpop.permute.xlu0 %4269  ;;  %5483 = vmatprep.subr.mxu1 %v6637_v47 }
 0x4f0   :  { %v4514_v36 = vsel %vm4498_vm14, %v4490_v29, %v4270_v56  ;;  %v4348_v27 = vsel %vm2418_vm15, %v4325_v41, %v11599_v30  ;;  %5484 = vmatpush1.msra.mxu1 %v5429_v45 }
 0x4f1   :  { %v4838_v24 = vsel %vm140_vm1, %v4835_v61, %v4837_v11  ;;  %6322 = vmatmul.mubr.msk.f32.gmra.mxu1 %vm4534_vm3, %v4514_v36  ;;  %5485 = vmatprep.subr.mxu1 %v6637_v47  ;;  %v5426_v36 = vld [vmem:[%s12543_s5 + $0x40] sm:$0xff] }
 0x4f2   :  { %v4901_v49 = vmax.f32 %v4787_v8, %v4838_v24  ;;  %6324 = vmatprep.mubr.msk.f32.mxu1 %vm12792_vm13, %v6637_v47  ;;  %5486 = vmatpush1.msra.mxu1 %v5428_v0 }
 0x4f3   :  { %v3675_v43 = vpop.permute.xlu1 %3674  ;;  %v4015_v48 = vpop.permute.xlu0 %4014  ;;  %5487 = vmatprep.subr.mxu1 %v6637_v47 }
 0x4f4   :  { %4924 = vst.msk [vmem:[#allocation3 + $0x18] sm:$0xff] %vm12852_vm8, %v4901_v49  ;;  %v4443_v37 = vsel %vm4426_vm10, %v4419_v60, %v4015_v48  ;;  %vm12853_vm8 = vmmov %vm12850_vm2  ;;  %v4372_v53 = vsel %vm4354_vm11, %v4348_v27, %v3675_v43  ;;  %5488 = vmatpush1.msra.mxu1 %v5427_v42  ;;  %v5423_v60 = vld [vmem:[%s12543_s5 + $0x28] sm:$0xff] }
 0x4f5   :  { %5489 = vmatprep.subr.mxu1 %v6637_v47 }
 0x4f6   :  { %5490 = vmatpush1.msra.mxu1 %v5426_v36 }
 0x4f7   :  { %v3789_v16 = vpop.permute.xlu1 %3788  ;;  %v4132_v12 = vpop.permute.xlu0 %4131  ;;  %5491 = vmatprep.subr.mxu1 %v6637_v47 }
 0x4f8   :  { %v4467_v58 = vsel %vm12561_vm12, %v4443_v37, %v4132_v12  ;;  %v4396_v18 = vsel %vm12850_vm2, %v4372_v53, %v3789_v16  ;;  %v5425_v12 = vld [vmem:[%s12543_s5 + $0x38] sm:$0xff]  ;;  %v5418_v53 = vld [vmem:[%s12543_s5] sm:$0xff] }
 0x4f9   :  { %5492 = vmatpush1.msra.mxu1 %v5425_v12 }
 0x4fa   :  { %5493 = vmatprep.subr.mxu1 %v6637_v47 }
 0x4fb   :  { %v11615_v5 = vpop.permute.xlu1 %3448  ;;  %v4201_v3 = vpop.permute.xlu0 %4200  ;;  %v11617_v28 = vld [vmem:[#allocation3 + $0x10] ss:$2 sm:$0xff]  ;;  %5494 = vmatpush1.msra.mxu1 %v5424_v51 }
 0x4fc   :  { %v4980_v2 = vrot.slane %v11617_v28, 1  ;;  %v4491_v7 = vsel %vm4474_vm0, %v4467_v58, %v4201_v3  ;;  %5495 = vmatprep.subr.mxu1 %v6637_v47  ;;  %v4326_v37 = vsel %vm12849_vm7, %v11141_v19, %v11615_v5  ;;  %v5420_v19 = vld [vmem:[%s12543_s5 + $0x10] sm:$0xff]  ;;  %v5133_v40 = vrot.slane %v11617_v28, 4 }
 0x4fd   :  { %5496 = vmatpush1.msra.mxu1 %v5423_v60  ;;  %v5235_v51 = vrot.slane %v11617_v28, 6 }
 0x4fe   :  { %v4695_v15 = vpop.f32.mrf.mxu1  ;;  %v4981_v14 = vsel %vm140_vm1, %v4979_v34, %v4980_v2  ;;  %v5422_v34 = vld [vmem:[%s12543_s5 + $0x20] sm:$0xff]  ;;  %5497 = vmatprep.subr.mxu1 %v6637_v47 }
 0x4ff   :  { %v11629_v21 = vadd.f32 %v11398_v25, %v4695_v15  ;;  %5000 = vrot.lane.b32.xlu0 %v4981_v14, %s6640_s15  ;;  %v4272_v26 = vpop.permute.xlu1 %4271  ;;  %v3903_v8 = vpop.permute.xlu0 %3902  ;;  %v5421_v14 = vld [vmem:[%s12543_s5 + $0x18] sm:$0xff]  ;;  %5498 = vmatpush1.msra.mxu1 %v5422_v34 }
 0x500   :  { %v4515_v57 = vsel %vm4498_vm14, %v4491_v7, %v4272_v26  ;;  %v6293_v61 = vpop.f32.mrf.mxu1  ;;  %v4420_v39 = vsel %vm4402_vm9, %v4396_v18, %v3903_v8  ;;  %v5031_v26 = vrot.slane %v11617_v28, 2  ;;  %5499 = vmatprep.subr.mxu1 %v6637_v47  ;;  %v5082_v8 = vrot.slane %v11617_v28, 3 }
 0x501   :  { %v4789_v31 = vmax.f32 %v11629_v21, 0.0  ;;  %6325 = vmatmul.mubr.msk.f32.gmra.mxu1 %vm4534_vm3, %v4515_v57 }
 0x502   :  { %6327 = vmatprep.mubr.msk.f32.mxu1 %vm12792_vm13, %v6637_v47  ;;  %5500 = vmatpush1.msra.mxu1 %v5421_v14  ;;  %v5234_v14 = vrot.slane %v11611_v10, 6 }
 0x503   :  { %v4839_v1 = vrot.slane %v4789_v31, 1  ;;  %v4017_v6 = vpop.permute.xlu1 %4016  ;;  %v11637_v55 = vpop.permute.xlu0 %3562  ;;  %5501 = vmatprep.subr.mxu1 %v6637_v47 }
 0x504   :  { %v4349_v7 = vsel %vm2418_vm15, %v4326_v37, %v11637_v55  ;;  %v5081_v55 = vrot.slane %v11611_v10, 3  ;;  %5502 = vmatpush1.msra.mxu1 %v5420_v19 }
 0x505   :  { %v4840_v4 = vsel %vm140_vm1, %v4837_v11, %v4839_v1  ;;  %v4444_v11 = vsel %vm4426_vm10, %v4420_v39, %v4017_v6  ;;  %v5030_v6 = vrot.slane %v11611_v10, 2  ;;  %5503 = vmatprep.subr.mxu1 %v6637_v47 }
 0x506   :  { %v4902_v23 = vmax.f32 %v4788_v32, %v4840_v4  ;;  %5504 = vmatpush1.msra.mxu1 %v5419_v9 }
 0x507   :  { %v4134_v54 = vpop.permute.xlu1 %4133  ;;  %v11650_v20 = vpop.permute.xlu0 %3676  ;;  %5505 = vmatprep.subr.mxu1 %v6637_v47 }
 0x508   :  { %4925 = vst.msk [vmem:[#allocation3 + $0x20] sm:$0xff] %vm12853_vm8, %v4902_v23  ;;  %v4468_v56 = vsel %vm12561_vm12, %v4444_v11, %v4134_v54  ;;  %vm12854_vm8 = vmmov %vm12850_vm2  ;;  %v4373_v21 = vsel %vm4354_vm11, %v4349_v7, %v11650_v20  ;;  %5506 = vmatpush1.msra.mxu1 %v5418_v53  ;;  %v5436_v7 = vld [vmem:[%s12543_s5 + $0x90] sm:$0xff] }
 0x509   :  { %5531 = vmatprep.subr.mxu1 %v6637_v47 }
 0x50b   :  { %v4203_v62 = vpop.permute.xlu1 %4202  ;;  %v3791_v35 = vpop.permute.xlu0 %3790 }
 0x50c   :  { %v4492_v24 = vsel %vm4474_vm0, %v4468_v56, %v4203_v62  ;;  %v4397_v5 = vsel %vm12850_vm2, %v4373_v21, %v3791_v35  ;;  %vm12857_vm2 = vcmask 1044480  }
 0x50d   :  { %v5083_v0 = vsel %vm12857_vm2, %v5081_v55, %v5082_v8  ;;  %v5286_v55 = vrot.slane %v11617_v28, 7 }
 0x50e   :  { %v4700_v63 = vpop.f32.mrf.mxu1 }
 0x50f   :  { %v11677_v46 = vadd.f32 %v11398_v25, %v4700_v63  ;;  %v3905_v33 = vpop.permute.xlu1 %3904  ;;  %v11679_v32 = vpop.permute.xlu0 %3450 }
 0x510   :  { %v6296_v29 = vpop.f32.mrf.mxu1  ;;  %v4421_v57 = vsel %vm4402_vm9, %v4397_v5, %v3905_v33 }
 0x511   :  { %v4790_v30 = vmax.f32 %v11677_v46, 0.0 }
 0x513   :  { %v11693_v49 = vrot.slane %v4790_v30, 1  ;;  %v11695_v43 = vpop.permute.xlu1 %3564  ;;  %v4274_v48 = vpop.permute.xlu0 %4273 }
 0x514   :  { %v4516_v16 = vsel %vm4498_vm14, %v4492_v24, %v4274_v48 }
 0x515   :  { %v4842_v44 = vsel %vm140_vm1, %v4839_v1, %v11693_v49  ;;  %6328 = vmatmul.mubr.msk.f32.gmra.mxu1 %vm4534_vm3, %v4516_v16  ;;  %v5437_v16 = vld [vmem:[%s12543_s5 + $0x98] sm:$0xff] }
 0x516   :  { %v4903_v52 = vmax.f32 %v4789_v31, %v4842_v44  ;;  %6330 = vmatprep.mubr.msk.f32.mxu1 %vm12792_vm13, %v6637_v47  ;;  %5532 = vmatpush2.msra.mxu1 %v5437_v16 }
 0x517   :  { %v11710_v50 = vpop.permute.xlu1 %3678  ;;  %v4019_v3 = vpop.permute.xlu0 %4018  ;;  %5533 = vmatprep.subr.mxu1 %v6637_v47 }
 0x518   :  { %4926 = vst.msk [vmem:[#allocation3 + $0x28] sm:$0xff] %vm12854_vm8, %v4903_v52  ;;  %v4445_v59 = vsel %vm4426_vm10, %v4421_v57, %v4019_v3  ;;  %vm12855_vm8 = vcmask 1045504   ;;  %v5184_v52 = vrot.slane %v11617_v28, 5  ;;  %5534 = vmatpush2.msra.mxu1 %v5436_v7 }
 0x519   :  { %v5032_v20 = vsel %vm12855_vm8, %v5030_v6, %v5031_v26  ;;  %vm12856_vm7 = vmmov %vm12855_vm8  ;;  %v5236_v6 = vsel %vm1324_vm5, %v5234_v14, %v5235_v51  ;;  %5535 = vmatprep.subr.mxu1 %v6637_v47 }
 0x51b   :  { %v11724_v58 = vpop.permute.xlu1 %3792  ;;  %v4136_v15 = vpop.permute.xlu0 %4135 }
 0x51c   :  { %v4469_v54 = vsel %vm12561_vm12, %v4445_v59, %v4136_v15  ;;  %vm12858_vm12 = vmmov %vm12857_vm2  ;;  %v5183_v15 = vrot.slane %v11611_v10, 5  ;;  %vm12862_vm2 = vcmask 31744  }
 0x51f   :  { %v11742_v61 = vpop.permute.xlu1 %3452  ;;  %v4205_v31 = vpop.permute.xlu0 %4204  ;;  %v11744_v1 = vld [vmem:[#allocation3 + $0x20] ss:$2 sm:$0xff] }
 0x520   :  { %v5033_v4 = vrot.slane %v11744_v1, 2  ;;  %v5084_v23 = vrot.slane %v11744_v1, 3  ;;  %v5135_v45 = vrot.slane %v11744_v1, 4  ;;  %v4493_v62 = vsel %vm4474_vm0, %v4469_v54, %v4205_v31 }
 0x521   :  { %v4982_v29 = vrot.slane %v11744_v1, 1  ;;  %v5186_v24 = vrot.slane %v11744_v1, 5  ;;  %v5237_v48 = vrot.slane %v11744_v1, 6  ;;  %v5288_v5 = vrot.slane %v11744_v1, 7 }
 0x522   :  { %v4705_v35 = vpop.f32.mrf.mxu1  ;;  %v5034_v41 = vsel %vm12856_vm7, %v5031_v26, %v5033_v4  ;;  %v5085_v27 = vsel %vm12858_vm12, %v5082_v8, %v5084_v23  ;;  %vm12859_vm12 = vcmask 1043456   ;;  %v5185_v31 = vsel %vm1087_vm4, %v5183_v15, %v5184_v52 }
 0x523   :  { %v11773_v63 = vadd.f32 %v11398_v25, %v4705_v35  ;;  %v4276_v42 = vpop.permute.xlu1 %4275  ;;  %v11775_v18 = vpop.permute.xlu0 %3906  ;;  %v6443_v33 = vpack.i.bf16 %v5034_v41, %v5032_v20  ;;  %v6448_v39 = vpack.i.bf16 %v5085_v27, %v5083_v0  ;;  %v5136_v36 = vsel %vm12859_vm12, %v5133_v40, %v5135_v45  ;;  %vm12860_vm8 = vmmov %vm12859_vm12  ;;  %v6604_v41 = vld [vmem:[#allocation2 + $0x130] ss:$2 sm:$0xff] }
 0x524   :  { %v4517_v11 = vsel %vm4498_vm14, %v4493_v62, %v4276_v42  ;;  %v6299_v56 = vpop.f32.mrf.mxu1  ;;  %v5134_v44 = vsel %vm12860_vm8, %v5132_v13, %v5133_v40  ;;  %v4983_v21 = vsel %vm140_vm1, %v4980_v2, %v4982_v29  ;;  %v5187_v26 = vsel %vm1087_vm4, %v5184_v52, %v5186_v24  ;;  %v5435_v2 = vld [vmem:[%s12543_s5 + $0x88] sm:$0xff] }
 0x525   :  { %v4791_v12 = vmax.f32 %v11773_v63, 0.0  ;;  %6444 = vrot.lane.b32.xlu1 %v6443_v33, %s6644_s21  ;;  %6449 = vrot.lane.b32.xlu0 %v6448_v39, %s6646_s3  ;;  %v6453_v37 = vpack.i.bf16 %v5136_v36, %v5134_v44  ;;  %v5238_v19 = vsel %vm1324_vm5, %v5235_v51, %v5237_v48  ;;  %v6458_v59 = vpack.i.bf16 %v5187_v26, %v5185_v31 }
 0x526   :  { %6331 = vmatmul.mubr.msk.f32.gmra.mxu1 %vm4534_vm3, %v4517_v11  ;;  %v6463_v13 = vpack.i.bf16 %v5238_v19, %v5236_v6  ;;  %vm12861_vm7 = vcmask 130048   ;;  %v5285_v54 = vrot.slane %v11611_v10, 7  ;;  %v5289_v46 = vsel %vm12562_vm6, %v5286_v55, %v5288_v5 }
 0x527   :  { %v11798_v3 = vrot.slane %v4791_v12, 1  ;;  %v4021_v60 = vpop.permute.xlu1 %4020  ;;  %v11800_v34 = vpop.permute.xlu0 %3566  ;;  %6333 = vmatprep.mubr.msk.f32.mxu1 %vm12792_vm13, %v6637_v47  ;;  %5536 = vmatpush2.msra.mxu1 %v5435_v2  ;;  %v4327_v0 = vsel %vm12862_vm2, %v6604_v41, %v11679_v32  ;;  %vm12863_vm12 = vmmov %vm12861_vm7  ;;  %vm12864_vm8 = vcmask 228352   ;;  %v4328_v26 = vsel %vm12862_vm2, %v11306_v38, %v11742_v61 }
 0x528   :  { %v5287_v20 = vsel %vm12562_vm6, %v5285_v54, %v5286_v55  ;;  %5537 = vmatprep.subr.mxu1 %v6637_v47  ;;  %v4350_v27 = vsel %vm2418_vm15, %v4327_v0, %v11695_v43 }
 0x529   :  { %v4844_v8 = vsel %vm140_vm1, %v11693_v49, %v11798_v3  ;;  %6454 = vrot.lane.b32.xlu1 %v6453_v37, %s6647_s27  ;;  %5002 = vrot.lane.b32.xlu0 %v4983_v21, %s6640_s15  ;;  %v6468_v35 = vpack.i.bf16 %v5289_v46, %v5287_v20  ;;  %v4374_v53 = vsel %vm4354_vm11, %v4350_v27, %v11710_v50 }
 0x52a   :  { %v4904_v57 = vmax.f32 %v4790_v30, %v4844_v8  ;;  %v5434_v30 = vld [vmem:[%s12543_s5 + $0x80] sm:$0xff]  ;;  %s6650_s5 = smov 112   ;;  %v4398_v33 = vsel %vm12863_vm12, %v4374_v53, %v11724_v58  ;;  %vm12865_vm12 = vmmov %vm12861_vm7 }
 0x52b   :  { %v4138_v49 = vpop.permute.xlu1 %4137  ;;  %v3681_v9 = vpop.permute.xlu0 %3680  ;;  %5538 = vmatpush2.msra.mxu1 %v5434_v30  ;;  %v4422_v32 = vsel %vm4402_vm9, %v4398_v33, %v11775_v18 }
 0x52c   :  { %4927 = vst.msk [vmem:[#allocation3 + $0x30] sm:$0xff] %vm12861_vm7, %v4904_v57  ;;  %6345 = vmatprep.subr.mxu1 %v6637_v47  ;;  %v4446_v43 = vsel %vm4426_vm10, %v4422_v32, %v4021_v60 }
 0x52d   :  { %6459 = vrot.lane.b32.xlu1 %v6458_v59, %s6648_s22  ;;  %6464 = vrot.lane.b32.xlu0 %v6463_v13, %s6649_s24  ;;  %v4470_v44 = vsel %vm12864_vm8, %v4446_v43, %v4138_v49 }
 0x52f   :  { %v4207_v40 = vpop.permute.xlu1 %4206  ;;  %v3795_v62 = vpop.permute.xlu0 %3794 }
 0x530   :  { %v4494_v52 = vsel %vm4474_vm0, %v4470_v44, %v4207_v40 }
 0x531   :  { %6469 = vrot.lane.b32.xlu1 %v6468_v35, %s6650_s5 }
 0x532   :  { %v4710_v42 = vpop.f32.mrf.mxu1 }
 0x533   :  { %v4711_v39 = vadd.f32 %v11398_v25, %v4710_v42  ;;  %v3909_v11 = vpop.permute.xlu1 %3908  ;;  %v3455_v56 = vpop.permute.xlu0 %3454 }
 0x534   :  { %v6302_v36 = vpop.f32.mrf.mxu1 }
 0x535   :  { %v4792_v16 = vmax.f32 %v4711_v39, 0.0 }
 0x537   :  { %v4845_v50 = vrot.slane %v4792_v16, 1  ;;  %v3569_v51 = vpop.permute.xlu1 %3568  ;;  %v4278_v37 = vpop.permute.xlu0 %4277 }
 0x538   :  { %v4518_v58 = vsel %vm4498_vm14, %v4494_v52, %v4278_v37 }
 0x539   :  { %v4846_v15 = vsel %vm140_vm1, %v11798_v3, %v4845_v50  ;;  %6334 = vmatmul.mubr.msk.f32.gmra.mxu1 %vm4534_vm3, %v4518_v58  ;;  %v4351_v3 = vsel %vm2418_vm15, %v4328_v26, %v11800_v34 }
 0x53a   :  { %v4905_v18 = vmax.f32 %v4791_v12, %v4846_v15  ;;  %6336 = vmatprep.mubr.msk.f32.mxu1 %vm12792_vm13, %v6637_v47  ;;  %v4375_v19 = vsel %vm4354_vm11, %v4351_v3, %v3681_v9 }
 0x53b   :  { %v3683_v60 = vpop.permute.xlu1 %3682  ;;  %v4023_v14 = vpop.permute.xlu0 %4022  ;;  %v4399_v63 = vsel %vm12865_vm12, %v4375_v19, %v3795_v62 }
 0x53c   :  { %4928 = vst.msk [vmem:[#allocation3 + $0x38] sm:$0xff] %vm12861_vm7, %v4905_v18  ;;  %v4423_v57 = vsel %vm4402_vm9, %v4399_v63, %v3909_v11  ;;  %vm12866_vm7 = vmmov %vm12862_vm2 }
 0x53d   :  { %v4447_v6 = vsel %vm4426_vm10, %v4423_v57, %v4023_v14  ;;  %v4329_v0 = vsel %vm12866_vm7, %v11359_v22, %v3455_v56  ;;  %vm12867_vm2 = vmmov %vm12865_vm12 }
 0x53e   :  { %v4352_v27 = vsel %vm2418_vm15, %v4329_v0, %v3569_v51  ;;  %vm12868_vm12 = vmmov %vm12867_vm2 }
 0x53f   :  { %v3797_v7 = vpop.permute.xlu1 %3796  ;;  %v4140_v21 = vpop.permute.xlu0 %4139  ;;  %v4376_v53 = vsel %vm4354_vm11, %v4352_v27, %v3683_v60  ;;  %vm12869_vm6 = vmmov %vm12866_vm7 }
 0x540   :  { %v4471_v55 = vsel %vm12864_vm8, %v4447_v6, %v4140_v21  ;;  %v4400_v42 = vsel %vm12868_vm12, %v4376_v53, %v3797_v7  ;;  %vm12870_vm7 = vmmov %vm12867_vm2 }
 0x541   :  { %vm12879_vm12 = vmmov %vm12870_vm7 }
 0x543   :  { %v3457_v12 = vpop.permute.xlu1 %3456  ;;  %v4209_v8 = vpop.permute.xlu0 %4208  ;;  %v11880_v2 = vld [vmem:[#allocation3 + $0x30] ss:$2 sm:$0xff] }
 0x544   :  { %v4984_v31 = vrot.slane %v11880_v2, 1  ;;  %v4495_v34 = vsel %vm4474_vm0, %v4471_v55, %v4209_v8  ;;  %v4330_v22 = vsel %vm12869_vm6, %v11440_v17, %v3457_v12  ;;  %vm12871_vm6 = vmmov %vm12864_vm8  ;;  %v5035_v6 = vrot.slane %v11880_v2, 2 }
 0x545   :  { %v5086_v55 = vrot.slane %v11880_v2, 3  ;;  %v5188_v27 = vrot.slane %v11880_v2, 5  ;;  %v5239_v53 = vrot.slane %v11880_v2, 6 }
 0x546   :  { %v4715_v38 = vpop.f32.mrf.mxu1  ;;  %v4985_v61 = vsel %vm140_vm1, %v4982_v29, %v4984_v31 }
 0x547   :  { %v4716_v49 = vadd.f32 %v11398_v25, %v4715_v38  ;;  %5004 = vrot.lane.b32.xlu0 %v4985_v61, %s6640_s15  ;;  %v4280_v9 = vpop.permute.xlu1 %4279  ;;  %v3911_v59 = vpop.permute.xlu0 %3910 }
 0x548   :  { %v4519_v13 = vsel %vm4498_vm14, %v4495_v34, %v4280_v9  ;;  %v6305_v54 = vpop.f32.mrf.mxu1  ;;  %v4424_v11 = vsel %vm4402_vm9, %v4400_v42, %v3911_v59  ;;  %v5137_v9 = vrot.slane %v11880_v2, 4 }
 0x549   :  { %v4793_v46 = vmax.f32 %v4716_v49, 0.0  ;;  %6337 = vmatmul.mubr.msk.f32.gmra.mxu1 %vm4534_vm3, %v4519_v13 }
 0x54a   :  { %6339 = vmatprep.mubr.msk.f32.mxu1 %vm12792_vm13, %v6637_v47 }
 0x54b   :  { %v4847_v30 = vrot.slane %v4793_v46, 1  ;;  %v4025_v20 = vpop.permute.xlu1 %4024  ;;  %v3571_v29 = vpop.permute.xlu0 %3570 }
 0x54c   :  { %v4448_v32 = vsel %vm4426_vm10, %v4424_v11, %v4025_v20 }
 0x54d   :  { %v4848_v40 = vsel %vm140_vm1, %v4845_v50, %v4847_v30  ;;  %v4353_v50 = vsel %vm2418_vm15, %v4330_v22, %v3571_v29  ;;  %vm12872_vm15 = vmmov %vm12867_vm2  ;;  %v5240_v22 = vsel %vm1324_vm5, %v5237_v48, %v5239_v53 }
 0x54e   :  { %v4906_v62 = vmax.f32 %v4792_v16, %v4848_v40 }
 0x54f   :  { %v4142_v35 = vpop.permute.xlu1 %4141  ;;  %v3685_v41 = vpop.permute.xlu0 %3684 }
 0x550   :  { %4929 = vst.msk [vmem:[#allocation3 + $0x40] sm:$0xff] %vm12867_vm2, %v4906_v62  ;;  %v4472_v36 = vsel %vm12864_vm8, %v4448_v32, %v4142_v35  ;;  %v4377_v58 = vsel %vm4354_vm11, %v4353_v50, %v3685_v41  ;;  %vm12873_vm11 = vcmask 1045504   ;;  %vm12880_vm8 = vcmask 1040384  }
 0x551   :  { %v5036_v13 = vsel %vm12873_vm11, %v5033_v4, %v5035_v6 }
 0x553   :  { %v4211_v33 = vpop.permute.xlu1 %4210  ;;  %v3799_v39 = vpop.permute.xlu0 %3798 }
 0x554   :  { %v4496_v56 = vsel %vm4474_vm0, %v4472_v36, %v4211_v33  ;;  %v4401_v18 = vsel %vm12870_vm7, %v4377_v58, %v3799_v39  ;;  %vm12881_vm7 = vmmov %vm12880_vm8 }
 0x556   :  { %v4720_v43 = vpop.f32.mrf.mxu1 }
 0x557   :  { %v4721_v16 = vadd.f32 %v11398_v25, %v4720_v43  ;;  %v4282_v44 = vpop.permute.xlu1 %4281  ;;  %v3913_v52 = vpop.permute.xlu0 %3912 }
 0x558   :  { %v4520_v51 = vsel %vm4498_vm14, %v4496_v56, %v4282_v44  ;;  %v6308_v37 = vpop.f32.mrf.mxu1  ;;  %v4425_v60 = vsel %vm4402_vm9, %v4401_v18, %v3913_v52  ;;  %vm12874_vm9 = vmmov %vm12873_vm11  ;;  %v5290_v56 = vrot.slane %v11880_v2, 7 }
 0x559   :  { %v4794_v15 = vmax.f32 %v4721_v16, 0.0  ;;  %6340 = vmatmul.mubr.msk.f32.gmra.mxu1 %vm4534_vm3, %v4520_v51  ;;  %v11994_v51 = vld [vmem:[%s12542_s4] ss:$0 sm:$0xff] }
 0x55a   :  { %6342 = vmatprep.mubr.msk.f32.mxu1 %vm12792_vm13, %v6637_v47 }
 0x55b   :  { %v4849_v17 = vrot.slane %v4794_v15, 1  ;;  %v4144_v14 = vpop.permute.xlu1 %4143  ;;  %v4027_v7 = vpop.permute.xlu0 %4026 }
 0x55c   :  { %v4449_v21 = vsel %vm4426_vm10, %v4425_v60, %v4027_v7  ;;  %vm12875_vm10 = vcmask 1044480  }
 0x55d   :  { %v4850_v26 = vsel %vm140_vm1, %v4847_v30, %v4849_v17  ;;  %v4473_v63 = vsel %vm12871_vm6, %v4449_v21, %v4144_v14  ;;  %vm12882_vm6 = vmmov %vm12879_vm12 }
 0x55e   :  { %v4907_v3 = vmax.f32 %v4793_v46, %v4850_v26  ;;  %v5087_v46 = vsel %vm12875_vm10, %v5084_v23, %v5086_v55  ;;  %vm12884_vm11 = vmmov %vm12882_vm6 }
 0x55f   :  { %v4284_v19 = vpop.permute.xlu1 %4283  ;;  %v4213_v12 = vpop.permute.xlu0 %4212 }
 0x560   :  { %4930 = vst.msk [vmem:[#allocation3 + $0x48] sm:$0xff] %vm12872_vm15, %v4907_v3  ;;  %v4497_v8 = vsel %vm4474_vm0, %v4473_v63, %v4213_v12  ;;  %vm12883_vm15 = vmmov %vm12882_vm6 }
 0x561   :  { %v4521_v57 = vsel %vm4498_vm14, %v4497_v8, %v4284_v19  ;;  %vm12876_vm14 = vmmov %vm12875_vm10  ;;  %vm5362_vm10 = vcmask 392192  }
 0x562   :  { %6343 = vmatmul.mubr.msk.f32.gmra.mxu1 %vm4534_vm3, %v4521_v57  ;;  %vm12877_vm3 = vcmask 1043456  }
 0x563   :  { %vm12878_vm2 = vmmov %vm12877_vm3 }
 0x567   :  { %v11929_v38 = vld [vmem:[#allocation3 + $0x40] ss:$2 sm:$0xff] }
 0x568   :  { %v5037_v61 = vrot.slane %v11929_v38, 2  ;;  %v5088_v34 = vrot.slane %v11929_v38, 3  ;;  %v5139_v49 = vrot.slane %v11929_v38, 4  ;;  %v4986_v35 = vrot.slane %v11929_v38, 1 }
 0x569   :  { %v5190_v41 = vrot.slane %v11929_v38, 5  ;;  %v5241_v0 = vrot.slane %v11929_v38, 6 }
 0x56a   :  { %v4725_v59 = vpop.f32.mrf.mxu1  ;;  %v5038_v54 = vsel %vm12874_vm9, %v5035_v6, %v5037_v61  ;;  %v5089_v30 = vsel %vm12876_vm14, %v5086_v55, %v5088_v34  ;;  %v5140_v4 = vsel %vm12877_vm3, %v5137_v9, %v5139_v49  ;;  %v4987_v39 = vsel %vm140_vm1, %v4984_v31, %v4986_v35  ;;  %vm12885_vm9 = vmmov %vm12882_vm6 }
 0x56b   :  { %v4726_v20 = vadd.f32 %v11398_v25, %v4725_v59  ;;  %v6473_v29 = vpack.i.bf16 %v5038_v54, %v5036_v13  ;;  %v6478_v40 = vpack.i.bf16 %v5089_v30, %v5087_v46  ;;  %v5138_v25 = vsel %vm12878_vm2, %v5135_v45, %v5137_v9 }
 0x56c   :  { %v6311_v62 = vpop.f32.mrf.mxu1  ;;  %v6483_v33 = vpack.i.bf16 %v5140_v4, %v5138_v25  ;;  %v5191_v11 = vsel %vm1087_vm4, %v5188_v27, %v5190_v41  ;;  %v5242_v32 = vsel %vm1324_vm5, %v5239_v53, %v5241_v0  ;;  %v5292_v45 = vrot.slane %v11929_v38, 7 }
 0x56d   :  { %v4795_v23 = vmax.f32 %v4726_v20, 0.0  ;;  %6474 = vrot.lane.b32.xlu1 %v6473_v29, %s6644_s21  ;;  %6479 = vrot.lane.b32.xlu0 %v6478_v40, %s6646_s3  ;;  %v5189_v31 = vsel %vm1087_vm4, %v5186_v24, %v5188_v27  ;;  %v6493_v44 = vpack.i.bf16 %v5242_v32, %v5240_v22  ;;  %v5291_v24 = vsel %vm12881_vm7, %v5288_v5, %v5290_v56 }
 0x56e   :  { %v6488_v16 = vpack.i.bf16 %v5191_v11, %v5189_v31  ;;  %v5293_v52 = vsel %vm12880_vm8, %v5290_v56, %v5292_v45  ;;  %vm5373_vm14 = vcmask 523264   ;;  %vm5384_vm3 = vcmask 654336   ;;  %vm12886_vm8 = vmmov %vm12882_vm6 }
 0x56f   :  { %v4851_v42 = vrot.slane %v4795_v23, 1  ;;  %v6498_v50 = vpack.i.bf16 %v5293_v52, %v5291_v24  ;;  %vm5395_vm2 = vcmask 785408   ;;  %vm12887_vm7 = vcmask 1044480  }
 0x571   :  { %v4852_v36 = vsel %vm140_vm1, %v4849_v17, %v4851_v42  ;;  %6484 = vrot.lane.b32.xlu1 %v6483_v33, %s6647_s27  ;;  %5006 = vrot.lane.b32.xlu0 %v4987_v39, %s6640_s15  ;;  %v5001_v63 = vpop.permute.xlu0 %5000 }
 0x572   :  { %v4908_v43 = vmax.f32 %v4794_v15, %v4852_v36  ;;  %v5342_v54 = vsel %vm12884_vm11, %v11611_v10, %v5001_v63 }
 0x574   :  { %4931 = vst.msk [vmem:[#allocation3 + $0x50] sm:$0xff] %vm12879_vm12, %v4908_v43  ;;  %vm5406_vm12 = vcmask 916480  }
 0x575   :  { %6489 = vrot.lane.b32.xlu1 %v6488_v16, %s6648_s22  ;;  %6494 = vrot.lane.b32.xlu0 %v6493_v44, %s6649_s24 }
 0x579   :  { %6499 = vrot.lane.b32.xlu1 %v6498_v50, %s6650_s5 }
 0x57a   :  { %v4730_v48 = vpop.f32.mrf.mxu1 }
 0x57b   :  { %v4731_v37 = vadd.f32 %v11994_v51, %v4730_v48 }
 0x57c   :  { %v6314_v58 = vpop.f32.mrf.mxu1 }
 0x57d   :  { %v4796_v15 = vmax.f32 %v4731_v37, 0.0 }
 0x57f   :  { %v4853_v18 = vrot.slane %v4796_v15, 1 }
 0x581   :  { %v4854_v17 = vsel %vm140_vm1, %v4851_v42, %v4853_v18 }
 0x582   :  { %v4909_v60 = vmax.f32 %v4795_v23, %v4854_v17 }
 0x584   :  { %4932 = vst.msk [vmem:[#allocation3 + $0x58] sm:$0xff] %vm12882_vm6, %v4909_v60  ;;  %vm12888_vm6 = vcmask 1045504  }
 0x585   :  { %vm12890_vm11 = vmmov %vm12888_vm6 }
 0x58b   :  { %v11999_v5 = vld [vmem:[#allocation3 + $0x50] ss:$2 sm:$0xff] }
 0x58c   :  { %v4988_v14 = vrot.slane %v11999_v5, 1  ;;  %v5090_v56 = vrot.slane %v11999_v5, 3  ;;  %v5039_v16 = vrot.slane %v11999_v5, 2  ;;  %v5141_v60 = vrot.slane %v11999_v5, 4 }
 0x58e   :  { %v4735_v7 = vpop.f32.mrf.mxu1  ;;  %v4989_v21 = vsel %vm140_vm1, %v4986_v35, %v4988_v14  ;;  %v5040_v17 = vsel %vm12888_vm6, %v5037_v61, %v5039_v16 }
 0x58f   :  { %v4736_v26 = vadd.f32 %v11994_v51, %v4735_v7  ;;  %5008 = vrot.lane.b32.xlu0 %v4989_v21, %s6640_s15 }
 0x590   :  { %v6317_v3 = vpop.f32.mrf.mxu1 }
 0x591   :  { %v4797_v19 = vmax.f32 %v4736_v26, 0.0 }
 0x593   :  { %v4855_v12 = vrot.slane %v4797_v19, 1 }
 0x595   :  { %v4856_v8 = vsel %vm140_vm1, %v4853_v18, %v4855_v12  ;;  %v5091_v18 = vsel %vm12887_vm7, %v5088_v34, %v5090_v56 }
 0x596   :  { %v4910_v57 = vmax.f32 %v4796_v15, %v4856_v8 }
 0x597   :  { %v6445_v6 = vpop.permute.xlu1 %6444  ;;  %v6450_v55 = vpop.permute.xlu0 %6449 }
 0x598   :  { %4933 = vst.msk [vmem:[#allocation3 + $0x60] sm:$0xff] %vm12883_vm15, %v4910_v57  ;;  %v6446_v9 = vunpack.i.l.bf16 %v6445_v6  ;;  %v6451_v46 = vunpack.i.l.bf16 %v6450_v55  ;;  %v6447_v22 = vunpack.i.h.bf16 %v6445_v6  ;;  %v6452_v24 = vunpack.i.h.bf16 %v6450_v55  ;;  %vm12889_vm15 = vmmov %vm12887_vm7 }
 0x599   :  { %vm12893_vm7 = vcmask 130048  }
 0x59a   :  { %v5352_v20 = vsel %vm4474_vm0, %v5342_v54, %v6446_v9  ;;  %v5192_v9 = vrot.slane %v11999_v5, 5  ;;  %vm12894_vm6 = vmmov %vm12893_vm7 }
 0x59b   :  { %v12009_v59 = vpop.permute.xlu1 %6454  ;;  %v5003_v13 = vpop.permute.xlu0 %5002  ;;  %v5363_v10 = vsel %vm5362_vm10, %v5352_v20, %v6451_v46 }
 0x59c   :  { %v5343_v30 = vsel %vm12885_vm9, %v11617_v28, %v5003_v13  ;;  %v6456_v29 = vunpack.i.l.bf16 %v12009_v59  ;;  %v6457_v58 = vunpack.i.h.bf16 %v12009_v59  ;;  %vm12891_vm9 = vcmask 1043456  }
 0x59d   :  { %5996 = vmatprep.mubr.msk.f32.mxu1 %vm4474_vm0, %v5343_v30  ;;  %v5353_v44 = vsel %vm4474_vm0, %v5343_v30, %v6447_v22  ;;  %v5243_v59 = vrot.slane %v11999_v5, 6 }
 0x59e   :  { %v4740_v40 = vpop.f32.mrf.mxu1  ;;  %v5374_v25 = vsel %vm5373_vm14, %v5363_v10, %v6456_v29  ;;  %v5364_v7 = vsel %vm5362_vm10, %v5353_v44, %v6452_v24 }
 0x59f   :  { %v12019_v62 = vadd.f32 %v11994_v51, %v4740_v40  ;;  %v6460_v4 = vpop.permute.xlu1 %6459  ;;  %v12021_v35 = vpop.permute.xlu0 %6464  ;;  %v5375_v30 = vsel %vm5373_vm14, %v5364_v7, %v6457_v58 }
 0x5a0   :  { %v6461_v23 = vunpack.i.l.bf16 %v6460_v4  ;;  %v6320_v28 = vpop.f32.mrf.mxu1  ;;  %v6466_v53 = vunpack.i.l.bf16 %v12021_v35  ;;  %v6467_v13 = vunpack.i.h.bf16 %v12021_v35 }
 0x5a1   :  { %v4798_v27 = vmax.f32 %v12019_v62, 0.0 }
 0x5a2   :  { %v5385_v42 = vsel %vm5384_vm3, %v5374_v25, %v6461_v23  ;;  %v5294_v25 = vrot.slane %v11999_v5, 7 }
 0x5a3   :  { %v4857_v33 = vrot.slane %v4798_v27, 1  ;;  %v12028_v39 = vpop.permute.xlu1 %6469  ;;  %v5396_v36 = vsel %vm5395_vm2, %v5385_v42, %v6466_v53  ;;  %v5193_v42 = vsel %vm1087_vm4, %v5190_v41, %v5192_v9 }
 0x5a4   :  { %v6471_v11 = vunpack.i.l.bf16 %v12028_v39  ;;  %v6472_v20 = vunpack.i.h.bf16 %v12028_v39 }
 0x5a5   :  { %v4858_v32 = vsel %vm140_vm1, %v4855_v12, %v4857_v33 }
 0x5a6   :  { %v4911_v43 = vmax.f32 %v4797_v19, %v4858_v32  ;;  %v5407_v31 = vsel %vm5406_vm12, %v5396_v36, %v6471_v11  ;;  %v6462_v19 = vunpack.i.h.bf16 %v6460_v4 }
 0x5a7   :  { %5540 = vmatmul.mubr.f32.vlgmr.msra.gmra.mxu1 %v5407_v31 }
 0x5a8   :  { %4934 = vst.msk [vmem:[#allocation3 + $0x68] sm:$0xff] %vm12886_vm8, %v4911_v43  ;;  %vm12892_vm8 = vmmov %vm12891_vm9  ;;  %v5386_v40 = vsel %vm5384_vm3, %v5375_v30, %v6462_v19 }
 0x5a9   :  { %v5142_v46 = vsel %vm12892_vm8, %v5139_v49, %v5141_v60  ;;  %vm12898_vm8 = vmmov %vm12894_vm6 }
 0x5af   :  { %v12038_v52 = vld [vmem:[#allocation3 + $0x60] ss:$2 sm:$0xff] }
 0x5b0   :  { %v5092_v50 = vrot.slane %v12038_v52, 3  ;;  %v5041_v48 = vrot.slane %v12038_v52, 2  ;;  %v5143_v37 = vrot.slane %v12038_v52, 4  ;;  %v4990_v61 = vrot.slane %v12038_v52, 1 }
 0x5b1   :  { %v4745_v15 = vpop.f32.mrf.mxu1  ;;  %v5194_v6 = vrot.slane %v12038_v52, 5  ;;  %v5245_v55 = vrot.slane %v12038_v52, 6  ;;  %v5296_v62 = vrot.slane %v12038_v52, 7 }
 0x5b2   :  { %v4746_v21 = vadd.f32 %v11994_v51, %v4745_v15  ;;  %v5093_v26 = vsel %vm12889_vm15, %v5090_v56, %v5092_v50  ;;  %v5042_v3 = vsel %vm12890_vm11, %v5039_v16, %v5041_v48  ;;  %v5144_v57 = vsel %vm12891_vm9, %v5141_v60, %v5143_v37  ;;  %vm12897_vm9 = vmmov %vm12894_vm6 }
 0x5b3   :  { %v6323_v34 = vpop.f32.mrf.mxu1  ;;  %v6508_v63 = vpack.i.bf16 %v5093_v26, %v5091_v18  ;;  %v6503_v12 = vpack.i.bf16 %v5042_v3, %v5040_v17  ;;  %v6513_v29 = vpack.i.bf16 %v5144_v57, %v5142_v46  ;;  %v4991_v35 = vsel %vm140_vm1, %v4988_v14, %v4990_v61 }
 0x5b4   :  { %v4799_v8 = vmax.f32 %v4746_v21, 0.0  ;;  %v5195_v10 = vsel %vm1087_vm4, %v5192_v9, %v5194_v6  ;;  %v5246_v49 = vsel %vm1324_vm5, %v5243_v59, %v5245_v55  ;;  %v5397_v14 = vsel %vm5395_vm2, %v5386_v40, %v6467_v13 }
 0x5b5   :  { %6509 = vrot.lane.b32.xlu0 %v6508_v63, %s6646_s3  ;;  %6504 = vrot.lane.b32.xlu1 %v6503_v12, %s6644_s21  ;;  %v6518_v39 = vpack.i.bf16 %v5195_v10, %v5193_v42  ;;  %vm12895_vm15 = vcmask 1040384  }
 0x5b6   :  { %v4859_v54 = vrot.slane %v4799_v8, 1  ;;  %vm12896_vm11 = vmmov %vm12895_vm15 }
 0x5b7   :  { %v5295_v41 = vsel %vm12896_vm11, %v5292_v45, %v5294_v25  ;;  %vm12901_vm11 = vcmask 1045504  }
 0x5b8   :  { %v4860_v4 = vsel %vm140_vm1, %v4857_v33, %v4859_v54  ;;  %v5408_v33 = vsel %vm5406_vm12, %v5397_v14, %v6472_v20 }
 0x5b9   :  { %v4912_v23 = vmax.f32 %v4798_v27, %v4860_v4  ;;  %6514 = vrot.lane.b32.xlu1 %v6513_v29, %s6647_s27  ;;  %5010 = vrot.lane.b32.xlu0 %v4991_v35, %s6640_s15  ;;  %v5005_v28 = vpop.permute.xlu0 %5004  ;;  %v5244_v27 = vsel %vm1324_vm5, %v5241_v0, %v5243_v59 }
 0x5ba   :  { %v5344_v53 = vsel %vm12893_vm7, %v11744_v1, %v5005_v28  ;;  %v6523_v11 = vpack.i.bf16 %v5246_v49, %v5244_v27  ;;  %v5297_v1 = vsel %vm12895_vm15, %v5294_v25, %v5296_v62  ;;  %vm12899_vm7 = vmmov %vm12894_vm6  ;;  %vm12900_vm15 = vcmask 1044480  }
 0x5bb   :  { %4935 = vst.msk [vmem:[#allocation3 + $0x70] sm:$0xff] %vm12894_vm6, %v4912_v23  ;;  %5997 = vmatprep.mubr.msk.f32.mxu1 %vm4474_vm0, %v5344_v53  ;;  %v6528_v0 = vpack.i.bf16 %v5297_v1, %v5295_v41 }
 0x5bc   :  { %5545 = vmatmul.mubr.f32.gmra.mxu1 %v5408_v33 }
 0x5bd   :  { %6519 = vrot.lane.b32.xlu1 %v6518_v39, %s6648_s22  ;;  %6524 = vrot.lane.b32.xlu0 %v6523_v11, %s6649_s24 }
 0x5c1   :  { %6529 = vrot.lane.b32.xlu1 %v6528_v0, %s6650_s5  ;;  %v4750_v32 = vpop.f32.mrf.mxu1 }
 0x5c2   :  { %v4751_v36 = vadd.f32 %v11994_v51, %v4750_v32 }
 0x5c3   :  { %v6326_v43 = vpop.f32.mrf.mxu1 }
 0x5c4   :  { %v4800_v31 = vmax.f32 %v4751_v36, 0.0 }
 0x5c6   :  { %v4861_v22 = vrot.slane %v4800_v31, 1 }
 0x5c8   :  { %v4862_v56 = vsel %vm140_vm1, %v4859_v54, %v4861_v22 }
 0x5c9   :  { %v4913_v16 = vmax.f32 %v4799_v8, %v4862_v56 }
 0x5cb   :  { %4936 = vst.msk [vmem:[#allocation3 + $0x78] sm:$0xff] %vm12897_vm9, %v4913_v16  ;;  %vm12902_vm9 = vmmov %vm12900_vm15 }
 0x5d2   :  { %v12114_v44 = vld [vmem:[#allocation3 + $0x70] ss:$2 sm:$0xff] }
 0x5d3   :  { %v4992_v24 = vrot.slane %v12114_v44, 1  ;;  %v5094_v42 = vrot.slane %v12114_v44, 3  ;;  %v5043_v27 = vrot.slane %v12114_v44, 2 }
 0x5d5   :  { %v4755_v58 = vpop.f32.mrf.mxu1  ;;  %v4993_v45 = vsel %vm140_vm1, %v4990_v61, %v4992_v24  ;;  %v5095_v43 = vsel %vm12900_vm15, %v5092_v50, %v5094_v42  ;;  %vm12906_vm15 = vcmask 130048  }
 0x5d6   :  { %v4756_v15 = vadd.f32 %v11994_v51, %v4755_v58  ;;  %5012 = vrot.lane.b32.xlu0 %v4993_v45, %s6640_s15 }
 0x5d7   :  { %v6329_v18 = vpop.f32.mrf.mxu1 }
 0x5d8   :  { %v4801_v17 = vmax.f32 %v4756_v15, 0.0 }
 0x5da   :  { %v4863_v60 = vrot.slane %v4801_v17, 1 }
 0x5dc   :  { %v4864_v7 = vsel %vm140_vm1, %v4861_v22, %v4863_v60  ;;  %v5145_v22 = vrot.slane %v12114_v44, 4 }
 0x5dd   :  { %v4914_v21 = vmax.f32 %v4800_v31, %v4864_v7  ;;  %v5044_v31 = vsel %vm12901_vm11, %v5041_v48, %v5043_v27 }
 0x5df   :  { %4937 = vst.msk [vmem:[#allocation3 + $0x80] sm:$0xff] %vm12898_vm8, %v4914_v21  ;;  %v6475_v26 = vpop.permute.xlu1 %6474  ;;  %v6480_v3 = vpop.permute.xlu0 %6479  ;;  %vm12903_vm8 = vmmov %vm12901_vm11 }
 0x5e0   :  { %v6476_v19 = vunpack.i.l.bf16 %v6475_v26  ;;  %v6481_v12 = vunpack.i.l.bf16 %v6480_v3  ;;  %v6477_v14 = vunpack.i.h.bf16 %v6475_v26  ;;  %v6482_v11 = vunpack.i.h.bf16 %v6480_v3  ;;  %vm12907_vm11 = vmmov %vm12906_vm15 }
 0x5e1   :  { %v5196_v3 = vrot.slane %v12114_v44, 5 }
 0x5e2   :  { %v5354_v8 = vsel %vm4474_vm0, %v5344_v53, %v6476_v19  ;;  %v5247_v19 = vrot.slane %v12114_v44, 6 }
 0x5e3   :  { %v12124_v34 = vpop.permute.xlu1 %6484  ;;  %v5007_v63 = vpop.permute.xlu0 %5006  ;;  %v5365_v46 = vsel %vm5362_vm10, %v5354_v8, %v6481_v12 }
 0x5e4   :  { %v5345_v61 = vsel %vm12899_vm7, %v11880_v2, %v5007_v63  ;;  %v6486_v57 = vunpack.i.l.bf16 %v12124_v34  ;;  %v6487_v32 = vunpack.i.h.bf16 %v12124_v34  ;;  %vm12904_vm7 = vcmask 1043456  }
 0x5e5   :  { %5998 = vmatprep.mubr.msk.f32.mxu1 %vm4474_vm0, %v5345_v61  ;;  %v5355_v33 = vsel %vm4474_vm0, %v5345_v61, %v6477_v14 }
 0x5e6   :  { %v4760_v9 = vpop.f32.mrf.mxu1  ;;  %v5376_v29 = vsel %vm5373_vm14, %v5365_v46, %v6486_v57  ;;  %v5366_v56 = vsel %vm5362_vm10, %v5355_v33, %v6482_v11 }
 0x5e7   :  { %v12132_v59 = vadd.f32 %v11994_v51, %v4760_v9  ;;  %v6490_v13 = vpop.permute.xlu1 %6489  ;;  %v12134_v54 = vpop.permute.xlu0 %6494  ;;  %v5377_v61 = vsel %vm5373_vm14, %v5366_v56, %v6487_v32 }
 0x5e8   :  { %v6491_v30 = vunpack.i.l.bf16 %v6490_v13  ;;  %v6332_v20 = vpop.f32.mrf.mxu1  ;;  %v6496_v40 = vunpack.i.l.bf16 %v12134_v54  ;;  %v6492_v15 = vunpack.i.h.bf16 %v6490_v13  ;;  %v6497_v34 = vunpack.i.h.bf16 %v12134_v54 }
 0x5e9   :  { %v4802_v2 = vmax.f32 %v12132_v59, 0.0 }
 0x5ea   :  { %v5387_v4 = vsel %vm5384_vm3, %v5376_v29, %v6491_v30  ;;  %v5388_v9 = vsel %vm5384_vm3, %v5377_v61, %v6492_v15  ;;  %v5298_v29 = vrot.slane %v12114_v44, 7 }
 0x5eb   :  { %v4865_v35 = vrot.slane %v4802_v2, 1  ;;  %v12141_v10 = vpop.permute.xlu1 %6499  ;;  %v5398_v28 = vsel %vm5395_vm2, %v5387_v4, %v6496_v40  ;;  %v5197_v4 = vsel %vm1087_vm4, %v5194_v6, %v5196_v3 }
 0x5ec   :  { %v6501_v49 = vunpack.i.l.bf16 %v12141_v10  ;;  %v6502_v8 = vunpack.i.h.bf16 %v12141_v10 }
 0x5ed   :  { %v4866_v23 = vsel %vm140_vm1, %v4863_v60, %v4865_v35 }
 0x5ee   :  { %v4915_v25 = vmax.f32 %v4801_v17, %v4866_v23  ;;  %v5409_v53 = vsel %vm5406_vm12, %v5398_v28, %v6501_v49 }
 0x5ef   :  { %5550 = vmatmul.mubr.f32.gmra.mxu1 %v5409_v53 }
 0x5f0   :  { %4938 = vst.msk [vmem:[#allocation3 + $0x88] sm:$0xff] %vm12894_vm6, %v4915_v25  ;;  %vm12905_vm6 = vmmov %vm12904_vm7 }
 0x5f1   :  { %v5146_v12 = vsel %vm12905_vm6, %v5143_v37, %v5145_v22 }
 0x5f7   :  { %v12151_v39 = vld [vmem:[#allocation3 + $0x80] ss:$2 sm:$0xff] }
 0x5f8   :  { %v5096_v1 = vrot.slane %v12151_v39, 3  ;;  %v5045_v41 = vrot.slane %v12151_v39, 2  ;;  %v5147_v0 = vrot.slane %v12151_v39, 4  ;;  %v4994_v48 = vrot.slane %v12151_v39, 1 }
 0x5f9   :  { %v4765_v36 = vpop.f32.mrf.mxu1  ;;  %v5198_v21 = vrot.slane %v12151_v39, 5  ;;  %v5249_v26 = vrot.slane %v12151_v39, 6  ;;  %v5300_v59 = vrot.slane %v12151_v39, 7 }
 0x5fa   :  { %v4766_v16 = vadd.f32 %v11994_v51, %v4765_v36  ;;  %v5097_v58 = vsel %vm12902_vm9, %v5094_v42, %v5096_v1  ;;  %v5046_v45 = vsel %vm12903_vm8, %v5043_v27, %v5045_v41  ;;  %v5148_v7 = vsel %vm12904_vm7, %v5145_v22, %v5147_v0  ;;  %vm12910_vm7 = vmmov %vm12907_vm11 }
 0x5fb   :  { %v6335_v50 = vpop.f32.mrf.mxu1  ;;  %v6538_v18 = vpack.i.bf16 %v5097_v58, %v5095_v43  ;;  %v6533_v17 = vpack.i.bf16 %v5046_v45, %v5044_v31  ;;  %v6543_v57 = vpack.i.bf16 %v5148_v7, %v5146_v12  ;;  %v4995_v54 = vsel %vm140_vm1, %v4992_v24, %v4994_v48  ;;  %vm12911_vm6 = vmmov %vm12910_vm7 }
 0x5fc   :  { %v4803_v60 = vmax.f32 %v4766_v16, 0.0  ;;  %v5199_v46 = vsel %vm1087_vm4, %v5196_v3, %v5198_v21  ;;  %v5250_v37 = vsel %vm1324_vm5, %v5247_v19, %v5249_v26  ;;  %v5399_v24 = vsel %vm5395_vm2, %v5388_v9, %v6497_v34 }
 0x5fd   :  { %6539 = vrot.lane.b32.xlu0 %v6538_v18, %s6646_s3  ;;  %6534 = vrot.lane.b32.xlu1 %v6533_v17, %s6644_s21  ;;  %v6548_v10 = vpack.i.bf16 %v5199_v46, %v5197_v4  ;;  %vm12908_vm9 = vcmask 1040384  }
 0x5fe   :  { %v4867_v63 = vrot.slane %v4803_v60, 1  ;;  %vm12909_vm8 = vmmov %vm12908_vm9 }
 0x5ff   :  { %v5299_v6 = vsel %vm12909_vm8, %v5296_v62, %v5298_v29  ;;  %vm12914_vm8 = vcmask 1044480  }
 0x600   :  { %v4868_v13 = vsel %vm140_vm1, %v4865_v35, %v4867_v63  ;;  %v5410_v35 = vsel %vm5406_vm12, %v5399_v24, %v6502_v8 }
 0x601   :  { %v4916_v30 = vmax.f32 %v4802_v2, %v4868_v13  ;;  %6544 = vrot.lane.b32.xlu1 %v6543_v57, %s6647_s27  ;;  %5014 = vrot.lane.b32.xlu0 %v4995_v54, %s6640_s15  ;;  %v5009_v20 = vpop.permute.xlu0 %5008  ;;  %v5248_v2 = vsel %vm1324_vm5, %v5245_v55, %v5247_v19 }
 0x602   :  { %v5346_v40 = vsel %vm12906_vm15, %v11929_v38, %v5009_v20  ;;  %v6553_v49 = vpack.i.bf16 %v5250_v37, %v5248_v2  ;;  %v5301_v38 = vsel %vm12908_vm9, %v5298_v29, %v5300_v59  ;;  %vm4943_vm15 = vcmask 122880   ;;  %vm12913_vm9 = vmmov %vm12911_vm6 }
 0x603   :  { %4939 = vst.msk [vmem:[#allocation3 + $0x90] sm:$0xff] %vm12907_vm11, %v4916_v30  ;;  %5999 = vmatprep.mubr.msk.f32.mxu1 %vm4474_vm0, %v5346_v40  ;;  %v6558_v55 = vpack.i.bf16 %v5301_v38, %v5299_v6  ;;  %vm12912_vm11 = vmmov %vm12911_vm6 }
 0x604   :  { %5555 = vmatmul.mubr.f32.gmra.mxu1 %v5410_v35 }
 0x605   :  { %6549 = vrot.lane.b32.xlu1 %v6548_v10, %s6648_s22  ;;  %6554 = vrot.lane.b32.xlu0 %v6553_v49, %s6649_s24 }
 0x609   :  { %6559 = vrot.lane.b32.xlu1 %v6558_v55, %s6650_s5  ;;  %v4770_v23 = vpop.f32.mrf.mxu1 }
 0x60a   :  { %v4771_v28 = vadd.f32 %v11994_v51, %v4770_v23 }
 0x60b   :  { %v6338_v25 = vpop.f32.mrf.mxu1 }
 0x60c   :  { %v4804_v53 = vmax.f32 %v4771_v28, 0.0 }
 0x60e   :  { %v4869_v14 = vrot.slane %v4804_v53, 1 }
 0x610   :  { %v4870_v42 = vsel %vm140_vm1, %v4867_v63, %v4869_v14 }
 0x611   :  { %v4917_v27 = vmax.f32 %v4803_v60, %v4870_v42 }
 0x613   :  { %4940 = vst.msk [vmem:[#allocation3 + $0x98] sm:$0xff] %vm12910_vm7, %v4917_v27  ;;  %vm12915_vm7 = vmmov %vm12914_vm8 }
 0x619   :  { %v4775_v33 = vpop.f32.mrf.mxu1 }
 0x61a   :  { %v4776_v11 = vadd.f32 %v11994_v51, %v4775_v33  ;;  %v12228_v32 = vld [vmem:[#allocation3 + $0x90] ss:$2 sm:$0xff] }
 0x61b   :  { %v6341_v62 = vpop.f32.mrf.mxu1  ;;  %v4996_v36 = vrot.slane %v12228_v32, 1  ;;  %v5047_v20 = vrot.slane %v12228_v32, 2  ;;  %v5149_v49 = vrot.slane %v12228_v32, 4  ;;  %v5200_v33 = vrot.slane %v12228_v32, 5 }
 0x61c   :  { %v4805_v43 = vmax.f32 %v4776_v11, 0.0  ;;  %v5251_v11 = vrot.slane %v12228_v32, 6 }
 0x61d   :  { %v4997_v31 = vsel %vm140_vm1, %v4994_v48, %v4996_v36 }
 0x61e   :  { %v4871_v22 = vrot.slane %v4805_v43, 1  ;;  %5016 = vrot.lane.b32.xlu0 %v4997_v31, %s6640_s15 }
 0x620   :  { %v4872_v56 = vsel %vm140_vm1, %v4869_v14, %v4871_v22 }
 0x621   :  { %v4918_v16 = vmax.f32 %v4804_v53, %v4872_v56 }
 0x622   :  { %v4780_v58 = vpop.f32.mrf.mxu1 }
 0x623   :  { %4941 = vst.msk [vmem:[#allocation3 + $0xa0] sm:$0xff] %vm12911_vm6, %v4918_v16  ;;  %v4781_v45 = vadd.f32 %v11994_v51, %v4780_v58  ;;  %vm12916_vm6 = vcmask 1045504   ;;  %v5252_v58 = vsel %vm1324_vm5, %v5249_v26, %v5251_v11 }
 0x624   :  { %v6344_v15 = vpop.f32.mrf.mxu1  ;;  %v5048_v23 = vsel %vm12916_vm6, %v5045_v41, %v5047_v20 }
 0x625   :  { %v4806_v50 = vmax.f32 %v4781_v45, 0.0 }
 0x627   :  { %v4873_v18 = vrot.slane %v4806_v50, 1  ;;  %v6505_v17 = vpop.permute.xlu1 %6504  ;;  %v12238_v60 = vpop.permute.xlu0 %6509 }
 0x628   :  { %v6506_v3 = vunpack.i.l.bf16 %v6505_v17  ;;  %v6511_v51 = vunpack.i.l.bf16 %v12238_v60  ;;  %v6507_v56 = vunpack.i.h.bf16 %v6505_v17 }
 0x629   :  { %v4874_v48 = vsel %vm140_vm1, %v4871_v22, %v4873_v18  ;;  %v4920_v7 = vmax.f32 %v4806_v50, %v4873_v18  ;;  %v6512_v50 = vunpack.i.h.bf16 %v12238_v60  ;;  %v5302_v18 = vrot.slane %v12228_v32, 7 }
 0x62a   :  { %v4919_v19 = vmax.f32 %v4805_v43, %v4874_v48  ;;  %v5356_v61 = vsel %vm4474_vm0, %v5346_v40, %v6506_v3 }
 0x62b   :  { %4944 = vst.msk [vmem:[#allocation3 + $0xb0] sm:$0x1] %vm4943_vm15, %v4920_v7  ;;  %v12241_v34 = vpop.permute.xlu1 %6514  ;;  %v5011_v63 = vpop.permute.xlu0 %5010  ;;  %v5367_v13 = vsel %vm5362_vm10, %v5356_v61, %v6511_v51  ;;  %vm12917_vm15 = vmmov %vm12916_vm6 }
 0x62c   :  { %4942 = vst.msk [vmem:[#allocation3 + $0xa8] sm:$0xff] %vm12912_vm11, %v4919_v19  ;;  %v5347_v12 = vsel %vm12913_vm9, %v11999_v5, %v5011_v63  ;;  %v6516_v8 = vunpack.i.l.bf16 %v12241_v34  ;;  %v5098_v5 = vrot.slane %v12228_v32, 3  ;;  %vm12918_vm11 = vcmask 1043456  }
 0x62d   :  { %6000 = vmatprep.mubr.msk.f32.mxu1 %vm4474_vm0, %v5347_v12  ;;  %vm12919_vm9 = vmmov %vm12918_vm11  ;;  %v6517_v48 = vunpack.i.h.bf16 %v12241_v34 }
 0x62e   :  { %v5378_v46 = vsel %vm5373_vm14, %v5367_v13, %v6516_v8  ;;  %v5099_v10 = vsel %vm12914_vm8, %v5096_v1, %v5098_v5  ;;  %v5150_v41 = vsel %vm12919_vm9, %v5147_v0, %v5149_v49  ;;  %v5201_v0 = vsel %vm1087_vm4, %v5198_v21, %v5200_v33 }
 0x62f   :  { %v12250_v57 = vpop.permute.xlu1 %6519  ;;  %v12252_v9 = vpop.permute.xlu0 %6524  ;;  %vm12922_vm8 = vcmask 130048  }
 0x630   :  { %v6521_v54 = vunpack.i.l.bf16 %v12250_v57  ;;  %v6526_v37 = vunpack.i.l.bf16 %v12252_v9  ;;  %v6522_v7 = vunpack.i.h.bf16 %v12250_v57  ;;  %v6527_v19 = vunpack.i.h.bf16 %v12252_v9 }
 0x632   :  { %v5389_v30 = vsel %vm5384_vm3, %v5378_v46, %v6521_v54  ;;  %v4967_v16 = vld [vmem:[#allocation3 + $0xb0] ss:$2 sm:$0x1] }
 0x633   :  { %v12261_v29 = vpop.permute.xlu1 %6529  ;;  %v12263_v40 = vld [vmem:[#allocation3 + $0xa0] ss:$2 sm:$0xff]  ;;  %v5400_v35 = vsel %vm5395_vm2, %v5389_v30, %v6526_v37  ;;  %v5337_v17 = vrot.slane %v4967_v16, 1 }
 0x634   :  { %v6531_v24 = vunpack.i.l.bf16 %v12261_v29  ;;  %v5100_v4 = vrot.slane %v12263_v40, 3  ;;  %v5049_v2 = vrot.slane %v12263_v40, 2  ;;  %v5151_v38 = vrot.slane %v12263_v40, 4 }
 0x635   :  { %v4998_v1 = vrot.slane %v12263_v40, 1  ;;  %v5202_v42 = vrot.slane %v12263_v40, 5  ;;  %v5253_v27 = vrot.slane %v12263_v40, 6  ;;  %v5304_v60 = vrot.slane %v12263_v40, 7 }
 0x636   :  { %v5411_v6 = vsel %vm5406_vm12, %v5400_v35, %v6531_v24  ;;  %v5101_v55 = vsel %vm12915_vm7, %v5098_v5, %v5100_v4  ;;  %v5050_v28 = vsel %vm12917_vm15, %v5047_v20, %v5049_v2  ;;  %v5152_v14 = vsel %vm12918_vm11, %v5149_v49, %v5151_v38  ;;  %vm12923_vm7 = vmmov %vm12922_vm8  ;;  %v12337_v4 = vld [vmem:[%s12544_s6] ss:$0 sm:$0xff] }
 0x637   :  { %5560 = vmatmul.mubr.f32.gmra.mxu1 %v5411_v6  ;;  %v6568_v25 = vpack.i.bf16 %v5101_v55, %v5099_v10  ;;  %v6563_v53 = vpack.i.bf16 %v5050_v28, %v5048_v23  ;;  %v6573_v62 = vpack.i.bf16 %v5152_v14, %v5150_v41  ;;  %v4999_v43 = vsel %vm140_vm1, %v4996_v36, %v4998_v1  ;;  %vm12924_vm6 = vmmov %vm12923_vm7 }
 0x638   :  { %v5203_v31 = vsel %vm1087_vm4, %v5200_v33, %v5202_v42  ;;  %v5254_v22 = vsel %vm1324_vm5, %v5251_v11, %v5253_v27  ;;  %v5357_v36 = vsel %vm4474_vm0, %v5347_v12, %v6507_v56  ;;  %vm12920_vm4 = vcmask 1040384   ;;  %vm12925_vm15 = vmmov %vm12924_vm6 }
 0x639   :  { %6569 = vrot.lane.b32.xlu0 %v6568_v25, %s6646_s3  ;;  %6564 = vrot.lane.b32.xlu1 %v6563_v53, %s6644_s21  ;;  %v6578_v45 = vpack.i.bf16 %v5203_v31, %v5201_v0  ;;  %v6583_v15 = vpack.i.bf16 %v5254_v22, %v5252_v58  ;;  %v5368_v21 = vsel %vm5362_vm10, %v5357_v36, %v6512_v50  ;;  %v6532_v63 = vunpack.i.h.bf16 %v12261_v29  ;;  %vm12921_vm5 = vmmov %vm12920_vm4 }
 0x63a   :  { %v5303_v26 = vsel %vm12920_vm4, %v5300_v59, %v5302_v18  ;;  %v5338_v3 = vsel %vm140_vm1, %v4998_v1, %v5337_v17  ;;  %v5379_v34 = vsel %vm5373_vm14, %v5368_v21, %v6517_v48  ;;  %v5305_v61 = vsel %vm12921_vm5, %v5302_v18, %v5304_v60 }
 0x63b   :  { %v5390_v51 = vsel %vm5384_vm3, %v5379_v34, %v6522_v7 }
 0x63c   :  { %v5401_v8 = vsel %vm5395_vm2, %v5390_v51, %v6527_v19 }
 0x63d   :  { %6574 = vrot.lane.b32.xlu1 %v6573_v62, %s6647_s27  ;;  %5018 = vrot.lane.b32.xlu0 %v4999_v43, %s6640_s15  ;;  %v5412_v57 = vsel %vm5406_vm12, %v5401_v8, %v6532_v63 }
 0x641   :  { %6579 = vrot.lane.b32.xlu1 %v6578_v45, %s6648_s22  ;;  %6584 = vrot.lane.b32.xlu0 %v6583_v15, %s6649_s24 }
 0x645   :  { %5322 = vrot.lane.b32.xlu1 %v5303_v26, %s6650_s5  ;;  %5339 = vrot.lane.b32.xlu0 %v5338_v3, %s6640_s15  ;;  %s6651_s15 = smov [#allocation5]  }
 0x646   :  { %s5914_s6 = sshll.u32 %s6651_s15, 4  ;;  %s5915_s6 = int_to_ptr.vmem [resolvable:$true] %s5914_s6 }
 0x647   :  { %p6611_p1 = scmp.lt.s32.totalorder %s5915_s6, %s5915_s6 }
 0x648   :  { %v5013_v12 = vpop.permute.xlu0 %5012 }
 0x649   :  { %v5348_v59 = vsel %vm12922_vm8, %v12038_v52, %v5013_v12  ;;  %5324 = vrot.lane.b32.xlu1 %v5305_v61, %s6650_s5 }
 0x64a   :  { %6001 = vmatprep.mubr.msk.f32.mxu1 %vm4474_vm0, %v5348_v59 }
 0x64b   :  { %5565 = vmatmul.mubr.f32.gmra.mxu1 %v5412_v57 }
 0x667   :  { %v5541_v9 = vpop.f32.mrf.mxu1 }
 0x668   :  { %v5542_v38 = vadd.f32 %v12337_v4, %v5541_v9 }
 0x669   :  { %v5543_v13 = vpop.f32.mrf.mxu1 }
 0x66a   :  { %v5590_v53 = vmax.f32 %v5542_v38, 0.0 }
 0x66c   :  { %v5610_v33 = vrot.slane %v5590_v53, 1 }
 0x66f   :  { %v6535_v54 = vpop.permute.xlu1 %6534  ;;  %v6540_v46 = vpop.permute.xlu0 %6539 }
 0x670   :  { %v6536_v37 = vunpack.i.l.bf16 %v6535_v54  ;;  %v6541_v20 = vunpack.i.l.bf16 %v6540_v46  ;;  %v6537_v31 = vunpack.i.h.bf16 %v6535_v54  ;;  %v6542_v56 = vunpack.i.h.bf16 %v6540_v46 }
 0x672   :  { %v5358_v29 = vsel %vm4474_vm0, %v5348_v59, %v6536_v37 }
 0x673   :  { %v6545_v5 = vpop.permute.xlu1 %6544  ;;  %v5015_v30 = vpop.permute.xlu0 %5014  ;;  %v5369_v10 = vsel %vm5362_vm10, %v5358_v29, %v6541_v20 }
 0x674   :  { %v5349_v52 = vsel %vm12923_vm7, %v12114_v44, %v5015_v30  ;;  %v6546_v24 = vunpack.i.l.bf16 %v6545_v5  ;;  %v6547_v16 = vunpack.i.h.bf16 %v6545_v5 }
 0x675   :  { %6002 = vmatprep.mubr.msk.f32.mxu1 %vm4474_vm0, %v5349_v52  ;;  %v5359_v22 = vsel %vm4474_vm0, %v5349_v52, %v6537_v31 }
 0x676   :  { %v5380_v6 = vsel %vm5373_vm14, %v5369_v10, %v6546_v24  ;;  %v5370_v0 = vsel %vm5362_vm10, %v5359_v22, %v6542_v56  ;;  %v5697_v22 = vld [vmem:[%s12545_s7 + $0x78] sm:$0xff]  ;;  %v5696_v56 = vld [vmem:[%s12545_s7 + $0x70] sm:$0xff] }
 0x677   :  { %v6550_v2 = vpop.permute.xlu1 %6549  ;;  %v6555_v35 = vpop.permute.xlu0 %6554  ;;  %v5381_v45 = vsel %vm5373_vm14, %v5370_v0, %v6547_v16  ;;  %6346 = vmatpush3.msra.mxu1 %v5697_v22  ;;  %v5695_v16 = vld [vmem:[%s12545_s7 + $0x68] sm:$0xff]  ;;  %v5694_v0 = vld [vmem:[%s12545_s7 + $0x60] sm:$0xff] }
 0x678   :  { %v6551_v49 = vunpack.i.l.bf16 %v6550_v2  ;;  %v6556_v44 = vunpack.i.l.bf16 %v6555_v35  ;;  %v6552_v58 = vunpack.i.h.bf16 %v6550_v2  ;;  %v6557_v36 = vunpack.i.h.bf16 %v6555_v35  ;;  %6347 = vmatprep.subr.mxu1 %v6637_v47 }
 0x679   :  { %6348 = vmatpush3.msra.mxu1 %v5696_v56 }
 0x67a   :  { %v5391_v55 = vsel %vm5384_vm3, %v5380_v6, %v6551_v49  ;;  %v5392_v50 = vsel %vm5384_vm3, %v5381_v45, %v6552_v58  ;;  %6349 = vmatprep.subr.mxu1 %v6637_v47  ;;  %v5693_v58 = vld [vmem:[%s12545_s7 + $0x58] sm:$0xff]  ;;  %v5691_v45 = vld [vmem:[%s12545_s7 + $0x48] sm:$0xff] }
 0x67b   :  { %v6560_v23 = vpop.permute.xlu1 %6559  ;;  %v5402_v1 = vsel %vm5395_vm2, %v5391_v55, %v6556_v44  ;;  %v5403_v48 = vsel %vm5395_vm2, %v5392_v50, %v6557_v36  ;;  %6350 = vmatpush3.msra.mxu1 %v5695_v16  ;;  %v5692_v36 = vld [vmem:[%s12545_s7 + $0x50] sm:$0xff]  ;;  %v5689_v50 = vld [vmem:[%s12545_s7 + $0x38] sm:$0xff] }
 0x67c   :  { %v6561_v28 = vunpack.i.l.bf16 %v6560_v23  ;;  %v5546_v25 = vpop.f32.mrf.mxu1  ;;  %v6562_v15 = vunpack.i.h.bf16 %v6560_v23  ;;  %6351 = vmatprep.subr.mxu1 %v6637_v47 }
 0x67d   :  { %v5547_v14 = vadd.f32 %v12337_v4, %v5546_v25  ;;  %6352 = vmatpush3.msra.mxu1 %v5694_v0 }
 0x67e   :  { %v5548_v42 = vpop.f32.mrf.mxu1  ;;  %v5413_v27 = vsel %vm5406_vm12, %v5402_v1, %v6561_v28  ;;  %v5414_v21 = vsel %vm5406_vm12, %v5403_v48, %v6562_v15  ;;  %6353 = vmatprep.subr.mxu1 %v6637_v47  ;;  %v5690_v15 = vld [vmem:[%s12545_s7 + $0x40] sm:$0xff] }
 0x67f   :  { %v5591_v41 = vmax.f32 %v5547_v14, 0.0  ;;  %5570 = vmatmul.mubr.f32.gmra.mxu1 %v5413_v27  ;;  %v5686_v48 = vld [vmem:[%s12545_s7 + $0x20] sm:$0xff] }
 0x680   :  { %6354 = vmatpush3.msra.mxu1 %v5693_v58 }
 0x681   :  { %v5611_v11 = vrot.slane %v5591_v41, 1  ;;  %6355 = vmatprep.subr.mxu1 %v6637_v47 }
 0x682   :  { %6356 = vmatpush3.msra.mxu1 %v5692_v36 }
 0x683   :  { %v5612_v62 = vsel %vm140_vm1, %v5610_v33, %v5611_v11  ;;  %6357 = vmatprep.subr.mxu1 %v6637_v47 }
 0x684   :  { %v5639_v43 = vmax.f32 %v5590_v53, %v5612_v62  ;;  %6358 = vmatpush3.msra.mxu1 %v5691_v45 }
 0x685   :  { %6359 = vmatprep.subr.mxu1 %v6637_v47 }
 0x686   :  { %5649 = vst.msk [vmem:[#allocation4] sm:$0xff] %vm4474_vm0, %v5639_v43  ;;  %6360 = vmatpush3.msra.mxu1 %v5690_v15 }
 0x687   :  { %6361 = vmatprep.subr.mxu1 %v6637_v47 }
 0x688   :  { %6362 = vmatpush3.msra.mxu1 %v5689_v50 }
 0x689   :  { %6363 = vmatprep.subr.mxu1 %v6637_v47 }
 0x690   :  { %v5017_v18 = vpop.permute.xlu0 %5016 }
 0x691   :  { %v5350_v17 = vsel %vm12924_vm6, %v12151_v39, %v5017_v18  ;;  %v5688_v18 = vld [vmem:[%s12545_s7 + $0x30] sm:$0xff] }
 0x692   :  { %6003 = vmatprep.mubr.msk.f32.mxu1 %vm4474_vm0, %v5350_v17  ;;  %6364 = vmatpush3.msra.mxu1 %v5688_v18 }
 0x693   :  { %5575 = vmatmul.mubr.f32.gmra.mxu1 %v5414_v21  ;;  %6365 = vmatprep.subr.mxu1 %v6637_v47  ;;  %v5685_v21 = vld [vmem:[%s12545_s7 + $0x18] sm:$0xff] }
 0x6ab   :  { %v6565_v7 = vpop.permute.xlu1 %6564  ;;  %v6570_v26 = vpop.permute.xlu0 %6569 }
 0x6ac   :  { %v6566_v3 = vunpack.i.l.bf16 %v6565_v7  ;;  %v6571_v60 = vunpack.i.l.bf16 %v6570_v26  ;;  %v6567_v63 = vunpack.i.h.bf16 %v6565_v7  ;;  %v6572_v8 = vunpack.i.h.bf16 %v6570_v26  ;;  %v5684_v7 = vld [vmem:[%s12545_s7 + $0x10] sm:$0xff] }
 0x6ae   :  { %v5360_v51 = vsel %vm4474_vm0, %v5350_v17, %v6566_v3  ;;  %v5687_v17 = vld [vmem:[%s12545_s7 + $0x28] sm:$0xff] }
 0x6af   :  { %v5551_v19 = vpop.f32.mrf.mxu1  ;;  %v6575_v34 = vpop.permute.xlu1 %6574  ;;  %v5371_v9 = vsel %vm5362_vm10, %v5360_v51, %v6571_v60  ;;  %6366 = vmatpush3.msra.mxu1 %v5687_v17 }
 0x6b0   :  { %v5019_v12 = vpop.permute.xlu0 %5018  ;;  %v6576_v61 = vunpack.i.l.bf16 %v6575_v34  ;;  %v6577_v13 = vunpack.i.h.bf16 %v6575_v34  ;;  %6367 = vmatprep.subr.mxu1 %v6637_v47 }
 0x6b1   :  { %v5351_v39 = vsel %vm12925_vm15, %v12228_v32, %v5019_v12  ;;  %v5553_v59 = vpop.f32.mrf.mxu1  ;;  %6368 = vmatpush3.msra.mxu1 %v5686_v48 }
 0x6b2   :  { %v5361_v57 = vsel %vm4474_vm0, %v5351_v39, %v6567_v63  ;;  %6004 = vmatprep.mubr.msk.f32.mxu1 %vm4474_vm0, %v5351_v39  ;;  %v5382_v20 = vsel %vm5373_vm14, %v5371_v9, %v6576_v61  ;;  %6369 = vmatprep.subr.mxu1 %v6637_v47 }
 0x6b3   :  { %v6580_v54 = vpop.permute.xlu1 %6579  ;;  %v5372_v46 = vsel %vm5362_vm10, %v5361_v57, %v6572_v8  ;;  %vm12926_vm10 = vmmov %vm12924_vm6  ;;  %6370 = vmatpush3.msra.mxu1 %v5685_v21 }
 0x6b4   :  { %v6582_v37 = vunpack.i.h.bf16 %v6580_v54  ;;  %v6581_v5 = vunpack.i.l.bf16 %v6580_v54  ;;  %v6585_v30 = vpop.permute.xlu0 %6584  ;;  %v5383_v35 = vsel %vm5373_vm14, %v5372_v46, %v6577_v13  ;;  %6371 = vmatprep.subr.mxu1 %v6637_v47 }
 0x6b5   :  { %v6586_v52 = vunpack.i.l.bf16 %v6585_v30  ;;  %v6587_v29 = vunpack.i.h.bf16 %v6585_v30  ;;  %6372 = vmatpush3.msra.mxu1 %v5684_v7  ;;  %v5682_v30 = vld [vmem:[%s12545_s7] sm:$0xff] }
 0x6b6   :  { %v5393_v32 = vsel %vm5384_vm3, %v5382_v20, %v6581_v5  ;;  %v5394_v38 = vsel %vm5384_vm3, %v5383_v35, %v6582_v37  ;;  %6373 = vmatprep.subr.mxu1 %v6637_v47  ;;  %v5683_v5 = vld [vmem:[%s12545_s7 + $0x8] sm:$0xff] }
 0x6b7   :  { %v5323_v24 = vpop.permute.xlu1 %5322  ;;  %v5404_v2 = vsel %vm5395_vm2, %v5393_v32, %v6586_v52  ;;  %v5405_v55 = vsel %vm5395_vm2, %v5394_v38, %v6587_v29  ;;  %6374 = vmatpush3.msra.mxu1 %v5683_v5 }
 0x6b8   :  { %v5340_v10 = vpop.permute.xlu0 %5339  ;;  %v5415_v49 = vsel %vm5406_vm12, %v5404_v2, %v5323_v24  ;;  %6375 = vmatprep.subr.mxu1 %v6637_v47 }
 0x6b9   :  { %v5417_v6 = vsel %vm12926_vm10, %v12263_v40, %v5340_v10  ;;  %5580 = vmatmul.mubr.f32.gmra.mxu1 %v5415_v49 }
 0x6ba   :  { %6005 = vmatprep.mubr.msk.f32.mxu1 %vm4474_vm0, %v5417_v6  ;;  %6376 = vmatpush3.msra.mxu1 %v5682_v30 }
 0x6bb   :  { %v5325_v44 = vpop.permute.xlu1 %5324  ;;  %6380 = vmatprep.subr.mxu1 %v6637_v47 }
 0x6bc   :  { %v5416_v23 = vsel %vm5406_vm12, %v5405_v55, %v5325_v44  ;;  %v5829_v44 = vld [vmem:[%s12549_s11 + $0x78] sm:$0xff]  ;;  %v5828_v55 = vld [vmem:[%s12549_s11 + $0x70] sm:$0xff] }
 0x6bd   :  { %5585 = vmatmul.mubr.f32.gmra.mxu1 %v5416_v23  ;;  %v5827_v23 = vld [vmem:[%s12549_s11 + $0x68] sm:$0xff] }
 0x6be   :  { %6377 = vmatprep.mubr.msk.f32.mxu1 %vm12792_vm13, %v6637_v47 }
 0x6c4   :  { %v5556_v28 = vpop.f32.mrf.mxu1 }
 0x6c5   :  { %v5557_v25 = vadd.f32 %v12337_v4, %v5556_v28  ;;  %v5826_v28 = vld [vmem:[%s12549_s11 + $0x60] sm:$0xff] }
 0x6c6   :  { %v5558_v53 = vpop.f32.mrf.mxu1 }
 0x6c7   :  { %v5593_v14 = vmax.f32 %v5557_v25, 0.0  ;;  %v5825_v25 = vld [vmem:[%s12549_s11 + $0x58] sm:$0xff]  ;;  %v5824_v53 = vld [vmem:[%s12549_s11 + $0x50] sm:$0xff] }
 0x6c9   :  { %v5615_v1 = vrot.slane %v5593_v14, 1 }
 0x6f7   :  { %v5561_v42 = vpop.f32.mrf.mxu1 }
 0x6f8   :  { %v5562_v40 = vadd.f32 %v12337_v4, %v5561_v42  ;;  %v5821_v42 = vld [vmem:[%s12549_s11 + $0x38] sm:$0xff] }
 0x6f9   :  { %v5563_v27 = vpop.f32.mrf.mxu1 }
 0x6fa   :  { %v5594_v41 = vmax.f32 %v5562_v40, 0.0  ;;  %v5820_v40 = vld [vmem:[%s12549_s11 + $0x30] sm:$0xff]  ;;  %v5819_v27 = vld [vmem:[%s12549_s11 + $0x28] sm:$0xff] }
 0x6fc   :  { %v5617_v33 = vrot.slane %v5594_v41, 1  ;;  %v5818_v41 = vld [vmem:[%s12549_s11 + $0x20] sm:$0xff] }
 0x6fe   :  { %v5618_v11 = vsel %vm140_vm1, %v5615_v1, %v5617_v33  ;;  %v5822_v1 = vld [vmem:[%s12549_s11 + $0x40] sm:$0xff]  ;;  %v5817_v33 = vld [vmem:[%s12549_s11 + $0x18] sm:$0xff] }
 0x6ff   :  { %v5642_v62 = vmax.f32 %v5593_v14, %v5618_v11  ;;  %v5823_v14 = vld [vmem:[%s12549_s11 + $0x48] sm:$0xff]  ;;  %v5816_v11 = vld [vmem:[%s12549_s11 + $0x10] sm:$0xff] }
 0x701   :  { %5652 = vst.msk [vmem:[#allocation4 + $0x18] sm:$0xff] %vm4474_vm0, %v5642_v62  ;;  %v5815_v62 = vld [vmem:[%s12549_s11 + $0x8] sm:$0xff] }
 0x70b   :  { %v5566_v43 = vpop.f32.mrf.mxu1 }
 0x70c   :  { %v5814_v43 = vld [vmem:[%s12549_s11] sm:$0xff] }
 0x70d   :  { %v5568_v31 = vpop.f32.mrf.mxu1 }
 0x70e   :  { %v6006_v31 = vld [vmem:[%s12546_s8] ss:$0 sm:$0xff] }
 0x73f   :  { %v5571_v26 = vpop.f32.mrf.mxu1 }
 0x740   :  { %v5572_v3 = vadd.f32 %v12337_v4, %v5571_v26 }
 0x741   :  { %v5573_v60 = vpop.f32.mrf.mxu1 }
 0x742   :  { %v5596_v19 = vmax.f32 %v5572_v3, 0.0 }
 0x744   :  { %v5621_v34 = vrot.slane %v5596_v19, 1 }
 0x753   :  { %v5576_v63 = vpop.f32.mrf.mxu1 }
 0x754   :  { %v5577_v51 = vadd.f32 %v12337_v4, %v5576_v63 }
 0x755   :  { %v5578_v12 = vpop.f32.mrf.mxu1 }
 0x756   :  { %v5597_v61 = vmax.f32 %v5577_v51, 0.0 }
 0x758   :  { %v5623_v39 = vrot.slane %v5597_v61, 1 }
 0x75a   :  { %v5624_v59 = vsel %vm140_vm1, %v5621_v34, %v5623_v39  ;;  %vm5658_vm1 = vcmask 260096   ;;  %v6007_v39 = vld [vmem:[%s12547_s9] ss:$0 sm:$0xff]  ;;  %s6606_s9 = scalar_lea.vmem %s5915_s6, 64 }
 0x75b   :  { %v5645_v8 = vmax.f32 %v5596_v19, %v5624_v59  ;;  %p6607_p0 = scmp.ne.s32.totalorder %s5915_s6, %s6606_s9  ;;  %p6612_p2 = scmp.lt.s32.totalorder %s6606_s9, %s6606_s9 }
 0x75d   :  { %5655 = vst.msk [vmem:[#allocation4 + $0x30] sm:$0xff] %vm4474_vm0, %v5645_v8  ;;  %v6008_v8 = vld [vmem:[%s12548_s10] ss:$0 sm:$0xff]  ;;  %p6613_p3 = por %p6612_p2, %p6611_p1 }
 0x75f   :  { %p6614_p4 = pnand %p6613_p3, %p6607_p0 }
 0x779   :  { %v5581_v57 = vpop.f32.mrf.mxu1 }
 0x77b   :  { %v5583_v9 = vpop.f32.mrf.mxu1 }
 0x77d   :  { %v5586_v13 = vpop.f32.mrf.mxu1 }
 0x77e   :  { %v5587_v54 = vadd.f32 %v12337_v4, %v5586_v13  ;;  %v6009_v13 = vld [vmem:[%s12550_s12] ss:$0 sm:$0xff] }
 0x77f   :  { %v5588_v46 = vpop.f32.mrf.mxu1 }
 0x780   :  { %v5599_v37 = vmax.f32 %v5587_v54, 0.0 }
 0x782   :  { %v5627_v20 = vrot.slane %v5599_v37, 1 }
 0x784   :  { %v5648_v52 = vmax.f32 %v5599_v37, %v5627_v20 }
 0x786   :  { %5659 = vst.msk [vmem:[#allocation4 + $0x48] sm:$0x7f] %vm5658_vm1, %v5648_v52 }
 0x78d   :  { %v5664_v4 = vld [vmem:[#allocation4 + $0x4] ss:$24 sm:$0xf]  ;;  %v5662_v32 = vld [vmem:[#allocation4 + $0x2] ss:$24 sm:$0xf] }
 0x78e   :  { %5672 = vrot.lane.b32.xlu1 %v5664_v4, %s6647_s27  ;;  %5668 = vrot.lane.b32.xlu0 %v5662_v32, %s6644_s21  ;;  %v5666_v29 = vld [vmem:[#allocation4 + $0x6] ss:$24 sm:$0xf]  ;;  %v5660_v2 = vld [vmem:[#allocation4] ss:$24 sm:$0xf] }
 0x792   :  { %5676 = vrot.lane.b32.xlu0 %v5666_v29, %s6649_s24 }
 0x800   :  { %v5669_v24 = vpop.permute.xlu0 %5668  ;;  %v5673_v35 = vpop.permute.xlu1 %5672 }
 0x801   :  { %v5679_v10 = vsel %vm4474_vm0, %v5660_v2, %v5669_v24  ;;  %vm12927_vm0 = vmmov %vm12919_vm9 }
 0x802   :  { %v5680_v38 = vsel %vm5373_vm14, %v5679_v10, %v5673_v35 }
 0x804   :  { %v5677_v49 = vpop.permute.xlu0 %5676 }
 0x805   :  { %v5681_v6 = vsel %vm5395_vm2, %v5680_v38, %v5677_v49 }
 0x806   :  { %6378 = vmatmul.mubr.f32.vlgmr.msra.gmra.mxu1 %v5681_v6 }
 0x807   :  { %6412 = vmatprep.mubr.msk.f32.mxu1 %vm12792_vm13, %v6637_v47  ;;  %6381 = vmatpush3.msra.mxu1 %v5829_v44  ;;  %vm12928_vm13 = vmmov %vm12927_vm0 }
 0x808   :  { %6382 = vmatprep.subr.mxu1 %v6637_v47 }
 0x809   :  { %6383 = vmatpush3.msra.mxu1 %v5828_v55 }
 0x80a   :  { %6384 = vmatprep.subr.mxu1 %v6637_v47 }
 0x80b   :  { %6385 = vmatpush3.msra.mxu1 %v5827_v23 }
 0x80c   :  { %6386 = vmatprep.subr.mxu1 %v6637_v47 }
 0x80d   :  { %6387 = vmatpush3.msra.mxu1 %v5826_v28 }
 0x80e   :  { %6388 = vmatprep.subr.mxu1 %v6637_v47 }
 0x80f   :  { %6389 = vmatpush3.msra.mxu1 %v5825_v25 }
 0x810   :  { %6390 = vmatprep.subr.mxu1 %v6637_v47 }
 0x811   :  { %6391 = vmatpush3.msra.mxu1 %v5824_v53 }
 0x812   :  { %6392 = vmatprep.subr.mxu1 %v6637_v47 }
 0x813   :  { %6393 = vmatpush3.msra.mxu1 %v5823_v14 }
 0x814   :  { %6394 = vmatprep.subr.mxu1 %v6637_v47 }
 0x815   :  { %6395 = vmatpush3.msra.mxu1 %v5822_v1 }
 0x816   :  { %6396 = vmatprep.subr.mxu1 %v6637_v47 }
 0x817   :  { %6397 = vmatpush3.msra.mxu1 %v5821_v42 }
 0x818   :  { %6398 = vmatprep.subr.mxu1 %v6637_v47 }
 0x819   :  { %6399 = vmatpush3.msra.mxu1 %v5820_v40 }
 0x81a   :  { %6400 = vmatprep.subr.mxu1 %v6637_v47 }
 0x81b   :  { %6401 = vmatpush3.msra.mxu1 %v5819_v27 }
 0x81c   :  { %6402 = vmatprep.subr.mxu1 %v6637_v47 }
 0x81d   :  { %6403 = vmatpush3.msra.mxu1 %v5818_v41 }
 0x81e   :  { %6404 = vmatprep.subr.mxu1 %v6637_v47 }
 0x81f   :  { %6405 = vmatpush3.msra.mxu1 %v5817_v33 }
 0x820   :  { %6406 = vmatprep.subr.mxu1 %v6637_v47 }
 0x821   :  { %6407 = vmatpush3.msra.mxu1 %v5816_v11 }
 0x822   :  { %6408 = vmatprep.subr.mxu1 %v6637_v47 }
 0x823   :  { %6409 = vmatpush3.msra.mxu1 %v5815_v62 }
 0x824   :  { %6410 = vmatprep.subr.mxu1 %v6637_v47 }
 0x825   :  { %6411 = vmatpush3.msra.mxu1 %v5814_v43 }
 0x8c6   :  { %v5771_v22 = vpop.f32.mrf.mxu1 }
 0x8c7   :  { %v5772_v56 = vadd.f32 %v6006_v31, %v5771_v22 }
 0x8c8   :  { %v6379_v16 = vpop.f32.mrf.mxu1 }
 0x8c9   :  { %v5775_v0 = vmax.f32 %v5772_v56, 0.0 }
 0x8cb   :  { %v5776_v58 = vsel %vm12927_vm0, %v5775_v0, 0.0 }
 0x8cc   :  { %v5777_v36 = vrot.slane %v5776_v58, 4 }
 0x8ce   :  { %v5778_v45 = vadd.f32 %v5777_v36, %v5776_v58 }
 0x8d0   :  { %v5779_v15 = vrot.slane %v5778_v45, 2 }
 0x8d2   :  { %v5780_v50 = vadd.f32 %v5779_v15, %v5778_v45 }
 0x8d4   :  { %v5781_v18 = vrot.slane %v5780_v50, 1 }
 0x8d6   :  { %v5782_v17 = vadd.f32 %v5781_v18, %v5780_v50 }
 0x8d8   :  { %v5784_v48 = vmul.f32 0.25, %v5782_v17 }
 0x8da   :  { %v5785_v21 = vsub.f32 %v5775_v0, %v5784_v48 }
 0x8dc   :  { %v5786_v47 = vmul.f32 %v5785_v21, %v5785_v21 }
 0x8de   :  { %v5787_v7 = vsel %vm12928_vm13, %v5786_v47, 0.0 }
 0x8df   :  { %v5788_v26 = vrot.slane %v5787_v7, 4 }
 0x8e1   :  { %v5789_v3 = vadd.f32 %v5788_v26, %v5787_v7 }
 0x8e3   :  { %v5790_v60 = vrot.slane %v5789_v3, 2 }
 0x8e5   :  { %v5791_v19 = vadd.f32 %v5790_v60, %v5789_v3 }
 0x8e7   :  { %v5792_v34 = vrot.slane %v5791_v19, 1 }
 0x8e9   :  { %v5793_v63 = vadd.f32 %v5792_v34, %v5791_v19 }
 0x8eb   :  { %v5794_v51 = vmul.f32 0.25, %v5793_v63 }
 0x8ed   :  { %v5795_v12 = vadd.f32 1e-05, %v5794_v51 }
 0x8ef   :  { %6588 = vrsqrt.f32 %v5795_v12 }
 0x8fc   :  { %v6589_v61 = vpop.eup %6588 }
 0x8fd   :  { %v5797_v59 = vmul.f32 %v6589_v61, %v5785_v21 }
 0x8ff   :  { %v5805_v57 = vmul.f32 %v6007_v39, %v5797_v59 }
 0x901   :  { %v5813_v9 = vadd.f32 %v6008_v8, %v5805_v57 }
 0x903   :  { %6413 = vmatmul.mubr.f32.vlgmr.msra.gmra.mxu1 %v5813_v9 }
 0x9c3   :  { %v5903_v54 = vpop.f32.mrf.mxu1 }
 0x9c4   :  { %v5904_v46 = vadd.f32 %v6009_v13, %v5903_v54 }
 0x9c5   :  { %v6414_v37 = vpop.f32.mrf.mxu1 }
 0x9c6   :  { %5907 = vst [vmem:[#allocation5] sm:$0xf] %v5904_v46 }
 0x9c7   :  { %6617 = shalt.err (!%p6614_p4)
}
 0x9c8   :  { %5917 = dma.vmem_to_hbm [thread:$0]  %s5915_s6, 64, %s12551_s13, [#allocation6]  }
 0x9c9   :  { %6626 = dma.done.wait [#allocation6], 64  }
 0x9ca   :  { %6627 = vsyncadd [#allocation6], 4294967232 }
 0x9cb   :  { %5921 = vsyncpa [#allocation6], 1 }

</bundles_post_ra>
